<compile_context>
chip_gen: v7x
topology: tpu7x:2x2x1
jax: 0.10.0
libtpu: 0.0.40
codegen_flags: <defaults>
</compile_context>

<pallas_src>
import functools

import jax
import jax.numpy as jnp
from jax import lax
from jax.experimental import pallas as pl
from jax.experimental.pallas import tpu as pltpu

NEG_INF = -1000000000.0  # matches the PyTorch -1e9 fill value


def _mha_kernel(x_ref, wq_ref, wk_ref, wv_ref, wr_ref, br_ref, er_ref,
                mask_ref, o_ref, *, heads, tq, nq, scale):
    # x_ref:    (1, T, E)  full-sequence input for this batch row
    # w{q,k,v}: (S, S)     pre-transposed (in, out), bf16
    # wr_ref:   (E, E)     pre-transposed recombine weight, bf16
    # br_ref:   (1, E)     recombine bias, f32
    # er_ref:   (H, T, S)  Er[:, max_length - T :, :], bf16 (NOT reversed)
    # mask_ref: (1, TQ, 1) padding mask for this query tile (1 keep, 0 masked)
    # o_ref:    (1, TQ, E) final output tile (recombine already applied)
    t = x_ref.shape[1]
    s = wq_ref.shape[0]

    x_kv = x_ref[0].astype(jnp.bfloat16)                       # (T, E)
    if nq == 1:
        q0 = 0                                                 # static
        x_q = x_kv                                             # (TQ=T, E)
    else:
        q0 = pl.multiple_of(pl.program_id(1) * tq, tq)
        x_q = x_ref[0, pl.ds(q0, tq), :].astype(jnp.bfloat16)  # (TQ, E)

    m = mask_ref[0].astype(jnp.float32)                        # (TQ, 1)
    rows = lax.broadcasted_iota(jnp.int32, (tq, t), 0) + q0    # global q index
    cols = lax.broadcasted_iota(jnp.int32, (tq, t), 1)
    causal = cols > rows

    head_outs = []
    for hh in range(heads):
        xq_h = x_q[:, hh * s:(hh + 1) * s]                     # (TQ, S) bf16
        xkv_h = x_kv[:, hh * s:(hh + 1) * s]                   # (T, S)  bf16

        q = jnp.dot(xq_h, wq_ref[...], preferred_element_type=jnp.float32)
        k = jnp.dot(xkv_h, wk_ref[...], preferred_element_type=jnp.float32)
        v = jnp.dot(xkv_h, wv_ref[...], preferred_element_type=jnp.float32)
        qb = q.astype(jnp.bfloat16)
        kb = k.astype(jnp.bfloat16)
        vb = v.astype(jnp.bfloat16)

        # Relative position term.  a[i, c] = q_i . Er[max_length - T + c].
        er_h = er_ref[hh]                                      # (T, S) bf16
        a = lax.dot_general(qb, er_h, (((1,), (1,)), ((), ())),
                            preferred_element_type=jnp.float32)  # (TQ, T)
        # Skew (PyTorch _mask_positions + _skew): SRel[i, j] = a[i, (j-i-1) mod T]
        # for j <= i; entries j > i are overridden by the causal mask below.
        # Implemented as a strided roll: local row r is rolled by (q0 + 1 + r).
        srel = pltpu.roll(a, q0 + 1, axis=1, stride=1, stride_axis=0)

        scores = lax.dot_general(qb, kb, (((1,), (1,)), ((), ())),
                                 preferred_element_type=jnp.float32)  # (TQ, T)
        scores = scores * scale + srel
        scores = jnp.where(causal, NEG_INF, scores)            # subsequent mask
        scores = jnp.where(m == 0.0, NEG_INF, scores)          # padded q rows

        smax = jnp.max(scores, axis=-1, keepdims=True)
        p = jnp.exp(scores - smax)
        p = p * pl.reciprocal(jnp.sum(p, axis=-1, keepdims=True), approx=True)

        head_outs.append(jnp.dot(p.astype(jnp.bfloat16), vb,
                                 preferred_element_type=jnp.float32))  # (TQ, S)

    attn_out = jnp.concatenate(head_outs, axis=1).astype(jnp.bfloat16)  # (TQ, E)
    y = jnp.dot(attn_out, wr_ref[...], preferred_element_type=jnp.float32)
    y = y + br_ref[...].astype(jnp.float32)
    o_ref[0] = y.astype(o_ref.dtype)


def multiheaded_attention(x, mask, params, *, heads, max_length=1024):
    b, t, e = x.shape
    h = heads
    s = e // h

    # Query-tile size: keep (TQ, T) temporaries bounded for large T.
    tq = t
    for cand in (512, 256, 128):
        if t > cand and t % cand == 0:
            tq = cand
            break
    nq = t // tq

    # Parameter prep (once per call, tiny): pre-transpose weights to (in, out),
    # slice Er (no flip needed), cast matmul operands to bf16.
    wq_t = params["wq"].T.astype(jnp.bfloat16)                 # (s, s)
    wk_t = params["wk"].T.astype(jnp.bfloat16)
    wv_t = params["wv"].T.astype(jnp.bfloat16)
    wr_t = params["wr"].T.astype(jnp.bfloat16)                 # (e, e)
    br = params["br"].reshape(1, e).astype(jnp.float32)
    er = params["er"][:, max_length - t:, :].astype(jnp.bfloat16)   # (h, t, s)
    mask3 = mask.reshape(b, t, 1).astype(jnp.float32)
    scale = 1.0 / float(e) ** 0.5

    kernel = functools.partial(_mha_kernel, heads=h, tq=tq, nq=nq, scale=scale)
    return pl.pallas_call(
        kernel,
        out_shape=jax.ShapeDtypeStruct((b, t, e), jnp.float32),
        grid_spec=pltpu.PrefetchScalarGridSpec(
            num_scalar_prefetch=0,
            grid=(b, nq),
            in_specs=[
                pl.BlockSpec((1, t, e), lambda bi, qi: (bi, 0, 0)),     # x
                pl.BlockSpec((s, s), lambda bi, qi: (0, 0)),            # wq^T
                pl.BlockSpec((s, s), lambda bi, qi: (0, 0)),            # wk^T
                pl.BlockSpec((s, s), lambda bi, qi: (0, 0)),            # wv^T
                pl.BlockSpec((e, e), lambda bi, qi: (0, 0)),            # wr^T
                pl.BlockSpec((1, e), lambda bi, qi: (0, 0)),            # br
                pl.BlockSpec((h, t, s), lambda bi, qi: (0, 0, 0)),      # Er
                pl.BlockSpec((1, tq, 1), lambda bi, qi: (bi, qi, 0)),   # mask
            ],
            out_specs=pl.BlockSpec((1, tq, e), lambda bi, qi: (bi, qi, 0)),
        ),
        compiler_params=pltpu.CompilerParams(
            dimension_semantics=("parallel", "parallel"),
            vmem_limit_bytes=32 * 1024 * 1024,
        ),
    )(x, wq_t, wk_t, wv_t, wr_t, br, er, mask3)


def reference_forward(x, mask, params, *, heads, max_length=1024):
    """Pure-JAX (f32) mirror of the PyTorch forward (eval mode)."""
    b, t, e = x.shape
    h = heads
    s = e // h
    x4 = x.reshape(b, t, h, s)

    def lin(a, w):
        return jnp.einsum("bthi,oi->btho", a, w)

    q = jnp.transpose(lin(x4, params["wq"]), (0, 2, 1, 3))     # (b, h, t, s)
    k = jnp.transpose(lin(x4, params["wk"]), (0, 2, 1, 3))
    v = jnp.transpose(lin(x4, params["wv"]), (0, 2, 1, 3))

    er_t = params["er"][:, max_length - t:, :]                 # (h, t, s)
    qe = jnp.einsum("bhts,hus->bhtu", q, er_t)                 # (b, h, t, t)
    mpos = jnp.flip(jnp.triu(jnp.ones((t, t)), 1), axis=1)
    qe = jnp.where(mpos == 1, 0.0, qe)
    padded = jnp.pad(qe, ((0, 0), (0, 0), (0, 0), (1, 0)))
    srel = padded.reshape(b, h, t + 1, t)[:, :, 1:, :].reshape(b * h, t, t)

    q = q.reshape(b * h, t, s) / e ** 0.25
    k = k.reshape(b * h, t, s) / e ** 0.25
    v = v.reshape(b * h, t, s)
    scores = jnp.einsum("bts,bus->btu", q, k) + srel
    causal = jnp.triu(jnp.ones((t, t)), 1)
    scores = jnp.where(causal == 1, NEG_INF, scores)
    mrep = jnp.repeat(mask, h, axis=0)                         # (b*h, t)
    scores = jnp.where(mrep[:, :, None] == 0, NEG_INF, scores)
    attn = jax.nn.softmax(scores, axis=2)
    out = jnp.einsum("btu,bus->bts", attn, v).reshape(b, h, t, s)
    out = jnp.transpose(out, (0, 2, 1, 3)).reshape(b, t, e)
    return out @ params["wr"].T + params["br"]


def init_params(key, d_model, heads, max_length=1024):
    s = d_model // heads
    ks = jax.random.split(key, 6)
    return {
        "wq": jax.random.normal(ks[0], (s, s), jnp.float32) / jnp.sqrt(s),
        "wk": jax.random.normal(ks[1], (s, s), jnp.float32) / jnp.sqrt(s),
        "wv": jax.random.normal(ks[2], (s, s), jnp.float32) / jnp.sqrt(s),
        "wr": jax.random.normal(ks[3], (d_model, d_model), jnp.float32) / jnp.sqrt(d_model),
        "br": jax.random.normal(ks[4], (d_model,), jnp.float32) * 0.01,
        "er": jax.random.normal(ks[5], (heads, max_length, s), jnp.float32) / jnp.sqrt(s),
    }


if __name__ == "__main__":
    # TPU-friendly small config: t and d_model aligned to 128 lanes,
    # heads=8 -> per-head dim s=16, E = H*S = 128 (lane-dense output).
    b, t, heads, d_model = 2, 128, 8, 128
    key = jax.random.PRNGKey(0)
    kp, kx = jax.random.split(key)
    params = init_params(kp, d_model, heads)
    x = jax.random.normal(kx, (b, t, d_model), jnp.float32)
    mask = jnp.ones((b, t), jnp.float32).at[1, -16:].set(0.0)

    out = multiheaded_attention(x, mask, params, heads=heads)
    out = jax.block_until_ready(out)

    with jax.default_matmul_precision("highest"):
        ref = reference_forward(x, mask, params, heads=heads)
    ref = jax.block_until_ready(ref)

    # Kernel uses bf16 MXU operands (f32 accumulation); tolerance sized for
    # bf16 rounding, still far tighter than any structural error would produce.
    if not bool(jnp.allclose(out, ref, atol=1e-1, rtol=1e-1)):
        raise AssertionError(
            f"mismatch: max abs err = {float(jnp.max(jnp.abs(out - ref)))}")
    print("KERNEL_OK")
</pallas_src>

<mosaic_0001>
module attributes {stable_mosaic.version = 11 : i64} {
  func.func @_mha_kernel(%arg0: i32, %arg1: i32, %arg2: memref<1x128x128xf32, #tpu.memory_space<vmem>>, %arg3: memref<16x16xbf16, #tpu.memory_space<vmem>>, %arg4: memref<16x16xbf16, #tpu.memory_space<vmem>>, %arg5: memref<16x16xbf16, #tpu.memory_space<vmem>>, %arg6: memref<128x128xbf16, #tpu.memory_space<vmem>>, %arg7: memref<1x128xf32, #tpu.memory_space<vmem>>, %arg8: memref<8x128x16xbf16, #tpu.memory_space<vmem>>, %arg9: memref<1x128x1xf32, #tpu.memory_space<vmem>>, %arg10: memref<1x128x128xf32, #tpu.memory_space<vmem>>) attributes {dimension_semantics = [#tpu.dimension_semantics<parallel>, #tpu.dimension_semantics<parallel>], iteration_bounds = array<i64: 2, 1>, scalar_prefetch = 0 : i64, scratch_operands = 0 : i64, tpu.core_type = #tpu.core_type<tc>, window_params = [{transform_indices = @transform_0, window_bounds = array<i64: 1, 128, 128>}, {pipeline_mode = #tpu.pipeline_mode<synchronous>, transform_indices = @transform_1, window_bounds = array<i64: 16, 16>}, {pipeline_mode = #tpu.pipeline_mode<synchronous>, transform_indices = @transform_2, window_bounds = array<i64: 16, 16>}, {pipeline_mode = #tpu.pipeline_mode<synchronous>, transform_indices = @transform_3, window_bounds = array<i64: 16, 16>}, {pipeline_mode = #tpu.pipeline_mode<synchronous>, transform_indices = @transform_4, window_bounds = array<i64: 128, 128>}, {pipeline_mode = #tpu.pipeline_mode<synchronous>, transform_indices = @transform_5, window_bounds = array<i64: 1, 128>}, {pipeline_mode = #tpu.pipeline_mode<synchronous>, transform_indices = @transform_6, window_bounds = array<i64: 8, 128, 16>}, {transform_indices = @transform_7, window_bounds = array<i64: 1, 128, 1>}, {transform_indices = @transform_8, window_bounds = array<i64: 1, 128, 128>}]} {
    %c0 = arith.constant 0 : index
    %c0_0 = arith.constant 0 : index
    %c0_1 = arith.constant 0 : index
    %0 = vector.load %arg2[%c0, %c0_0, %c0_1] : memref<1x128x128xf32, #tpu.memory_space<vmem>>, vector<1x128x128xf32>
    %1 = vector.shape_cast %0 : vector<1x128x128xf32> to vector<128x128xf32>
    %2 = arith.truncf %1 : vector<128x128xf32> to vector<128x128xbf16>
    %c0_2 = arith.constant 0 : index
    %c0_3 = arith.constant 0 : index
    %c0_4 = arith.constant 0 : index
    %3 = vector.load %arg9[%c0_2, %c0_3, %c0_4] : memref<1x128x1xf32, #tpu.memory_space<vmem>>, vector<1x128x1xf32>
    %4 = vector.shape_cast %3 : vector<1x128x1xf32> to vector<128x1xf32>
    %5 = tpu.iota {dimensions = array<i32: 0>} : vector<128x128xi32>
    %c0_i32 = arith.constant 0 : i32
    %6 = vector.broadcast %c0_i32 : i32 to vector<128x128xi32>
    %7 = arith.addi %5, %6 : vector<128x128xi32>
    %8 = tpu.iota {dimensions = array<i32: 1>} : vector<128x128xi32>
    %9 = arith.cmpi sgt, %8, %7 : vector<128x128xi32>
    %10 = vector.extract_strided_slice %2 {offsets = [0, 0], sizes = [128, 16], strides = [1, 1]} : vector<128x128xbf16> to vector<128x16xbf16>
    %11 = vector.extract_strided_slice %2 {offsets = [0, 0], sizes = [128, 16], strides = [1, 1]} : vector<128x128xbf16> to vector<128x16xbf16>
    %c0_5 = arith.constant 0 : index
    %c0_6 = arith.constant 0 : index
    %12 = vector.load %arg3[%c0_5, %c0_6] : memref<16x16xbf16, #tpu.memory_space<vmem>>, vector<16x16xbf16>
    %cst = arith.constant dense<0.000000e+00> : vector<128x16xf32>
    %13 = tpu.matmul %10, %12, %cst {dimension_numbers = #tpu.dot_dimension_numbers<[1], [0], [0], [1], [0, 0, 1, 1], [], []>} : vector<128x16xbf16>, vector<16x16xbf16>, vector<128x16xf32> -> vector<128x16xf32>
    %c0_7 = arith.constant 0 : index
    %c0_8 = arith.constant 0 : index
    %14 = vector.load %arg4[%c0_7, %c0_8] : memref<16x16xbf16, #tpu.memory_space<vmem>>, vector<16x16xbf16>
    %cst_9 = arith.constant dense<0.000000e+00> : vector<128x16xf32>
    %15 = tpu.matmul %11, %14, %cst_9 {dimension_numbers = #tpu.dot_dimension_numbers<[1], [0], [0], [1], [0, 0, 1, 1], [], []>} : vector<128x16xbf16>, vector<16x16xbf16>, vector<128x16xf32> -> vector<128x16xf32>
    %c0_10 = arith.constant 0 : index
    %c0_11 = arith.constant 0 : index
    %16 = vector.load %arg5[%c0_10, %c0_11] : memref<16x16xbf16, #tpu.memory_space<vmem>>, vector<16x16xbf16>
    %cst_12 = arith.constant dense<0.000000e+00> : vector<128x16xf32>
    %17 = tpu.matmul %11, %16, %cst_12 {dimension_numbers = #tpu.dot_dimension_numbers<[1], [0], [0], [1], [0, 0, 1, 1], [], []>} : vector<128x16xbf16>, vector<16x16xbf16>, vector<128x16xf32> -> vector<128x16xf32>
    %18 = arith.truncf %13 : vector<128x16xf32> to vector<128x16xbf16>
    %19 = arith.truncf %15 : vector<128x16xf32> to vector<128x16xbf16>
    %20 = arith.truncf %17 : vector<128x16xf32> to vector<128x16xbf16>
    %c0_13 = arith.constant 0 : index
    %c0_14 = arith.constant 0 : index
    %c0_15 = arith.constant 0 : index
    %21 = vector.load %arg8[%c0_13, %c0_14, %c0_15] : memref<8x128x16xbf16, #tpu.memory_space<vmem>>, vector<1x128x16xbf16>
    %22 = vector.shape_cast %21 : vector<1x128x16xbf16> to vector<128x16xbf16>
    %cst_16 = arith.constant dense<0.000000e+00> : vector<128x128xf32>
    %23 = tpu.matmul %18, %22, %cst_16 {dimension_numbers = #tpu.dot_dimension_numbers<[1], [1], [0], [0], [0, 0, 1, 0], [], []>} : vector<128x16xbf16>, vector<128x16xbf16>, vector<128x128xf32> -> vector<128x128xf32>
    %c1_i32 = arith.constant 1 : i32
    %24 = tpu.dynamic_rotate %23 by %c1_i32 dim 1 {stride = 1 : si32, stride_dimension = 0 : si32} : vector<128x128xf32>, i32 -> vector<128x128xf32>
    %cst_17 = arith.constant dense<0.000000e+00> : vector<128x128xf32>
    %25 = tpu.matmul %18, %19, %cst_17 {dimension_numbers = #tpu.dot_dimension_numbers<[1], [1], [0], [0], [0, 0, 1, 0], [], []>} : vector<128x16xbf16>, vector<128x16xbf16>, vector<128x128xf32> -> vector<128x128xf32>
    %cst_18 = arith.constant 0.0883883461 : f32
    %26 = vector.broadcast %cst_18 : f32 to vector<128x128xf32>
    %27 = arith.mulf %25, %26 : vector<128x128xf32>
    %28 = arith.addf %27, %24 : vector<128x128xf32>
    %cst_19 = arith.constant -1.000000e+09 : f32
    %29 = vector.broadcast %cst_19 : f32 to vector<128x128xf32>
    %30 = arith.select %9, %29, %28 : vector<128x128xi1>, vector<128x128xf32>
    %cst_20 = arith.constant 0.000000e+00 : f32
    %31 = vector.broadcast %cst_20 : f32 to vector<128x1xf32>
    %32 = arith.cmpf oeq, %4, %31 : vector<128x1xf32>
    %cst_21 = arith.constant -1.000000e+09 : f32
    %33 = vector.shape_cast %32 : vector<128x1xi1> to vector<128x1xi1>
    %34 = vector.broadcast %33 : vector<128x1xi1> to vector<128x128xi1>
    %35 = vector.broadcast %cst_21 : f32 to vector<128x128xf32>
    %36 = arith.select %34, %35, %30 : vector<128x128xi1>, vector<128x128xf32>
    %cst_22 = arith.constant dense<0xFF800000> : vector<128xf32>
    %37 = vector.multi_reduction <maximumf>, %36, %cst_22 [1] : vector<128x128xf32> to vector<128xf32>
    %38 = vector.shape_cast %37 : vector<128xf32> to vector<128x1xf32>
    %39 = vector.broadcast %38 : vector<128x1xf32> to vector<128x128xf32>
    %40 = arith.subf %36, %39 : vector<128x128xf32>
    %41 = math.exp %40 : vector<128x128xf32>
    %cst_23 = arith.constant dense<0.000000e+00> : vector<128xf32>
    %42 = vector.multi_reduction <add>, %41, %cst_23 [1] : vector<128x128xf32> to vector<128xf32>
    %43 = vector.shape_cast %42 : vector<128xf32> to vector<128x1xf32>
    %44 = tpu.reciprocal %43 {approx = true} : vector<128x1xf32> -> vector<128x1xf32>
    %45 = vector.broadcast %44 : vector<128x1xf32> to vector<128x128xf32>
    %46 = arith.mulf %41, %45 : vector<128x128xf32>
    %47 = arith.truncf %46 : vector<128x128xf32> to vector<128x128xbf16>
    %cst_24 = arith.constant dense<0.000000e+00> : vector<128x16xf32>
    %48 = tpu.matmul %47, %20, %cst_24 {dimension_numbers = #tpu.dot_dimension_numbers<[1], [0], [0], [1], [0, 0, 1, 1], [], []>} : vector<128x128xbf16>, vector<128x16xbf16>, vector<128x16xf32> -> vector<128x16xf32>
    %49 = vector.extract_strided_slice %2 {offsets = [0, 16], sizes = [128, 16], strides = [1, 1]} : vector<128x128xbf16> to vector<128x16xbf16>
    %50 = vector.extract_strided_slice %2 {offsets = [0, 16], sizes = [128, 16], strides = [1, 1]} : vector<128x128xbf16> to vector<128x16xbf16>
    %c0_25 = arith.constant 0 : index
    %c0_26 = arith.constant 0 : index
    %51 = vector.load %arg3[%c0_25, %c0_26] : memref<16x16xbf16, #tpu.memory_space<vmem>>, vector<16x16xbf16>
    %cst_27 = arith.constant dense<0.000000e+00> : vector<128x16xf32>
    %52 = tpu.matmul %49, %51, %cst_27 {dimension_numbers = #tpu.dot_dimension_numbers<[1], [0], [0], [1], [0, 0, 1, 1], [], []>} : vector<128x16xbf16>, vector<16x16xbf16>, vector<128x16xf32> -> vector<128x16xf32>
    %c0_28 = arith.constant 0 : index
    %c0_29 = arith.constant 0 : index
    %53 = vector.load %arg4[%c0_28, %c0_29] : memref<16x16xbf16, #tpu.memory_space<vmem>>, vector<16x16xbf16>
    %cst_30 = arith.constant dense<0.000000e+00> : vector<128x16xf32>
    %54 = tpu.matmul %50, %53, %cst_30 {dimension_numbers = #tpu.dot_dimension_numbers<[1], [0], [0], [1], [0, 0, 1, 1], [], []>} : vector<128x16xbf16>, vector<16x16xbf16>, vector<128x16xf32> -> vector<128x16xf32>
    %c0_31 = arith.constant 0 : index
    %c0_32 = arith.constant 0 : index
    %55 = vector.load %arg5[%c0_31, %c0_32] : memref<16x16xbf16, #tpu.memory_space<vmem>>, vector<16x16xbf16>
    %cst_33 = arith.constant dense<0.000000e+00> : vector<128x16xf32>
    %56 = tpu.matmul %50, %55, %cst_33 {dimension_numbers = #tpu.dot_dimension_numbers<[1], [0], [0], [1], [0, 0, 1, 1], [], []>} : vector<128x16xbf16>, vector<16x16xbf16>, vector<128x16xf32> -> vector<128x16xf32>
    %57 = arith.truncf %52 : vector<128x16xf32> to vector<128x16xbf16>
    %58 = arith.truncf %54 : vector<128x16xf32> to vector<128x16xbf16>
    %59 = arith.truncf %56 : vector<128x16xf32> to vector<128x16xbf16>
    %c1 = arith.constant 1 : index
    %c0_34 = arith.constant 0 : index
    %c0_35 = arith.constant 0 : index
    %60 = vector.load %arg8[%c1, %c0_34, %c0_35] : memref<8x128x16xbf16, #tpu.memory_space<vmem>>, vector<1x128x16xbf16>
    %61 = vector.shape_cast %60 : vector<1x128x16xbf16> to vector<128x16xbf16>
    %cst_36 = arith.constant dense<0.000000e+00> : vector<128x128xf32>
    %62 = tpu.matmul %57, %61, %cst_36 {dimension_numbers = #tpu.dot_dimension_numbers<[1], [1], [0], [0], [0, 0, 1, 0], [], []>} : vector<128x16xbf16>, vector<128x16xbf16>, vector<128x128xf32> -> vector<128x128xf32>
    %c1_i32_37 = arith.constant 1 : i32
    %63 = tpu.dynamic_rotate %62 by %c1_i32_37 dim 1 {stride = 1 : si32, stride_dimension = 0 : si32} : vector<128x128xf32>, i32 -> vector<128x128xf32>
    %cst_38 = arith.constant dense<0.000000e+00> : vector<128x128xf32>
    %64 = tpu.matmul %57, %58, %cst_38 {dimension_numbers = #tpu.dot_dimension_numbers<[1], [1], [0], [0], [0, 0, 1, 0], [], []>} : vector<128x16xbf16>, vector<128x16xbf16>, vector<128x128xf32> -> vector<128x128xf32>
    %cst_39 = arith.constant 0.0883883461 : f32
    %65 = vector.broadcast %cst_39 : f32 to vector<128x128xf32>
    %66 = arith.mulf %64, %65 : vector<128x128xf32>
    %67 = arith.addf %66, %63 : vector<128x128xf32>
    %cst_40 = arith.constant -1.000000e+09 : f32
    %68 = vector.broadcast %cst_40 : f32 to vector<128x128xf32>
    %69 = arith.select %9, %68, %67 : vector<128x128xi1>, vector<128x128xf32>
    %cst_41 = arith.constant 0.000000e+00 : f32
    %70 = vector.broadcast %cst_41 : f32 to vector<128x1xf32>
    %71 = arith.cmpf oeq, %4, %70 : vector<128x1xf32>
    %cst_42 = arith.constant -1.000000e+09 : f32
    %72 = vector.shape_cast %71 : vector<128x1xi1> to vector<128x1xi1>
    %73 = vector.broadcast %72 : vector<128x1xi1> to vector<128x128xi1>
    %74 = vector.broadcast %cst_42 : f32 to vector<128x128xf32>
    %75 = arith.select %73, %74, %69 : vector<128x128xi1>, vector<128x128xf32>
    %cst_43 = arith.constant dense<0xFF800000> : vector<128xf32>
    %76 = vector.multi_reduction <maximumf>, %75, %cst_43 [1] : vector<128x128xf32> to vector<128xf32>
    %77 = vector.shape_cast %76 : vector<128xf32> to vector<128x1xf32>
    %78 = vector.broadcast %77 : vector<128x1xf32> to vector<128x128xf32>
    %79 = arith.subf %75, %78 : vector<128x128xf32>
    %80 = math.exp %79 : vector<128x128xf32>
    %cst_44 = arith.constant dense<0.000000e+00> : vector<128xf32>
    %81 = vector.multi_reduction <add>, %80, %cst_44 [1] : vector<128x128xf32> to vector<128xf32>
    %82 = vector.shape_cast %81 : vector<128xf32> to vector<128x1xf32>
    %83 = tpu.reciprocal %82 {approx = true} : vector<128x1xf32> -> vector<128x1xf32>
    %84 = vector.broadcast %83 : vector<128x1xf32> to vector<128x128xf32>
    %85 = arith.mulf %80, %84 : vector<128x128xf32>
    %86 = arith.truncf %85 : vector<128x128xf32> to vector<128x128xbf16>
    %cst_45 = arith.constant dense<0.000000e+00> : vector<128x16xf32>
    %87 = tpu.matmul %86, %59, %cst_45 {dimension_numbers = #tpu.dot_dimension_numbers<[1], [0], [0], [1], [0, 0, 1, 1], [], []>} : vector<128x128xbf16>, vector<128x16xbf16>, vector<128x16xf32> -> vector<128x16xf32>
    %88 = vector.extract_strided_slice %2 {offsets = [0, 32], sizes = [128, 16], strides = [1, 1]} : vector<128x128xbf16> to vector<128x16xbf16>
    %89 = vector.extract_strided_slice %2 {offsets = [0, 32], sizes = [128, 16], strides = [1, 1]} : vector<128x128xbf16> to vector<128x16xbf16>
    %c0_46 = arith.constant 0 : index
    %c0_47 = arith.constant 0 : index
    %90 = vector.load %arg3[%c0_46, %c0_47] : memref<16x16xbf16, #tpu.memory_space<vmem>>, vector<16x16xbf16>
    %cst_48 = arith.constant dense<0.000000e+00> : vector<128x16xf32>
    %91 = tpu.matmul %88, %90, %cst_48 {dimension_numbers = #tpu.dot_dimension_numbers<[1], [0], [0], [1], [0, 0, 1, 1], [], []>} : vector<128x16xbf16>, vector<16x16xbf16>, vector<128x16xf32> -> vector<128x16xf32>
    %c0_49 = arith.constant 0 : index
    %c0_50 = arith.constant 0 : index
    %92 = vector.load %arg4[%c0_49, %c0_50] : memref<16x16xbf16, #tpu.memory_space<vmem>>, vector<16x16xbf16>
    %cst_51 = arith.constant dense<0.000000e+00> : vector<128x16xf32>
    %93 = tpu.matmul %89, %92, %cst_51 {dimension_numbers = #tpu.dot_dimension_numbers<[1], [0], [0], [1], [0, 0, 1, 1], [], []>} : vector<128x16xbf16>, vector<16x16xbf16>, vector<128x16xf32> -> vector<128x16xf32>
    %c0_52 = arith.constant 0 : index
    %c0_53 = arith.constant 0 : index
    %94 = vector.load %arg5[%c0_52, %c0_53] : memref<16x16xbf16, #tpu.memory_space<vmem>>, vector<16x16xbf16>
    %cst_54 = arith.constant dense<0.000000e+00> : vector<128x16xf32>
    %95 = tpu.matmul %89, %94, %cst_54 {dimension_numbers = #tpu.dot_dimension_numbers<[1], [0], [0], [1], [0, 0, 1, 1], [], []>} : vector<128x16xbf16>, vector<16x16xbf16>, vector<128x16xf32> -> vector<128x16xf32>
    %96 = arith.truncf %91 : vector<128x16xf32> to vector<128x16xbf16>
    %97 = arith.truncf %93 : vector<128x16xf32> to vector<128x16xbf16>
    %98 = arith.truncf %95 : vector<128x16xf32> to vector<128x16xbf16>
    %c2 = arith.constant 2 : index
    %c0_55 = arith.constant 0 : index
    %c0_56 = arith.constant 0 : index
    %99 = vector.load %arg8[%c2, %c0_55, %c0_56] : memref<8x128x16xbf16, #tpu.memory_space<vmem>>, vector<1x128x16xbf16>
    %100 = vector.shape_cast %99 : vector<1x128x16xbf16> to vector<128x16xbf16>
    %cst_57 = arith.constant dense<0.000000e+00> : vector<128x128xf32>
    %101 = tpu.matmul %96, %100, %cst_57 {dimension_numbers = #tpu.dot_dimension_numbers<[1], [1], [0], [0], [0, 0, 1, 0], [], []>} : vector<128x16xbf16>, vector<128x16xbf16>, vector<128x128xf32> -> vector<128x128xf32>
    %c1_i32_58 = arith.constant 1 : i32
    %102 = tpu.dynamic_rotate %101 by %c1_i32_58 dim 1 {stride = 1 : si32, stride_dimension = 0 : si32} : vector<128x128xf32>, i32 -> vector<128x128xf32>
    %cst_59 = arith.constant dense<0.000000e+00> : vector<128x128xf32>
    %103 = tpu.matmul %96, %97, %cst_59 {dimension_numbers = #tpu.dot_dimension_numbers<[1], [1], [0], [0], [0, 0, 1, 0], [], []>} : vector<128x16xbf16>, vector<128x16xbf16>, vector<128x128xf32> -> vector<128x128xf32>
    %cst_60 = arith.constant 0.0883883461 : f32
    %104 = vector.broadcast %cst_60 : f32 to vector<128x128xf32>
    %105 = arith.mulf %103, %104 : vector<128x128xf32>
    %106 = arith.addf %105, %102 : vector<128x128xf32>
    %cst_61 = arith.constant -1.000000e+09 : f32
    %107 = vector.broadcast %cst_61 : f32 to vector<128x128xf32>
    %108 = arith.select %9, %107, %106 : vector<128x128xi1>, vector<128x128xf32>
    %cst_62 = arith.constant 0.000000e+00 : f32
    %109 = vector.broadcast %cst_62 : f32 to vector<128x1xf32>
    %110 = arith.cmpf oeq, %4, %109 : vector<128x1xf32>
    %cst_63 = arith.constant -1.000000e+09 : f32
    %111 = vector.shape_cast %110 : vector<128x1xi1> to vector<128x1xi1>
    %112 = vector.broadcast %111 : vector<128x1xi1> to vector<128x128xi1>
    %113 = vector.broadcast %cst_63 : f32 to vector<128x128xf32>
    %114 = arith.select %112, %113, %108 : vector<128x128xi1>, vector<128x128xf32>
    %cst_64 = arith.constant dense<0xFF800000> : vector<128xf32>
    %115 = vector.multi_reduction <maximumf>, %114, %cst_64 [1] : vector<128x128xf32> to vector<128xf32>
    %116 = vector.shape_cast %115 : vector<128xf32> to vector<128x1xf32>
    %117 = vector.broadcast %116 : vector<128x1xf32> to vector<128x128xf32>
    %118 = arith.subf %114, %117 : vector<128x128xf32>
    %119 = math.exp %118 : vector<128x128xf32>
    %cst_65 = arith.constant dense<0.000000e+00> : vector<128xf32>
    %120 = vector.multi_reduction <add>, %119, %cst_65 [1] : vector<128x128xf32> to vector<128xf32>
    %121 = vector.shape_cast %120 : vector<128xf32> to vector<128x1xf32>
    %122 = tpu.reciprocal %121 {approx = true} : vector<128x1xf32> -> vector<128x1xf32>
    %123 = vector.broadcast %122 : vector<128x1xf32> to vector<128x128xf32>
    %124 = arith.mulf %119, %123 : vector<128x128xf32>
    %125 = arith.truncf %124 : vector<128x128xf32> to vector<128x128xbf16>
    %cst_66 = arith.constant dense<0.000000e+00> : vector<128x16xf32>
    %126 = tpu.matmul %125, %98, %cst_66 {dimension_numbers = #tpu.dot_dimension_numbers<[1], [0], [0], [1], [0, 0, 1, 1], [], []>} : vector<128x128xbf16>, vector<128x16xbf16>, vector<128x16xf32> -> vector<128x16xf32>
    %127 = vector.extract_strided_slice %2 {offsets = [0, 48], sizes = [128, 16], strides = [1, 1]} : vector<128x128xbf16> to vector<128x16xbf16>
    %128 = vector.extract_strided_slice %2 {offsets = [0, 48], sizes = [128, 16], strides = [1, 1]} : vector<128x128xbf16> to vector<128x16xbf16>
    %c0_67 = arith.constant 0 : index
    %c0_68 = arith.constant 0 : index
    %129 = vector.load %arg3[%c0_67, %c0_68] : memref<16x16xbf16, #tpu.memory_space<vmem>>, vector<16x16xbf16>
    %cst_69 = arith.constant dense<0.000000e+00> : vector<128x16xf32>
    %130 = tpu.matmul %127, %129, %cst_69 {dimension_numbers = #tpu.dot_dimension_numbers<[1], [0], [0], [1], [0, 0, 1, 1], [], []>} : vector<128x16xbf16>, vector<16x16xbf16>, vector<128x16xf32> -> vector<128x16xf32>
    %c0_70 = arith.constant 0 : index
    %c0_71 = arith.constant 0 : index
    %131 = vector.load %arg4[%c0_70, %c0_71] : memref<16x16xbf16, #tpu.memory_space<vmem>>, vector<16x16xbf16>
    %cst_72 = arith.constant dense<0.000000e+00> : vector<128x16xf32>
    %132 = tpu.matmul %128, %131, %cst_72 {dimension_numbers = #tpu.dot_dimension_numbers<[1], [0], [0], [1], [0, 0, 1, 1], [], []>} : vector<128x16xbf16>, vector<16x16xbf16>, vector<128x16xf32> -> vector<128x16xf32>
    %c0_73 = arith.constant 0 : index
    %c0_74 = arith.constant 0 : index
    %133 = vector.load %arg5[%c0_73, %c0_74] : memref<16x16xbf16, #tpu.memory_space<vmem>>, vector<16x16xbf16>
    %cst_75 = arith.constant dense<0.000000e+00> : vector<128x16xf32>
    %134 = tpu.matmul %128, %133, %cst_75 {dimension_numbers = #tpu.dot_dimension_numbers<[1], [0], [0], [1], [0, 0, 1, 1], [], []>} : vector<128x16xbf16>, vector<16x16xbf16>, vector<128x16xf32> -> vector<128x16xf32>
    %135 = arith.truncf %130 : vector<128x16xf32> to vector<128x16xbf16>
    %136 = arith.truncf %132 : vector<128x16xf32> to vector<128x16xbf16>
    %137 = arith.truncf %134 : vector<128x16xf32> to vector<128x16xbf16>
    %c3 = arith.constant 3 : index
    %c0_76 = arith.constant 0 : index
    %c0_77 = arith.constant 0 : index
    %138 = vector.load %arg8[%c3, %c0_76, %c0_77] : memref<8x128x16xbf16, #tpu.memory_space<vmem>>, vector<1x128x16xbf16>
    %139 = vector.shape_cast %138 : vector<1x128x16xbf16> to vector<128x16xbf16>
    %cst_78 = arith.constant dense<0.000000e+00> : vector<128x128xf32>
    %140 = tpu.matmul %135, %139, %cst_78 {dimension_numbers = #tpu.dot_dimension_numbers<[1], [1], [0], [0], [0, 0, 1, 0], [], []>} : vector<128x16xbf16>, vector<128x16xbf16>, vector<128x128xf32> -> vector<128x128xf32>
    %c1_i32_79 = arith.constant 1 : i32
    %141 = tpu.dynamic_rotate %140 by %c1_i32_79 dim 1 {stride = 1 : si32, stride_dimension = 0 : si32} : vector<128x128xf32>, i32 -> vector<128x128xf32>
    %cst_80 = arith.constant dense<0.000000e+00> : vector<128x128xf32>
    %142 = tpu.matmul %135, %136, %cst_80 {dimension_numbers = #tpu.dot_dimension_numbers<[1], [1], [0], [0], [0, 0, 1, 0], [], []>} : vector<128x16xbf16>, vector<128x16xbf16>, vector<128x128xf32> -> vector<128x128xf32>
    %cst_81 = arith.constant 0.0883883461 : f32
    %143 = vector.broadcast %cst_81 : f32 to vector<128x128xf32>
    %144 = arith.mulf %142, %143 : vector<128x128xf32>
    %145 = arith.addf %144, %141 : vector<128x128xf32>
    %cst_82 = arith.constant -1.000000e+09 : f32
    %146 = vector.broadcast %cst_82 : f32 to vector<128x128xf32>
    %147 = arith.select %9, %146, %145 : vector<128x128xi1>, vector<128x128xf32>
    %cst_83 = arith.constant 0.000000e+00 : f32
    %148 = vector.broadcast %cst_83 : f32 to vector<128x1xf32>
    %149 = arith.cmpf oeq, %4, %148 : vector<128x1xf32>
    %cst_84 = arith.constant -1.000000e+09 : f32
    %150 = vector.shape_cast %149 : vector<128x1xi1> to vector<128x1xi1>
    %151 = vector.broadcast %150 : vector<128x1xi1> to vector<128x128xi1>
    %152 = vector.broadcast %cst_84 : f32 to vector<128x128xf32>
    %153 = arith.select %151, %152, %147 : vector<128x128xi1>, vector<128x128xf32>
    %cst_85 = arith.constant dense<0xFF800000> : vector<128xf32>
    %154 = vector.multi_reduction <maximumf>, %153, %cst_85 [1] : vector<128x128xf32> to vector<128xf32>
    %155 = vector.shape_cast %154 : vector<128xf32> to vector<128x1xf32>
    %156 = vector.broadcast %155 : vector<128x1xf32> to vector<128x128xf32>
    %157 = arith.subf %153, %156 : vector<128x128xf32>
    %158 = math.exp %157 : vector<128x128xf32>
    %cst_86 = arith.constant dense<0.000000e+00> : vector<128xf32>
    %159 = vector.multi_reduction <add>, %158, %cst_86 [1] : vector<128x128xf32> to vector<128xf32>
    %160 = vector.shape_cast %159 : vector<128xf32> to vector<128x1xf32>
    %161 = tpu.reciprocal %160 {approx = true} : vector<128x1xf32> -> vector<128x1xf32>
    %162 = vector.broadcast %161 : vector<128x1xf32> to vector<128x128xf32>
    %163 = arith.mulf %158, %162 : vector<128x128xf32>
    %164 = arith.truncf %163 : vector<128x128xf32> to vector<128x128xbf16>
    %cst_87 = arith.constant dense<0.000000e+00> : vector<128x16xf32>
    %165 = tpu.matmul %164, %137, %cst_87 {dimension_numbers = #tpu.dot_dimension_numbers<[1], [0], [0], [1], [0, 0, 1, 1], [], []>} : vector<128x128xbf16>, vector<128x16xbf16>, vector<128x16xf32> -> vector<128x16xf32>
    %166 = vector.extract_strided_slice %2 {offsets = [0, 64], sizes = [128, 16], strides = [1, 1]} : vector<128x128xbf16> to vector<128x16xbf16>
    %167 = vector.extract_strided_slice %2 {offsets = [0, 64], sizes = [128, 16], strides = [1, 1]} : vector<128x128xbf16> to vector<128x16xbf16>
    %c0_88 = arith.constant 0 : index
    %c0_89 = arith.constant 0 : index
    %168 = vector.load %arg3[%c0_88, %c0_89] : memref<16x16xbf16, #tpu.memory_space<vmem>>, vector<16x16xbf16>
    %cst_90 = arith.constant dense<0.000000e+00> : vector<128x16xf32>
    %169 = tpu.matmul %166, %168, %cst_90 {dimension_numbers = #tpu.dot_dimension_numbers<[1], [0], [0], [1], [0, 0, 1, 1], [], []>} : vector<128x16xbf16>, vector<16x16xbf16>, vector<128x16xf32> -> vector<128x16xf32>
    %c0_91 = arith.constant 0 : index
    %c0_92 = arith.constant 0 : index
    %170 = vector.load %arg4[%c0_91, %c0_92] : memref<16x16xbf16, #tpu.memory_space<vmem>>, vector<16x16xbf16>
    %cst_93 = arith.constant dense<0.000000e+00> : vector<128x16xf32>
    %171 = tpu.matmul %167, %170, %cst_93 {dimension_numbers = #tpu.dot_dimension_numbers<[1], [0], [0], [1], [0, 0, 1, 1], [], []>} : vector<128x16xbf16>, vector<16x16xbf16>, vector<128x16xf32> -> vector<128x16xf32>
    %c0_94 = arith.constant 0 : index
    %c0_95 = arith.constant 0 : index
    %172 = vector.load %arg5[%c0_94, %c0_95] : memref<16x16xbf16, #tpu.memory_space<vmem>>, vector<16x16xbf16>
    %cst_96 = arith.constant dense<0.000000e+00> : vector<128x16xf32>
    %173 = tpu.matmul %167, %172, %cst_96 {dimension_numbers = #tpu.dot_dimension_numbers<[1], [0], [0], [1], [0, 0, 1, 1], [], []>} : vector<128x16xbf16>, vector<16x16xbf16>, vector<128x16xf32> -> vector<128x16xf32>
    %174 = arith.truncf %169 : vector<128x16xf32> to vector<128x16xbf16>
    %175 = arith.truncf %171 : vector<128x16xf32> to vector<128x16xbf16>
    %176 = arith.truncf %173 : vector<128x16xf32> to vector<128x16xbf16>
    %c4 = arith.constant 4 : index
    %c0_97 = arith.constant 0 : index
    %c0_98 = arith.constant 0 : index
    %177 = vector.load %arg8[%c4, %c0_97, %c0_98] : memref<8x128x16xbf16, #tpu.memory_space<vmem>>, vector<1x128x16xbf16>
    %178 = vector.shape_cast %177 : vector<1x128x16xbf16> to vector<128x16xbf16>
    %cst_99 = arith.constant dense<0.000000e+00> : vector<128x128xf32>
    %179 = tpu.matmul %174, %178, %cst_99 {dimension_numbers = #tpu.dot_dimension_numbers<[1], [1], [0], [0], [0, 0, 1, 0], [], []>} : vector<128x16xbf16>, vector<128x16xbf16>, vector<128x128xf32> -> vector<128x128xf32>
    %c1_i32_100 = arith.constant 1 : i32
    %180 = tpu.dynamic_rotate %179 by %c1_i32_100 dim 1 {stride = 1 : si32, stride_dimension = 0 : si32} : vector<128x128xf32>, i32 -> vector<128x128xf32>
    %cst_101 = arith.constant dense<0.000000e+00> : vector<128x128xf32>
    %181 = tpu.matmul %174, %175, %cst_101 {dimension_numbers = #tpu.dot_dimension_numbers<[1], [1], [0], [0], [0, 0, 1, 0], [], []>} : vector<128x16xbf16>, vector<128x16xbf16>, vector<128x128xf32> -> vector<128x128xf32>
    %cst_102 = arith.constant 0.0883883461 : f32
    %182 = vector.broadcast %cst_102 : f32 to vector<128x128xf32>
    %183 = arith.mulf %181, %182 : vector<128x128xf32>
    %184 = arith.addf %183, %180 : vector<128x128xf32>
    %cst_103 = arith.constant -1.000000e+09 : f32
    %185 = vector.broadcast %cst_103 : f32 to vector<128x128xf32>
    %186 = arith.select %9, %185, %184 : vector<128x128xi1>, vector<128x128xf32>
    %cst_104 = arith.constant 0.000000e+00 : f32
    %187 = vector.broadcast %cst_104 : f32 to vector<128x1xf32>
    %188 = arith.cmpf oeq, %4, %187 : vector<128x1xf32>
    %cst_105 = arith.constant -1.000000e+09 : f32
    %189 = vector.shape_cast %188 : vector<128x1xi1> to vector<128x1xi1>
    %190 = vector.broadcast %189 : vector<128x1xi1> to vector<128x128xi1>
    %191 = vector.broadcast %cst_105 : f32 to vector<128x128xf32>
    %192 = arith.select %190, %191, %186 : vector<128x128xi1>, vector<128x128xf32>
    %cst_106 = arith.constant dense<0xFF800000> : vector<128xf32>
    %193 = vector.multi_reduction <maximumf>, %192, %cst_106 [1] : vector<128x128xf32> to vector<128xf32>
    %194 = vector.shape_cast %193 : vector<128xf32> to vector<128x1xf32>
    %195 = vector.broadcast %194 : vector<128x1xf32> to vector<128x128xf32>
    %196 = arith.subf %192, %195 : vector<128x128xf32>
    %197 = math.exp %196 : vector<128x128xf32>
    %cst_107 = arith.constant dense<0.000000e+00> : vector<128xf32>
    %198 = vector.multi_reduction <add>, %197, %cst_107 [1] : vector<128x128xf32> to vector<128xf32>
    %199 = vector.shape_cast %198 : vector<128xf32> to vector<128x1xf32>
    %200 = tpu.reciprocal %199 {approx = true} : vector<128x1xf32> -> vector<128x1xf32>
    %201 = vector.broadcast %200 : vector<128x1xf32> to vector<128x128xf32>
    %202 = arith.mulf %197, %201 : vector<128x128xf32>
    %203 = arith.truncf %202 : vector<128x128xf32> to vector<128x128xbf16>
    %cst_108 = arith.constant dense<0.000000e+00> : vector<128x16xf32>
    %204 = tpu.matmul %203, %176, %cst_108 {dimension_numbers = #tpu.dot_dimension_numbers<[1], [0], [0], [1], [0, 0, 1, 1], [], []>} : vector<128x128xbf16>, vector<128x16xbf16>, vector<128x16xf32> -> vector<128x16xf32>
    %205 = vector.extract_strided_slice %2 {offsets = [0, 80], sizes = [128, 16], strides = [1, 1]} : vector<128x128xbf16> to vector<128x16xbf16>
    %206 = vector.extract_strided_slice %2 {offsets = [0, 80], sizes = [128, 16], strides = [1, 1]} : vector<128x128xbf16> to vector<128x16xbf16>
    %c0_109 = arith.constant 0 : index
    %c0_110 = arith.constant 0 : index
    %207 = vector.load %arg3[%c0_109, %c0_110] : memref<16x16xbf16, #tpu.memory_space<vmem>>, vector<16x16xbf16>
    %cst_111 = arith.constant dense<0.000000e+00> : vector<128x16xf32>
    %208 = tpu.matmul %205, %207, %cst_111 {dimension_numbers = #tpu.dot_dimension_numbers<[1], [0], [0], [1], [0, 0, 1, 1], [], []>} : vector<128x16xbf16>, vector<16x16xbf16>, vector<128x16xf32> -> vector<128x16xf32>
    %c0_112 = arith.constant 0 : index
    %c0_113 = arith.constant 0 : index
    %209 = vector.load %arg4[%c0_112, %c0_113] : memref<16x16xbf16, #tpu.memory_space<vmem>>, vector<16x16xbf16>
    %cst_114 = arith.constant dense<0.000000e+00> : vector<128x16xf32>
    %210 = tpu.matmul %206, %209, %cst_114 {dimension_numbers = #tpu.dot_dimension_numbers<[1], [0], [0], [1], [0, 0, 1, 1], [], []>} : vector<128x16xbf16>, vector<16x16xbf16>, vector<128x16xf32> -> vector<128x16xf32>
    %c0_115 = arith.constant 0 : index
    %c0_116 = arith.constant 0 : index
    %211 = vector.load %arg5[%c0_115, %c0_116] : memref<16x16xbf16, #tpu.memory_space<vmem>>, vector<16x16xbf16>
    %cst_117 = arith.constant dense<0.000000e+00> : vector<128x16xf32>
    %212 = tpu.matmul %206, %211, %cst_117 {dimension_numbers = #tpu.dot_dimension_numbers<[1], [0], [0], [1], [0, 0, 1, 1], [], []>} : vector<128x16xbf16>, vector<16x16xbf16>, vector<128x16xf32> -> vector<128x16xf32>
    %213 = arith.truncf %208 : vector<128x16xf32> to vector<128x16xbf16>
    %214 = arith.truncf %210 : vector<128x16xf32> to vector<128x16xbf16>
    %215 = arith.truncf %212 : vector<128x16xf32> to vector<128x16xbf16>
    %c5 = arith.constant 5 : index
    %c0_118 = arith.constant 0 : index
    %c0_119 = arith.constant 0 : index
    %216 = vector.load %arg8[%c5, %c0_118, %c0_119] : memref<8x128x16xbf16, #tpu.memory_space<vmem>>, vector<1x128x16xbf16>
    %217 = vector.shape_cast %216 : vector<1x128x16xbf16> to vector<128x16xbf16>
    %cst_120 = arith.constant dense<0.000000e+00> : vector<128x128xf32>
    %218 = tpu.matmul %213, %217, %cst_120 {dimension_numbers = #tpu.dot_dimension_numbers<[1], [1], [0], [0], [0, 0, 1, 0], [], []>} : vector<128x16xbf16>, vector<128x16xbf16>, vector<128x128xf32> -> vector<128x128xf32>
    %c1_i32_121 = arith.constant 1 : i32
    %219 = tpu.dynamic_rotate %218 by %c1_i32_121 dim 1 {stride = 1 : si32, stride_dimension = 0 : si32} : vector<128x128xf32>, i32 -> vector<128x128xf32>
    %cst_122 = arith.constant dense<0.000000e+00> : vector<128x128xf32>
    %220 = tpu.matmul %213, %214, %cst_122 {dimension_numbers = #tpu.dot_dimension_numbers<[1], [1], [0], [0], [0, 0, 1, 0], [], []>} : vector<128x16xbf16>, vector<128x16xbf16>, vector<128x128xf32> -> vector<128x128xf32>
    %cst_123 = arith.constant 0.0883883461 : f32
    %221 = vector.broadcast %cst_123 : f32 to vector<128x128xf32>
    %222 = arith.mulf %220, %221 : vector<128x128xf32>
    %223 = arith.addf %222, %219 : vector<128x128xf32>
    %cst_124 = arith.constant -1.000000e+09 : f32
    %224 = vector.broadcast %cst_124 : f32 to vector<128x128xf32>
    %225 = arith.select %9, %224, %223 : vector<128x128xi1>, vector<128x128xf32>
    %cst_125 = arith.constant 0.000000e+00 : f32
    %226 = vector.broadcast %cst_125 : f32 to vector<128x1xf32>
    %227 = arith.cmpf oeq, %4, %226 : vector<128x1xf32>
    %cst_126 = arith.constant -1.000000e+09 : f32
    %228 = vector.shape_cast %227 : vector<128x1xi1> to vector<128x1xi1>
    %229 = vector.broadcast %228 : vector<128x1xi1> to vector<128x128xi1>
    %230 = vector.broadcast %cst_126 : f32 to vector<128x128xf32>
    %231 = arith.select %229, %230, %225 : vector<128x128xi1>, vector<128x128xf32>
    %cst_127 = arith.constant dense<0xFF800000> : vector<128xf32>
    %232 = vector.multi_reduction <maximumf>, %231, %cst_127 [1] : vector<128x128xf32> to vector<128xf32>
    %233 = vector.shape_cast %232 : vector<128xf32> to vector<128x1xf32>
    %234 = vector.broadcast %233 : vector<128x1xf32> to vector<128x128xf32>
    %235 = arith.subf %231, %234 : vector<128x128xf32>
    %236 = math.exp %235 : vector<128x128xf32>
    %cst_128 = arith.constant dense<0.000000e+00> : vector<128xf32>
    %237 = vector.multi_reduction <add>, %236, %cst_128 [1] : vector<128x128xf32> to vector<128xf32>
    %238 = vector.shape_cast %237 : vector<128xf32> to vector<128x1xf32>
    %239 = tpu.reciprocal %238 {approx = true} : vector<128x1xf32> -> vector<128x1xf32>
    %240 = vector.broadcast %239 : vector<128x1xf32> to vector<128x128xf32>
    %241 = arith.mulf %236, %240 : vector<128x128xf32>
    %242 = arith.truncf %241 : vector<128x128xf32> to vector<128x128xbf16>
    %cst_129 = arith.constant dense<0.000000e+00> : vector<128x16xf32>
    %243 = tpu.matmul %242, %215, %cst_129 {dimension_numbers = #tpu.dot_dimension_numbers<[1], [0], [0], [1], [0, 0, 1, 1], [], []>} : vector<128x128xbf16>, vector<128x16xbf16>, vector<128x16xf32> -> vector<128x16xf32>
    %244 = vector.extract_strided_slice %2 {offsets = [0, 96], sizes = [128, 16], strides = [1, 1]} : vector<128x128xbf16> to vector<128x16xbf16>
    %245 = vector.extract_strided_slice %2 {offsets = [0, 96], sizes = [128, 16], strides = [1, 1]} : vector<128x128xbf16> to vector<128x16xbf16>
    %c0_130 = arith.constant 0 : index
    %c0_131 = arith.constant 0 : index
    %246 = vector.load %arg3[%c0_130, %c0_131] : memref<16x16xbf16, #tpu.memory_space<vmem>>, vector<16x16xbf16>
    %cst_132 = arith.constant dense<0.000000e+00> : vector<128x16xf32>
    %247 = tpu.matmul %244, %246, %cst_132 {dimension_numbers = #tpu.dot_dimension_numbers<[1], [0], [0], [1], [0, 0, 1, 1], [], []>} : vector<128x16xbf16>, vector<16x16xbf16>, vector<128x16xf32> -> vector<128x16xf32>
    %c0_133 = arith.constant 0 : index
    %c0_134 = arith.constant 0 : index
    %248 = vector.load %arg4[%c0_133, %c0_134] : memref<16x16xbf16, #tpu.memory_space<vmem>>, vector<16x16xbf16>
    %cst_135 = arith.constant dense<0.000000e+00> : vector<128x16xf32>
    %249 = tpu.matmul %245, %248, %cst_135 {dimension_numbers = #tpu.dot_dimension_numbers<[1], [0], [0], [1], [0, 0, 1, 1], [], []>} : vector<128x16xbf16>, vector<16x16xbf16>, vector<128x16xf32> -> vector<128x16xf32>
    %c0_136 = arith.constant 0 : index
    %c0_137 = arith.constant 0 : index
    %250 = vector.load %arg5[%c0_136, %c0_137] : memref<16x16xbf16, #tpu.memory_space<vmem>>, vector<16x16xbf16>
    %cst_138 = arith.constant dense<0.000000e+00> : vector<128x16xf32>
    %251 = tpu.matmul %245, %250, %cst_138 {dimension_numbers = #tpu.dot_dimension_numbers<[1], [0], [0], [1], [0, 0, 1, 1], [], []>} : vector<128x16xbf16>, vector<16x16xbf16>, vector<128x16xf32> -> vector<128x16xf32>
    %252 = arith.truncf %247 : vector<128x16xf32> to vector<128x16xbf16>
    %253 = arith.truncf %249 : vector<128x16xf32> to vector<128x16xbf16>
    %254 = arith.truncf %251 : vector<128x16xf32> to vector<128x16xbf16>
    %c6 = arith.constant 6 : index
    %c0_139 = arith.constant 0 : index
    %c0_140 = arith.constant 0 : index
    %255 = vector.load %arg8[%c6, %c0_139, %c0_140] : memref<8x128x16xbf16, #tpu.memory_space<vmem>>, vector<1x128x16xbf16>
    %256 = vector.shape_cast %255 : vector<1x128x16xbf16> to vector<128x16xbf16>
    %cst_141 = arith.constant dense<0.000000e+00> : vector<128x128xf32>
    %257 = tpu.matmul %252, %256, %cst_141 {dimension_numbers = #tpu.dot_dimension_numbers<[1], [1], [0], [0], [0, 0, 1, 0], [], []>} : vector<128x16xbf16>, vector<128x16xbf16>, vector<128x128xf32> -> vector<128x128xf32>
    %c1_i32_142 = arith.constant 1 : i32
    %258 = tpu.dynamic_rotate %257 by %c1_i32_142 dim 1 {stride = 1 : si32, stride_dimension = 0 : si32} : vector<128x128xf32>, i32 -> vector<128x128xf32>
    %cst_143 = arith.constant dense<0.000000e+00> : vector<128x128xf32>
    %259 = tpu.matmul %252, %253, %cst_143 {dimension_numbers = #tpu.dot_dimension_numbers<[1], [1], [0], [0], [0, 0, 1, 0], [], []>} : vector<128x16xbf16>, vector<128x16xbf16>, vector<128x128xf32> -> vector<128x128xf32>
    %cst_144 = arith.constant 0.0883883461 : f32
    %260 = vector.broadcast %cst_144 : f32 to vector<128x128xf32>
    %261 = arith.mulf %259, %260 : vector<128x128xf32>
    %262 = arith.addf %261, %258 : vector<128x128xf32>
    %cst_145 = arith.constant -1.000000e+09 : f32
    %263 = vector.broadcast %cst_145 : f32 to vector<128x128xf32>
    %264 = arith.select %9, %263, %262 : vector<128x128xi1>, vector<128x128xf32>
    %cst_146 = arith.constant 0.000000e+00 : f32
    %265 = vector.broadcast %cst_146 : f32 to vector<128x1xf32>
    %266 = arith.cmpf oeq, %4, %265 : vector<128x1xf32>
    %cst_147 = arith.constant -1.000000e+09 : f32
    %267 = vector.shape_cast %266 : vector<128x1xi1> to vector<128x1xi1>
    %268 = vector.broadcast %267 : vector<128x1xi1> to vector<128x128xi1>
    %269 = vector.broadcast %cst_147 : f32 to vector<128x128xf32>
    %270 = arith.select %268, %269, %264 : vector<128x128xi1>, vector<128x128xf32>
    %cst_148 = arith.constant dense<0xFF800000> : vector<128xf32>
    %271 = vector.multi_reduction <maximumf>, %270, %cst_148 [1] : vector<128x128xf32> to vector<128xf32>
    %272 = vector.shape_cast %271 : vector<128xf32> to vector<128x1xf32>
    %273 = vector.broadcast %272 : vector<128x1xf32> to vector<128x128xf32>
    %274 = arith.subf %270, %273 : vector<128x128xf32>
    %275 = math.exp %274 : vector<128x128xf32>
    %cst_149 = arith.constant dense<0.000000e+00> : vector<128xf32>
    %276 = vector.multi_reduction <add>, %275, %cst_149 [1] : vector<128x128xf32> to vector<128xf32>
    %277 = vector.shape_cast %276 : vector<128xf32> to vector<128x1xf32>
    %278 = tpu.reciprocal %277 {approx = true} : vector<128x1xf32> -> vector<128x1xf32>
    %279 = vector.broadcast %278 : vector<128x1xf32> to vector<128x128xf32>
    %280 = arith.mulf %275, %279 : vector<128x128xf32>
    %281 = arith.truncf %280 : vector<128x128xf32> to vector<128x128xbf16>
    %cst_150 = arith.constant dense<0.000000e+00> : vector<128x16xf32>
    %282 = tpu.matmul %281, %254, %cst_150 {dimension_numbers = #tpu.dot_dimension_numbers<[1], [0], [0], [1], [0, 0, 1, 1], [], []>} : vector<128x128xbf16>, vector<128x16xbf16>, vector<128x16xf32> -> vector<128x16xf32>
    %283 = vector.extract_strided_slice %2 {offsets = [0, 112], sizes = [128, 16], strides = [1, 1]} : vector<128x128xbf16> to vector<128x16xbf16>
    %284 = vector.extract_strided_slice %2 {offsets = [0, 112], sizes = [128, 16], strides = [1, 1]} : vector<128x128xbf16> to vector<128x16xbf16>
    %c0_151 = arith.constant 0 : index
    %c0_152 = arith.constant 0 : index
    %285 = vector.load %arg3[%c0_151, %c0_152] : memref<16x16xbf16, #tpu.memory_space<vmem>>, vector<16x16xbf16>
    %cst_153 = arith.constant dense<0.000000e+00> : vector<128x16xf32>
    %286 = tpu.matmul %283, %285, %cst_153 {dimension_numbers = #tpu.dot_dimension_numbers<[1], [0], [0], [1], [0, 0, 1, 1], [], []>} : vector<128x16xbf16>, vector<16x16xbf16>, vector<128x16xf32> -> vector<128x16xf32>
    %c0_154 = arith.constant 0 : index
    %c0_155 = arith.constant 0 : index
    %287 = vector.load %arg4[%c0_154, %c0_155] : memref<16x16xbf16, #tpu.memory_space<vmem>>, vector<16x16xbf16>
    %cst_156 = arith.constant dense<0.000000e+00> : vector<128x16xf32>
    %288 = tpu.matmul %284, %287, %cst_156 {dimension_numbers = #tpu.dot_dimension_numbers<[1], [0], [0], [1], [0, 0, 1, 1], [], []>} : vector<128x16xbf16>, vector<16x16xbf16>, vector<128x16xf32> -> vector<128x16xf32>
    %c0_157 = arith.constant 0 : index
    %c0_158 = arith.constant 0 : index
    %289 = vector.load %arg5[%c0_157, %c0_158] : memref<16x16xbf16, #tpu.memory_space<vmem>>, vector<16x16xbf16>
    %cst_159 = arith.constant dense<0.000000e+00> : vector<128x16xf32>
    %290 = tpu.matmul %284, %289, %cst_159 {dimension_numbers = #tpu.dot_dimension_numbers<[1], [0], [0], [1], [0, 0, 1, 1], [], []>} : vector<128x16xbf16>, vector<16x16xbf16>, vector<128x16xf32> -> vector<128x16xf32>
    %291 = arith.truncf %286 : vector<128x16xf32> to vector<128x16xbf16>
    %292 = arith.truncf %288 : vector<128x16xf32> to vector<128x16xbf16>
    %293 = arith.truncf %290 : vector<128x16xf32> to vector<128x16xbf16>
    %c7 = arith.constant 7 : index
    %c0_160 = arith.constant 0 : index
    %c0_161 = arith.constant 0 : index
    %294 = vector.load %arg8[%c7, %c0_160, %c0_161] : memref<8x128x16xbf16, #tpu.memory_space<vmem>>, vector<1x128x16xbf16>
    %295 = vector.shape_cast %294 : vector<1x128x16xbf16> to vector<128x16xbf16>
    %cst_162 = arith.constant dense<0.000000e+00> : vector<128x128xf32>
    %296 = tpu.matmul %291, %295, %cst_162 {dimension_numbers = #tpu.dot_dimension_numbers<[1], [1], [0], [0], [0, 0, 1, 0], [], []>} : vector<128x16xbf16>, vector<128x16xbf16>, vector<128x128xf32> -> vector<128x128xf32>
    %c1_i32_163 = arith.constant 1 : i32
    %297 = tpu.dynamic_rotate %296 by %c1_i32_163 dim 1 {stride = 1 : si32, stride_dimension = 0 : si32} : vector<128x128xf32>, i32 -> vector<128x128xf32>
    %cst_164 = arith.constant dense<0.000000e+00> : vector<128x128xf32>
    %298 = tpu.matmul %291, %292, %cst_164 {dimension_numbers = #tpu.dot_dimension_numbers<[1], [1], [0], [0], [0, 0, 1, 0], [], []>} : vector<128x16xbf16>, vector<128x16xbf16>, vector<128x128xf32> -> vector<128x128xf32>
    %cst_165 = arith.constant 0.0883883461 : f32
    %299 = vector.broadcast %cst_165 : f32 to vector<128x128xf32>
    %300 = arith.mulf %298, %299 : vector<128x128xf32>
    %301 = arith.addf %300, %297 : vector<128x128xf32>
    %cst_166 = arith.constant -1.000000e+09 : f32
    %302 = vector.broadcast %cst_166 : f32 to vector<128x128xf32>
    %303 = arith.select %9, %302, %301 : vector<128x128xi1>, vector<128x128xf32>
    %cst_167 = arith.constant 0.000000e+00 : f32
    %304 = vector.broadcast %cst_167 : f32 to vector<128x1xf32>
    %305 = arith.cmpf oeq, %4, %304 : vector<128x1xf32>
    %cst_168 = arith.constant -1.000000e+09 : f32
    %306 = vector.shape_cast %305 : vector<128x1xi1> to vector<128x1xi1>
    %307 = vector.broadcast %306 : vector<128x1xi1> to vector<128x128xi1>
    %308 = vector.broadcast %cst_168 : f32 to vector<128x128xf32>
    %309 = arith.select %307, %308, %303 : vector<128x128xi1>, vector<128x128xf32>
    %cst_169 = arith.constant dense<0xFF800000> : vector<128xf32>
    %310 = vector.multi_reduction <maximumf>, %309, %cst_169 [1] : vector<128x128xf32> to vector<128xf32>
    %311 = vector.shape_cast %310 : vector<128xf32> to vector<128x1xf32>
    %312 = vector.broadcast %311 : vector<128x1xf32> to vector<128x128xf32>
    %313 = arith.subf %309, %312 : vector<128x128xf32>
    %314 = math.exp %313 : vector<128x128xf32>
    %cst_170 = arith.constant dense<0.000000e+00> : vector<128xf32>
    %315 = vector.multi_reduction <add>, %314, %cst_170 [1] : vector<128x128xf32> to vector<128xf32>
    %316 = vector.shape_cast %315 : vector<128xf32> to vector<128x1xf32>
    %317 = tpu.reciprocal %316 {approx = true} : vector<128x1xf32> -> vector<128x1xf32>
    %318 = vector.broadcast %317 : vector<128x1xf32> to vector<128x128xf32>
    %319 = arith.mulf %314, %318 : vector<128x128xf32>
    %320 = arith.truncf %319 : vector<128x128xf32> to vector<128x128xbf16>
    %cst_171 = arith.constant dense<0.000000e+00> : vector<128x16xf32>
    %321 = tpu.matmul %320, %293, %cst_171 {dimension_numbers = #tpu.dot_dimension_numbers<[1], [0], [0], [1], [0, 0, 1, 1], [], []>} : vector<128x128xbf16>, vector<128x16xbf16>, vector<128x16xf32> -> vector<128x16xf32>
    %322 = tpu.concatenate %48, %87, %126, %165, %204, %243, %282, %321 in 1 : vector<128x16xf32>, vector<128x16xf32>, vector<128x16xf32>, vector<128x16xf32>, vector<128x16xf32>, vector<128x16xf32>, vector<128x16xf32>, vector<128x16xf32> -> vector<128x128xf32>
    %323 = arith.truncf %322 : vector<128x128xf32> to vector<128x128xbf16>
    %c0_172 = arith.constant 0 : index
    %c0_173 = arith.constant 0 : index
    %324 = vector.load %arg6[%c0_172, %c0_173] : memref<128x128xbf16, #tpu.memory_space<vmem>>, vector<128x128xbf16>
    %cst_174 = arith.constant dense<0.000000e+00> : vector<128x128xf32>
    %325 = tpu.matmul %323, %324, %cst_174 {dimension_numbers = #tpu.dot_dimension_numbers<[1], [0], [0], [1], [0, 0, 1, 1], [], []>} : vector<128x128xbf16>, vector<128x128xbf16>, vector<128x128xf32> -> vector<128x128xf32>
    %c0_175 = arith.constant 0 : index
    %c0_176 = arith.constant 0 : index
    %326 = vector.load %arg7[%c0_175, %c0_176] : memref<1x128xf32, #tpu.memory_space<vmem>>, vector<1x128xf32>
    %327 = vector.broadcast %326 : vector<1x128xf32> to vector<128x128xf32>
    %328 = arith.addf %325, %327 : vector<128x128xf32>
    %c0_177 = arith.constant 0 : index
    %c0_178 = arith.constant 0 : index
    %c0_179 = arith.constant 0 : index
    %329 = vector.load %arg10[%c0_177, %c0_178, %c0_179] : memref<1x128x128xf32, #tpu.memory_space<vmem>>, vector<1x128x128xf32>
    %330 = vector.shape_cast %329 : vector<1x128x128xf32> to vector<128x128xf32>
    %331 = vector.shape_cast %328 : vector<128x128xf32> to vector<1x128x128xf32>
    tpu.vector_store %arg10[%c0_177, %c0_178, %c0_179], %331 {strides = array<i32>} : memref<1x128x128xf32, #tpu.memory_space<vmem>>, vector<1x128x128xf32>,
    return
  }
  func.func @transform_0(%arg0: i32, %arg1: i32) -> (i32, i32, i32) {
    %c0_i32 = arith.constant 0 : i32
    %c0_i32_0 = arith.constant 0 : i32
    %c0_i32_1 = arith.constant 0 : i32
    return %arg0, %c0_i32, %c0_i32_0 : i32, i32, i32
  }
  func.func @transform_1(%arg0: i32, %arg1: i32) -> (i32, i32) {
    %c0_i32 = arith.constant 0 : i32
    %c0_i32_0 = arith.constant 0 : i32
    %c0_i32_1 = arith.constant 0 : i32
    return %c0_i32, %c0_i32_0 : i32, i32
  }
  func.func @transform_2(%arg0: i32, %arg1: i32) -> (i32, i32) {
    %c0_i32 = arith.constant 0 : i32
    %c0_i32_0 = arith.constant 0 : i32
    %c0_i32_1 = arith.constant 0 : i32
    return %c0_i32, %c0_i32_0 : i32, i32
  }
  func.func @transform_3(%arg0: i32, %arg1: i32) -> (i32, i32) {
    %c0_i32 = arith.constant 0 : i32
    %c0_i32_0 = arith.constant 0 : i32
    %c0_i32_1 = arith.constant 0 : i32
    return %c0_i32, %c0_i32_0 : i32, i32
  }
  func.func @transform_4(%arg0: i32, %arg1: i32) -> (i32, i32) {
    %c0_i32 = arith.constant 0 : i32
    %c0_i32_0 = arith.constant 0 : i32
    %c0_i32_1 = arith.constant 0 : i32
    return %c0_i32, %c0_i32_0 : i32, i32
  }
  func.func @transform_5(%arg0: i32, %arg1: i32) -> (i32, i32) {
    %c0_i32 = arith.constant 0 : i32
    %c0_i32_0 = arith.constant 0 : i32
    %c0_i32_1 = arith.constant 0 : i32
    return %c0_i32, %c0_i32_0 : i32, i32
  }
  func.func @transform_6(%arg0: i32, %arg1: i32) -> (i32, i32, i32) {
    %c0_i32 = arith.constant 0 : i32
    %c0_i32_0 = arith.constant 0 : i32
    %c0_i32_1 = arith.constant 0 : i32
    %c0_i32_2 = arith.constant 0 : i32
    return %c0_i32, %c0_i32_0, %c0_i32_1 : i32, i32, i32
  }
  func.func @transform_7(%arg0: i32, %arg1: i32) -> (i32, i32, i32) {
    %c0_i32 = arith.constant 0 : i32
    %c0_i32_0 = arith.constant 0 : i32
    return %arg0, %arg1, %c0_i32 : i32, i32, i32
  }
  func.func @transform_8(%arg0: i32, %arg1: i32) -> (i32, i32, i32) {
    %c0_i32 = arith.constant 0 : i32
    %c0_i32_0 = arith.constant 0 : i32
    return %arg0, %arg1, %c0_i32 : i32, i32, i32
  }
}

</mosaic_0001>

<bundles_post_ra>
// kernel: tpu_custom_call.1
= control target key start
LH: loop header
LB: loop body
LE: loop exit
PB: predicated region body
PF: predicated region fallthrough
CT: control target
= control target key end

     0   :  { %s17736_s0 = inlined_call_operand.vmem [shape: f32[2,128,128], index: 0, kind: input, shape index: {}]   ;;  %s17737_s1 = inlined_call_operand.vmem [shape: bf16[16,16], index: 1, kind: input, shape index: {}]   ;;  %s17738_s2 = inlined_call_operand.vmem [shape: bf16[16,16], index: 2, kind: input, shape index: {}]   ;;  %s17739_s3 = inlined_call_operand.vmem [shape: bf16[16,16], index: 3, kind: input, shape index: {}]   ;;  %s17740_s4 = inlined_call_operand.vmem [shape: bf16[128,128], index: 4, kind: input, shape index: {}]   ;;  %s17741_s5 = inlined_call_operand.vmem [shape: f32[1,128], index: 5, kind: input, shape index: {}]   ;;  %s17742_s6 = inlined_call_operand.vmem [shape: bf16[8,128,16], index: 6, kind: input, shape index: {}]   ;;  %s17743_s7 = inlined_call_operand.vmem [shape: f32[2,128,1], index: 7, kind: input, shape index: {}]   ;;  %s17744_s8 = inlined_call_operand.hbm [shape: f32[2,128,128], index: 8, kind: output, shape index: {}]  }
   0x1   :  { %17953 = sst [smem:[#allocation120_spill]] %s17736_s0 }
   0x2   :  { %17954 = sst [smem:[#allocation121_spill]] %s17743_s7 }
   0x3   :  { %13 = vsyncpa [#allocation3], 0 }
   0x4   :  { %15 = vsyncpa [#allocation3 + $0x1], 0  ;;  %s13474_s27 = smov 0   ;;  %s13476_s28 = smov 0  }
   0x5   :  { %s13478_s29 = smov 0   ;;  %s13480_s30 = smov 0  }
   0x6   :  { %s13482_s9 = smov 0   ;;  %s13484_s10 = smov 0  }
   0x7 LB: > { %17955 = sst [smem:[#allocation5_spill]] %s13380_s27  ;;  %s9848_s11 = sadd.s32 4294967295, %s13400_s10   ;;  %s13400_s10 = sphi %s13484_s10, %s21_s10   ;;  %s13396_s9 = sphi %s13482_s9, %s18978_s9   ;;  %s13392_s30 = sphi %s13480_s30, %s18977_s30   ;;  %s13388_s29 = sphi %s13478_s29, %s18976_s29   ;;  %s13384_s28 = sphi %s13476_s28, %s18980_s28   ;;  %s13380_s27 = sphi %s13474_s27, %s18979_s27  }
   0x8   : > { %17956 = sst [smem:[#allocation6_spill]] %s13388_s29  ;;  %s9849_s12 = sadd.s32 4294967294, %s13400_s10  }
   0x9   : > { %17957 = sst [smem:[#allocation7_spill]] %s13396_s9  ;;  %s33_s13 = sadd.s32 1, %s13396_s9 }
   0xa   : > { %17958 = sst [smem:[#allocation8_spill]] %s13400_s10  ;;  %s222_s14 = sadd.s32 1, %s13388_s29 }
   0xb   : > { %p35_p0 = scmp.ge.s32.totalorder %s33_s13, 2  ;;  %p232_p1 = scmp.ne.s32.totalorder %s13388_s29, %s13384_s28 }
   0xc   : > { %p233_p2 = scmp.eq.s32.totalorder %s9848_s11, 1  ;;  %p238_p3 = scmp.ne.s32.totalorder %s13384_s28, %s13380_s27 }
   0xd   : > { %s18982_s13 = smov (%p35_p0, %s33_s13), 0  ;;  %p239_p5 = scmp.eq.s32.totalorder %s9849_s12, 1 }
   0xe   : > { %17959 = sst [smem:[#allocation9_spill]] %s18982_s13  ;;  %p13514_p4 = por %p233_p2, %p232_p1 }
   0xf   : > { %s217_s16 = ssub.s32 %s13396_s9, %s18982_s13  ;;  %p9852_p6 = scmp.ge.s32.totalorder %s13400_s10, 1 }
  0x10   : > { %p220_p7 = scmp.eq.s32.totalorder %s217_s16, 0  ;;  %p13521_p8 = por %p239_p5, %p238_p3 }
  0x11   : > { %p296_p9 = scmp.lt.s32.totalorder %s13400_s10, 3 }
  0x12   : > { %s17961_s17 = scalar_select %p13521_p8, 1, 0 }
  0x13   : > { %s13527_s18 = scalar_select %p220_p7, %s13388_s29, %s222_s14  }
  0x14   : > { %17962 = sst [smem:[#allocation10_spill]] %s17961_s17  ;;  %p297_p10 = pnand %p9852_p6, %p296_p9 }
  0x15   : > { %17963 = sst [smem:[#allocation11_spill]] %s13527_s18 }
  0x16   : > { %300 = sbr.rel (%p297_p10) target bundleno = 7729 (0x1e31), region = 52 }
  0x1d   : > { %v13532_v0 = vld [vmem:[%s17737_s1] sm:$0xff]   ;;  %p339_p11 = scmp.lt.s32.totalorder %s13392_s30, 1  ;;  %s17964_s0 = sld [smem:[#allocation120_spill]]  ;;  %vm17771_vm0 = vcmask 130048   ;;  %v12718_v24 = vld [vmem:[%s17742_s6 + $0x8] sm:$0xff]   ;;  %v12719_v25 = vld [vmem:[%s17742_s6 + $0x10] sm:$0xff]  }
  0x1e   : > { %v13538_v1 = vld [vmem:[%s17738_s2] sm:$0xff]   ;;  %10990 = vmatprep.subr.bf16.mxu0 %v13532_v0  ;;  %12222 = vmatprep.subr.bf16.mxu1 %v13532_v0  ;;  %v12720_v27 = vld [vmem:[%s17742_s6 + $0x18] sm:$0xff]   ;;  %v879_v33 = vsel %vm17771_vm0, %v12718_v24, 0  ;;  %v882_v34 = vsel %vm17771_vm0, %v12719_v25, 0  ;;  %v12723_v37 = vld [vmem:[%s17742_s6 + $0x28] sm:$0xff]   ;;  %s17973_s7 = sld [smem:[#allocation121_spill]] }
  0x1f   : > { %s13543_s23 = scalar_select %p339_p11, %s13392_s30, 1  ;;  %10991 = vmatpush3.bf16.msra.mxu0 %v13532_v0  ;;  %12223 = vmatpush3.bf16.msra.mxu1 %v13532_v0  ;;  %v12717_v14 = vld [vmem:[%s17742_s6] sm:$0xff]   ;;  %v885_v35 = vsel %vm17771_vm0, %v12720_v27, 0  ;;  %v891_v38 = vsel %vm17771_vm0, %v12723_v37, 0  ;;  %v12724_v39 = vld [vmem:[%s17742_s6 + $0x30] sm:$0xff]   ;;  %v12725_v41 = vld [vmem:[%s17742_s6 + $0x38] sm:$0xff]  }
  0x20   : > { %11008 = vmatprep.subr.bf16.mxu1 %v13538_v1  ;;  %v12721_v28 = vld [vmem:[%s17742_s6 + $0x20] sm:$0xff]   ;;  %v876_v32 = vsel %vm17771_vm0, %v12717_v14, 0  ;;  %v894_v40 = vsel %vm17771_vm0, %v12724_v39, 0  ;;  %v897_v42 = vsel %vm17771_vm0, %v12725_v41, 0  ;;  %v13402_v43 = vmov 0   ;;  %s17834_s16 = smov 257  }
  0x21   : > { %s10371_s24 = sshll.u32 %s13543_s23, 7  ;;  %v13597_v29 = vld [vmem:[%s17739_s3] sm:$0xff]   ;;  %v888_v36 = vsel %vm17771_vm0, %v12721_v28, 0  ;;  %12433 = vset.pattern.permute.xlu0 %v13402_v43  ;;  %12434 = vset.pattern.permute.xlu1 %v13402_v43  ;;  %s17822_s23 = smov 273  }
  0x22   : > { %11026 = vmatprep.subr.bf16.mxu0 %v13597_v29  ;;  %s17814_s19 = smov 305   ;;  %s17745_s20 = smov 313  }
  0x23   : > { %s343_s11 = scalar_lea.vmem %s17964_s0, %s10371_s24  ;;  %s17816_s21 = smov 289  }
  0x24   : > { %v356_v2 = vld [vmem:[%s343_s11] sm:$0xff]  ;;  %v357_v3 = vld [vmem:[%s343_s11 + $0x8] sm:$0xff]  ;;  %v358_v7 = vld [vmem:[%s343_s11 + $0x10] sm:$0xff]  ;;  %s13671_s14 = scalar_lea.vmem %s17973_s7, %s10371_s24  ;;  %s17820_s24 = smov 281  }
  0x25   : > { %v364_v4 = vld [vmem:[%s343_s11 + $0x40] sm:$0xff]  ;;  %v13554_v5 = vpack.c.bf16 %v357_v3, %v356_v2  ;;  %v365_v6 = vld [vmem:[%s343_s11 + $0x48] sm:$0xff]  ;;  %v359_v8 = vld [vmem:[%s343_s11 + $0x18] sm:$0xff]  ;;  %s17818_s22 = smov 297   ;;  %s17749_s25 = smov 337  }
  0x26   : > { %v13556_v9 = vpack.c.bf16 %v365_v6, %v364_v4  ;;  %v13558_v10 = vpack.c.bf16 %v359_v8, %v358_v7  ;;  %v366_v11 = vld [vmem:[%s343_s11 + $0x50] sm:$0xff]  ;;  %v367_v12 = vld [vmem:[%s343_s11 + $0x58] sm:$0xff]  ;;  %v360_v13 = vld [vmem:[%s343_s11 + $0x20] sm:$0xff]  ;;  %s17747_s26 = smov 345   ;;  %s17751_s12 = smov 321  }
  0x27   : > { %17965 = vst [vmem:[#allocation12_spill] sm:$0xff] %v13554_v5  ;;  %10992 = vmatprep.mubr.msk.bf16.mxu0 %vm17771_vm0, %v13554_v5  ;;  %v13565_v15 = vpack.c.bf16 %v367_v12, %v366_v11  ;;  %v361_v16 = vld [vmem:[%s343_s11 + $0x28] sm:$0xff]  ;;  %v368_v17 = vld [vmem:[%s343_s11 + $0x60] sm:$0xff]  ;;  %v362_v21 = vld [vmem:[%s343_s11 + $0x30] sm:$0xff]  ;;  %s18212_s0 = smov 257   ;;  %s18213_s7 = smov 265  }
  0x28   : > { %17966 = vst [vmem:[#allocation13_spill] sm:$0xff] %v13556_v9  ;;  %17967 = vst [vmem:[#allocation14_spill] sm:$0xff] %v13558_v10  ;;  %v369_v18 = vld [vmem:[%s343_s11 + $0x68] sm:$0xff]  ;;  %11000 = vmatprep.mubr.msk.bf16.mxu1 %vm17771_vm0, %v13556_v9  ;;  %10993 = vmatmul.mubr.msk.bf16.vlgmr.msra.gmra.mrb[0].mxu0 %vm17771_vm0, %v13558_v10  ;;  %v13571_v19 = vpack.c.bf16 %v361_v16, %v360_v13  ;;  %v363_v22 = vld [vmem:[%s343_s11 + $0x38] sm:$0xff]  ;;  %s18215_s13 = smov 281   ;;  %s18217_s9 = smov 297  }
  0x29   : > { %17968 = vst [vmem:[#allocation15_spill] sm:$0xff] %v13565_v15  ;;  %v13573_v20 = vpack.c.bf16 %v369_v18, %v368_v17  ;;  %v370_v23 = vld [vmem:[%s343_s11 + $0x70] sm:$0xff]  ;;  %11001 = vmatmul.mubr.msk.bf16.vlgmr.msra.gmra.mrb[0].mxu1 %vm17771_vm0, %v13565_v15  ;;  %v371_v26 = vld [vmem:[%s343_s11 + $0x78] sm:$0xff]  ;;  %v13599_v30 = vpack.c.bf16 %v363_v22, %v362_v21  ;;  %11027 = vmatpush3.bf16.msra.mxu0 %v13597_v29  ;;  %v380_v44 = vld [vmem:[%s13671_s14] sm:$0xff]  ;;  %s17826_s11 = smov 265   ;;  %s17858_s18 = smov 80  }
  0x2a   : > { %17969 = vst [vmem:[#allocation16_spill] sm:$0xff] %v13571_v19  ;;  %10996 = vmatprep.mubr.msk.bf16.mxu0 %vm17771_vm0, %v13571_v19  ;;  %11009 = vmatpush3.bf16.msra.mxu1 %v13538_v1  ;;  %v13602_v31 = vpack.c.bf16 %v371_v26, %v370_v23  ;;  %v382_v45 = vld [vmem:[%s13671_s14 + $0x10] sm:$0xff]  ;;  %v381_v46 = vld [vmem:[%s13671_s14 + $0x8] sm:$0xff]  ;;  %vm1229_vm1 = vcmp.eq.f32.partialorder %v380_v44, 0.0  ;;  %v383_v47 = vld [vmem:[%s13671_s14 + $0x18] sm:$0xff]  ;;  %s17885_s27 = smov 64  }
  0x2b   : > { %17970 = vst [vmem:[#allocation17_spill] sm:$0xff] %v13573_v20  ;;  %11004 = vmatprep.mubr.msk.bf16.mxu1 %vm17771_vm0, %v13573_v20  ;;  %17971 = vst [vmem:[#allocation18_spill] sm:$0xff] %v13599_v30  ;;  %12224 = vmatprep.subr.msk.bf16.mxu1 %vm17771_vm0, %v12717_v14  ;;  %vm1231_vm2 = vcmp.eq.f32.partialorder %v382_v45, 0.0  ;;  %vm1230_vm3 = vcmp.eq.f32.partialorder %v381_v46, 0.0  ;;  %v1245_v48 = vsel %vm1229_vm1, 1, %v13402_v43  ;;  %vm1232_vm4 = vcmp.eq.f32.partialorder %v383_v47, 0.0 }
  0x2c   : > { %17972 = vst [vmem:[#allocation19_spill] sm:$0xff] %v13602_v31  ;;  %v1247_v49 = vsel %vm1231_vm2, 1, %v13402_v43  ;;  %v384_v50 = vld [vmem:[%s13671_s14 + $0x20] sm:$0xff]  ;;  %v385_v51 = vld [vmem:[%s13671_s14 + $0x28] sm:$0xff]  ;;  %1262 = vperm.xlu0 %12433, %v1245_v48   ;;  %v1246_v52 = vsel %vm1230_vm3, 1, %v13402_v43  ;;  %v1248_v53 = vsel %vm1232_vm4, 1, %v13402_v43 }
  0x2d   : > { %1268 = vperm.xlu1 %12434, %v1247_v49   ;;  %vm1233_vm5 = vcmp.eq.f32.partialorder %v384_v50, 0.0  ;;  %vm1234_vm6 = vcmp.eq.f32.partialorder %v385_v51, 0.0  ;;  %v386_v54 = vld [vmem:[%s13671_s14 + $0x30] sm:$0xff]  ;;  %v387_v55 = vld [vmem:[%s13671_s14 + $0x38] sm:$0xff]  ;;  %v388_v58 = vld [vmem:[%s13671_s14 + $0x40] sm:$0xff]  ;;  %s17903_s29 = smov 48  }
  0x2e   : > { %v1249_v56 = vsel %vm1233_vm5, 1, %v13402_v43  ;;  %v1250_v57 = vsel %vm1234_vm6, 1, %v13402_v43  ;;  %vm1235_vm7 = vcmp.eq.f32.partialorder %v386_v54, 0.0  ;;  %vm1236_vm8 = vcmp.eq.f32.partialorder %v387_v55, 0.0  ;;  %v389_v59 = vld [vmem:[%s13671_s14 + $0x48] sm:$0xff]  ;;  %v390_v62 = vld [vmem:[%s13671_s14 + $0x50] sm:$0xff] }
  0x2f   : > { %v1251_v60 = vsel %vm1235_vm7, 1, %v13402_v43  ;;  %v1252_v61 = vsel %vm1236_vm8, 1, %v13402_v43  ;;  %vm1237_vm9 = vcmp.eq.f32.partialorder %v388_v58, 0.0  ;;  %vm1238_vm10 = vcmp.eq.f32.partialorder %v389_v59, 0.0  ;;  %v391_v63 = vld [vmem:[%s13671_s14 + $0x58] sm:$0xff]  ;;  %v392_v12 = vld [vmem:[%s13671_s14 + $0x60] sm:$0xff] }
  0x30   : > { %10997 = vmatmul.mubr.msk.bf16.gmra.mrb[4].mxu0 %vm17771_vm0, %v13599_v30  ;;  %1265 = vperm.xlu0 %12433, %v1246_v52   ;;  %v1253_v3 = vsel %vm1237_vm9, 1, %v13402_v43  ;;  %v1254_v4 = vsel %vm1238_vm10, 1, %v13402_v43  ;;  %vm1239_vm11 = vcmp.eq.f32.partialorder %v390_v62, 0.0  ;;  %vm1240_vm12 = vcmp.eq.f32.partialorder %v391_v63, 0.0  ;;  %v393_v17 = vld [vmem:[%s13671_s14 + $0x68] sm:$0xff]  ;;  %s17921_s17 = smov 32  }
  0x31   : > { %11005 = vmatmul.mubr.msk.bf16.gmra.mrb[4].mxu1 %vm17771_vm0, %v13602_v31  ;;  %11028 = vmatprep.mubr.msk.bf16.mxu0 %vm17771_vm0, %v13554_v5  ;;  %v1255_v23 = vsel %vm1239_vm11, 1, %v13402_v43  ;;  %vm1241_vm13 = vcmp.eq.f32.partialorder %v392_v12, 0.0  ;;  %vm1242_vm14 = vcmp.eq.f32.partialorder %v393_v17, 0.0  ;;  %s17939_s10 = smov 16  }
  0x32   : > { %11010 = vmatprep.mubr.msk.bf16.mxu1 %vm17771_vm0, %v13554_v5  ;;  %1271 = vperm.xlu1 %12434, %v1248_v53  }
  0x34   : > { %1274 = vperm.xlu0 %12433, %v1249_v56  }
  0x36   : > { %1277 = vperm.xlu1 %12434, %v1250_v57  }
  0x38   : > { %11029 = vmatmul.mubr.msk.bf16.vlgmr.msra.gmra.mrb[8].mxu0 %vm17771_vm0, %v13558_v10  ;;  %1280 = vperm.xlu0 %12433, %v1251_v60  }
  0x39   : > { %11011 = vmatmul.mubr.msk.bf16.vlgmr.msra.gmra.mrb[8].mxu1 %vm17771_vm0, %v13558_v10  ;;  %11032 = vmatprep.mubr.msk.bf16.mxu0 %vm17771_vm0, %v13571_v19 }
  0x3a   : > { %11014 = vmatprep.mubr.msk.bf16.mxu1 %vm17771_vm0, %v13571_v19  ;;  %11045 = vmatpush3.bf16.xpose.msra.mxu1 %v876_v32 }
  0x3b   : > { %12225 = vmatprep.subr.msk.bf16.mxu1 %vm17771_vm0, %v12718_v24  ;;  %1283 = vperm.xlu1 %12434, %v1252_v61  }
  0x3c   : > { %1286 = vperm.xlu0 %12433, %v1253_v3  }
  0x3f   : > { %1289 = vperm.xlu1 %12434, %v1254_v4  }
  0x40   : > { %11033 = vmatmul.mubr.msk.bf16.gmra.mrb[12].mxu0 %vm17771_vm0, %v13599_v30  ;;  %1292 = vperm.xlu0 %12433, %v1255_v23  }
  0x41   : > { %11015 = vmatmul.mubr.msk.bf16.gmra.mrb[12].mxu1 %vm17771_vm0, %v13599_v30  ;;  %11036 = vmatprep.mubr.msk.bf16.mxu0 %vm17771_vm0, %v13556_v9 }
  0x42   : > { %11018 = vmatprep.mubr.msk.bf16.mxu1 %vm17771_vm0, %v13556_v9  ;;  %11047 = vmatpush3.bf16.xpose.msra.mxu1 %v879_v33  ;;  %v1258_v33 = vsel %vm1242_vm14, 1, %v13402_v43 }
  0x43   : > { %12226 = vmatprep.subr.msk.bf16.mxu1 %vm17771_vm0, %v12719_v25  ;;  %v1256_v25 = vsel %vm1240_vm12, 1, %v13402_v43 }
  0x44   : > { %1295 = vperm.xlu1 %12434, %v1256_v25  }
  0x48   : > { %11037 = vmatmul.mubr.msk.bf16.gmra.mrb[16].mxu0 %vm17771_vm0, %v13565_v15  ;;  %1301 = vperm.xlu1 %12434, %v1258_v33  }
  0x49   : > { %11019 = vmatmul.mubr.msk.bf16.gmra.mrb[16].mxu1 %vm17771_vm0, %v13565_v15  ;;  %11040 = vmatprep.mubr.msk.bf16.mxu0 %vm17771_vm0, %v13573_v20 }
  0x4a   : > { %11022 = vmatprep.mubr.msk.bf16.mxu1 %vm17771_vm0, %v13573_v20  ;;  %11049 = vmatpush3.bf16.xpose.msra.mxu1 %v882_v34 }
  0x4b   : > { %12227 = vmatprep.subr.msk.bf16.mxu1 %vm17771_vm0, %v12720_v27  ;;  %v1257_v27 = vsel %vm1241_vm13, 1, %v13402_v43 }
  0x4c   : > { %1298 = vperm.xlu0 %12433, %v1257_v27  }
  0x50   : > { %11041 = vmatmul.mubr.msk.bf16.gmra.mrb[20].mxu0 %vm17771_vm0, %v13602_v31 }
  0x51   : > { %11023 = vmatmul.mubr.msk.bf16.gmra.mrb[20].mxu1 %vm17771_vm0, %v13602_v31 }
  0x52   : > { %11051 = vmatpush3.bf16.xpose.msra.mxu1 %v885_v35 }
  0x53   : > { %12228 = vmatprep.subr.msk.bf16.mxu1 %vm17771_vm0, %v12721_v28 }
  0x5a   : > { %11053 = vmatpush3.bf16.xpose.msra.mxu1 %v888_v36 }
  0x5b   : > { %12229 = vmatprep.subr.msk.bf16.mxu1 %vm17771_vm0, %v12723_v37 }
  0x62   : > { %11055 = vmatpush3.bf16.xpose.msra.mxu1 %v891_v38 }
  0x63   : > { %12230 = vmatprep.subr.msk.bf16.mxu1 %vm17771_vm0, %v12724_v39 }
  0x6a   : > { %11057 = vmatpush3.bf16.xpose.msra.mxu1 %v894_v40 }
  0x6b   : > { %12231 = vmatprep.subr.msk.bf16.mxu1 %vm17771_vm0, %v12725_v41 }
  0x72   : > { %11059 = vmatpush3.bf16.xpose.msra.mxu1 %v897_v42 }
  0xfb   : > { %v10994_v2 = vpop.f32.mrb[0].mxu0 }
  0xfc   : > { %v498_v6 = vpop.f32.mrb[1].mxu0  ;;  %v11002_v7 = vpop.f32.mrb[0].mxu1 }
  0xfd   : > { %v10995_v8 = vpop.f32.mrb[2].mxu0  ;;  %v530_v11 = vpop.f32.mrb[1].mxu1 }
  0xfe   : > { %v13698_v13 = vpack.c.bf16 %v10995_v8, %v10994_v2  ;;  %v501_v14 = vpop.f32.mrb[3].mxu0  ;;  %v11003_v16 = vpop.f32.mrb[2].mxu1 }
  0xff   : > { %v771_v18 = vpack.c.bf16 %v501_v14, %v498_v6  ;;  %v13701_v21 = vpack.c.bf16 %v11003_v16, %v11002_v7  ;;  %v533_v22 = vpop.f32.mrb[3].mxu1 }
 0x100   : > { %v13704_v24 = vpack.c.bf16 %v533_v22, %v530_v11 }
 0x101   : > { %11060 = vmatprep.mubr.msk.bf16.mxu1 %vm17771_vm0, %v771_v18  ;;  %11092 = vmatprep.mubr.msk.bf16.mxu0 %vm17771_vm0, %v771_v18 }
 0x102   : > { %11061 = vmatmul.mubr.msk.bf16.vlgmr.msra.gmra.mrb[24].mxu1 %vm17771_vm0, %v13698_v13 }
 0x103   : > { %v10998_v26 = vpop.f32.mrb[4].mxu0 }
 0x104   : > { %v514_v28 = vpop.f32.mrb[5].mxu0  ;;  %v11006_v32 = vpop.f32.mrb[4].mxu1 }
 0x105   : > { %v10999_v34 = vpop.f32.mrb[6].mxu0  ;;  %v546_v35 = vpop.f32.mrb[5].mxu1 }
 0x106   : > { %v13713_v36 = vpack.c.bf16 %v10999_v34, %v10998_v26  ;;  %v517_v37 = vpop.f32.mrb[7].mxu0  ;;  %v11007_v38 = vpop.f32.mrb[6].mxu1 }
 0x107   : > { %v773_v39 = vpack.c.bf16 %v517_v37, %v514_v28  ;;  %v13715_v40 = vpack.c.bf16 %v11007_v38, %v11006_v32  ;;  %v549_v41 = vpop.f32.mrb[7].mxu1 }
 0x108   : > { %v13717_v42 = vpack.c.bf16 %v549_v41, %v546_v35 }
 0x109   : > { %11064 = vmatprep.mubr.msk.bf16.mxu1 %vm17771_vm0, %v773_v39 }
 0x10a   : > { %11065 = vmatmul.mubr.msk.bf16.gmra.mrb[28].mxu1 %vm17771_vm0, %v13713_v36 }
 0x10b   : > { %11068 = vmatprep.mubr.msk.bf16.mxu1 %vm17771_vm0, %v13704_v24 }
 0x10c   : > { %v11012_v44 = vpop.f32.mrb[8].mxu1 }
 0x10d   : > { %v603_v45 = vpop.f32.mrb[9].mxu1 }
 0x10e   : > { %v11013_v46 = vpop.f32.mrb[10].mxu1 }
 0x10f   : > { %v780_v47 = vpack.c.bf16 %v11013_v46, %v11012_v44  ;;  %v606_v48 = vpop.f32.mrb[11].mxu1 }
 0x110   : > { %v779_v49 = vpack.c.bf16 %v606_v48, %v603_v45 }
 0x111   : > { %v1064_v56 = vsel %vm17771_vm0, %v780_v47, 0 }
 0x112   : > { %12232 = vmatprep.subr.msk.bf16.mxu0 %vm17771_vm0, %v779_v49  ;;  %11069 = vmatmul.mubr.msk.bf16.gmra.mrb[32].mxu1 %vm17771_vm0, %v13701_v21  ;;  %v1061_v50 = vsel %vm17771_vm0, %v779_v49, 0 }
 0x113   : > { %11077 = vmatpush3.bf16.xpose.msra.mxu0 %v1061_v50  ;;  %11072 = vmatprep.mubr.msk.bf16.mxu1 %vm17771_vm0, %v13717_v42 }
 0x114   : > { %12233 = vmatprep.subr.msk.bf16.mxu0 %vm17771_vm0, %v780_v47  ;;  %v11016_v51 = vpop.f32.mrb[12].mxu1 }
 0x115   : > { %v619_v52 = vpop.f32.mrb[13].mxu1 }
 0x116   : > { %v11017_v53 = vpop.f32.mrb[14].mxu1 }
 0x117   : > { %v782_v54 = vpack.c.bf16 %v11017_v53, %v11016_v51  ;;  %v622_v55 = vpop.f32.mrb[15].mxu1 }
 0x118   : > { %v781_v57 = vpack.c.bf16 %v622_v55, %v619_v52 }
 0x119   : > { %v1070_v11 = vsel %vm17771_vm0, %v782_v54, 0 }
 0x11a   : > { %11073 = vmatmul.mubr.msk.bf16.gmra.mrb[36].mxu1 %vm17771_vm0, %v13715_v40  ;;  %v1067_v63 = vsel %vm17771_vm0, %v781_v57, 0 }
 0x11b   : > { %11079 = vmatpush3.bf16.xpose.msra.mxu0 %v1064_v56 }
 0x11c   : > { %12234 = vmatprep.subr.msk.bf16.mxu0 %vm17771_vm0, %v781_v57  ;;  %v11020_v58 = vpop.f32.mrb[16].mxu1  ;;  %v395_v57 = vld [vmem:[%s13671_s14 + $0x78] sm:$0xff] }
 0x11d   : > { %v635_v59 = vpop.f32.mrb[17].mxu1  ;;  %vm1244_vm1 = vcmp.eq.f32.partialorder %v395_v57, 0.0 }
 0x11e   : > { %v11021_v60 = vpop.f32.mrb[18].mxu1 }
 0x11f   : > { %v784_v61 = vpack.c.bf16 %v11021_v60, %v11020_v58  ;;  %v638_v62 = vpop.f32.mrb[19].mxu1  ;;  %v1260_v60 = vsel %vm1244_vm1, 1, %v13402_v43 }
 0x120   : > { %v783_v2 = vpack.c.bf16 %v638_v62, %v635_v59 }
 0x121   : > { %v1076_v16 = vsel %vm17771_vm0, %v784_v61, 0 }
 0x122   : > { %v1073_v14 = vsel %vm17771_vm0, %v783_v2, 0 }
 0x123   : > { %11081 = vmatpush3.bf16.xpose.msra.mxu0 %v1067_v63 }
 0x124   : > { %12235 = vmatprep.subr.msk.bf16.mxu0 %vm17771_vm0, %v782_v54  ;;  %v11024_v3 = vpop.f32.mrb[20].mxu1  ;;  %v394_v54 = vld [vmem:[%s13671_s14 + $0x70] sm:$0xff]  ;;  %s17796_s14 = smov 353  }
 0x125   : > { %v651_v4 = vpop.f32.mrb[21].mxu1  ;;  %vm1243_vm15 = vcmp.eq.f32.partialorder %v394_v54, 0.0 }
 0x126   : > { %v11025_v6 = vpop.f32.mrb[22].mxu1  ;;  %v1259_v59 = vsel %vm1243_vm15, 1, %v13402_v43  ;;  %v13785_v43 = vpop.permute.xlu1 %1268 }
 0x127   : > { %v786_v7 = vpack.c.bf16 %v11025_v6, %v11024_v3  ;;  %v654_v8 = vpop.f32.mrb[23].mxu1  ;;  %v13783_v3 = vpop.permute.xlu0 %1262  ;;  %vm17757_vm8 = vcmp.eq.s32.totalorder %v13785_v43, 1 }
 0x128   : > { %v785_v12 = vpack.c.bf16 %v654_v8, %v651_v4  ;;  %vm17761_vm5 = vcmp.eq.s32.totalorder %v13783_v3, 1 }
 0x129   : > { %v1082_v18 = vsel %vm17771_vm0, %v786_v7, 0 }
 0x12a   : > { %v1079_v17 = vsel %vm17771_vm0, %v785_v12, 0 }
 0x12b   : > { %11083 = vmatpush3.bf16.xpose.msra.mxu0 %v1070_v11  ;;  %v13787_v6 = vpop.permute.xlu0 %1265  ;;  %v13789_v11 = vpop.permute.xlu1 %1271 }
 0x12c   : > { %12236 = vmatprep.subr.msk.bf16.mxu0 %vm17771_vm0, %v783_v2  ;;  %vm17758_vm6 = vcmp.eq.s32.totalorder %v13787_v6, 1  ;;  %vm17756_vm10 = vcmp.eq.s32.totalorder %v13789_v11, 1 }
 0x133   : > { %11085 = vmatpush3.bf16.xpose.msra.mxu0 %v1073_v14  ;;  %v13791_v14 = vpop.permute.xlu0 %1274 }
 0x134   : > { %12237 = vmatprep.subr.msk.bf16.mxu0 %vm17771_vm0, %v784_v61  ;;  %vm17753_vm13 = vcmp.eq.s32.totalorder %v13791_v14, 1 }
 0x13b   : > { %11087 = vmatpush3.bf16.xpose.msra.mxu0 %v1076_v16 }
 0x13c   : > { %12238 = vmatprep.subr.msk.bf16.mxu0 %vm17771_vm0, %v785_v12 }
 0x143   : > { %11089 = vmatpush3.bf16.xpose.msra.mxu0 %v1079_v17  ;;  %v13793_v17 = vpop.permute.xlu1 %1277 }
 0x144   : > { %12239 = vmatprep.subr.msk.bf16.mxu0 %vm17771_vm0, %v786_v7  ;;  %vm17755_vm15 = vcmp.eq.s32.totalorder %v13793_v17, 1 }
 0x14b   : > { %11091 = vmatpush3.bf16.xpose.msra.mxu0 %v1082_v18 }
 0x14c   : > { %11140 = vmatprep.subr.bf16.mxu0 %v13532_v0 }
 0x152   : > { %11093 = vmatmul.mubr.msk.bf16.vlgmr.msra.gmra.mrb[24].mxu0 %vm17771_vm0, %v13698_v13  ;;  %v11030_v13 = vpop.f32.mrb[8].mxu0 }
 0x153   : > { %11096 = vmatprep.mubr.msk.bf16.mxu0 %vm17771_vm0, %v773_v39  ;;  %11141 = vmatpush3.bf16.msra.mxu0 %v13532_v0  ;;  %v708_v22 = vpop.f32.mrb[9].mxu0 }
 0x154   : > { %11176 = vmatprep.subr.bf16.mxu0 %v13597_v29  ;;  %v11031_v0 = vpop.f32.mrb[10].mxu0 }
 0x155   : > { %v788_v23 = vpack.c.bf16 %v11031_v0, %v11030_v13  ;;  %v711_v29 = vpop.f32.mrb[11].mxu0  ;;  %v13797_v0 = vpop.permute.xlu0 %1280 }
 0x156   : > { %v787_v25 = vpack.c.bf16 %v711_v29, %v708_v22  ;;  %v11034_v26 = vpop.f32.mrb[12].mxu0  ;;  %vm17754_vm1 = vcmp.eq.s32.totalorder %v13797_v0, 1 }
 0x157   : > { %v724_v27 = vpop.f32.mrb[13].mxu0 }
 0x158   : > { %11108 = vmatprep.subr.bf16.mxu1 %v787_v25  ;;  %v11035_v28 = vpop.f32.mrb[14].mxu0 }
 0x159   : > { %11109 = vmatpush3.bf16.msra.mxu1 %v787_v25  ;;  %v727_v32 = vpop.f32.mrb[15].mxu0 }
 0x15a   : > { %11097 = vmatmul.mubr.msk.bf16.gmra.mrb[28].mxu0 %vm17771_vm0, %v13713_v36  ;;  %11110 = vmatprep.subr.bf16.mxu1 %v788_v23  ;;  %v11038_v33 = vpop.f32.mrb[16].mxu0 }
 0x15b   : > { %11100 = vmatprep.mubr.msk.bf16.mxu0 %vm17771_vm0, %v13704_v24  ;;  %v790_v24 = vpack.c.bf16 %v11035_v28, %v11034_v26  ;;  %v740_v34 = vpop.f32.mrb[17].mxu0 }
 0x15c   : > { %v11039_v35 = vpop.f32.mrb[18].mxu0 }
 0x15d   : > { %11111 = vmatpush3.bf16.msra.mxu1 %v788_v23  ;;  %v792_v36 = vpack.c.bf16 %v11039_v35, %v11038_v33  ;;  %v743_v37 = vpop.f32.mrb[19].mxu0  ;;  %v13799_v23 = vpop.permute.xlu1 %1283 }
 0x15e   : > { %v791_v38 = vpack.c.bf16 %v743_v37, %v740_v34  ;;  %v11042_v39 = vpop.f32.mrb[20].mxu0  ;;  %v396_v37 = vlaneseq }
 0x162   : > { %11101 = vmatmul.mubr.msk.bf16.gmra.mrb[32].mxu0 %vm17771_vm0, %v13701_v21  ;;  %v789_v21 = vpack.c.bf16 %v727_v32, %v724_v27  ;;  %v13807_v27 = vpop.permute.xlu0 %1286 }
 0x163   : > { %11104 = vmatprep.mubr.msk.bf16.mxu0 %vm17771_vm0, %v13717_v42 }
 0x164   : > { %11112 = vmatprep.subr.bf16.mxu1 %v789_v21 }
 0x165   : > { %11113 = vmatpush3.bf16.msra.mxu1 %v789_v21 }
 0x166   : > { %11114 = vmatprep.subr.bf16.mxu1 %v790_v24  ;;  %v13815_v21 = vpop.permute.xlu0 %1292 }
 0x169   : > { %11115 = vmatpush3.bf16.msra.mxu1 %v790_v24  ;;  %v13811_v24 = vpop.permute.xlu1 %1289 }
 0x16a   : > { %11105 = vmatmul.mubr.msk.bf16.gmra.mrb[36].mxu0 %vm17771_vm0, %v13715_v40  ;;  %v756_v40 = vpop.f32.mrb[21].mxu0  ;;  %11116 = vmatprep.subr.bf16.mxu1 %v791_v38  ;;  %17974 = vst [vmem:[#allocation20_spill] sm:$0xff] %v13811_v24 }
 0x16b   : > { %v11043_v41 = vpop.f32.mrb[22].mxu0 }
 0x16c   : > { %v794_v42 = vpack.c.bf16 %v11043_v41, %v11042_v39  ;;  %v759_v44 = vpop.f32.mrb[23].mxu0 }
 0x16d   : > { %v793_v45 = vpack.c.bf16 %v759_v44, %v756_v40  ;;  %11117 = vmatpush3.bf16.msra.mxu1 %v791_v38  ;;  %v13821_v35 = vpop.permute.xlu1 %1295  ;;  %v13825_v38 = vpop.permute.xlu0 %1298  ;;  %v13829_v40 = vshrl.u32 %v396_v37, 7  ;;  %v13831_v44 = vand.u32 127, %v396_v37 }
 0x16e   : > { %11118 = vmatprep.subr.bf16.mxu1 %v792_v36  ;;  %17975 = vst [vmem:[#allocation21_spill] sm:$0xff] %v13821_v35 }
 0x16f   : > { %vm13837_vm2 = vcmp.gt.s32.totalorder %v13831_v44, %v13829_v40  ;;  %v403_v37 = vadd.s32 48, %v13829_v40 }
 0x171   : > { %11119 = vmatpush3.bf16.msra.mxu1 %v792_v36  ;;  %v13827_v39 = vpop.permute.xlu1 %1301  ;;  %vm13893_vm11 = vcmp.gt.s32.totalorder %v13831_v44, %v403_v37 }
 0x172   : > { %11120 = vmatprep.subr.bf16.mxu1 %v793_v45  ;;  %17976 = vst [vmem:[#allocation22_spill] sm:$0xff] %v13827_v39 }
 0x175   : > { %11121 = vmatpush3.bf16.msra.mxu1 %v793_v45  ;;  %v398_v45 = vadd.s32 8, %v13829_v40 }
 0x176   : > { %11122 = vmatprep.subr.bf16.mxu1 %v794_v42 }
 0x177   : > { %vm13842_vm3 = vcmp.gt.s32.totalorder %v13831_v44, %v398_v45 }
 0x179   : > { %11123 = vmatpush3.bf16.msra.mxu1 %v794_v42 }
 0x17a   : > { %11158 = vmatprep.subr.bf16.mxu1 %v13538_v1 }
 0x1d5   : > { %v11062_v46 = vpop.f32.mrb[24].mxu1 }
 0x1d6   : > { %1006 = vrot.lane.b32.xlu0 %v11062_v46, %s17822_s23  ;;  %v933_v47 = vpop.f32.mrb[25].mxu1  ;;  %v399_v46 = vadd.s32 16, %v13829_v40 }
 0x1d7   : > { %v11063_v48 = vpop.f32.mrb[26].mxu1 }
 0x1d8   : > { %1010 = vrot.lane.b32.xlu1 %v11063_v48, %s17820_s24  ;;  %v936_v49 = vpop.f32.mrb[27].mxu1  ;;  %vm13847_vm4 = vcmp.gt.s32.totalorder %v13831_v44, %v399_v46 }
 0x1da   : > { %998 = vrot.lane.b32.xlu0 %v933_v47, %s17834_s16 }
 0x1dc   : > { %1002 = vrot.lane.b32.xlu1 %v936_v49, %s17826_s11 }
 0x1dd   : > { %v11066_v50 = vpop.f32.mrb[28].mxu1 }
 0x1de   : > { %1022 = vrot.lane.b32.xlu0 %v11066_v50, %s17814_s19  ;;  %v949_v1 = vpop.f32.mrb[29].mxu1  ;;  %s18095_s19 = smov 337  }
 0x1df   : > { %v11067_v51 = vpop.f32.mrb[30].mxu1 }
 0x1e0   : > { %1026 = vrot.lane.b32.xlu1 %v11067_v51, %s17745_s20  ;;  %v952_v52 = vpop.f32.mrb[31].mxu1  ;;  %s17812_s20 = smov 329  }
 0x1e2   : > { %1014 = vrot.lane.b32.xlu0 %v949_v1, %s17816_s21 }
 0x1e4   : > { %1018 = vrot.lane.b32.xlu1 %v952_v52, %s17818_s22 }
 0x1e5   : > { %v11070_v53 = vpop.f32.mrb[32].mxu1 }
 0x1e6   : > { %1038 = vrot.lane.b32.xlu0 %v11070_v53, %s17749_s25  ;;  %v965_v55 = vpop.f32.mrb[33].mxu1  ;;  %s17792_s25 = smov 369  }
 0x1e7   : > { %v11071_v56 = vpop.f32.mrb[34].mxu1 }
 0x1e8   : > { %1042 = vrot.lane.b32.xlu1 %v11071_v56, %s17747_s26  ;;  %v968_v58 = vpop.f32.mrb[35].mxu1  ;;  %s17794_s26 = smov 361   ;;  %v400_v56 = vadd.s32 24, %v13829_v40 }
 0x1ea   : > { %1030 = vrot.lane.b32.xlu0 %v965_v55, %s17751_s12  ;;  %s17784_s12 = smov 377   ;;  %vm13871_vm7 = vcmp.gt.s32.totalorder %v13831_v44, %v400_v56 }
 0x1ec   : > { %1034 = vrot.lane.b32.xlu1 %v968_v58, %s17812_s20  ;;  %s18096_s20 = smov 345  }
 0x1ed   : > { %v11074_v61 = vpop.f32.mrb[36].mxu1 }
 0x1ee   : > { %1304 = vperm.xlu0 %12433, %v1259_v59   ;;  %v981_v62 = vpop.f32.mrb[37].mxu1 }
 0x1ef   : > { %v11075_v63 = vpop.f32.mrb[38].mxu1 }
 0x1f0   : > { %1307 = vperm.xlu1 %12434, %v1260_v60   ;;  %v984_v2 = vpop.f32.mrb[39].mxu1 }
 0x1f2   : > { %1046 = vrot.lane.b32.xlu0 %v981_v62, %s17796_s14  ;;  %v401_v62 = vadd.s32 32, %v13829_v40  ;;  %s18092_s14 = smov 313  }
 0x1f4   : > { %1050 = vrot.lane.b32.xlu1 %v984_v2, %s17794_s26  ;;  %vm13884_vm9 = vcmp.gt.s32.totalorder %v13831_v44, %v401_v62  ;;  %s18094_s26 = smov 329  }
 0x1f6   : > { %1054 = vrot.lane.b32.xlu0 %v11074_v61, %s17792_s25  ;;  %s18093_s25 = smov 321  }
 0x1f8   : > { %1058 = vrot.lane.b32.xlu1 %v11075_v63, %s17784_s12  ;;  %s17790_s12 = smov 112  }
 0x225   : > { %v11094_v4 = vpop.f32.mrb[24].mxu0 }
 0x226   : > { %v1118_v7 = vpop.f32.mrb[25].mxu0  ;;  %v1183_v47 = vmul.f32 0.088388346, %v11094_v4 }
 0x227   : > { %v11095_v8 = vpop.f32.mrb[26].mxu0  ;;  %v1181_v48 = vmul.f32 0.088388346, %v1118_v7 }
 0x228   : > { %v1121_v12 = vpop.f32.mrb[27].mxu0  ;;  %v1184_v57 = vmul.f32 0.088388346, %v11095_v8 }
 0x229   : > { %v1182_v1 = vmul.f32 0.088388346, %v1121_v12 }
 0x22d   : > { %v11098_v16 = vpop.f32.mrb[28].mxu0 }
 0x22e   : > { %v1134_v18 = vpop.f32.mrb[29].mxu0 }
 0x22f   : > { %v13795_v13 = vpop.f32.mrb[30].mxu0  ;;  %v1185_v45 = vmul.f32 0.088388346, %v1134_v18 }
 0x230   : > { %v1137_v22 = vpop.f32.mrb[31].mxu0  ;;  %v1188_v56 = vmul.f32 0.088388346, %v13795_v13 }
 0x235   : > { %v13801_v29 = vpop.f32.mrb[32].mxu0 }
 0x236   : > { %v13803_v25 = vpop.f32.mrb[33].mxu0 }
 0x237   : > { %v13805_v26 = vpop.f32.mrb[34].mxu0 }
 0x238   : > { %v13809_v28 = vpop.f32.mrb[35].mxu0 }
 0x23d   : > { %v13813_v32 = vpop.f32.mrb[36].mxu0 }
 0x23e   : > { %v13817_v33 = vpop.f32.mrb[37].mxu0 }
 0x23f   : > { %v13819_v34 = vpop.f32.mrb[38].mxu0 }
 0x240   : > { %v13823_v36 = vpop.f32.mrb[39].mxu0 }
 0x248   : > { %v1007_v41 = vpop.permute.xlu0 %1006 }
 0x249   : > { %v1199_v51 = vadd.f32 %v1183_v47, %v1007_v41  ;;  %v402_v41 = vadd.s32 40, %v13829_v40 }
 0x24a   : > { %v1011_v42 = vpop.permute.xlu1 %1010 }
 0x24b   : > { %v1200_v63 = vadd.f32 %v1184_v57, %v1011_v42  ;;  %v1215_v4 = vsel %vm13847_vm4, -1e+09, %v1199_v51  ;;  %v1187_v42 = vmul.f32 0.088388346, %v11098_v16  ;;  %vm13898_vm12 = vcmp.gt.s32.totalorder %v13831_v44, %v402_v41 }
 0x24c   : > { %v999_v49 = vpop.permute.xlu0 %998  ;;  %v13881_v47 = vsel %vm17757_vm8, -1e+09, %v1215_v4  ;;  %vm17760_vm8 = vcmp.eq.s32.totalorder %v13807_v27, 1 }
 0x24d   : > { %v1197_v52 = vadd.f32 %v1181_v48, %v999_v49  ;;  %v1186_v49 = vmul.f32 0.088388346, %v1137_v22  ;;  %v1216_v16 = vsel %vm13871_vm7, -1e+09, %v1200_v63  ;;  %v404_v22 = vadd.s32 56, %v13829_v40 }
 0x24e   : > { %v1003_v53 = vpop.permute.xlu1 %1002  ;;  %v405_v63 = vadd.s32 64, %v13829_v40 }
 0x24f   : > { %v1198_v58 = vadd.f32 %v1182_v1, %v1003_v53  ;;  %v1213_v59 = vsel %vm13837_vm2, -1e+09, %v1197_v52  ;;  %vm13923_vm14 = vcmp.gt.s32.totalorder %v13831_v44, %v404_v22 }
 0x250   : > { %v1023_v60 = vpop.permute.xlu0 %1022  ;;  %v13857_v61 = vsel %vm17761_vm5, -1e+09, %v1213_v59  ;;  %vm17763_vm5 = vcmp.eq.s32.totalorder %v13821_v35, 1  ;;  %v412_v35 = vadd.s32 120, %v13829_v40 }
 0x251   : > { %1341 = vmax.xlane.f32.xlu0 %v13857_v61  ;;  %v1214_v2 = vsel %vm13842_vm3, -1e+09, %v1198_v58  ;;  %v1203_v1 = vadd.f32 %v1187_v42, %v1023_v60  ;;  %v13909_v60 = vsel %vm17756_vm10, -1e+09, %v1216_v16  ;;  %v407_v42 = vadd.s32 80, %v13829_v40 }
 0x252   : > { %v1027_v7 = vpop.permute.xlu1 %1026  ;;  %v13868_v8 = vsel %vm17758_vm6, -1e+09, %v1214_v2  ;;  %v17993_v16 = vmov 0 }
 0x253   : > { %1343 = vmax.xlane.f32.xlu1 %v13868_v8  ;;  %v1204_v2 = vadd.f32 %v1188_v56, %v1027_v7  ;;  %v1219_v13 = vsel %vm13893_vm11, -1e+09, %v1203_v1  ;;  %v406_v7 = vadd.s32 72, %v13829_v40 }
 0x254   : > { %v1015_v46 = vpop.permute.xlu0 %1014  ;;  %v13935_v1 = vsel %vm17754_vm1, -1e+09, %v1219_v13  ;;  %vm17759_vm1 = vcmp.eq.s32.totalorder %v13799_v23, 1 }
 0x255   : > { %v1201_v51 = vadd.f32 %v1185_v45, %v1015_v46  ;;  %1345 = vmax.xlane.f32.xlu0 %v13881_v47  ;;  %v1191_v45 = vmul.f32 0.088388346, %v13801_v29  ;;  %v1189_v46 = vmul.f32 0.088388346, %v13803_v25  ;;  %v1220_v25 = vsel %vm13923_vm14, -1e+09, %v1204_v2 }
 0x256   : > { %v1019_v18 = vpop.permute.xlu1 %1018  ;;  %vm13958_vm10 = vcmp.gt.s32.totalorder %v13831_v44, %v406_v7  ;;  %v13969_v13 = vsel %vm17759_vm1, -1e+09, %v1220_v25  ;;  %vm17762_vm1 = vcmp.eq.s32.totalorder %v13811_v24, 1 }
 0x257   : > { %v1202_v57 = vadd.f32 %v1186_v49, %v1019_v18  ;;  %v1217_v58 = vsel %vm13884_vm9, -1e+09, %v1201_v51  ;;  %v1190_v18 = vmul.f32 0.088388346, %v13809_v28  ;;  %v17997_v28 = vmov 0 }
 0x258   : > { %v1039_v59 = vpop.permute.xlu0 %1038  ;;  %v13913_v62 = vsel %vm17753_vm13, -1e+09, %v1217_v58  ;;  %vm13942_vm13 = vcmp.gt.s32.totalorder %v13831_v44, %v405_v63  ;;  %v17998_v28 = vsel %vm13958_vm10, 4294967295, %v17997_v28  ;;  %v408_v58 = vadd.s32 88, %v13829_v40 }
 0x259   : > { %1347 = vmax.xlane.f32.xlu0 %v13909_v60  ;;  %1349 = vmax.xlane.f32.xlu1 %v13913_v62  ;;  %v1218_v4 = vsel %vm13898_vm12, -1e+09, %v1202_v57  ;;  %v17994_v16 = vsel %vm13942_vm13, 4294967295, %v17993_v16  ;;  %v1207_v22 = vadd.f32 %v1191_v45, %v1039_v59  ;;  %v17995_v57 = vmov 0 }
 0x25a   : > { %v1043_v37 = vpop.permute.xlu1 %1042  ;;  %v13939_v51 = vsel %vm17755_vm15, -1e+09, %v1218_v4  ;;  %vm13953_vm15 = vcmp.gt.s32.totalorder %v13831_v44, %v407_v42  ;;  %v1192_v59 = vmul.f32 0.088388346, %v13805_v26  ;;  %vm13982_vm6 = vcmp.gt.s32.totalorder %v13831_v44, %v408_v58 }
 0x25b   : > { %v17996_v57 = vsel %vm13953_vm15, 4294967295, %v17995_v57  ;;  %v1223_v26 = vsel %vm13953_vm15, -1e+09, %v1207_v22  ;;  %v17999_v45 = vmov 0  ;;  %v1193_v58 = vmul.f32 0.088388346, %v13817_v33 }
 0x25c   : > { %v1031_v49 = vpop.permute.xlu0 %1030  ;;  %v1208_v42 = vadd.f32 %v1192_v59, %v1043_v37  ;;  %v18000_v45 = vsel %vm13982_vm6, 4294967295, %v17999_v45  ;;  %v1195_v33 = vmul.f32 0.088388346, %v13813_v32 }
 0x25d   : > { %v1205_v29 = vadd.f32 %v1189_v46, %v1031_v49  ;;  %1353 = vmax.xlane.f32.xlu1 %v13935_v1  ;;  %1351 = vmax.xlane.f32.xlu0 %v13939_v51  ;;  %18001 = vst [vmem:[#allocation23_spill] sm:$0xff] %v18000_v45 }
 0x25e   : > { %v1035_v56 = vpop.permute.xlu1 %1034  ;;  %v1224_v49 = vsel %vm13982_vm6, -1e+09, %v1208_v42  ;;  %v1194_v42 = vmul.f32 0.088388346, %v13823_v36  ;;  %vm17777_vm6 = vcmp.eq.s32.totalorder %v13827_v39, 1 }
 0x25f   : > { %v1206_v63 = vadd.f32 %v1190_v18, %v1035_v56  ;;  %v1221_v2 = vsel %vm13942_vm13, -1e+09, %v1205_v29  ;;  %v14003_v18 = vsel %vm17763_vm5, -1e+09, %v1224_v49  ;;  %v409_v29 = vadd.s32 96, %v13829_v40 }
 0x260   : > { %v13973_v4 = vsel %vm17760_vm8, -1e+09, %v1221_v2  ;;  %vm17766_vm8 = vcmp.eq.s32.totalorder %v13815_v21, 1  ;;  %v410_v56 = vadd.s32 104, %v13829_v40  ;;  %v411_v2 = vadd.s32 112, %v13829_v40 }
 0x261   : > { %1355 = vmax.xlane.f32.xlu0 %v13969_v13  ;;  %1357 = vmax.xlane.f32.xlu1 %v13973_v4  ;;  %v1222_v7 = vsel %vm13958_vm10, -1e+09, %v1206_v63  ;;  %v13990_v37 = vsel %vm17766_vm8, -1e+09, %v1223_v26  ;;  %v18004_v63 = vmov 0  ;;  %v18006_v49 = vmov 0 }
 0x262   : > { %v13994_v46 = vsel %vm17762_vm1, -1e+09, %v1222_v7  ;;  %vm14014_vm1 = vcmp.gt.s32.totalorder %v13831_v44, %v409_v29  ;;  %vm14021_vm5 = vcmp.gt.s32.totalorder %v13831_v44, %v410_v56  ;;  %vm17774_vm8 = vcmp.eq.s32.totalorder %v13825_v38, 1 }
 0x263   : > { %v18005_v63 = vsel %vm14014_vm1, 4294967295, %v18004_v63  ;;  %v18007_v49 = vsel %vm14021_vm5, 4294967295, %v18006_v49  ;;  %vm14035_vm0 = vcmp.gt.s32.totalorder %v13831_v44, %v411_v2  ;;  %v18008_v56 = vmov 0 }
 0x264   : > { %v18009_v56 = vsel %vm14035_vm0, 4294967295, %v18008_v56  ;;  %v1196_v40 = vmul.f32 0.088388346, %v13819_v34  ;;  %v18010_v2 = vmov 0 }
 0x265   : > { %1361 = vmax.xlane.f32.xlu1 %v13990_v37  ;;  %1359 = vmax.xlane.f32.xlu0 %v13994_v46 }
 0x269   : > { %1363 = vmax.xlane.f32.xlu0 %v14003_v18 }
 0x26d   : > { %v14006_v22 = vpop.permute.xlu0 %1304 }
 0x26e   : > { %18002 = vst [vmem:[#allocation24_spill] sm:$0xff] %v14006_v22 }
 0x26f   : > { %v14009_v25 = vpop.permute.xlu1 %1307 }
 0x270   : > { %18003 = vst [vmem:[#allocation25_spill] sm:$0xff] %v14009_v25 }
 0x271   : > { %v1047_v59 = vpop.permute.xlu0 %1046 }
 0x272   : > { %v1209_v26 = vadd.f32 %v1193_v58, %v1047_v59 }
 0x273   : > { %v1051_v7 = vpop.permute.xlu1 %1050 }
 0x274   : > { %v1210_v29 = vadd.f32 %v1194_v42, %v1051_v7  ;;  %v1225_v45 = vsel %vm14014_vm1, -1e+09, %v1209_v26  ;;  %vm17799_vm1 = vcmp.eq.s32.totalorder %v14006_v22, 1 }
 0x275   : > { %v1055_v24 = vpop.permute.xlu0 %1054  ;;  %v14032_v36 = vsel %vm17774_vm8, -1e+09, %v1225_v45  ;;  %vm14049_vm8 = vcmp.gt.s32.totalorder %v13831_v44, %v412_v35 }
 0x276   : > { %v1211_v58 = vadd.f32 %v1195_v33, %v1055_v24  ;;  %1365 = vmax.xlane.f32.xlu1 %v14032_v36  ;;  %v1226_v32 = vsel %vm14021_vm5, -1e+09, %v1210_v29  ;;  %v18011_v2 = vsel %vm14049_vm8, 4294967295, %v18010_v2 }
 0x277   : > { %v1059_v59 = vpop.permute.xlu1 %1058  ;;  %v14046_v45 = vsel %vm17777_vm6, -1e+09, %v1226_v32  ;;  %18012 = vst [vmem:[#allocation26_spill] sm:$0xff] %v18011_v2  ;;  %vm17798_vm6 = vcmp.eq.s32.totalorder %v14009_v25, 1 }
 0x278   : > { %v1212_v42 = vadd.f32 %v1196_v40, %v1059_v59  ;;  %1367 = vmax.xlane.f32.xlu0 %v14046_v45  ;;  %v1227_v24 = vsel %vm14035_vm0, -1e+09, %v1211_v58 }
 0x279   : > { %v14059_v34 = vsel %vm17799_vm1, -1e+09, %v1227_v24 }
 0x27a   : > { %1369 = vmax.xlane.f32.xlu1 %v14059_v34  ;;  %v1228_v35 = vsel %vm14049_vm8, -1e+09, %v1212_v42 }
 0x27b   : > { %v14067_v44 = vsel %vm17798_vm6, -1e+09, %v1228_v35  ;;  %vm18013_vm6 = vcmask 130048  }
 0x27c   : > { %1371 = vmax.xlane.f32.xlu0 %v14067_v44  ;;  %vm18014_vm1 = vmmov %vm18013_vm6 }
 0x27d   : > { %vm18015_vm8 = vmmov %vm18014_vm1 }
 0x27e   : > { %vm18018_vm0 = vmmov %vm18014_vm1 }
 0x27f   : > { %vm18019_vm5 = vmmov %vm18018_vm0 }
 0x280   : > { %vm18020_vm15 = vmmov %vm18018_vm0 }
 0x281   : > { %vm18022_vm10 = vmmov %vm18018_vm0 }
 0x282   : > { %vm18027_vm13 = vmmov %vm18018_vm0 }
 0x2de   : > { %v1342_v26 = vpop.xlane.xlu0 %1341 }
 0x2df   : > { %v1373_v7 = vsub.f32 %v13857_v61, %v1342_v26 }
 0x2e0   : > { %v1344_v33 = vpop.xlane.xlu1 %1343 }
 0x2e1   : > { %v1389_v29 = vmul.f32 1.442695, %v1373_v7  ;;  %v1374_v40 = vsub.f32 %v13868_v8, %v1344_v33 }
 0x2e2   : > { %v1346_v58 = vpop.xlane.xlu0 %1345 }
 0x2e3   : > { %12790 = vpow2.f32 %v1389_v29  ;;  %v1391_v32 = vmul.f32 1.442695, %v1374_v40  ;;  %v1375_v59 = vsub.f32 %v13881_v47, %v1346_v58 }
 0x2e5   : > { %12792 = vpow2.f32 %v1391_v32  ;;  %v1393_v42 = vmul.f32 1.442695, %v1375_v59 }
 0x2e6   : > { %v1348_v24 = vpop.xlane.xlu0 %1347  ;;  %v1350_v25 = vpop.xlane.xlu1 %1349 }
 0x2e7   : > { %12794 = vpow2.f32 %v1393_v42  ;;  %v1376_v35 = vsub.f32 %v13909_v60, %v1348_v24  ;;  %v1377_v2 = vsub.f32 %v13913_v62, %v1350_v25 }
 0x2e9   : > { %v1395_v39 = vmul.f32 1.442695, %v1376_v35  ;;  %v1397_v61 = vmul.f32 1.442695, %v1377_v2 }
 0x2ea   : > { %v1354_v26 = vpop.xlane.xlu1 %1353  ;;  %v1352_v7 = vpop.xlane.xlu0 %1351 }
 0x2eb   : > { %12796 = vpow2.f32 %v1395_v39  ;;  %v1379_v8 = vsub.f32 %v13935_v1, %v1354_v26  ;;  %v1378_v33 = vsub.f32 %v13939_v51, %v1352_v7 }
 0x2ec   : > { %12798 = vpow2.f32 %v1397_v61 }
 0x2ed   : > { %v14077_v47 = vpop.eup %12790  ;;  %v1401_v29 = vmul.f32 1.442695, %v1379_v8  ;;  %v1399_v40 = vmul.f32 1.442695, %v1378_v33 }
 0x2ee   : > { %v1356_v58 = vpop.xlane.xlu0 %1355  ;;  %v1358_v32 = vpop.xlane.xlu1 %1357  ;;  %1421 = vadd.xlane.f32.xlu1 %v14077_v47 }
 0x2ef   : > { %v14080_v60 = vpop.eup %12792  ;;  %12800 = vpow2.f32 %v1401_v29  ;;  %v1380_v62 = vsub.f32 %v13969_v13, %v1356_v58  ;;  %v1381_v39 = vsub.f32 %v13973_v4, %v1358_v32 }
 0x2f0   : > { %12802 = vpow2.f32 %v1399_v40  ;;  %1423 = vadd.xlane.f32.xlu0 %v14080_v60 }
 0x2f1   : > { %v14085_v1 = vpop.eup %12794  ;;  %v1403_v51 = vmul.f32 1.442695, %v1380_v62  ;;  %v1405_v25 = vmul.f32 1.442695, %v1381_v39 }
 0x2f2   : > { %v1362_v2 = vpop.xlane.xlu1 %1361  ;;  %v1360_v59 = vpop.xlane.xlu0 %1359  ;;  %1425 = vadd.xlane.f32.xlu1 %v14085_v1 }
 0x2f3   : > { %12804 = vpow2.f32 %v1403_v51  ;;  %v1383_v42 = vsub.f32 %v13990_v37, %v1362_v2  ;;  %v1382_v24 = vsub.f32 %v13994_v46, %v1360_v59 }
 0x2f4   : > { %12806 = vpow2.f32 %v1405_v25 }
 0x2f5   : > { %v14090_v13 = vpop.eup %12796  ;;  %v1409_v4 = vmul.f32 1.442695, %v1383_v42  ;;  %v1407_v35 = vmul.f32 1.442695, %v1382_v24 }
 0x2f6   : > { %v14092_v61 = vpop.eup %12798  ;;  %v1364_v26 = vpop.xlane.xlu0 %1363  ;;  %1427 = vadd.xlane.f32.xlu0 %v14090_v13 }
 0x2f7   : > { %12808 = vpow2.f32 %v1409_v4  ;;  %v1384_v7 = vsub.f32 %v14003_v18, %v1364_v26  ;;  %1429 = vadd.xlane.f32.xlu1 %v14092_v61 }
 0x2f8   : > { %12810 = vpow2.f32 %v1407_v35 }
 0x2f9   : > { %v14097_v8 = vpop.eup %12800  ;;  %v1411_v37 = vmul.f32 1.442695, %v1384_v7 }
 0x2fa   : > { %v14099_v46 = vpop.eup %12802 }
 0x2fb   : > { %12812 = vpow2.f32 %v1411_v37  ;;  %1433 = vadd.xlane.f32.xlu1 %v14097_v8  ;;  %1431 = vadd.xlane.f32.xlu0 %v14099_v46 }
 0x2fd   : > { %v14103_v33 = vpop.eup %12804 }
 0x2fe   : > { %v14105_v29 = vpop.eup %12806 }
 0x2ff   : > { %1437 = vadd.xlane.f32.xlu1 %v14105_v29  ;;  %1435 = vadd.xlane.f32.xlu0 %v14103_v33 }
 0x301   : > { %v14109_v18 = vpop.eup %12808 }
 0x302   : > { %v14111_v40 = vpop.eup %12810 }
 0x303   : > { %1441 = vadd.xlane.f32.xlu1 %v14109_v18  ;;  %1439 = vadd.xlane.f32.xlu0 %v14111_v40  ;;  %v1366_v58 = vpop.xlane.xlu1 %1365 }
 0x304   : > { %v1385_v32 = vsub.f32 %v14032_v36, %v1366_v58 }
 0x305   : > { %v14116_v62 = vpop.eup %12812  ;;  %v1368_v39 = vpop.xlane.xlu0 %1367 }
 0x306   : > { %v1413_v51 = vmul.f32 1.442695, %v1385_v32  ;;  %v1386_v25 = vsub.f32 %v14046_v45, %v1368_v39 }
 0x307   : > { %1443 = vadd.xlane.f32.xlu0 %v14116_v62  ;;  %v1370_v2 = vpop.xlane.xlu1 %1369 }
 0x308   : > { %12814 = vpow2.f32 %v1413_v51  ;;  %v1415_v59 = vmul.f32 1.442695, %v1386_v25  ;;  %v1387_v42 = vsub.f32 %v14059_v34, %v1370_v2 }
 0x309   : > { %v1372_v24 = vpop.xlane.xlu0 %1371 }
 0x30a   : > { %12816 = vpow2.f32 %v1415_v59  ;;  %v1417_v4 = vmul.f32 1.442695, %v1387_v42  ;;  %v1388_v35 = vsub.f32 %v14067_v44, %v1372_v24 }
 0x30c   : > { %12818 = vpow2.f32 %v1417_v4  ;;  %v1419_v36 = vmul.f32 1.442695, %v1388_v35 }
 0x30e   : > { %12820 = vpow2.f32 %v1419_v36 }
 0x312   : > { %v14122_v26 = vpop.eup %12814 }
 0x313   : > { %1445 = vadd.xlane.f32.xlu1 %v14122_v26 }
 0x314   : > { %v14125_v45 = vpop.eup %12816 }
 0x315   : > { %1447 = vadd.xlane.f32.xlu0 %v14125_v45 }
 0x316   : > { %v14128_v7 = vpop.eup %12818 }
 0x317   : > { %1449 = vadd.xlane.f32.xlu1 %v14128_v7 }
 0x318   : > { %v14131_v34 = vpop.eup %12820 }
 0x319   : > { %1451 = vadd.xlane.f32.xlu0 %v14131_v34 }
 0x328   : > { %1598 = vrot.lane.b32.xlu1 %v13554_v5, %s17790_s12 }
 0x32c   : > { %1602 = vrot.lane.b32.xlu1 %v13571_v19, %s17790_s12 }
 0x32f   : > { %1600 = vrot.lane.b32.xlu0 %v13558_v10, %s17790_s12 }
 0x330   : > { %1604 = vrot.lane.b32.xlu1 %v13599_v30, %s17790_s12 }
 0x333   : > { %1606 = vrot.lane.b32.xlu0 %v13556_v9, %s17790_s12 }
 0x334   : > { %1608 = vrot.lane.b32.xlu1 %v13565_v15, %s17790_s12 }
 0x337   : > { %1610 = vrot.lane.b32.xlu0 %v13573_v20, %s17790_s12 }
 0x338   : > { %1612 = vrot.lane.b32.xlu1 %v13602_v31, %s17790_s12  ;;  %s18091_s12 = smov 305  }
 0x37b   : > { %v1422_v44 = vpop.xlane.xlu1 %1421 }
 0x37c   : > { %12822 = vrcp.f32 %v1422_v44 }
 0x37d   : > { %v1424_v37 = vpop.xlane.xlu0 %1423 }
 0x37e   : > { %12824 = vrcp.f32 %v1424_v37 }
 0x37f   : > { %v1426_v58 = vpop.xlane.xlu1 %1425 }
 0x380   : > { %12826 = vrcp.f32 %v1426_v58 }
 0x383   : > { %v1428_v32 = vpop.xlane.xlu0 %1427 }
 0x384   : > { %v1430_v39 = vpop.xlane.xlu1 %1429  ;;  %12828 = vrcp.f32 %v1428_v32 }
 0x385   : > { %12830 = vrcp.f32 %v1430_v39 }
 0x386   : > { %v12823_v51 = vpop.eup %12822 }
 0x387   : > { %v1469_v42 = vmul.f32 %v12823_v51, %v14077_v47  ;;  %v14157_v47 = vld [vmem:[%s17742_s6 + $0x40] sm:$0xff]  }
 0x388   : > { %v12825_v25 = vpop.eup %12824  ;;  %v1434_v2 = vpop.xlane.xlu1 %1433 }
 0x389   : > { %v1432_v59 = vpop.xlane.xlu0 %1431  ;;  %v1470_v24 = vmul.f32 %v12825_v25, %v14080_v60 }
 0x38a   : > { %12832 = vrcp.f32 %v1432_v59  ;;  %v12827_v35 = vpop.eup %12826 }
 0x38b   : > { %v1485_v4 = vpack.c.bf16 %v1470_v24, %v1469_v42  ;;  %12834 = vrcp.f32 %v1434_v2  ;;  %v1471_v58 = vmul.f32 %v12827_v35, %v14085_v1  ;;  %v14162_v1 = vld [vmem:[%s17738_s2] sm:$0xff]  }
 0x38c   : > { %v1438_v36 = vpop.xlane.xlu1 %1437 }
 0x38d   : > { %v1436_v44 = vpop.xlane.xlu0 %1435  ;;  %11124 = vmatprep.mubr.bf16.mxu1 %v1485_v4 }
 0x38e   : > { %v12829_v37 = vpop.eup %12828  ;;  %12836 = vrcp.f32 %v1436_v44 }
 0x38f   : > { %v1472_v32 = vmul.f32 %v12829_v37, %v14090_v13  ;;  %12838 = vrcp.f32 %v1438_v36  ;;  %v12831_v60 = vpop.eup %12830 }
 0x390   : > { %v1442_v39 = vpop.xlane.xlu1 %1441  ;;  %v1473_v13 = vmul.f32 %v12831_v60, %v14092_v61 }
 0x391   : > { %v1440_v20 = vpop.xlane.xlu0 %1439  ;;  %v1486_v31 = vpack.c.bf16 %v1472_v32, %v1471_v58 }
 0x392   : > { %12840 = vrcp.f32 %v1440_v20 }
 0x393   : > { %12842 = vrcp.f32 %v1442_v39  ;;  %11125 = vmatmul.mubr.bf16.vlgmr.msra.gmra.mrb[40].mxu1 %v1486_v31 }
 0x394   : > { %v12833_v51 = vpop.eup %12832  ;;  %11159 = vmatpush3.bf16.msra.mxu1 %v14162_v1 }
 0x395   : > { %v1444_v25 = vpop.xlane.xlu0 %1443  ;;  %v1474_v2 = vmul.f32 %v12833_v51, %v14099_v46  ;;  %12240 = vmatprep.subr.msk.bf16.mxu1 %vm18013_vm6, %v14157_v47  ;;  %v12835_v20 = vpop.eup %12834 }
 0x396   : > { %12844 = vrcp.f32 %v1444_v25  ;;  %v1475_v42 = vmul.f32 %v12835_v20, %v14097_v8 }
 0x397   : > { %v1487_v59 = vpack.c.bf16 %v1474_v2, %v1473_v13 }
 0x398   : > { %v12837_v31 = vpop.eup %12836 }
 0x399   : > { %11128 = vmatprep.mubr.bf16.mxu1 %v1487_v59  ;;  %v1476_v24 = vmul.f32 %v12837_v31, %v14103_v33  ;;  %v12839_v4 = vpop.eup %12838 }
 0x39a   : > { %v1477_v61 = vmul.f32 %v12839_v4, %v14105_v29 }
 0x39b   : > { %v1488_v35 = vpack.c.bf16 %v1476_v24, %v1475_v42 }
 0x39c   : > { %v12841_v36 = vpop.eup %12840 }
 0x39d   : > { %v12843_v44 = vpop.eup %12842  ;;  %11129 = vmatmul.mubr.bf16.gmra.mrb[44].mxu1 %v1488_v35  ;;  %v1478_v46 = vmul.f32 %v12841_v36, %v14111_v40 }
 0x39e   : > { %v1479_v39 = vmul.f32 %v12843_v44, %v14109_v18 }
 0x39f   : > { %v1489_v58 = vpack.c.bf16 %v1478_v46, %v1477_v61  ;;  %v2035_v46 = vsel %vm18020_vm15, %v14157_v47, 0  ;;  %v12728_v47 = vld [vmem:[%s17742_s6 + $0x50] sm:$0xff]   ;;  %vm18026_vm15 = vmmov %vm18018_vm0 }
 0x3a0   : > { %v12845_v37 = vpop.eup %12844  ;;  %v1446_v32 = vpop.xlane.xlu1 %1445 }
 0x3a1   : > { %v1480_v60 = vmul.f32 %v12845_v37, %v14116_v62  ;;  %11132 = vmatprep.mubr.bf16.mxu1 %v1489_v58  ;;  %12846 = vrcp.f32 %v1446_v32  ;;  %v14180_v62 = vld [vmem:[%s17739_s3] sm:$0xff]   ;;  %v12729_v32 = vld [vmem:[%s17742_s6 + $0x58] sm:$0xff]  }
 0x3a2   : > { %v1448_v8 = vpop.xlane.xlu0 %1447 }
 0x3a3   : > { %v1490_v33 = vpack.c.bf16 %v1480_v60, %v1479_v39  ;;  %12848 = vrcp.f32 %v1448_v8  ;;  %v12730_v60 = vld [vmem:[%s17742_s6 + $0x60] sm:$0xff]  }
 0x3a4   : > { %v1450_v51 = vpop.xlane.xlu1 %1449 }
 0x3a5   : > { %11133 = vmatmul.mubr.bf16.gmra.mrb[48].mxu1 %v1490_v33  ;;  %12850 = vrcp.f32 %v1450_v51  ;;  %v12731_v33 = vld [vmem:[%s17742_s6 + $0x68] sm:$0xff]  }
 0x3a6   : > { %v1452_v25 = vpop.xlane.xlu0 %1451 }
 0x3a7   : > { %12852 = vrcp.f32 %v1452_v25  ;;  %v12732_v25 = vld [vmem:[%s17742_s6 + $0x70] sm:$0xff]  }
 0x3a8   : > { %v1599_v29 = vpop.permute.xlu1 %1598 }
 0x3a9   : > { %11142 = vmatprep.mubr.msk.bf16.mxu0 %vm18013_vm6, %v1599_v29  ;;  %vm18016_vm6 = vmmov %vm18014_vm1 }
 0x3aa   : > { %v1601_v40 = vpop.permute.xlu0 %1600 }
 0x3ab   : > { %v12847_v13 = vpop.eup %12846  ;;  %11143 = vmatmul.mubr.msk.bf16.vlgmr.msra.gmra.mrb[40].mxu0 %vm18014_vm1, %v1601_v40 }
 0x3ac   : > { %v1603_v18 = vpop.permute.xlu1 %1602  ;;  %11177 = vmatpush3.bf16.msra.mxu0 %v14180_v62  ;;  %v1481_v20 = vmul.f32 %v12847_v13, %v14122_v26 }
 0x3ad   : > { %v12849_v2 = vpop.eup %12848  ;;  %11146 = vmatprep.mubr.msk.bf16.mxu0 %vm18015_vm8, %v1603_v18  ;;  %vm18017_vm8 = vmmov %vm18014_vm1 }
 0x3ae   : > { %v1482_v59 = vmul.f32 %v12849_v2, %v14125_v45  ;;  %v1607_v35 = vpop.permute.xlu0 %1606 }
 0x3af   : > { %v12851_v31 = vpop.eup %12850 }
 0x3b0   : > { %v1605_v42 = vpop.permute.xlu1 %1604  ;;  %v1491_v24 = vpack.c.bf16 %v1482_v59, %v1481_v20  ;;  %v1483_v36 = vmul.f32 %v12851_v31, %v14128_v7  ;;  %v12727_v7 = vld [vmem:[%s17742_s6 + $0x48] sm:$0xff]  }
 0x3b1   : > { %v12853_v4 = vpop.eup %12852 }
 0x3b2   : > { %11136 = vmatprep.mubr.bf16.mxu1 %v1491_v24  ;;  %v1484_v44 = vmul.f32 %v12853_v4, %v14131_v34  ;;  %v1611_v45 = vpop.permute.xlu0 %1610 }
 0x3b3   : > { %11147 = vmatmul.mubr.msk.bf16.gmra.mrb[44].mxu0 %vm18014_vm1, %v1605_v42  ;;  %vm18021_vm1 = vmmov %vm18018_vm0 }
 0x3b4   : > { %v1492_v61 = vpack.c.bf16 %v1484_v44, %v1483_v36  ;;  %11150 = vmatprep.mubr.msk.bf16.mxu0 %vm18016_vm6, %v1607_v35  ;;  %v1609_v26 = vpop.permute.xlu1 %1608  ;;  %vm18023_vm6 = vmmov %vm18018_vm0 }
 0x3b6   : > { %11137 = vmatmul.mubr.bf16.gmra.mrb[52].mxu1 %v1492_v61 }
 0x3b7   : > { %11160 = vmatprep.mubr.msk.bf16.mxu1 %vm18017_vm8, %v1599_v29  ;;  %vm18024_vm8 = vmmov %vm18018_vm0 }
 0x3b8   : > { %v1613_v34 = vpop.permute.xlu1 %1612 }
 0x3bb   : > { %11151 = vmatmul.mubr.msk.bf16.gmra.mrb[48].mxu0 %vm18018_vm0, %v1609_v26 }
 0x3bc   : > { %11154 = vmatprep.mubr.msk.bf16.mxu0 %vm18019_vm5, %v1611_v45  ;;  %vm18025_vm5 = vmmov %vm18018_vm0 }
 0x3bd   : > { %v2038_v37 = vsel %vm18025_vm5, %v12727_v7, 0  ;;  %vm18032_vm5 = vmmov %vm18018_vm0 }
 0x3be   : > { %11161 = vmatmul.mubr.msk.bf16.vlgmr.msra.gmra.mrb[56].mxu1 %vm18021_vm1, %v1601_v40  ;;  %vm18029_vm1 = vmmov %vm18018_vm0 }
 0x3bf   : > { %11164 = vmatprep.mubr.msk.bf16.mxu1 %vm18022_vm10, %v1603_v18  ;;  %11195 = vmatpush3.bf16.xpose.msra.mxu1 %v2035_v46  ;;  %vm18028_vm10 = vmmov %vm18018_vm0 }
 0x3c0   : > { %12241 = vmatprep.subr.msk.bf16.mxu1 %vm18023_vm6, %v12727_v7  ;;  %vm18030_vm6 = vmmov %vm18018_vm0 }
 0x3c3   : > { %11155 = vmatmul.mubr.msk.bf16.gmra.mrb[52].mxu0 %vm18024_vm8, %v1613_v34  ;;  %vm18031_vm8 = vmmov %vm18018_vm0 }
 0x3c4   : > { %11178 = vmatprep.mubr.msk.bf16.mxu0 %vm18018_vm0, %v1599_v29  ;;  %v2041_v58 = vsel %vm18031_vm8, %v12728_v47, 0  ;;  %vm18038_vm8 = vmmov %vm18018_vm0 }
 0x3c6   : > { %11165 = vmatmul.mubr.msk.bf16.gmra.mrb[60].mxu1 %vm18026_vm15, %v1605_v42  ;;  %vm18033_vm15 = vmmov %vm18018_vm0 }
 0x3c7   : > { %11168 = vmatprep.mubr.msk.bf16.mxu1 %vm18027_vm13, %v1607_v35  ;;  %11197 = vmatpush3.bf16.xpose.msra.mxu1 %v2038_v37  ;;  %vm18034_vm13 = vmmov %vm18018_vm0 }
 0x3c8   : > { %12242 = vmatprep.subr.msk.bf16.mxu1 %vm18028_vm10, %v12728_v47  ;;  %vm18035_vm10 = vmmov %vm18018_vm0 }
 0x3cb   : > { %11179 = vmatmul.mubr.msk.bf16.vlgmr.msra.gmra.mrb[56].mxu0 %vm18029_vm1, %v1601_v40  ;;  %vm18036_vm1 = vmmov %vm18018_vm0  ;;  %v12733_v40 = vld [vmem:[%s17742_s6 + $0x78] sm:$0xff]  }
 0x3cc   : > { %11182 = vmatprep.mubr.msk.bf16.mxu0 %vm18030_vm6, %v1603_v18  ;;  %v2044_v39 = vsel %vm18036_vm1, %v12729_v32, 0  ;;  %vm18037_vm6 = vmmov %vm18018_vm0 }
 0x3cd   : > { %vm18043_vm1 = vmmov %vm18018_vm0 }
 0x3ce   : > { %11169 = vmatmul.mubr.msk.bf16.gmra.mrb[64].mxu1 %vm18018_vm0, %v1609_v26  ;;  %v2050_v51 = vsel %vm18043_vm1, %v12731_v33, 0  ;;  %vm18066_vm1 = vmmov %vm18018_vm0 }
 0x3cf   : > { %11172 = vmatprep.mubr.msk.bf16.mxu1 %vm18032_vm5, %v1611_v45  ;;  %11199 = vmatpush3.bf16.xpose.msra.mxu1 %v2041_v58  ;;  %vm18039_vm5 = vmmov %vm18018_vm0 }
 0x3d0   : > { %12243 = vmatprep.subr.msk.bf16.mxu1 %vm18033_vm15, %v12729_v32  ;;  %vm18040_vm15 = vmmov %vm18018_vm0 }
 0x3d3   : > { %11183 = vmatmul.mubr.msk.bf16.gmra.mrb[60].mxu0 %vm18034_vm13, %v1605_v42  ;;  %vm18041_vm13 = vmmov %vm18018_vm0 }
 0x3d4   : > { %11186 = vmatprep.mubr.msk.bf16.mxu0 %vm18035_vm10, %v1607_v35  ;;  %v2047_v8 = vsel %vm18041_vm13, %v12730_v60, 0  ;;  %vm18042_vm10 = vmmov %vm18018_vm0 }
 0x3d5   : > { %vm18060_vm13 = vmmov %vm18018_vm0 }
 0x3d6   : > { %11173 = vmatmul.mubr.msk.bf16.gmra.mrb[68].mxu1 %vm18037_vm6, %v1613_v34  ;;  %vm18044_vm6 = vmmov %vm18018_vm0 }
 0x3d7   : > { %11201 = vmatpush3.bf16.xpose.msra.mxu1 %v2044_v39 }
 0x3d8   : > { %12244 = vmatprep.subr.msk.bf16.mxu1 %vm18038_vm8, %v12730_v60  ;;  %vm18045_vm8 = vmmov %vm18018_vm0 }
 0x3d9   : > { %v2053_v29 = vsel %vm18045_vm8, %v12732_v25, 0  ;;  %vm18068_vm8 = vmmov %vm18018_vm0 }
 0x3db   : > { %11187 = vmatmul.mubr.msk.bf16.gmra.mrb[64].mxu0 %vm18018_vm0, %v1609_v26 }
 0x3dc   : > { %11190 = vmatprep.mubr.msk.bf16.mxu0 %vm18039_vm5, %v1611_v45  ;;  %vm18046_vm5 = vmmov %vm18018_vm0 }
 0x3dd   : > { %v2056_v13 = vsel %vm18046_vm5, %v12733_v40, 0  ;;  %vm18069_vm5 = vmmov %vm18018_vm0 }
 0x3df   : > { %11203 = vmatpush3.bf16.xpose.msra.mxu1 %v2047_v8 }
 0x3e0   : > { %12245 = vmatprep.subr.msk.bf16.mxu1 %vm18042_vm10, %v12731_v33  ;;  %vm18061_vm10 = vmmov %vm18018_vm0 }
 0x3e3   : > { %11191 = vmatmul.mubr.msk.bf16.gmra.mrb[68].mxu0 %vm18040_vm15, %v1613_v34  ;;  %vm18059_vm15 = vmmov %vm18018_vm0 }
 0x3e7   : > { %11205 = vmatpush3.bf16.xpose.msra.mxu1 %v2050_v51 }
 0x3e8   : > { %12246 = vmatprep.subr.msk.bf16.mxu1 %vm18044_vm6, %v12732_v25  ;;  %vm18067_vm6 = vmmov %vm18018_vm0 }
 0x3ef   : > { %11207 = vmatpush3.bf16.xpose.msra.mxu1 %v2053_v29 }
 0x3f0   : > { %12247 = vmatprep.subr.msk.bf16.mxu1 %vm18018_vm0, %v12733_v40 }
 0x3f7   : > { %11209 = vmatpush3.bf16.xpose.msra.mxu1 %v2056_v13 }
 0x466   : > { %v14246_v18 = vpop.f32.mrb[40].mxu1 }
 0x467   : > { %18047 = vst [vmem:[#allocation27_spill] sm:$0xff] %v14246_v18  ;;  %v14248_v2 = vpop.f32.mrb[41].mxu1 }
 0x468   : > { %18048 = vst [vmem:[#allocation28_spill] sm:$0xff] %v14248_v2  ;;  %v14250_v20 = vpop.f32.mrb[42].mxu1 }
 0x469   : > { %18049 = vst [vmem:[#allocation29_spill] sm:$0xff] %v14250_v20  ;;  %v14252_v59 = vpop.f32.mrb[43].mxu1 }
 0x46a   : > { %18050 = vst [vmem:[#allocation30_spill] sm:$0xff] %v14252_v59 }
 0x470   : > { %v14254_v31 = vpop.f32.mrb[44].mxu1 }
 0x471   : > { %18051 = vst [vmem:[#allocation31_spill] sm:$0xff] %v14254_v31  ;;  %v14256_v42 = vpop.f32.mrb[45].mxu1 }
 0x472   : > { %18052 = vst [vmem:[#allocation32_spill] sm:$0xff] %v14256_v42  ;;  %v14258_v24 = vpop.f32.mrb[46].mxu1 }
 0x473   : > { %18053 = vst [vmem:[#allocation33_spill] sm:$0xff] %v14258_v24  ;;  %v14260_v4 = vpop.f32.mrb[47].mxu1 }
 0x474   : > { %18054 = vst [vmem:[#allocation34_spill] sm:$0xff] %v14260_v4 }
 0x478   : > { %v14262_v35 = vpop.f32.mrb[48].mxu1 }
 0x479   : > { %18055 = vst [vmem:[#allocation35_spill] sm:$0xff] %v14262_v35  ;;  %v14264_v36 = vpop.f32.mrb[49].mxu1 }
 0x47a   : > { %18056 = vst [vmem:[#allocation36_spill] sm:$0xff] %v14264_v36  ;;  %v14266_v44 = vpop.f32.mrb[50].mxu1 }
 0x47b   : > { %18057 = vst [vmem:[#allocation37_spill] sm:$0xff] %v14266_v44  ;;  %v14268_v61 = vpop.f32.mrb[51].mxu1 }
 0x47c   : > { %18058 = vst [vmem:[#allocation38_spill] sm:$0xff] %v14268_v61 }
 0x47e   : > { %v11144_v26 = vpop.f32.mrb[40].mxu0 }
 0x47f   : > { %v1672_v45 = vpop.f32.mrb[41].mxu0 }
 0x480   : > { %v11145_v46 = vpop.f32.mrb[42].mxu0 }
 0x481   : > { %v14270_v7 = vpack.c.bf16 %v11145_v46, %v11144_v26  ;;  %v1675_v34 = vpop.f32.mrb[43].mxu0 }
 0x482   : > { %v1929_v37 = vpack.c.bf16 %v1675_v34, %v1672_v45 }
 0x484   : > { %11210 = vmatprep.mubr.msk.bf16.mxu1 %vm18059_vm15, %v1929_v37  ;;  %11242 = vmatprep.mubr.msk.bf16.mxu0 %vm18060_vm13, %v1929_v37  ;;  %vm18070_vm15 = vmmov %vm18018_vm0 }
 0x485   : > { %11211 = vmatmul.mubr.msk.bf16.vlgmr.msra.gmra.mrb[72].mxu1 %vm18061_vm10, %v14270_v7  ;;  %vm18071_vm13 = vmmov %vm18018_vm0 }
 0x486   : > { %v11148_v47 = vpop.f32.mrb[44].mxu0  ;;  %vm18072_vm10 = vmmov %vm18018_vm0 }
 0x487   : > { %v1688_v58 = vpop.f32.mrb[45].mxu0 }
 0x488   : > { %v11149_v32 = vpop.f32.mrb[46].mxu0 }
 0x489   : > { %v14276_v39 = vpack.c.bf16 %v11149_v32, %v11148_v47  ;;  %v14278_v60 = vpop.f32.mrb[52].mxu1  ;;  %v1691_v8 = vpop.f32.mrb[47].mxu0 }
 0x48a   : > { %18062 = vst [vmem:[#allocation39_spill] sm:$0xff] %v14278_v60  ;;  %v14280_v33 = vpack.c.bf16 %v1691_v8, %v1688_v58  ;;  %v14282_v51 = vpop.f32.mrb[53].mxu1 }
 0x48b   : > { %18063 = vst [vmem:[#allocation40_spill] sm:$0xff] %v14282_v51  ;;  %v14284_v25 = vpop.f32.mrb[54].mxu1 }
 0x48c   : > { %18064 = vst [vmem:[#allocation41_spill] sm:$0xff] %v14284_v25  ;;  %v14286_v29 = vpop.f32.mrb[55].mxu1  ;;  %11214 = vmatprep.mubr.msk.bf16.mxu1 %vm18066_vm1, %v14280_v33  ;;  %vm18073_vm1 = vmmov %vm18018_vm0 }
 0x48d   : > { %18065 = vst [vmem:[#allocation42_spill] sm:$0xff] %v14286_v29  ;;  %11215 = vmatmul.mubr.msk.bf16.gmra.mrb[76].mxu1 %vm18067_vm6, %v14276_v39  ;;  %vm18074_vm6 = vmmov %vm18018_vm0 }
 0x48e   : > { %v11152_v40 = vpop.f32.mrb[48].mxu0 }
 0x48f   : > { %v1704_v13 = vpop.f32.mrb[49].mxu0 }
 0x490   : > { %v11153_v26 = vpop.f32.mrb[50].mxu0 }
 0x491   : > { %v14292_v45 = vpack.c.bf16 %v11153_v26, %v11152_v40  ;;  %v1707_v46 = vpop.f32.mrb[51].mxu0  ;;  %v11162_v34 = vpop.f32.mrb[56].mxu1 }
 0x492   : > { %v14294_v37 = vpack.c.bf16 %v1707_v46, %v1704_v13  ;;  %v1769_v47 = vpop.f32.mrb[57].mxu1 }
 0x493   : > { %v11163_v58 = vpop.f32.mrb[58].mxu1 }
 0x494   : > { %v1938_v32 = vpack.c.bf16 %v11163_v58, %v11162_v34  ;;  %v1772_v8 = vpop.f32.mrb[59].mxu1  ;;  %11218 = vmatprep.mubr.msk.bf16.mxu1 %vm18068_vm8, %v14294_v37  ;;  %vm18075_vm8 = vmmov %vm18018_vm0 }
 0x495   : > { %v1937_v60 = vpack.c.bf16 %v1772_v8, %v1769_v47  ;;  %11219 = vmatmul.mubr.msk.bf16.gmra.mrb[80].mxu1 %vm18018_vm0, %v14292_v45 }
 0x496   : > { %v11156_v25 = vpop.f32.mrb[52].mxu0 }
 0x497   : > { %v1720_v51 = vpop.f32.mrb[53].mxu0  ;;  %12248 = vmatprep.subr.msk.bf16.mxu0 %vm18069_vm5, %v1937_v60  ;;  %v2220_v40 = vsel %vm18070_vm15, %v1937_v60, 0  ;;  %vm18076_vm5 = vmmov %vm18018_vm0 }
 0x498   : > { %v11157_v26 = vpop.f32.mrb[54].mxu0  ;;  %11227 = vmatpush3.bf16.xpose.msra.mxu0 %v2220_v40  ;;  %v2223_v40 = vsel %vm18074_vm6, %v1938_v32, 0  ;;  %vm18077_vm15 = vmmov %vm18018_vm0 }
 0x499   : > { %v14302_v13 = vpack.c.bf16 %v11157_v26, %v11156_v25  ;;  %v1723_v46 = vpop.f32.mrb[55].mxu0  ;;  %v11166_v34 = vpop.f32.mrb[60].mxu1  ;;  %12249 = vmatprep.subr.msk.bf16.mxu0 %vm18071_vm13, %v1938_v32  ;;  %vm18078_vm13 = vmmov %vm18018_vm0 }
 0x49a   : > { %v14305_v58 = vpack.c.bf16 %v1723_v46, %v1720_v51  ;;  %v1785_v47 = vpop.f32.mrb[61].mxu1  ;;  %vm18081_vm6 = vmmov %vm18018_vm0 }
 0x49b   : > { %v11167_v8 = vpop.f32.mrb[62].mxu1 }
 0x49c   : > { %v1940_v29 = vpack.c.bf16 %v11167_v8, %v11166_v34  ;;  %v1788_v35 = vpop.f32.mrb[63].mxu1  ;;  %11222 = vmatprep.mubr.msk.bf16.mxu1 %vm18072_vm10, %v14305_v58  ;;  %vm18079_vm10 = vmmov %vm18018_vm0 }
 0x49d   : > { %v1939_v44 = vpack.c.bf16 %v1788_v35, %v1785_v47  ;;  %11223 = vmatmul.mubr.msk.bf16.gmra.mrb[84].mxu1 %vm18073_vm1, %v14302_v13  ;;  %vm18080_vm1 = vmmov %vm18018_vm0 }
 0x49e   : > { %v11180_v60 = vpop.f32.mrb[56].mxu0 }
 0x49f   : > { %v1866_v25 = vpop.f32.mrb[57].mxu0  ;;  %v2226_v32 = vsel %vm18018_vm0, %v1939_v44, 0 }
 0x4a0   : > { %v11181_v26 = vpop.f32.mrb[58].mxu0  ;;  %11229 = vmatpush3.bf16.xpose.msra.mxu0 %v2223_v40 }
 0x4a1   : > { %v1946_v36 = vpack.c.bf16 %v11181_v26, %v11180_v60  ;;  %v11170_v51 = vpop.f32.mrb[64].mxu1  ;;  %v1869_v46 = vpop.f32.mrb[59].mxu0  ;;  %12250 = vmatprep.subr.msk.bf16.mxu0 %vm18075_vm8, %v1939_v44  ;;  %v2229_v44 = vsel %vm18077_vm15, %v1940_v29, 0  ;;  %vm18082_vm8 = vmmov %vm18018_vm0 }
 0x4a2   : > { %v1945_v34 = vpack.c.bf16 %v1869_v46, %v1866_v25  ;;  %v1801_v8 = vpop.f32.mrb[65].mxu1  ;;  %vm18084_vm15 = vmmov %vm18018_vm0 }
 0x4a3   : > { %v11171_v61 = vpop.f32.mrb[66].mxu1 }
 0x4a4   : > { %v1942_v31 = vpack.c.bf16 %v11171_v61, %v11170_v51  ;;  %v1804_v24 = vpop.f32.mrb[67].mxu1  ;;  %11258 = vmatprep.subr.bf16.mxu1 %v1945_v34 }
 0x4a5   : > { %v1941_v35 = vpack.c.bf16 %v1804_v24, %v1801_v8  ;;  %11259 = vmatpush3.bf16.msra.mxu1 %v1945_v34 }
 0x4a6   : > { %v11184_v47 = vpop.f32.mrb[60].mxu0  ;;  %11260 = vmatprep.subr.bf16.mxu1 %v1946_v36 }
 0x4a7   : > { %v1882_v42 = vpop.f32.mrb[61].mxu0 }
 0x4a8   : > { %v11185_v4 = vpop.f32.mrb[62].mxu0  ;;  %11231 = vmatpush3.bf16.xpose.msra.mxu0 %v2226_v32 }
 0x4a9   : > { %v1948_v60 = vpack.c.bf16 %v11185_v4, %v11184_v47  ;;  %v11174_v40 = vpop.f32.mrb[68].mxu1  ;;  %v1885_v26 = vpop.f32.mrb[63].mxu0  ;;  %12251 = vmatprep.subr.msk.bf16.mxu0 %vm18076_vm5, %v1940_v29  ;;  %11261 = vmatpush3.bf16.msra.mxu1 %v1946_v36  ;;  %vm18083_vm5 = vmmov %vm18018_vm0 }
 0x4aa   : > { %v1947_v25 = vpack.c.bf16 %v1885_v26, %v1882_v42  ;;  %v1817_v46 = vpop.f32.mrb[69].mxu1 }
 0x4ab   : > { %v11175_v61 = vpop.f32.mrb[70].mxu1 }
 0x4ac   : > { %v1944_v51 = vpack.c.bf16 %v11175_v61, %v11174_v40  ;;  %v1820_v18 = vpop.f32.mrb[71].mxu1  ;;  %11262 = vmatprep.subr.bf16.mxu1 %v1947_v25 }
 0x4ad   : > { %v1943_v24 = vpack.c.bf16 %v1820_v18, %v1817_v46  ;;  %11263 = vmatpush3.bf16.msra.mxu1 %v1947_v25  ;;  %v2232_v18 = vsel %vm18079_vm10, %v1941_v35, 0  ;;  %vm18086_vm10 = vmmov %vm18018_vm0 }
 0x4ae   : > { %v11188_v34 = vpop.f32.mrb[64].mxu0  ;;  %11264 = vmatprep.subr.bf16.mxu1 %v1948_v60  ;;  %v2241_v61 = vsel %vm18084_vm15, %v1944_v51, 0  ;;  %vm18101_vm15 = vcmp.eq.s32.totalorder %v13783_v3, 1 }
 0x4af   : > { %v1898_v8 = vpop.f32.mrb[65].mxu0 }
 0x4b0   : > { %v11189_v32 = vpop.f32.mrb[66].mxu0  ;;  %11233 = vmatpush3.bf16.xpose.msra.mxu0 %v2229_v44 }
 0x4b1   : > { %v1950_v4 = vpack.c.bf16 %v11189_v32, %v11188_v34  ;;  %v1901_v47 = vpop.f32.mrb[67].mxu0  ;;  %12252 = vmatprep.subr.msk.bf16.mxu0 %vm18078_vm13, %v1941_v35  ;;  %11265 = vmatpush3.bf16.msra.mxu1 %v1948_v60  ;;  %v2235_v60 = vsel %vm18081_vm6, %v1942_v31, 0  ;;  %v2238_v35 = vsel %vm18018_vm0, %v1943_v24, 0  ;;  %v13304_v34 = vld [vmem:[%s17737_s1] sm:$0xff]   ;;  %vm18085_vm13 = vmmov %vm18018_vm0 }
 0x4b2   : > { %v1949_v42 = vpack.c.bf16 %v1901_v47, %v1898_v8  ;;  %vm18088_vm6 = vmmov %vm18018_vm0 }
 0x4b4   : > { %11266 = vmatprep.subr.bf16.mxu1 %v1949_v42 }
 0x4b5   : > { %11267 = vmatpush3.bf16.msra.mxu1 %v1949_v42 }
 0x4b6   : > { %v11192_v36 = vpop.f32.mrb[68].mxu0  ;;  %11268 = vmatprep.subr.bf16.mxu1 %v1950_v4 }
 0x4b7   : > { %v1914_v40 = vpop.f32.mrb[69].mxu0 }
 0x4b8   : > { %v11193_v26 = vpop.f32.mrb[70].mxu0  ;;  %11235 = vmatpush3.bf16.xpose.msra.mxu0 %v2232_v18 }
 0x4b9   : > { %v1952_v25 = vpack.c.bf16 %v11193_v26, %v11192_v36  ;;  %v1917_v46 = vpop.f32.mrb[71].mxu0  ;;  %12253 = vmatprep.subr.msk.bf16.mxu0 %vm18080_vm1, %v1942_v31  ;;  %11269 = vmatpush3.bf16.msra.mxu1 %v1950_v4  ;;  %vm18087_vm1 = vmmov %vm18018_vm0 }
 0x4ba   : > { %v1951_v29 = vpack.c.bf16 %v1917_v46, %v1914_v40 }
 0x4bc   : > { %11270 = vmatprep.subr.bf16.mxu1 %v1951_v29 }
 0x4bd   : > { %11271 = vmatpush3.bf16.msra.mxu1 %v1951_v29 }
 0x4be   : > { %11272 = vmatprep.subr.bf16.mxu1 %v1952_v25 }
 0x4c0   : > { %11237 = vmatpush3.bf16.xpose.msra.mxu0 %v2235_v60 }
 0x4c1   : > { %12254 = vmatprep.subr.msk.bf16.mxu0 %vm18082_vm8, %v1943_v24  ;;  %11273 = vmatpush3.bf16.msra.mxu1 %v1952_v25  ;;  %vm18089_vm8 = vmmov %vm18018_vm0 }
 0x4c2   : > { %11308 = vmatprep.subr.bf16.mxu1 %v14162_v1 }
 0x4c8   : > { %11239 = vmatpush3.bf16.xpose.msra.mxu0 %v2238_v35 }
 0x4c9   : > { %12255 = vmatprep.subr.msk.bf16.mxu0 %vm18083_vm5, %v1944_v51  ;;  %vm18090_vm5 = vmmov %vm18018_vm0 }
 0x4d0   : > { %11241 = vmatpush3.bf16.xpose.msra.mxu0 %v2241_v61 }
 0x4d1   : > { %11290 = vmatprep.subr.bf16.mxu0 %v13304_v34 }
 0x4d7   : > { %11243 = vmatmul.mubr.msk.bf16.vlgmr.msra.gmra.mrb[72].mxu0 %vm18085_vm13, %v14270_v7  ;;  %vm18102_vm13 = vcmp.eq.s32.totalorder %v13787_v6, 1 }
 0x4d8   : > { %11246 = vmatprep.mubr.msk.bf16.mxu0 %vm18086_vm10, %v14280_v33  ;;  %11291 = vmatpush3.bf16.msra.mxu0 %v13304_v34  ;;  %vm18103_vm10 = vcmp.eq.s32.totalorder %v13785_v43, 1 }
 0x4d9   : > { %11326 = vmatprep.subr.bf16.mxu0 %v14180_v62 }
 0x4df   : > { %11247 = vmatmul.mubr.msk.bf16.gmra.mrb[76].mxu0 %vm18087_vm1, %v14276_v39  ;;  %vm18104_vm1 = vcmp.eq.s32.totalorder %v13789_v11, 1 }
 0x4e0   : > { %11250 = vmatprep.mubr.msk.bf16.mxu0 %vm18088_vm6, %v14294_v37  ;;  %vm18105_vm6 = vcmp.eq.s32.totalorder %v13791_v14, 1 }
 0x4e7   : > { %11251 = vmatmul.mubr.msk.bf16.gmra.mrb[80].mxu0 %vm18089_vm8, %v14292_v45  ;;  %vm18106_vm8 = vcmp.eq.s32.totalorder %v13797_v0, 1 }
 0x4e8   : > { %11254 = vmatprep.mubr.msk.bf16.mxu0 %vm18018_vm0, %v14305_v58  ;;  %vm18107_vm0 = vcmp.eq.s32.totalorder %v13793_v17, 1 }
 0x4ef   : > { %11255 = vmatmul.mubr.msk.bf16.gmra.mrb[84].mxu0 %vm18090_vm5, %v14302_v13  ;;  %vm18108_vm5 = vnez %v17994_v16 }
 0x558   : > { %v11212_v1 = vpop.f32.mrb[72].mxu1 }
 0x559   : > { %v2092_v31 = vpop.f32.mrb[73].mxu1 }
 0x55a   : > { %2157 = vrot.lane.b32.xlu0 %v2092_v31, %s17834_s16  ;;  %v11213_v62 = vpop.f32.mrb[74].mxu1  ;;  %s18214_s16 = smov 273  }
 0x55b   : > { %v2095_v7 = vpop.f32.mrb[75].mxu1 }
 0x55c   : > { %2161 = vrot.lane.b32.xlu1 %v2095_v7, %s17826_s11  ;;  %s17832_s11 = smov 96  }
 0x55e   : > { %2165 = vrot.lane.b32.xlu0 %v11212_v1, %s17822_s23  ;;  %s18100_s23 = smov 377  }
 0x560   : > { %2169 = vrot.lane.b32.xlu1 %v11213_v62, %s17820_s24  ;;  %v11216_v39 = vpop.f32.mrb[76].mxu1  ;;  %s18099_s24 = smov 369  }
 0x561   : > { %v2108_v33 = vpop.f32.mrb[77].mxu1 }
 0x562   : > { %2173 = vrot.lane.b32.xlu0 %v2108_v33, %s17816_s21  ;;  %v11217_v45 = vpop.f32.mrb[78].mxu1  ;;  %s18097_s21 = smov 353  }
 0x563   : > { %v2111_v37 = vpop.f32.mrb[79].mxu1 }
 0x564   : > { %2177 = vrot.lane.b32.xlu1 %v2111_v37, %s17818_s22  ;;  %s18098_s22 = smov 361  }
 0x566   : > { %2181 = vrot.lane.b32.xlu0 %v11216_v39, %s18091_s12 }
 0x568   : > { %2185 = vrot.lane.b32.xlu1 %v11217_v45, %s18092_s14  ;;  %v11220_v13 = vpop.f32.mrb[80].mxu1 }
 0x569   : > { %v2124_v58 = vpop.f32.mrb[81].mxu1 }
 0x56a   : > { %2189 = vrot.lane.b32.xlu0 %v2124_v58, %s18093_s25  ;;  %v11221_v51 = vpop.f32.mrb[82].mxu1 }
 0x56b   : > { %v2127_v24 = vpop.f32.mrb[83].mxu1 }
 0x56c   : > { %2193 = vrot.lane.b32.xlu1 %v2127_v24, %s18094_s26 }
 0x56e   : > { %2197 = vrot.lane.b32.xlu0 %v11220_v13, %s18095_s19 }
 0x570   : > { %2201 = vrot.lane.b32.xlu1 %v11221_v51, %s18096_s20  ;;  %v11224_v8 = vpop.f32.mrb[84].mxu1 }
 0x571   : > { %v2140_v44 = vpop.f32.mrb[85].mxu1 }
 0x572   : > { %2205 = vrot.lane.b32.xlu0 %v2140_v44, %s18097_s21  ;;  %v11225_v32 = vpop.f32.mrb[86].mxu1 }
 0x573   : > { %v2143_v4 = vpop.f32.mrb[87].mxu1 }
 0x574   : > { %2209 = vrot.lane.b32.xlu1 %v2143_v4, %s18098_s22 }
 0x576   : > { %2213 = vrot.lane.b32.xlu0 %v11224_v8, %s18099_s24 }
 0x578   : > { %2217 = vrot.lane.b32.xlu1 %v11225_v32, %s18100_s23 }
 0x5aa   : > { %v11244_v47 = vpop.f32.mrb[72].mxu0 }
 0x5ab   : > { %v2277_v42 = vpop.f32.mrb[73].mxu0  ;;  %v2342_v13 = vmul.f32 0.088388346, %v11244_v47 }
 0x5ac   : > { %v11245_v36 = vpop.f32.mrb[74].mxu0  ;;  %v2340_v7 = vmul.f32 0.088388346, %v2277_v42 }
 0x5ad   : > { %v2280_v40 = vpop.f32.mrb[75].mxu0  ;;  %v2343_v44 = vmul.f32 0.088388346, %v11245_v36 }
 0x5ae   : > { %v2341_v33 = vmul.f32 0.088388346, %v2280_v40 }
 0x5b2   : > { %v11248_v18 = vpop.f32.mrb[76].mxu0 }
 0x5b3   : > { %v2293_v26 = vpop.f32.mrb[77].mxu0 }
 0x5b4   : > { %v11249_v25 = vpop.f32.mrb[78].mxu0  ;;  %v2344_v40 = vmul.f32 0.088388346, %v2293_v26  ;;  %v2346_v26 = vmul.f32 0.088388346, %v11248_v18 }
 0x5b5   : > { %v2296_v46 = vpop.f32.mrb[79].mxu0 }
 0x5ba   : > { %v11252_v29 = vpop.f32.mrb[80].mxu0 }
 0x5bb   : > { %v2309_v60 = vpop.f32.mrb[81].mxu0 }
 0x5bc   : > { %v14359_v35 = vpop.f32.mrb[82].mxu0 }
 0x5bd   : > { %v2312_v61 = vpop.f32.mrb[83].mxu0 }
 0x5c2   : > { %v14361_v34 = vpop.f32.mrb[84].mxu0 }
 0x5c3   : > { %v14363_v1 = vpop.f32.mrb[85].mxu0 }
 0x5c4   : > { %v14365_v31 = vpop.f32.mrb[86].mxu0 }
 0x5c5   : > { %v14367_v62 = vpop.f32.mrb[87].mxu0 }
 0x5cc   : > { %v2158_v39 = vpop.permute.xlu0 %2157 }
 0x5cd   : > { %v2356_v45 = vadd.f32 %v2340_v7, %v2158_v39 }
 0x5ce   : > { %v2162_v37 = vpop.permute.xlu1 %2161 }
 0x5cf   : > { %v2357_v58 = vadd.f32 %v2341_v33, %v2162_v37  ;;  %v2372_v51 = vsel %vm13837_vm2, -1e+09, %v2356_v45  ;;  %v2345_v45 = vmul.f32 0.088388346, %v2296_v46 }
 0x5d0   : > { %v2166_v24 = vpop.permute.xlu0 %2165  ;;  %v14373_v8 = vsel %vm18101_vm15, -1e+09, %v2372_v51  ;;  %vm18109_vm15 = vcmp.eq.s32.totalorder %v13799_v23, 1 }
 0x5d1   : > { %v2358_v32 = vadd.f32 %v2342_v13, %v2166_v24  ;;  %2404 = vmax.xlane.f32.xlu0 %v14373_v8  ;;  %v2373_v4 = vsel %vm13842_vm3, -1e+09, %v2357_v58 }
 0x5d2   : > { %v2170_v42 = vpop.permute.xlu1 %2169  ;;  %v14380_v47 = vsel %vm18102_vm13, -1e+09, %v2373_v4  ;;  %v2347_v4 = vmul.f32 0.088388346, %v11249_v25  ;;  %vm18110_vm13 = vcmp.eq.s32.totalorder %v13807_v27, 1 }
 0x5d3   : > { %v2359_v7 = vadd.f32 %v2343_v44, %v2170_v42  ;;  %2406 = vmax.xlane.f32.xlu1 %v14380_v47  ;;  %v2374_v39 = vsel %vm13847_vm4, -1e+09, %v2358_v32 }
 0x5d4   : > { %v2174_v33 = vpop.permute.xlu0 %2173  ;;  %v14387_v36 = vsel %vm18103_vm10, -1e+09, %v2374_v39  ;;  %vm18111_vm10 = vnez %v17998_v28 }
 0x5d5   : > { %v2360_v37 = vadd.f32 %v2344_v40, %v2174_v33  ;;  %2408 = vmax.xlane.f32.xlu0 %v14387_v36  ;;  %v2375_v13 = vsel %vm13871_vm7, -1e+09, %v2359_v7  ;;  %v2348_v7 = vmul.f32 0.088388346, %v2309_v60 }
 0x5d6   : > { %v2178_v58 = vpop.permute.xlu1 %2177  ;;  %v14396_v32 = vsel %vm18104_vm1, -1e+09, %v2375_v13  ;;  %v2349_v13 = vmul.f32 0.088388346, %v2312_v61  ;;  %vm18112_vm1 = vnez %v17996_v57 }
 0x5d7   : > { %v2361_v51 = vadd.f32 %v2345_v45, %v2178_v58  ;;  %v2376_v24 = vsel %vm13884_vm9, -1e+09, %v2360_v37 }
 0x5d8   : > { %v2182_v44 = vpop.permute.xlu0 %2181  ;;  %v14400_v46 = vsel %vm18105_vm6, -1e+09, %v2376_v24  ;;  %vm18113_vm6 = vcmp.eq.s32.totalorder %v13815_v21, 1 }
 0x5d9   : > { %v2362_v42 = vadd.f32 %v2346_v26, %v2182_v44  ;;  %2410 = vmax.xlane.f32.xlu0 %v14396_v32  ;;  %2412 = vmax.xlane.f32.xlu1 %v14400_v46  ;;  %v2377_v18 = vsel %vm13898_vm12, -1e+09, %v2361_v51  ;;  %v2350_v51 = vmul.f32 0.088388346, %v11252_v29 }
 0x5da   : > { %v2186_v40 = vpop.permute.xlu1 %2185  ;;  %v14414_v25 = vsel %vm18107_vm0, -1e+09, %v2377_v18  ;;  %v2351_v18 = vmul.f32 0.088388346, %v14359_v35  ;;  %v18114_v35 = vld [vmem:[#allocation20_spill] sm:$0xff] }
 0x5db   : > { %v2363_v39 = vadd.f32 %v2347_v4, %v2186_v40  ;;  %v2378_v33 = vsel %vm13893_vm11, -1e+09, %v2362_v42 }
 0x5dc   : > { %v2190_v45 = vpop.permute.xlu0 %2189  ;;  %v14410_v37 = vsel %vm18106_vm8, -1e+09, %v2378_v33  ;;  %vm18115_vm8 = vcmp.eq.s32.totalorder %v18114_v35, 1 }
 0x5dd   : > { %v2364_v58 = vadd.f32 %v2348_v7, %v2190_v45  ;;  %2416 = vmax.xlane.f32.xlu1 %v14410_v37  ;;  %2414 = vmax.xlane.f32.xlu0 %v14414_v25  ;;  %v2379_v60 = vsel %vm13923_vm14, -1e+09, %v2363_v39  ;;  %v2352_v39 = vmul.f32 0.088388346, %v14363_v1  ;;  %v18116_v1 = vld [vmem:[#allocation23_spill] sm:$0xff] }
 0x5de   : > { %v2194_v26 = vpop.permute.xlu1 %2193  ;;  %v14424_v42 = vsel %vm18109_vm15, -1e+09, %v2379_v60  ;;  %vm18117_vm0 = vnez %v18116_v1  ;;  %vm18118_vm15 = vnez %v18005_v63 }
 0x5df   : > { %v2365_v24 = vadd.f32 %v2349_v13, %v2194_v26  ;;  %v2380_v44 = vsel %vm18108_vm5, -1e+09, %v2364_v58  ;;  %v2353_v26 = vmul.f32 0.088388346, %v14367_v62 }
 0x5e0   : > { %v2198_v4 = vpop.permute.xlu0 %2197  ;;  %v14428_v61 = vsel %vm18110_vm13, -1e+09, %v2380_v44 }
 0x5e1   : > { %v2366_v40 = vadd.f32 %v2350_v51, %v2198_v4  ;;  %2418 = vmax.xlane.f32.xlu0 %v14424_v42  ;;  %2420 = vmax.xlane.f32.xlu1 %v14428_v61  ;;  %v2381_v29 = vsel %vm18111_vm10, -1e+09, %v2365_v24  ;;  %v2354_v4 = vmul.f32 0.088388346, %v14361_v34 }
 0x5e2   : > { %v2202_v7 = vpop.permute.xlu1 %2201  ;;  %v14444_v60 = vsel %vm18115_vm8, -1e+09, %v2381_v29  ;;  %v18119_v29 = vld [vmem:[#allocation21_spill] sm:$0xff]  ;;  %vm18122_vm8 = vnez %v18007_v49 }
 0x5e3   : > { %v2367_v33 = vadd.f32 %v2351_v18, %v2202_v7  ;;  %v2382_v45 = vsel %vm18112_vm1, -1e+09, %v2366_v40  ;;  %vm18120_vm13 = vcmp.eq.s32.totalorder %v18119_v29, 1 }
 0x5e4   : > { %v2206_v13 = vpop.permute.xlu0 %2205  ;;  %v14440_v58 = vsel %vm18113_vm6, -1e+09, %v2382_v45  ;;  %vm18121_vm6 = vcmp.eq.s32.totalorder %v13825_v38, 1 }
 0x5e5   : > { %v2368_v51 = vadd.f32 %v2352_v39, %v2206_v13  ;;  %2424 = vmax.xlane.f32.xlu1 %v14440_v58  ;;  %2422 = vmax.xlane.f32.xlu0 %v14444_v60  ;;  %v2383_v24 = vsel %vm18117_vm0, -1e+09, %v2367_v33  ;;  %v2355_v39 = vmul.f32 0.088388346, %v14365_v31 }
 0x5e6   : > { %v2210_v44 = vpop.permute.xlu1 %2209  ;;  %v14456_v45 = vsel %vm18120_vm13, -1e+09, %v2383_v24  ;;  %vm18124_vm13 = vcmp.eq.s32.totalorder %v14006_v22, 1 }
 0x5e7   : > { %v2369_v18 = vadd.f32 %v2353_v26, %v2210_v44  ;;  %v2384_v40 = vsel %vm18118_vm15, -1e+09, %v2368_v51  ;;  %vm18123_vm15 = vnez %v18009_v56  ;;  %v18125_v44 = vld [vmem:[#allocation22_spill] sm:$0xff] }
 0x5e8   : > { %v2214_v7 = vpop.permute.xlu0 %2213  ;;  %v14460_v62 = vsel %vm18121_vm6, -1e+09, %v2384_v40  ;;  %vm18126_vm6 = vcmp.eq.s32.totalorder %v18125_v44, 1  ;;  %v18129_v40 = vld [vmem:[#allocation25_spill] sm:$0xff] }
 0x5e9   : > { %v2370_v13 = vadd.f32 %v2354_v4, %v2214_v7  ;;  %2426 = vmax.xlane.f32.xlu0 %v14456_v45  ;;  %2428 = vmax.xlane.f32.xlu1 %v14460_v62  ;;  %v2385_v34 = vsel %vm18122_vm8, -1e+09, %v2369_v18  ;;  %v18127_v4 = vld [vmem:[#allocation26_spill] sm:$0xff]  ;;  %vm18130_vm8 = vcmp.eq.s32.totalorder %v18129_v40, 1 }
 0x5ea   : > { %v2218_v33 = vpop.permute.xlu1 %2217  ;;  %v14475_v31 = vsel %vm18126_vm6, -1e+09, %v2385_v34  ;;  %vm18128_vm0 = vnez %v18127_v4 }
 0x5eb   : > { %v2371_v26 = vadd.f32 %v2355_v39, %v2218_v33  ;;  %v2386_v51 = vsel %vm18123_vm15, -1e+09, %v2370_v13 }
 0x5ec   : > { %v14471_v24 = vsel %vm18124_vm13, -1e+09, %v2386_v51 }
 0x5ed   : > { %2432 = vmax.xlane.f32.xlu1 %v14471_v24  ;;  %2430 = vmax.xlane.f32.xlu0 %v14475_v31  ;;  %v2387_v18 = vsel %vm18128_vm0, -1e+09, %v2371_v26 }
 0x5ee   : > { %v14483_v7 = vsel %vm18130_vm8, -1e+09, %v2387_v18  ;;  %vm18133_vm8 = vcmask 130048  }
 0x5ef   : > { %vm18134_vm13 = vmmov %vm18133_vm8 }
 0x5f0   : > { %vm18135_vm6 = vmmov %vm18133_vm8 }
 0x5f1   : > { %2434 = vmax.xlane.f32.xlu0 %v14483_v7  ;;  %vm18139_vm0 = vmmov %vm18135_vm6 }
 0x5f2   : > { %vm18140_vm15 = vmmov %vm18139_vm0 }
 0x5f3   : > { %vm18141_vm1 = vmmov %vm18139_vm0 }
 0x5f4   : > { %vm18143_vm10 = vmmov %vm18139_vm0 }
 0x5f5   : > { %vm18148_vm5 = vmmov %vm18139_vm0 }
 0x65e   : > { %v2405_v39 = vpop.xlane.xlu0 %2404 }
 0x65f   : > { %v2436_v13 = vsub.f32 %v14373_v8, %v2405_v39 }
 0x660   : > { %v2407_v33 = vpop.xlane.xlu1 %2406 }
 0x661   : > { %v2452_v51 = vmul.f32 1.442695, %v2436_v13  ;;  %v2437_v34 = vsub.f32 %v14380_v47, %v2407_v33 }
 0x662   : > { %v2409_v20 = vpop.xlane.xlu0 %2408 }
 0x663   : > { %12854 = vpow2.f32 %v2452_v51  ;;  %v2454_v2 = vmul.f32 1.442695, %v2437_v34  ;;  %v2438_v59 = vsub.f32 %v14387_v36, %v2409_v20 }
 0x665   : > { %12856 = vpow2.f32 %v2454_v2  ;;  %v2456_v26 = vmul.f32 1.442695, %v2438_v59 }
 0x666   : > { %v2411_v4 = vpop.xlane.xlu0 %2410  ;;  %v2413_v40 = vpop.xlane.xlu1 %2412 }
 0x667   : > { %12858 = vpow2.f32 %v2456_v26  ;;  %v2439_v18 = vsub.f32 %v14396_v32, %v2411_v4  ;;  %v2440_v44 = vsub.f32 %v14400_v46, %v2413_v40 }
 0x669   : > { %v2458_v22 = vmul.f32 1.442695, %v2439_v18  ;;  %v2460_v8 = vmul.f32 1.442695, %v2440_v44 }
 0x66a   : > { %v2417_v39 = vpop.xlane.xlu1 %2416  ;;  %v2415_v13 = vpop.xlane.xlu0 %2414 }
 0x66b   : > { %12860 = vpow2.f32 %v2458_v22  ;;  %v2442_v47 = vsub.f32 %v14410_v37, %v2417_v39  ;;  %v2441_v33 = vsub.f32 %v14414_v25, %v2415_v13 }
 0x66c   : > { %12862 = vpow2.f32 %v2460_v8 }
 0x66d   : > { %v14493_v20 = vpop.eup %12854  ;;  %v2464_v2 = vmul.f32 1.442695, %v2442_v47  ;;  %v2462_v59 = vmul.f32 1.442695, %v2441_v33 }
 0x66e   : > { %v2419_v36 = vpop.xlane.xlu0 %2418  ;;  %v2421_v51 = vpop.xlane.xlu1 %2420  ;;  %2484 = vadd.xlane.f32.xlu1 %v14493_v20 }
 0x66f   : > { %v14496_v32 = vpop.eup %12856  ;;  %12864 = vpow2.f32 %v2464_v2  ;;  %v2443_v46 = vsub.f32 %v14424_v42, %v2419_v36  ;;  %v2444_v22 = vsub.f32 %v14428_v61, %v2421_v51 }
 0x670   : > { %12866 = vpow2.f32 %v2462_v59  ;;  %2486 = vadd.xlane.f32.xlu0 %v14496_v32 }
 0x671   : > { %v14501_v37 = vpop.eup %12858  ;;  %v2466_v25 = vmul.f32 1.442695, %v2443_v46  ;;  %v2468_v44 = vmul.f32 1.442695, %v2444_v22 }
 0x672   : > { %v2425_v4 = vpop.xlane.xlu1 %2424  ;;  %v2423_v40 = vpop.xlane.xlu0 %2422  ;;  %2488 = vadd.xlane.f32.xlu1 %v14501_v37 }
 0x673   : > { %12868 = vpow2.f32 %v2466_v25  ;;  %v2446_v34 = vsub.f32 %v14440_v58, %v2425_v4  ;;  %v2445_v26 = vsub.f32 %v14444_v60, %v2423_v40 }
 0x674   : > { %12870 = vpow2.f32 %v2468_v44 }
 0x675   : > { %v14506_v42 = vpop.eup %12860  ;;  %v2472_v61 = vmul.f32 1.442695, %v2446_v34  ;;  %v2470_v18 = vmul.f32 1.442695, %v2445_v26 }
 0x676   : > { %v14508_v8 = vpop.eup %12862  ;;  %v2427_v39 = vpop.xlane.xlu0 %2426  ;;  %2490 = vadd.xlane.f32.xlu0 %v14506_v42 }
 0x677   : > { %v2429_v13 = vpop.xlane.xlu1 %2428  ;;  %12872 = vpow2.f32 %v2472_v61  ;;  %v2447_v47 = vsub.f32 %v14456_v45, %v2427_v39  ;;  %2492 = vadd.xlane.f32.xlu1 %v14508_v8 }
 0x678   : > { %v2448_v58 = vsub.f32 %v14460_v62, %v2429_v13  ;;  %12874 = vpow2.f32 %v2470_v18  ;;  %v18131_v13 = vld [vmem:[#allocation19_spill] sm:$0xff] }
 0x679   : > { %v14514_v60 = vpop.eup %12864  ;;  %v2474_v33 = vmul.f32 1.442695, %v2447_v47  ;;  %v18132_v47 = vld [vmem:[#allocation17_spill] sm:$0xff] }
 0x67a   : > { %v2476_v2 = vmul.f32 1.442695, %v2448_v58  ;;  %v14516_v59 = vpop.eup %12866  ;;  %v2431_v51 = vpop.xlane.xlu0 %2430 }
 0x67b   : > { %v2433_v36 = vpop.xlane.xlu1 %2432  ;;  %12876 = vpow2.f32 %v2474_v33  ;;  %2496 = vadd.xlane.f32.xlu1 %v14514_v60  ;;  %2494 = vadd.xlane.f32.xlu0 %v14516_v59  ;;  %v2449_v45 = vsub.f32 %v14475_v31, %v2431_v51 }
 0x67c   : > { %v2450_v46 = vsub.f32 %v14471_v24, %v2433_v36  ;;  %12878 = vpow2.f32 %v2476_v2 }
 0x67d   : > { %v14522_v62 = vpop.eup %12868  ;;  %v2478_v25 = vmul.f32 1.442695, %v2449_v45 }
 0x67e   : > { %v2480_v22 = vmul.f32 1.442695, %v2450_v46  ;;  %v14524_v44 = vpop.eup %12870  ;;  %v2435_v4 = vpop.xlane.xlu0 %2434 }
 0x67f   : > { %2500 = vadd.xlane.f32.xlu1 %v14524_v44  ;;  %2498 = vadd.xlane.f32.xlu0 %v14522_v62  ;;  %v2451_v40 = vsub.f32 %v14483_v7, %v2435_v4 }
 0x680   : > { %12880 = vpow2.f32 %v2480_v22 }
 0x681   : > { %12882 = vpow2.f32 %v2478_v25  ;;  %v14529_v24 = vpop.eup %12872  ;;  %v2482_v34 = vmul.f32 1.442695, %v2451_v40 }
 0x682   : > { %v14531_v31 = vpop.eup %12874 }
 0x683   : > { %12884 = vpow2.f32 %v2482_v34  ;;  %2504 = vadd.xlane.f32.xlu1 %v14529_v24  ;;  %2502 = vadd.xlane.f32.xlu0 %v14531_v31 }
 0x685   : > { %v14535_v26 = vpop.eup %12876 }
 0x686   : > { %v14537_v61 = vpop.eup %12878 }
 0x687   : > { %2508 = vadd.xlane.f32.xlu1 %v14537_v61  ;;  %2506 = vadd.xlane.f32.xlu0 %v14535_v26 }
 0x68a   : > { %v14541_v7 = vpop.eup %12880 }
 0x68b   : > { %v14543_v18 = vpop.eup %12882  ;;  %2512 = vadd.xlane.f32.xlu1 %v14541_v7 }
 0x68c   : > { %2510 = vadd.xlane.f32.xlu0 %v14543_v18 }
 0x68d   : > { %v14547_v39 = vpop.eup %12884 }
 0x690   : > { %2514 = vadd.xlane.f32.xlu0 %v14547_v39 }
 0x69c   : > { %2653 = vrot.lane.b32.xlu1 %v13554_v5, %s17832_s11 }
 0x6a0   : > { %2657 = vrot.lane.b32.xlu1 %v13571_v19, %s17832_s11 }
 0x6a4   : > { %2659 = vrot.lane.b32.xlu1 %v13599_v30, %s17832_s11 }
 0x6a6   : > { %2655 = vrot.lane.b32.xlu0 %v13558_v10, %s17832_s11 }
 0x6a8   : > { %2663 = vrot.lane.b32.xlu1 %v13565_v15, %s17832_s11 }
 0x6aa   : > { %2661 = vrot.lane.b32.xlu0 %v13556_v9, %s17832_s11 }
 0x6ac   : > { %2667 = vrot.lane.b32.xlu1 %v18131_v13, %s17832_s11 }
 0x6ae   : > { %2665 = vrot.lane.b32.xlu0 %v18132_v47, %s17832_s11  ;;  %s18216_s11 = smov 289  }
 0x6fb   : > { %v2485_v58 = vpop.xlane.xlu1 %2484 }
 0x6fc   : > { %12886 = vrcp.f32 %v2485_v58 }
 0x6fd   : > { %v2487_v33 = vpop.xlane.xlu0 %2486 }
 0x6fe   : > { %12888 = vrcp.f32 %v2487_v33 }
 0x6ff   : > { %v2489_v2 = vpop.xlane.xlu1 %2488 }
 0x700   : > { %12890 = vrcp.f32 %v2489_v2 }
 0x703   : > { %v2491_v36 = vpop.xlane.xlu0 %2490 }
 0x704   : > { %v2493_v51 = vpop.xlane.xlu1 %2492  ;;  %12892 = vrcp.f32 %v2491_v36 }
 0x705   : > { %12894 = vrcp.f32 %v2493_v51 }
 0x706   : > { %v12887_v46 = vpop.eup %12886 }
 0x707   : > { %v2532_v4 = vmul.f32 %v12887_v46, %v14493_v20  ;;  %v14573_v20 = vld [vmem:[%s17742_s6 + $0x80] sm:$0xff]  }
 0x708   : > { %v12889_v45 = vpop.eup %12888  ;;  %v2497_v22 = vpop.xlane.xlu1 %2496 }
 0x709   : > { %v2495_v25 = vpop.xlane.xlu0 %2494  ;;  %v2533_v40 = vmul.f32 %v12889_v45, %v14496_v32 }
 0x70a   : > { %12896 = vrcp.f32 %v2495_v25  ;;  %v12891_v47 = vpop.eup %12890 }
 0x70b   : > { %v2548_v34 = vpack.c.bf16 %v2533_v40, %v2532_v4  ;;  %12898 = vrcp.f32 %v2497_v22  ;;  %v2534_v36 = vmul.f32 %v12891_v47, %v14501_v37  ;;  %v14578_v37 = vld [vmem:[%s17738_s2] sm:$0xff]  }
 0x70c   : > { %v2501_v58 = vpop.xlane.xlu1 %2500 }
 0x70d   : > { %v2499_v33 = vpop.xlane.xlu0 %2498  ;;  %11274 = vmatprep.mubr.bf16.mxu1 %v2548_v34 }
 0x70e   : > { %v12893_v2 = vpop.eup %12892  ;;  %12900 = vrcp.f32 %v2499_v33 }
 0x70f   : > { %v2535_v13 = vmul.f32 %v12893_v2, %v14506_v42  ;;  %12902 = vrcp.f32 %v2501_v58  ;;  %v12895_v32 = vpop.eup %12894 }
 0x710   : > { %v2505_v51 = vpop.xlane.xlu1 %2504  ;;  %v2536_v42 = vmul.f32 %v12895_v32, %v14508_v8 }
 0x711   : > { %v2503_v9 = vpop.xlane.xlu0 %2502  ;;  %v2549_v15 = vpack.c.bf16 %v2535_v13, %v2534_v36 }
 0x712   : > { %12904 = vrcp.f32 %v2503_v9 }
 0x713   : > { %11275 = vmatmul.mubr.bf16.vlgmr.msra.gmra.mrb[88].mxu1 %v2549_v15  ;;  %12906 = vrcp.f32 %v2505_v51 }
 0x714   : > { %v12897_v46 = vpop.eup %12896  ;;  %v2509_v45 = vpop.xlane.xlu1 %2508  ;;  %11309 = vmatpush3.bf16.msra.mxu1 %v14578_v37 }
 0x715   : > { %v2507_v22 = vpop.xlane.xlu0 %2506  ;;  %v2537_v13 = vmul.f32 %v12897_v46, %v14516_v59  ;;  %12256 = vmatprep.subr.msk.bf16.mxu1 %vm18133_vm8, %v14573_v20  ;;  %v12899_v9 = vpop.eup %12898  ;;  %vm18136_vm8 = vmmov %vm18135_vm6 }
 0x716   : > { %12908 = vrcp.f32 %v2507_v22  ;;  %v2538_v40 = vmul.f32 %v12899_v9, %v14514_v60 }
 0x717   : > { %v2550_v15 = vpack.c.bf16 %v2537_v13, %v2536_v42  ;;  %12910 = vrcp.f32 %v2509_v45 }
 0x718   : > { %v12901_v47 = vpop.eup %12900  ;;  %v2513_v25 = vpop.xlane.xlu1 %2512 }
 0x719   : > { %v2511_v4 = vpop.xlane.xlu0 %2510  ;;  %11278 = vmatprep.mubr.bf16.mxu1 %v2550_v15  ;;  %v2539_v34 = vmul.f32 %v12901_v47, %v14522_v62  ;;  %v12903_v58 = vpop.eup %12902 }
 0x71a   : > { %12912 = vrcp.f32 %v2511_v4  ;;  %v2540_v36 = vmul.f32 %v12903_v58, %v14524_v44  ;;  %v14597_v44 = vld [vmem:[%s17739_s3] sm:$0xff]  }
 0x71b   : > { %12914 = vrcp.f32 %v2513_v25  ;;  %v2551_v8 = vpack.c.bf16 %v2539_v34, %v2538_v40 }
 0x71c   : > { %v12905_v59 = vpop.eup %12904  ;;  %v2654_v2 = vpop.permute.xlu1 %2653 }
 0x71d   : > { %v2515_v33 = vpop.xlane.xlu0 %2514  ;;  %11279 = vmatmul.mubr.bf16.gmra.mrb[92].mxu1 %v2551_v8  ;;  %v2541_v51 = vmul.f32 %v12905_v59, %v14531_v31  ;;  %11292 = vmatprep.mubr.msk.bf16.mxu0 %vm18134_vm13, %v2654_v2  ;;  %v12907_v32 = vpop.eup %12906  ;;  %vm18137_vm13 = vmmov %vm18135_vm6 }
 0x71e   : > { %12916 = vrcp.f32 %v2515_v33  ;;  %v2542_v22 = vmul.f32 %v12907_v32, %v14529_v24  ;;  %v12738_v32 = vld [vmem:[%s17742_s6 + $0xa0] sm:$0xff]  }
 0x71f   : > { %v2552_v46 = vpack.c.bf16 %v2541_v51, %v2540_v36 }
 0x720   : > { %v12909_v60 = vpop.eup %12908  ;;  %v2658_v62 = vpop.permute.xlu1 %2657 }
 0x721   : > { %v2656_v45 = vpop.permute.xlu0 %2655  ;;  %11282 = vmatprep.mubr.bf16.mxu1 %v2552_v46  ;;  %v2543_v42 = vmul.f32 %v12909_v60, %v14535_v26  ;;  %v12911_v13 = vpop.eup %12910  ;;  %v12739_v60 = vld [vmem:[%s17742_s6 + $0xa8] sm:$0xff]  }
 0x722   : > { %11293 = vmatmul.mubr.msk.bf16.vlgmr.msra.gmra.mrb[88].mxu0 %vm18135_vm6, %v2656_v45  ;;  %v2544_v47 = vmul.f32 %v12911_v13, %v14537_v61 }
 0x723   : > { %11296 = vmatprep.mubr.msk.bf16.mxu0 %vm18136_vm8, %v2658_v62  ;;  %11327 = vmatpush3.bf16.msra.mxu0 %v14597_v44  ;;  %v2553_v31 = vpack.c.bf16 %v2543_v42, %v2542_v22  ;;  %vm18138_vm8 = vmmov %vm18135_vm6  ;;  %v12741_v42 = vld [vmem:[%s17742_s6 + $0xb8] sm:$0xff]  }
 0x724   : > { %v12913_v9 = vpop.eup %12912  ;;  %v2660_v25 = vpop.permute.xlu1 %2659 }
 0x725   : > { %v12915_v15 = vpop.eup %12914  ;;  %11283 = vmatmul.mubr.bf16.gmra.mrb[96].mxu1 %v2553_v31  ;;  %v2545_v24 = vmul.f32 %v12913_v9, %v14543_v18  ;;  %v2662_v40 = vpop.permute.xlu0 %2661  ;;  %v12735_v18 = vld [vmem:[%s17742_s6 + $0x88] sm:$0xff]  }
 0x726   : > { %v2546_v34 = vmul.f32 %v12915_v15, %v14541_v7  ;;  %v3090_v7 = vsel %vm18141_vm1, %v14573_v20, 0  ;;  %v12736_v20 = vld [vmem:[%s17742_s6 + $0x90] sm:$0xff]   ;;  %vm18147_vm1 = vmmov %vm18139_vm0 }
 0x727   : > { %v2554_v4 = vpack.c.bf16 %v2545_v24, %v2544_v47 }
 0x728   : > { %v12917_v26 = vpop.eup %12916  ;;  %v2664_v61 = vpop.permute.xlu1 %2663 }
 0x729   : > { %v2547_v58 = vmul.f32 %v12917_v26, %v14547_v39  ;;  %11286 = vmatprep.mubr.bf16.mxu1 %v2554_v4  ;;  %v2666_v59 = vpop.permute.xlu0 %2665 }
 0x72a   : > { %11297 = vmatmul.mubr.msk.bf16.gmra.mrb[92].mxu0 %vm18137_vm13, %v2660_v25  ;;  %vm18142_vm13 = vmmov %vm18139_vm0 }
 0x72b   : > { %v2555_v8 = vpack.c.bf16 %v2547_v58, %v2546_v34  ;;  %11300 = vmatprep.mubr.msk.bf16.mxu0 %vm18135_vm6, %v2662_v40  ;;  %vm18144_vm6 = vmmov %vm18139_vm0 }
 0x72c   : > { %v2668_v39 = vpop.permute.xlu1 %2667 }
 0x72d   : > { %11287 = vmatmul.mubr.bf16.gmra.mrb[100].mxu1 %v2555_v8 }
 0x72e   : > { %11310 = vmatprep.mubr.msk.bf16.mxu1 %vm18138_vm8, %v2654_v2  ;;  %vm18145_vm8 = vmmov %vm18139_vm0 }
 0x732   : > { %11301 = vmatmul.mubr.msk.bf16.gmra.mrb[96].mxu0 %vm18139_vm0, %v2664_v61 }
 0x733   : > { %11304 = vmatprep.mubr.msk.bf16.mxu0 %vm18140_vm15, %v2666_v59  ;;  %vm18146_vm15 = vmmov %vm18139_vm0 }
 0x734   : > { %v3093_v33 = vsel %vm18146_vm15, %v12735_v18, 0  ;;  %vm18153_vm15 = vmmov %vm18139_vm0 }
 0x735   : > { %11311 = vmatmul.mubr.msk.bf16.vlgmr.msra.gmra.mrb[104].mxu1 %vm18142_vm13, %v2656_v45  ;;  %vm18150_vm13 = vmmov %vm18139_vm0 }
 0x736   : > { %11314 = vmatprep.mubr.msk.bf16.mxu1 %vm18143_vm10, %v2658_v62  ;;  %11345 = vmatpush3.bf16.xpose.msra.mxu1 %v3090_v7  ;;  %vm18149_vm10 = vmmov %vm18139_vm0 }
 0x737   : > { %12257 = vmatprep.subr.msk.bf16.mxu1 %vm18144_vm6, %v12735_v18  ;;  %vm18151_vm6 = vmmov %vm18139_vm0 }
 0x73a   : > { %11305 = vmatmul.mubr.msk.bf16.gmra.mrb[100].mxu0 %vm18145_vm8, %v2668_v39  ;;  %vm18152_vm8 = vmmov %vm18139_vm0 }
 0x73b   : > { %11328 = vmatprep.mubr.msk.bf16.mxu0 %vm18139_vm0, %v2654_v2  ;;  %v3096_v36 = vsel %vm18152_vm8, %v12736_v20, 0  ;;  %v12737_v2 = vld [vmem:[%s17742_s6 + $0x98] sm:$0xff]   ;;  %vm18159_vm8 = vmmov %vm18139_vm0 }
 0x73d   : > { %11315 = vmatmul.mubr.msk.bf16.gmra.mrb[108].mxu1 %vm18147_vm1, %v2660_v25  ;;  %vm18154_vm1 = vmmov %vm18139_vm0 }
 0x73e   : > { %11318 = vmatprep.mubr.msk.bf16.mxu1 %vm18148_vm5, %v2662_v40  ;;  %11347 = vmatpush3.bf16.xpose.msra.mxu1 %v3093_v33  ;;  %vm18155_vm5 = vmmov %vm18139_vm0 }
 0x73f   : > { %12258 = vmatprep.subr.msk.bf16.mxu1 %vm18149_vm10, %v12736_v20  ;;  %vm18156_vm10 = vmmov %vm18139_vm0 }
 0x742   : > { %11329 = vmatmul.mubr.msk.bf16.vlgmr.msra.gmra.mrb[104].mxu0 %vm18150_vm13, %v2656_v45  ;;  %vm18157_vm13 = vmmov %vm18139_vm0 }
 0x743   : > { %11332 = vmatprep.mubr.msk.bf16.mxu0 %vm18151_vm6, %v2658_v62  ;;  %v3099_v51 = vsel %vm18157_vm13, %v12737_v2, 0  ;;  %vm18158_vm6 = vmmov %vm18139_vm0  ;;  %v12740_v62 = vld [vmem:[%s17742_s6 + $0xb0] sm:$0xff]  }
 0x744   : > { %vm18164_vm13 = vmmov %vm18139_vm0 }
 0x745   : > { %11319 = vmatmul.mubr.msk.bf16.gmra.mrb[112].mxu1 %vm18139_vm0, %v2664_v61  ;;  %v3105_v45 = vsel %vm18164_vm13, %v12739_v60, 0  ;;  %vm18186_vm13 = vmmov %vm18139_vm0 }
 0x746   : > { %11322 = vmatprep.mubr.msk.bf16.mxu1 %vm18153_vm15, %v2666_v59  ;;  %11349 = vmatpush3.bf16.xpose.msra.mxu1 %v3096_v36  ;;  %vm18160_vm15 = vmmov %vm18139_vm0 }
 0x747   : > { %12259 = vmatprep.subr.msk.bf16.mxu1 %vm18154_vm1, %v12737_v2  ;;  %vm18161_vm1 = vmmov %vm18139_vm0 }
 0x748   : > { %v3102_v46 = vsel %vm18161_vm1, %v12738_v32, 0  ;;  %vm18179_vm1 = vmmov %vm18139_vm0 }
 0x74a   : > { %11333 = vmatmul.mubr.msk.bf16.gmra.mrb[108].mxu0 %vm18155_vm5, %v2660_v25  ;;  %vm18162_vm5 = vmmov %vm18139_vm0 }
 0x74b   : > { %11336 = vmatprep.mubr.msk.bf16.mxu0 %vm18156_vm10, %v2662_v40  ;;  %vm18163_vm10 = vmmov %vm18139_vm0 }
 0x74d   : > { %11323 = vmatmul.mubr.msk.bf16.gmra.mrb[116].mxu1 %vm18158_vm6, %v2668_v39  ;;  %vm18165_vm6 = vmmov %vm18139_vm0 }
 0x74e   : > { %11351 = vmatpush3.bf16.xpose.msra.mxu1 %v3099_v51 }
 0x74f   : > { %12260 = vmatprep.subr.msk.bf16.mxu1 %vm18159_vm8, %v12738_v32  ;;  %vm18166_vm8 = vmmov %vm18139_vm0 }
 0x750   : > { %v3108_v22 = vsel %vm18166_vm8, %v12740_v62, 0  ;;  %vm18189_vm8 = vmmov %vm18139_vm0 }
 0x752   : > { %11337 = vmatmul.mubr.msk.bf16.gmra.mrb[112].mxu0 %vm18139_vm0, %v2664_v61 }
 0x753   : > { %11340 = vmatprep.mubr.msk.bf16.mxu0 %vm18160_vm15, %v2666_v59  ;;  %vm18167_vm15 = vmmov %vm18139_vm0 }
 0x754   : > { %v3111_v13 = vsel %vm18167_vm15, %v12741_v42, 0  ;;  %vm18190_vm15 = vmmov %vm18139_vm0 }
 0x756   : > { %11353 = vmatpush3.bf16.xpose.msra.mxu1 %v3102_v46 }
 0x757   : > { %12261 = vmatprep.subr.msk.bf16.mxu1 %vm18162_vm5, %v12739_v60  ;;  %vm18180_vm5 = vmmov %vm18139_vm0 }
 0x75a   : > { %11341 = vmatmul.mubr.msk.bf16.gmra.mrb[116].mxu0 %vm18163_vm10, %v2668_v39  ;;  %vm18182_vm10 = vmmov %vm18139_vm0 }
 0x75e   : > { %11355 = vmatpush3.bf16.xpose.msra.mxu1 %v3105_v45 }
 0x75f   : > { %12262 = vmatprep.subr.msk.bf16.mxu1 %vm18165_vm6, %v12740_v62  ;;  %vm18188_vm6 = vmmov %vm18139_vm0 }
 0x766   : > { %11357 = vmatpush3.bf16.xpose.msra.mxu1 %v3108_v22 }
 0x767   : > { %12263 = vmatprep.subr.msk.bf16.mxu1 %vm18139_vm0, %v12741_v42 }
 0x76e   : > { %11359 = vmatpush3.bf16.xpose.msra.mxu1 %v3111_v13 }
 0x7e6   : > { %v14662_v31 = vpop.f32.mrb[88].mxu1 }
 0x7e7   : > { %18168 = vst [vmem:[#allocation20_spill] sm:$0xff] %v14662_v31  ;;  %v14664_v9 = vpop.f32.mrb[89].mxu1 }
 0x7e8   : > { %18169 = vst [vmem:[#allocation23_spill] sm:$0xff] %v14664_v9  ;;  %v14666_v15 = vpop.f32.mrb[90].mxu1 }
 0x7e9   : > { %18170 = vst [vmem:[#allocation21_spill] sm:$0xff] %v14666_v15  ;;  %v14670_v24 = vpop.f32.mrb[91].mxu1 }
 0x7ea   : > { %18171 = vst [vmem:[#allocation43_spill] sm:$0xff] %v14670_v24 }
 0x7f0   : > { %v14674_v26 = vpop.f32.mrb[92].mxu1 }
 0x7f1   : > { %18172 = vst [vmem:[#allocation44_spill] sm:$0xff] %v14674_v26  ;;  %v14676_v4 = vpop.f32.mrb[93].mxu1 }
 0x7f2   : > { %18173 = vst [vmem:[#allocation45_spill] sm:$0xff] %v14676_v4  ;;  %v14678_v40 = vpop.f32.mrb[94].mxu1 }
 0x7f3   : > { %18174 = vst [vmem:[#allocation46_spill] sm:$0xff] %v14678_v40  ;;  %v14682_v58 = vpop.f32.mrb[95].mxu1 }
 0x7f4   : > { %18175 = vst [vmem:[#allocation47_spill] sm:$0xff] %v14682_v58 }
 0x7f5   : > { %v11294_v61 = vpop.f32.mrb[88].mxu0 }
 0x7f6   : > { %v2727_v59 = vpop.f32.mrb[89].mxu0 }
 0x7f7   : > { %v11295_v7 = vpop.f32.mrb[90].mxu0 }
 0x7f8   : > { %v14686_v18 = vpack.c.bf16 %v11295_v7, %v11294_v61  ;;  %v2730_v39 = vpop.f32.mrb[91].mxu0  ;;  %v14688_v33 = vpop.f32.mrb[96].mxu1 }
 0x7f9   : > { %18176 = vst [vmem:[#allocation48_spill] sm:$0xff] %v14688_v33  ;;  %v2984_v20 = vpack.c.bf16 %v2730_v39, %v2727_v59  ;;  %v14690_v36 = vpop.f32.mrb[97].mxu1 }
 0x7fa   : > { %18177 = vst [vmem:[#allocation49_spill] sm:$0xff] %v14690_v36  ;;  %v14692_v2 = vpop.f32.mrb[98].mxu1 }
 0x7fb   : > { %18178 = vst [vmem:[#allocation50_spill] sm:$0xff] %v14692_v2  ;;  %11360 = vmatprep.mubr.msk.bf16.mxu1 %vm18179_vm1, %v2984_v20  ;;  %11392 = vmatprep.mubr.msk.bf16.mxu0 %vm18180_vm5, %v2984_v20  ;;  %v14698_v32 = vpop.f32.mrb[99].mxu1  ;;  %vm18191_vm1 = vmmov %vm18139_vm0 }
 0x7fc   : > { %18181 = vst [vmem:[#allocation51_spill] sm:$0xff] %v14698_v32  ;;  %11361 = vmatmul.mubr.msk.bf16.vlgmr.msra.gmra.mrb[120].mxu1 %vm18182_vm10, %v14686_v18  ;;  %vm18192_vm5 = vmmov %vm18139_vm0 }
 0x7fd   : > { %v11298_v60 = vpop.f32.mrb[92].mxu0  ;;  %vm18193_vm10 = vmmov %vm18139_vm0 }
 0x7fe   : > { %v2743_v45 = vpop.f32.mrb[93].mxu0 }
 0x7ff   : > { %v11299_v62 = vpop.f32.mrb[94].mxu0 }
 0x800   : > { %v14704_v22 = vpack.c.bf16 %v11299_v62, %v11298_v60  ;;  %v2746_v42 = vpop.f32.mrb[95].mxu0  ;;  %v14706_v13 = vpop.f32.mrb[100].mxu1 }
 0x801   : > { %18183 = vst [vmem:[#allocation52_spill] sm:$0xff] %v14706_v13  ;;  %v14708_v61 = vpack.c.bf16 %v2746_v42, %v2743_v45  ;;  %v14710_v59 = vpop.f32.mrb[101].mxu1 }
 0x802   : > { %18184 = vst [vmem:[#allocation53_spill] sm:$0xff] %v14710_v59  ;;  %v14712_v7 = vpop.f32.mrb[102].mxu1 }
 0x803   : > { %18185 = vst [vmem:[#allocation54_spill] sm:$0xff] %v14712_v7  ;;  %11364 = vmatprep.mubr.msk.bf16.mxu1 %vm18186_vm13, %v14708_v61  ;;  %v14718_v20 = vpop.f32.mrb[103].mxu1  ;;  %vm18194_vm13 = vmmov %vm18139_vm0 }
 0x804   : > { %18187 = vst [vmem:[#allocation55_spill] sm:$0xff] %v14718_v20  ;;  %11365 = vmatmul.mubr.msk.bf16.gmra.mrb[124].mxu1 %vm18188_vm6, %v14704_v22  ;;  %vm18195_vm6 = vmmov %vm18139_vm0 }
 0x805   : > { %v11302_v45 = vpop.f32.mrb[96].mxu0 }
 0x806   : > { %v2759_v62 = vpop.f32.mrb[97].mxu0 }
 0x807   : > { %v11303_v42 = vpop.f32.mrb[98].mxu0 }
 0x808   : > { %v14724_v46 = vpack.c.bf16 %v11303_v42, %v11302_v45  ;;  %v2762_v51 = vpop.f32.mrb[99].mxu0  ;;  %v11312_v34 = vpop.f32.mrb[104].mxu1 }
 0x809   : > { %v14726_v8 = vpack.c.bf16 %v2762_v51, %v2759_v62  ;;  %v2824_v47 = vpop.f32.mrb[105].mxu1 }
 0x80a   : > { %v11313_v25 = vpop.f32.mrb[106].mxu1 }
 0x80b   : > { %11368 = vmatprep.mubr.msk.bf16.mxu1 %vm18189_vm8, %v14726_v8  ;;  %v2993_v39 = vpack.c.bf16 %v11313_v25, %v11312_v34  ;;  %v2827_v13 = vpop.f32.mrb[107].mxu1  ;;  %vm18196_vm8 = vmmov %vm18139_vm0 }
 0x80c   : > { %11369 = vmatmul.mubr.msk.bf16.gmra.mrb[128].mxu1 %vm18139_vm0, %v14724_v46  ;;  %v2992_v60 = vpack.c.bf16 %v2827_v13, %v2824_v47 }
 0x80d   : > { %v11306_v59 = vpop.f32.mrb[100].mxu0 }
 0x80e   : > { %v2775_v20 = vpop.f32.mrb[101].mxu0  ;;  %12264 = vmatprep.subr.msk.bf16.mxu0 %vm18190_vm15, %v2992_v60  ;;  %v3275_v51 = vsel %vm18191_vm1, %v2992_v60, 0  ;;  %vm18197_vm15 = vmmov %vm18139_vm0 }
 0x80f   : > { %v11307_v45 = vpop.f32.mrb[102].mxu0  ;;  %11377 = vmatpush3.bf16.xpose.msra.mxu0 %v3275_v51  ;;  %vm18198_vm1 = vmmov %vm18139_vm0 }
 0x810   : > { %v14734_v62 = vpack.c.bf16 %v11307_v45, %v11306_v59  ;;  %v2778_v42 = vpop.f32.mrb[103].mxu0  ;;  %v11316_v36 = vpop.f32.mrb[108].mxu1  ;;  %12265 = vmatprep.subr.msk.bf16.mxu0 %vm18192_vm5, %v2993_v39  ;;  %vm18199_vm5 = vmmov %vm18139_vm0 }
 0x811   : > { %v14736_v7 = vpack.c.bf16 %v2778_v42, %v2775_v20  ;;  %v2840_v25 = vpop.f32.mrb[109].mxu1  ;;  %v3278_v20 = vsel %vm18195_vm6, %v2993_v39, 0  ;;  %vm18202_vm6 = vmmov %vm18139_vm0 }
 0x812   : > { %v11317_v34 = vpop.f32.mrb[110].mxu1 }
 0x813   : > { %11372 = vmatprep.mubr.msk.bf16.mxu1 %vm18193_vm10, %v14736_v7  ;;  %v2995_v47 = vpack.c.bf16 %v11317_v34, %v11316_v36  ;;  %v2843_v13 = vpop.f32.mrb[111].mxu1  ;;  %vm18200_vm10 = vmmov %vm18139_vm0 }
 0x814   : > { %11373 = vmatmul.mubr.msk.bf16.gmra.mrb[132].mxu1 %vm18194_vm13, %v14734_v62  ;;  %v2994_v60 = vpack.c.bf16 %v2843_v13, %v2840_v25  ;;  %vm18201_vm13 = vmmov %vm18139_vm0 }
 0x815   : > { %v11330_v59 = vpop.f32.mrb[104].mxu0 }
 0x816   : > { %v2921_v45 = vpop.f32.mrb[105].mxu0  ;;  %v3281_v39 = vsel %vm18139_vm0, %v2994_v60, 0 }
 0x817   : > { %v11331_v51 = vpop.f32.mrb[106].mxu0  ;;  %11379 = vmatpush3.bf16.xpose.msra.mxu0 %v3278_v20 }
 0x818   : > { %v3001_v42 = vpack.c.bf16 %v11331_v51, %v11330_v59  ;;  %v2924_v32 = vpop.f32.mrb[107].mxu0  ;;  %v11320_v33 = vpop.f32.mrb[112].mxu1  ;;  %12266 = vmatprep.subr.msk.bf16.mxu0 %vm18196_vm8, %v2994_v60  ;;  %vm18203_vm8 = vmmov %vm18139_vm0 }
 0x819   : > { %v3000_v2 = vpack.c.bf16 %v2924_v32, %v2921_v45  ;;  %v2856_v4 = vpop.f32.mrb[113].mxu1 }
 0x81a   : > { %v11321_v58 = vpop.f32.mrb[114].mxu1 }
 0x81b   : > { %11408 = vmatprep.subr.bf16.mxu1 %v3000_v2  ;;  %v2997_v36 = vpack.c.bf16 %v11321_v58, %v11320_v33  ;;  %v2859_v34 = vpop.f32.mrb[115].mxu1 }
 0x81c   : > { %11409 = vmatpush3.bf16.msra.mxu1 %v3000_v2  ;;  %v2996_v26 = vpack.c.bf16 %v2859_v34, %v2856_v4 }
 0x81d   : > { %v11334_v25 = vpop.f32.mrb[108].mxu0  ;;  %11410 = vmatprep.subr.bf16.mxu1 %v3001_v42 }
 0x81e   : > { %v2937_v13 = vpop.f32.mrb[109].mxu0 }
 0x81f   : > { %v11335_v40 = vpop.f32.mrb[110].mxu0  ;;  %11381 = vmatpush3.bf16.xpose.msra.mxu0 %v3281_v39 }
 0x820   : > { %v3003_v59 = vpack.c.bf16 %v11335_v40, %v11334_v25  ;;  %v2940_v51 = vpop.f32.mrb[111].mxu0  ;;  %11411 = vmatpush3.bf16.msra.mxu1 %v3001_v42  ;;  %v11324_v32 = vpop.f32.mrb[116].mxu1  ;;  %12267 = vmatprep.subr.msk.bf16.mxu0 %vm18197_vm15, %v2995_v47  ;;  %v3284_v40 = vsel %vm18198_vm1, %v2995_v47, 0  ;;  %vm18204_vm15 = vmmov %vm18139_vm0 }
 0x821   : > { %v3002_v45 = vpack.c.bf16 %v2940_v51, %v2937_v13  ;;  %v2872_v20 = vpop.f32.mrb[117].mxu1  ;;  %v3287_v51 = vsel %vm18200_vm10, %v2996_v26, 0  ;;  %vm18205_vm1 = vmmov %vm18139_vm0 }
 0x822   : > { %v11325_v31 = vpop.f32.mrb[118].mxu1  ;;  %vm18207_vm10 = vmmov %vm18139_vm0 }
 0x823   : > { %11412 = vmatprep.subr.bf16.mxu1 %v3002_v45  ;;  %v2999_v58 = vpack.c.bf16 %v11325_v31, %v11324_v32  ;;  %v2875_v33 = vpop.f32.mrb[119].mxu1 }
 0x824   : > { %11413 = vmatpush3.bf16.msra.mxu1 %v3002_v45  ;;  %v2998_v4 = vpack.c.bf16 %v2875_v33, %v2872_v20  ;;  %v13307_v20 = vld [vmem:[%s17737_s1] sm:$0xff]  }
 0x825   : > { %v11338_v2 = vpop.f32.mrb[112].mxu0  ;;  %11414 = vmatprep.subr.bf16.mxu1 %v3003_v59 }
 0x826   : > { %v2953_v34 = vpop.f32.mrb[113].mxu0 }
 0x827   : > { %v11339_v15 = vpop.f32.mrb[114].mxu0  ;;  %11383 = vmatpush3.bf16.xpose.msra.mxu0 %v3284_v40 }
 0x828   : > { %v3005_v60 = vpack.c.bf16 %v11339_v15, %v11338_v2  ;;  %v2956_v42 = vpop.f32.mrb[115].mxu0  ;;  %11415 = vmatpush3.bf16.msra.mxu1 %v3003_v59  ;;  %12268 = vmatprep.subr.msk.bf16.mxu0 %vm18199_vm5, %v2996_v26  ;;  %v3290_v15 = vsel %vm18202_vm6, %v2997_v36, 0  ;;  %v3293_v26 = vsel %vm18139_vm0, %v2998_v4, 0  ;;  %v3296_v59 = vsel %vm18205_vm1, %v2999_v58, 0  ;;  %vm18206_vm5 = vmmov %vm18139_vm0 }
 0x829   : > { %v3004_v25 = vpack.c.bf16 %v2956_v42, %v2953_v34  ;;  %vm18209_vm6 = vmmov %vm18139_vm0  ;;  %vm18218_vm1 = vcmp.eq.s32.totalorder %v13783_v3, 1 }
 0x82b   : > { %11416 = vmatprep.subr.bf16.mxu1 %v3004_v25 }
 0x82c   : > { %11417 = vmatpush3.bf16.msra.mxu1 %v3004_v25 }
 0x82d   : > { %v11342_v13 = vpop.f32.mrb[116].mxu0  ;;  %11418 = vmatprep.subr.bf16.mxu1 %v3005_v60 }
 0x82e   : > { %v2969_v31 = vpop.f32.mrb[117].mxu0 }
 0x82f   : > { %v11343_v39 = vpop.f32.mrb[118].mxu0  ;;  %11385 = vmatpush3.bf16.xpose.msra.mxu0 %v3287_v51 }
 0x830   : > { %v3007_v32 = vpack.c.bf16 %v11343_v39, %v11342_v13  ;;  %v2972_v45 = vpop.f32.mrb[119].mxu0  ;;  %11419 = vmatpush3.bf16.msra.mxu1 %v3005_v60  ;;  %12269 = vmatprep.subr.msk.bf16.mxu0 %vm18201_vm13, %v2997_v36  ;;  %vm18208_vm13 = vmmov %vm18139_vm0 }
 0x831   : > { %v3006_v47 = vpack.c.bf16 %v2972_v45, %v2969_v31 }
 0x833   : > { %11420 = vmatprep.subr.bf16.mxu1 %v3006_v47 }
 0x834   : > { %11421 = vmatpush3.bf16.msra.mxu1 %v3006_v47 }
 0x835   : > { %11422 = vmatprep.subr.bf16.mxu1 %v3007_v32 }
 0x837   : > { %11387 = vmatpush3.bf16.xpose.msra.mxu0 %v3290_v15 }
 0x838   : > { %11423 = vmatpush3.bf16.msra.mxu1 %v3007_v32  ;;  %12270 = vmatprep.subr.msk.bf16.mxu0 %vm18203_vm8, %v2998_v4  ;;  %vm18210_vm8 = vmmov %vm18139_vm0 }
 0x839   : > { %11458 = vmatprep.subr.bf16.mxu1 %v14578_v37 }
 0x83f   : > { %11389 = vmatpush3.bf16.xpose.msra.mxu0 %v3293_v26 }
 0x840   : > { %12271 = vmatprep.subr.msk.bf16.mxu0 %vm18204_vm15, %v2999_v58  ;;  %vm18211_vm15 = vmmov %vm18139_vm0 }
 0x847   : > { %11391 = vmatpush3.bf16.xpose.msra.mxu0 %v3296_v59 }
 0x848   : > { %11440 = vmatprep.subr.bf16.mxu0 %v13307_v20 }
 0x84e   : > { %11393 = vmatmul.mubr.msk.bf16.vlgmr.msra.gmra.mrb[120].mxu0 %vm18206_vm5, %v14686_v18  ;;  %vm18219_vm5 = vcmp.eq.s32.totalorder %v13787_v6, 1 }
 0x84f   : > { %11396 = vmatprep.mubr.msk.bf16.mxu0 %vm18207_vm10, %v14708_v61  ;;  %11441 = vmatpush3.bf16.msra.mxu0 %v13307_v20  ;;  %vm18220_vm10 = vcmp.eq.s32.totalorder %v13785_v43, 1 }
 0x850   : > { %11476 = vmatprep.subr.bf16.mxu0 %v14597_v44 }
 0x856   : > { %11397 = vmatmul.mubr.msk.bf16.gmra.mrb[124].mxu0 %vm18208_vm13, %v14704_v22  ;;  %vm18221_vm13 = vcmp.eq.s32.totalorder %v13789_v11, 1 }
 0x857   : > { %11400 = vmatprep.mubr.msk.bf16.mxu0 %vm18209_vm6, %v14726_v8  ;;  %vm18222_vm6 = vcmp.eq.s32.totalorder %v13791_v14, 1 }
 0x85e   : > { %11401 = vmatmul.mubr.msk.bf16.gmra.mrb[128].mxu0 %vm18210_vm8, %v14724_v46  ;;  %vm18223_vm8 = vcmp.eq.s32.totalorder %v13797_v0, 1 }
 0x85f   : > { %11404 = vmatprep.mubr.msk.bf16.mxu0 %vm18139_vm0, %v14736_v7  ;;  %vm18224_vm0 = vcmp.eq.s32.totalorder %v13793_v17, 1 }
 0x866   : > { %11405 = vmatmul.mubr.msk.bf16.gmra.mrb[132].mxu0 %vm18211_vm15, %v14734_v62  ;;  %vm18225_vm15 = vnez %v17994_v16 }
 0x8cf   : > { %v11362_v37 = vpop.f32.mrb[120].mxu1 }
 0x8d0   : > { %v3147_v18 = vpop.f32.mrb[121].mxu1 }
 0x8d1   : > { %3212 = vrot.lane.b32.xlu0 %v3147_v18, %s18212_s0  ;;  %v11363_v44 = vpop.f32.mrb[122].mxu1 }
 0x8d2   : > { %v3150_v61 = vpop.f32.mrb[123].mxu1 }
 0x8d3   : > { %3216 = vrot.lane.b32.xlu1 %v3150_v61, %s18213_s7 }
 0x8d5   : > { %3220 = vrot.lane.b32.xlu0 %v11362_v37, %s18214_s16 }
 0x8d7   : > { %3224 = vrot.lane.b32.xlu1 %v11363_v44, %s18215_s13  ;;  %v11366_v8 = vpop.f32.mrb[124].mxu1 }
 0x8d8   : > { %v3163_v46 = vpop.f32.mrb[125].mxu1 }
 0x8d9   : > { %3228 = vrot.lane.b32.xlu0 %v3163_v46, %s18216_s11  ;;  %v11367_v22 = vpop.f32.mrb[126].mxu1 }
 0x8da   : > { %v3166_v7 = vpop.f32.mrb[127].mxu1 }
 0x8db   : > { %3232 = vrot.lane.b32.xlu1 %v3166_v7, %s18217_s9 }
 0x8dd   : > { %3236 = vrot.lane.b32.xlu0 %v11366_v8, %s18091_s12 }
 0x8df   : > { %3240 = vrot.lane.b32.xlu1 %v11367_v22, %s18092_s14  ;;  %v11370_v62 = vpop.f32.mrb[128].mxu1 }
 0x8e0   : > { %v3179_v36 = vpop.f32.mrb[129].mxu1 }
 0x8e1   : > { %3244 = vrot.lane.b32.xlu0 %v3179_v36, %s18093_s25  ;;  %v11371_v58 = vpop.f32.mrb[130].mxu1 }
 0x8e2   : > { %v3182_v33 = vpop.f32.mrb[131].mxu1 }
 0x8e3   : > { %3248 = vrot.lane.b32.xlu1 %v3182_v33, %s18094_s26 }
 0x8e5   : > { %3252 = vrot.lane.b32.xlu0 %v11370_v62, %s18095_s19 }
 0x8e7   : > { %3256 = vrot.lane.b32.xlu1 %v11371_v58, %s18096_s20  ;;  %v11374_v4 = vpop.f32.mrb[132].mxu1 }
 0x8e8   : > { %v3195_v2 = vpop.f32.mrb[133].mxu1 }
 0x8e9   : > { %3260 = vrot.lane.b32.xlu0 %v3195_v2, %s18097_s21  ;;  %v11375_v34 = vpop.f32.mrb[134].mxu1 }
 0x8ea   : > { %v3198_v40 = vpop.f32.mrb[135].mxu1 }
 0x8eb   : > { %3264 = vrot.lane.b32.xlu1 %v3198_v40, %s18098_s22 }
 0x8ed   : > { %3268 = vrot.lane.b32.xlu0 %v11374_v4, %s18099_s24 }
 0x8ef   : > { %3272 = vrot.lane.b32.xlu1 %v11375_v34, %s18100_s23 }
 0x921   : > { %v11394_v60 = vpop.f32.mrb[120].mxu0 }
 0x922   : > { %v3332_v42 = vpop.f32.mrb[121].mxu0  ;;  %v3397_v7 = vmul.f32 0.088388346, %v11394_v60 }
 0x923   : > { %v11395_v25 = vpop.f32.mrb[122].mxu0  ;;  %v3395_v44 = vmul.f32 0.088388346, %v3332_v42 }
 0x924   : > { %v3335_v13 = vpop.f32.mrb[123].mxu0  ;;  %v3398_v4 = vmul.f32 0.088388346, %v11395_v25 }
 0x925   : > { %v3396_v8 = vmul.f32 0.088388346, %v3335_v13 }
 0x929   : > { %v11398_v31 = vpop.f32.mrb[124].mxu0 }
 0x92a   : > { %v3348_v39 = vpop.f32.mrb[125].mxu0 }
 0x92b   : > { %v11399_v51 = vpop.f32.mrb[126].mxu0  ;;  %v3399_v42 = vmul.f32 0.088388346, %v3348_v39  ;;  %v3401_v39 = vmul.f32 0.088388346, %v11398_v31 }
 0x92c   : > { %v3351_v32 = vpop.f32.mrb[127].mxu0 }
 0x931   : > { %v11402_v45 = vpop.f32.mrb[128].mxu0 }
 0x932   : > { %v3364_v47 = vpop.f32.mrb[129].mxu0 }
 0x933   : > { %v14791_v15 = vpop.f32.mrb[130].mxu0 }
 0x934   : > { %v3367_v26 = vpop.f32.mrb[131].mxu0 }
 0x939   : > { %v14793_v59 = vpop.f32.mrb[132].mxu0 }
 0x93a   : > { %v14795_v20 = vpop.f32.mrb[133].mxu0 }
 0x93b   : > { %v14797_v37 = vpop.f32.mrb[134].mxu0 }
 0x93c   : > { %v14799_v18 = vpop.f32.mrb[135].mxu0 }
 0x943   : > { %v3213_v61 = vpop.permute.xlu0 %3212 }
 0x944   : > { %v3411_v46 = vadd.f32 %v3395_v44, %v3213_v61 }
 0x945   : > { %v3217_v22 = vpop.permute.xlu1 %3216 }
 0x946   : > { %v3412_v62 = vadd.f32 %v3396_v8, %v3217_v22  ;;  %v3427_v36 = vsel %vm13837_vm2, -1e+09, %v3411_v46  ;;  %v3400_v8 = vmul.f32 0.088388346, %v3351_v32 }
 0x947   : > { %v3221_v58 = vpop.permute.xlu0 %3220  ;;  %v14805_v33 = vsel %vm18218_vm1, -1e+09, %v3427_v36  ;;  %vm18226_vm1 = vcmp.eq.s32.totalorder %v13799_v23, 1 }
 0x948   : > { %v3413_v2 = vadd.f32 %v3397_v7, %v3221_v58  ;;  %3459 = vmax.xlane.f32.xlu0 %v14805_v33  ;;  %v3428_v34 = vsel %vm13842_vm3, -1e+09, %v3412_v62 }
 0x949   : > { %v3225_v40 = vpop.permute.xlu1 %3224  ;;  %v14812_v60 = vsel %vm18219_vm5, -1e+09, %v3428_v34  ;;  %vm18227_vm5 = vcmp.eq.s32.totalorder %v13807_v27, 1 }
 0x94a   : > { %v3414_v13 = vadd.f32 %v3398_v4, %v3225_v40  ;;  %3461 = vmax.xlane.f32.xlu1 %v14812_v60  ;;  %v3429_v44 = vsel %vm13847_vm4, -1e+09, %v3413_v2  ;;  %v3402_v2 = vmul.f32 0.088388346, %v11399_v51 }
 0x94b   : > { %v3229_v61 = vpop.permute.xlu0 %3228  ;;  %v14819_v25 = vsel %vm18220_vm10, -1e+09, %v3429_v44  ;;  %vm18228_vm10 = vnez %v17998_v28 }
 0x94c   : > { %v3415_v46 = vadd.f32 %v3399_v42, %v3229_v61  ;;  %3463 = vmax.xlane.f32.xlu0 %v14819_v25  ;;  %v3430_v22 = vsel %vm13871_vm7, -1e+09, %v3414_v13  ;;  %v3403_v42 = vmul.f32 0.088388346, %v3364_v47 }
 0x94d   : > { %v3233_v7 = vpop.permute.xlu1 %3232  ;;  %v14828_v4 = vsel %vm18221_vm13, -1e+09, %v3430_v22  ;;  %vm18229_vm13 = vnez %v17996_v57 }
 0x94e   : > { %v3416_v62 = vadd.f32 %v3400_v8, %v3233_v7  ;;  %v3431_v36 = vsel %vm13884_vm9, -1e+09, %v3415_v46  ;;  %v3404_v46 = vmul.f32 0.088388346, %v3367_v26 }
 0x94f   : > { %v3237_v58 = vpop.permute.xlu0 %3236  ;;  %v14832_v32 = vsel %vm18222_vm6, -1e+09, %v3431_v36  ;;  %vm18230_vm6 = vcmp.eq.s32.totalorder %v13815_v21, 1 }
 0x950   : > { %v3417_v34 = vadd.f32 %v3401_v39, %v3237_v58  ;;  %3465 = vmax.xlane.f32.xlu0 %v14828_v4  ;;  %3467 = vmax.xlane.f32.xlu1 %v14832_v32  ;;  %v3432_v31 = vsel %vm13898_vm12, -1e+09, %v3416_v62  ;;  %v3405_v39 = vmul.f32 0.088388346, %v11402_v45 }
 0x951   : > { %v3241_v40 = vpop.permute.xlu1 %3240  ;;  %v14846_v51 = vsel %vm18224_vm0, -1e+09, %v3432_v31  ;;  %vm18232_vm0 = vnez %v18116_v1 }
 0x952   : > { %v3418_v13 = vadd.f32 %v3402_v2, %v3241_v40  ;;  %v3433_v44 = vsel %vm13893_vm11, -1e+09, %v3417_v34  ;;  %v3406_v34 = vmul.f32 0.088388346, %v14791_v15 }
 0x953   : > { %v3245_v61 = vpop.permute.xlu0 %3244  ;;  %v14842_v8 = vsel %vm18223_vm8, -1e+09, %v3433_v44  ;;  %vm18231_vm8 = vcmp.eq.s32.totalorder %v18114_v35, 1 }
 0x954   : > { %v3419_v22 = vadd.f32 %v3403_v42, %v3245_v61  ;;  %3471 = vmax.xlane.f32.xlu1 %v14842_v8  ;;  %3469 = vmax.xlane.f32.xlu0 %v14846_v51  ;;  %v3434_v47 = vsel %vm13923_vm14, -1e+09, %v3418_v13  ;;  %v3407_v42 = vmul.f32 0.088388346, %v14795_v20 }
 0x955   : > { %v3249_v7 = vpop.permute.xlu1 %3248  ;;  %v14856_v2 = vsel %vm18226_vm1, -1e+09, %v3434_v47  ;;  %vm18233_vm1 = vnez %v18005_v63 }
 0x956   : > { %v3420_v62 = vadd.f32 %v3404_v46, %v3249_v7  ;;  %v3435_v36 = vsel %vm18225_vm15, -1e+09, %v3419_v22  ;;  %v3408_v22 = vmul.f32 0.088388346, %v14799_v18 }
 0x957   : > { %v3253_v58 = vpop.permute.xlu0 %3252  ;;  %v14860_v26 = vsel %vm18227_vm5, -1e+09, %v3435_v36  ;;  %vm18234_vm5 = vcmp.eq.s32.totalorder %v18119_v29, 1 }
 0x958   : > { %v3421_v31 = vadd.f32 %v3405_v39, %v3253_v58  ;;  %3473 = vmax.xlane.f32.xlu0 %v14856_v2  ;;  %3475 = vmax.xlane.f32.xlu1 %v14860_v26  ;;  %v3436_v45 = vsel %vm18228_vm10, -1e+09, %v3420_v62  ;;  %v3409_v39 = vmul.f32 0.088388346, %v14793_v59 }
 0x959   : > { %v3257_v40 = vpop.permute.xlu1 %3256  ;;  %v14876_v15 = vsel %vm18231_vm8, -1e+09, %v3436_v45  ;;  %vm18236_vm8 = vnez %v18007_v49 }
 0x95a   : > { %v3422_v13 = vadd.f32 %v3406_v34, %v3257_v40  ;;  %v3437_v44 = vsel %vm18229_vm13, -1e+09, %v3421_v31  ;;  %v3410_v31 = vmul.f32 0.088388346, %v14797_v37 }
 0x95b   : > { %v3261_v61 = vpop.permute.xlu0 %3260  ;;  %v14872_v46 = vsel %vm18230_vm6, -1e+09, %v3437_v44  ;;  %vm18235_vm6 = vcmp.eq.s32.totalorder %v13825_v38, 1  ;;  %v18238_v44 = vld [vmem:[#allocation24_spill] sm:$0xff] }
 0x95c   : > { %v3423_v47 = vadd.f32 %v3407_v42, %v3261_v61  ;;  %3479 = vmax.xlane.f32.xlu1 %v14872_v46  ;;  %3477 = vmax.xlane.f32.xlu0 %v14876_v15  ;;  %v3438_v20 = vsel %vm18232_vm0, -1e+09, %v3422_v13 }
 0x95d   : > { %v3265_v7 = vpop.permute.xlu1 %3264  ;;  %v14888_v34 = vsel %vm18234_vm5, -1e+09, %v3438_v20  ;;  %vm18239_vm5 = vcmp.eq.s32.totalorder %v18238_v44, 1 }
 0x95e   : > { %v3424_v62 = vadd.f32 %v3408_v22, %v3265_v7  ;;  %v3439_v36 = vsel %vm18233_vm1, -1e+09, %v3423_v47  ;;  %vm18237_vm1 = vnez %v18009_v56  ;;  %v18240_v22 = vld [vmem:[#allocation22_spill] sm:$0xff]  ;;  %v18244_v7 = vld [vmem:[#allocation25_spill] sm:$0xff] }
 0x95f   : > { %v3269_v58 = vpop.permute.xlu0 %3268  ;;  %v14892_v18 = vsel %vm18235_vm6, -1e+09, %v3439_v36  ;;  %vm18241_vm6 = vcmp.eq.s32.totalorder %v18240_v22, 1  ;;  %v18242_v47 = vld [vmem:[#allocation26_spill] sm:$0xff] }
 0x960   : > { %v3425_v45 = vadd.f32 %v3409_v39, %v3269_v58  ;;  %3481 = vmax.xlane.f32.xlu0 %v14888_v34  ;;  %3483 = vmax.xlane.f32.xlu1 %v14892_v18  ;;  %v3440_v59 = vsel %vm18236_vm8, -1e+09, %v3424_v62  ;;  %vm18243_vm0 = vnez %v18242_v47  ;;  %vm18245_vm8 = vcmp.eq.s32.totalorder %v18244_v7, 1 }
 0x961   : > { %v3273_v40 = vpop.permute.xlu1 %3272  ;;  %v14907_v37 = vsel %vm18241_vm6, -1e+09, %v3440_v59 }
 0x962   : > { %v3426_v42 = vadd.f32 %v3410_v31, %v3273_v40  ;;  %v3441_v13 = vsel %vm18237_vm1, -1e+09, %v3425_v45 }
 0x963   : > { %v14903_v61 = vsel %vm18239_vm5, -1e+09, %v3441_v13 }
 0x964   : > { %3487 = vmax.xlane.f32.xlu1 %v14903_v61  ;;  %3485 = vmax.xlane.f32.xlu0 %v14907_v37  ;;  %v3442_v20 = vsel %vm18243_vm0, -1e+09, %v3426_v42 }
 0x965   : > { %v14915_v39 = vsel %vm18245_vm8, -1e+09, %v3442_v20  ;;  %vm18250_vm8 = vcmask 130048  }
 0x966   : > { %vm18251_vm5 = vmmov %vm18250_vm8 }
 0x967   : > { %vm18252_vm6 = vmmov %vm18251_vm5 }
 0x968   : > { %3489 = vmax.xlane.f32.xlu0 %v14915_v39  ;;  %vm18256_vm0 = vmmov %vm18251_vm5 }
 0x969   : > { %vm18257_vm1 = vmmov %vm18256_vm0 }
 0x96a   : > { %vm18258_vm13 = vmmov %vm18256_vm0 }
 0x96b   : > { %vm18260_vm10 = vmmov %vm18256_vm0 }
 0x96c   : > { %vm18265_vm15 = vmmov %vm18256_vm0 }
 0x9d5   : > { %v3460_v62 = vpop.xlane.xlu0 %3459 }
 0x9d6   : > { %v3491_v36 = vsub.f32 %v14805_v33, %v3460_v62 }
 0x9d7   : > { %v3462_v58 = vpop.xlane.xlu1 %3461 }
 0x9d8   : > { %v3507_v31 = vmul.f32 1.442695, %v3491_v36  ;;  %v3492_v45 = vsub.f32 %v14812_v60, %v3462_v58 }
 0x9d9   : > { %v3464_v59 = vpop.xlane.xlu0 %3463 }
 0x9da   : > { %12918 = vpow2.f32 %v3507_v31  ;;  %v3509_v40 = vmul.f32 1.442695, %v3492_v45  ;;  %v3493_v13 = vsub.f32 %v14819_v25, %v3464_v59 }
 0x9dc   : > { %12920 = vpow2.f32 %v3509_v40  ;;  %v3511_v42 = vmul.f32 1.442695, %v3493_v13 }
 0x9dd   : > { %v3466_v9 = vpop.xlane.xlu0 %3465  ;;  %v3468_v24 = vpop.xlane.xlu1 %3467 }
 0x9de   : > { %12922 = vpow2.f32 %v3511_v42  ;;  %v3494_v20 = vsub.f32 %v14828_v4, %v3466_v9  ;;  %v3495_v7 = vsub.f32 %v14832_v32, %v3468_v24 }
 0x9e0   : > { %v3513_v47 = vmul.f32 1.442695, %v3494_v20  ;;  %v3515_v33 = vmul.f32 1.442695, %v3495_v7 }
 0x9e1   : > { %v3472_v62 = vpop.xlane.xlu1 %3471  ;;  %v3470_v36 = vpop.xlane.xlu0 %3469 }
 0x9e2   : > { %12924 = vpow2.f32 %v3513_v47  ;;  %v3497_v60 = vsub.f32 %v14842_v8, %v3472_v62  ;;  %v3496_v58 = vsub.f32 %v14846_v51, %v3470_v36 }
 0x9e3   : > { %12926 = vpow2.f32 %v3515_v33 }
 0x9e4   : > { %v14925_v25 = vpop.eup %12918  ;;  %v3519_v31 = vmul.f32 1.442695, %v3497_v60  ;;  %v3517_v45 = vmul.f32 1.442695, %v3496_v58 }
 0x9e5   : > { %v3474_v59 = vpop.xlane.xlu0 %3473  ;;  %v3476_v40 = vpop.xlane.xlu1 %3475  ;;  %3539 = vadd.xlane.f32.xlu1 %v14925_v25 }
 0x9e6   : > { %v14928_v9 = vpop.eup %12920  ;;  %12928 = vpow2.f32 %v3519_v31  ;;  %v3498_v24 = vsub.f32 %v14856_v2, %v3474_v59  ;;  %v3499_v4 = vsub.f32 %v14860_v26, %v3476_v40 }
 0x9e7   : > { %12930 = vpow2.f32 %v3517_v45  ;;  %3541 = vadd.xlane.f32.xlu0 %v14928_v9 }
 0x9e8   : > { %v14933_v32 = vpop.eup %12922  ;;  %v3521_v8 = vmul.f32 1.442695, %v3498_v24  ;;  %v3523_v51 = vmul.f32 1.442695, %v3499_v4 }
 0x9e9   : > { %v3480_v47 = vpop.xlane.xlu1 %3479  ;;  %v3478_v7 = vpop.xlane.xlu0 %3477  ;;  %3543 = vadd.xlane.f32.xlu1 %v14933_v32 }
 0x9ea   : > { %12932 = vpow2.f32 %v3521_v8  ;;  %v3501_v13 = vsub.f32 %v14872_v46, %v3480_v47  ;;  %v3500_v42 = vsub.f32 %v14876_v15, %v3478_v7 }
 0x9eb   : > { %12934 = vpow2.f32 %v3523_v51 }
 0x9ec   : > { %v14938_v2 = vpop.eup %12924  ;;  %v3527_v26 = vmul.f32 1.442695, %v3501_v13  ;;  %v3525_v20 = vmul.f32 1.442695, %v3500_v42 }
 0x9ed   : > { %v14940_v33 = vpop.eup %12926  ;;  %v3482_v62 = vpop.xlane.xlu0 %3481  ;;  %3545 = vadd.xlane.f32.xlu0 %v14938_v2 }
 0x9ee   : > { %v3484_v36 = vpop.xlane.xlu1 %3483  ;;  %12936 = vpow2.f32 %v3527_v26  ;;  %v3502_v60 = vsub.f32 %v14888_v34, %v3482_v62  ;;  %3547 = vadd.xlane.f32.xlu1 %v14940_v33 }
 0x9ef   : > { %v3503_v46 = vsub.f32 %v14892_v18, %v3484_v36  ;;  %12938 = vpow2.f32 %v3525_v20  ;;  %v18246_v36 = vld [vmem:[#allocation15_spill] sm:$0xff] }
 0x9f0   : > { %v14946_v15 = vpop.eup %12928  ;;  %v3529_v58 = vmul.f32 1.442695, %v3502_v60  ;;  %v18247_v60 = vld [vmem:[#allocation13_spill] sm:$0xff] }
 0x9f1   : > { %v3531_v31 = vmul.f32 1.442695, %v3503_v46  ;;  %v14948_v45 = vpop.eup %12930  ;;  %v3486_v40 = vpop.xlane.xlu0 %3485  ;;  %v18248_v46 = vld [vmem:[#allocation19_spill] sm:$0xff] }
 0x9f2   : > { %v3488_v59 = vpop.xlane.xlu1 %3487  ;;  %12940 = vpow2.f32 %v3529_v58  ;;  %3551 = vadd.xlane.f32.xlu1 %v14946_v15  ;;  %3549 = vadd.xlane.f32.xlu0 %v14948_v45  ;;  %v3504_v34 = vsub.f32 %v14907_v37, %v3486_v40  ;;  %v18249_v58 = vld [vmem:[#allocation17_spill] sm:$0xff] }
 0x9f3   : > { %v3505_v24 = vsub.f32 %v14903_v61, %v3488_v59  ;;  %12942 = vpow2.f32 %v3531_v31 }
 0x9f4   : > { %v14954_v18 = vpop.eup %12932  ;;  %v3533_v8 = vmul.f32 1.442695, %v3504_v34 }
 0x9f5   : > { %v3535_v4 = vmul.f32 1.442695, %v3505_v24  ;;  %v14956_v51 = vpop.eup %12934  ;;  %v3490_v47 = vpop.xlane.xlu0 %3489 }
 0x9f6   : > { %3555 = vadd.xlane.f32.xlu1 %v14956_v51  ;;  %3553 = vadd.xlane.f32.xlu0 %v14954_v18  ;;  %v3506_v7 = vsub.f32 %v14915_v39, %v3490_v47 }
 0x9f7   : > { %12944 = vpow2.f32 %v3535_v4 }
 0x9f8   : > { %12946 = vpow2.f32 %v3533_v8  ;;  %v14961_v61 = vpop.eup %12936  ;;  %v3537_v13 = vmul.f32 1.442695, %v3506_v7 }
 0x9f9   : > { %v14963_v37 = vpop.eup %12938 }
 0x9fa   : > { %12948 = vpow2.f32 %v3537_v13  ;;  %3559 = vadd.xlane.f32.xlu1 %v14961_v61  ;;  %3557 = vadd.xlane.f32.xlu0 %v14963_v37 }
 0x9fc   : > { %v14967_v42 = vpop.eup %12940 }
 0x9fd   : > { %v14969_v26 = vpop.eup %12942 }
 0x9fe   : > { %3563 = vadd.xlane.f32.xlu1 %v14969_v26  ;;  %3561 = vadd.xlane.f32.xlu0 %v14967_v42 }
 0xa01   : > { %v14973_v39 = vpop.eup %12944 }
 0xa02   : > { %v14975_v20 = vpop.eup %12946  ;;  %3567 = vadd.xlane.f32.xlu1 %v14973_v39 }
 0xa03   : > { %3565 = vadd.xlane.f32.xlu0 %v14975_v20 }
 0xa04   : > { %v14979_v62 = vpop.eup %12948 }
 0xa07   : > { %3569 = vadd.xlane.f32.xlu0 %v14979_v62 }
 0xa13   : > { %3708 = vrot.lane.b32.xlu1 %v13554_v5, %s17858_s18 }
 0xa17   : > { %3712 = vrot.lane.b32.xlu1 %v13571_v19, %s17858_s18 }
 0xa1b   : > { %3714 = vrot.lane.b32.xlu1 %v13599_v30, %s17858_s18 }
 0xa1d   : > { %3710 = vrot.lane.b32.xlu0 %v13558_v10, %s17858_s18 }
 0xa1f   : > { %3718 = vrot.lane.b32.xlu1 %v18246_v36, %s17858_s18 }
 0xa21   : > { %3716 = vrot.lane.b32.xlu0 %v18247_v60, %s17858_s18 }
 0xa23   : > { %3722 = vrot.lane.b32.xlu1 %v18248_v46, %s17858_s18 }
 0xa25   : > { %3720 = vrot.lane.b32.xlu0 %v18249_v58, %s17858_s18 }
 0xa72   : > { %v3540_v31 = vpop.xlane.xlu1 %3539 }
 0xa73   : > { %12950 = vrcp.f32 %v3540_v31 }
 0xa74   : > { %v3542_v59 = vpop.xlane.xlu0 %3541 }
 0xa75   : > { %12952 = vrcp.f32 %v3542_v59 }
 0xa76   : > { %v3544_v40 = vpop.xlane.xlu1 %3543 }
 0xa77   : > { %12954 = vrcp.f32 %v3544_v40 }
 0xa7a   : > { %v3546_v24 = vpop.xlane.xlu0 %3545 }
 0xa7b   : > { %v3548_v34 = vpop.xlane.xlu1 %3547  ;;  %12956 = vrcp.f32 %v3546_v24 }
 0xa7c   : > { %12958 = vrcp.f32 %v3548_v34 }
 0xa7d   : > { %v12951_v4 = vpop.eup %12950 }
 0xa7e   : > { %v3587_v13 = vmul.f32 %v12951_v4, %v14925_v25  ;;  %v15005_v25 = vld [vmem:[%s17742_s6 + $0xc0] sm:$0xff]  }
 0xa7f   : > { %v12953_v8 = vpop.eup %12952  ;;  %v3552_v47 = vpop.xlane.xlu1 %3551 }
 0xa80   : > { %v3550_v7 = vpop.xlane.xlu0 %3549  ;;  %v3588_v46 = vmul.f32 %v12953_v8, %v14928_v9 }
 0xa81   : > { %12960 = vrcp.f32 %v3550_v7  ;;  %v12955_v60 = vpop.eup %12954 }
 0xa82   : > { %v3603_v58 = vpack.c.bf16 %v3588_v46, %v3587_v13  ;;  %12962 = vrcp.f32 %v3552_v47  ;;  %v3589_v24 = vmul.f32 %v12955_v60, %v14933_v32  ;;  %v15010_v32 = vld [vmem:[%s17738_s2] sm:$0xff]  }
 0xa83   : > { %v3556_v31 = vpop.xlane.xlu1 %3555 }
 0xa84   : > { %v3554_v59 = vpop.xlane.xlu0 %3553  ;;  %11424 = vmatprep.mubr.bf16.mxu1 %v3603_v58 }
 0xa85   : > { %v12957_v40 = vpop.eup %12956  ;;  %12964 = vrcp.f32 %v3554_v59 }
 0xa86   : > { %v3590_v36 = vmul.f32 %v12957_v40, %v14938_v2  ;;  %12966 = vrcp.f32 %v3556_v31  ;;  %v12959_v9 = vpop.eup %12958 }
 0xa87   : > { %v3560_v34 = vpop.xlane.xlu1 %3559  ;;  %v3591_v2 = vmul.f32 %v12959_v9, %v14940_v33 }
 0xa88   : > { %v3558_v10 = vpop.xlane.xlu0 %3557  ;;  %v3604_v30 = vpack.c.bf16 %v3590_v36, %v3589_v24 }
 0xa89   : > { %12968 = vrcp.f32 %v3558_v10 }
 0xa8a   : > { %11425 = vmatmul.mubr.bf16.vlgmr.msra.gmra.mrb[136].mxu1 %v3604_v30  ;;  %12970 = vrcp.f32 %v3560_v34 }
 0xa8b   : > { %v12961_v46 = vpop.eup %12960  ;;  %v3564_v58 = vpop.xlane.xlu1 %3563  ;;  %11459 = vmatpush3.bf16.msra.mxu1 %v15010_v32 }
 0xa8c   : > { %v3562_v4 = vpop.xlane.xlu0 %3561  ;;  %v3592_v36 = vmul.f32 %v12961_v46, %v14948_v45  ;;  %12272 = vmatprep.subr.msk.bf16.mxu1 %vm18250_vm8, %v15005_v25  ;;  %v12963_v10 = vpop.eup %12962  ;;  %vm18253_vm8 = vmmov %vm18251_vm5 }
 0xa8d   : > { %12972 = vrcp.f32 %v3562_v4  ;;  %v3593_v7 = vmul.f32 %v12963_v10, %v14946_v15 }
 0xa8e   : > { %v3605_v30 = vpack.c.bf16 %v3592_v36, %v3591_v2  ;;  %12974 = vrcp.f32 %v3564_v58 }
 0xa8f   : > { %v12965_v60 = vpop.eup %12964  ;;  %v3568_v8 = vpop.xlane.xlu1 %3567 }
 0xa90   : > { %v3566_v47 = vpop.xlane.xlu0 %3565  ;;  %11428 = vmatprep.mubr.bf16.mxu1 %v3605_v30  ;;  %v3594_v13 = vmul.f32 %v12965_v60, %v14954_v18  ;;  %v12967_v31 = vpop.eup %12966 }
 0xa91   : > { %12976 = vrcp.f32 %v3566_v47  ;;  %v3595_v24 = vmul.f32 %v12967_v31, %v14956_v51  ;;  %v15029_v51 = vld [vmem:[%s17739_s3] sm:$0xff]  }
 0xa92   : > { %12978 = vrcp.f32 %v3568_v8  ;;  %v3606_v33 = vpack.c.bf16 %v3594_v13, %v3593_v7 }
 0xa93   : > { %v12969_v45 = vpop.eup %12968  ;;  %v3709_v40 = vpop.permute.xlu1 %3708 }
 0xa94   : > { %v3570_v59 = vpop.xlane.xlu0 %3569  ;;  %11429 = vmatmul.mubr.bf16.gmra.mrb[140].mxu1 %v3606_v33  ;;  %11442 = vmatprep.mubr.msk.bf16.mxu0 %vm18251_vm5, %v3709_v40  ;;  %v3596_v34 = vmul.f32 %v12969_v45, %v14963_v37  ;;  %v12971_v9 = vpop.eup %12970 }
 0xa95   : > { %12980 = vrcp.f32 %v3570_v59  ;;  %v3597_v4 = vmul.f32 %v12971_v9, %v14961_v61  ;;  %v12746_v9 = vld [vmem:[%s17742_s6 + $0xe0] sm:$0xff]  }
 0xa96   : > { %v3607_v46 = vpack.c.bf16 %v3596_v34, %v3595_v24 }
 0xa97   : > { %v12973_v15 = vpop.eup %12972  ;;  %v3713_v18 = vpop.permute.xlu1 %3712 }
 0xa98   : > { %v3711_v58 = vpop.permute.xlu0 %3710  ;;  %11432 = vmatprep.mubr.bf16.mxu1 %v3607_v46  ;;  %v3598_v2 = vmul.f32 %v12973_v15, %v14967_v42  ;;  %v12975_v36 = vpop.eup %12974  ;;  %v12747_v15 = vld [vmem:[%s17742_s6 + $0xe8] sm:$0xff]  }
 0xa99   : > { %11443 = vmatmul.mubr.msk.bf16.vlgmr.msra.gmra.mrb[136].mxu0 %vm18252_vm6, %v3711_v58  ;;  %v3599_v60 = vmul.f32 %v12975_v36, %v14969_v26  ;;  %vm18254_vm6 = vmmov %vm18251_vm5 }
 0xa9a   : > { %11446 = vmatprep.mubr.msk.bf16.mxu0 %vm18253_vm8, %v3713_v18  ;;  %11477 = vmatpush3.bf16.msra.mxu0 %v15029_v51  ;;  %v3608_v37 = vpack.c.bf16 %v3598_v2, %v3597_v4  ;;  %vm18255_vm8 = vmmov %vm18251_vm5  ;;  %v12749_v2 = vld [vmem:[%s17742_s6 + $0xf8] sm:$0xff]  }
 0xa9b   : > { %v12977_v10 = vpop.eup %12976  ;;  %v3715_v8 = vpop.permute.xlu1 %3714 }
 0xa9c   : > { %v12979_v30 = vpop.eup %12978  ;;  %11433 = vmatmul.mubr.bf16.gmra.mrb[144].mxu1 %v3608_v37  ;;  %v3600_v61 = vmul.f32 %v12977_v10, %v14975_v20  ;;  %v3717_v7 = vpop.permute.xlu0 %3716  ;;  %v12743_v20 = vld [vmem:[%s17742_s6 + $0xc8] sm:$0xff]  }
 0xa9d   : > { %v3601_v13 = vmul.f32 %v12979_v30, %v14973_v39  ;;  %v4145_v39 = vsel %vm18258_vm13, %v15005_v25, 0  ;;  %v12744_v25 = vld [vmem:[%s17742_s6 + $0xd0] sm:$0xff]   ;;  %vm18264_vm13 = vmmov %vm18256_vm0 }
 0xa9e   : > { %v3609_v47 = vpack.c.bf16 %v3600_v61, %v3599_v60 }
 0xa9f   : > { %v12981_v42 = vpop.eup %12980  ;;  %v3719_v26 = vpop.permute.xlu1 %3718 }
 0xaa0   : > { %v3602_v31 = vmul.f32 %v12981_v42, %v14979_v62  ;;  %11436 = vmatprep.mubr.bf16.mxu1 %v3609_v47  ;;  %v3721_v45 = vpop.permute.xlu0 %3720 }
 0xaa1   : > { %11447 = vmatmul.mubr.msk.bf16.gmra.mrb[140].mxu0 %vm18251_vm5, %v3715_v8  ;;  %vm18259_vm5 = vmmov %vm18256_vm0 }
 0xaa2   : > { %v3610_v33 = vpack.c.bf16 %v3602_v31, %v3601_v13  ;;  %11450 = vmatprep.mubr.msk.bf16.mxu0 %vm18254_vm6, %v3717_v7  ;;  %vm18261_vm6 = vmmov %vm18256_vm0 }
 0xaa3   : > { %v3723_v62 = vpop.permute.xlu1 %3722 }
 0xaa4   : > { %11437 = vmatmul.mubr.bf16.gmra.mrb[148].mxu1 %v3610_v33 }
 0xaa5   : > { %11460 = vmatprep.mubr.msk.bf16.mxu1 %vm18255_vm8, %v3709_v40  ;;  %vm18262_vm8 = vmmov %vm18256_vm0 }
 0xaa9   : > { %11451 = vmatmul.mubr.msk.bf16.gmra.mrb[144].mxu0 %vm18256_vm0, %v3719_v26 }
 0xaaa   : > { %11454 = vmatprep.mubr.msk.bf16.mxu0 %vm18257_vm1, %v3721_v45  ;;  %vm18263_vm1 = vmmov %vm18256_vm0 }
 0xaab   : > { %v4148_v59 = vsel %vm18263_vm1, %v12743_v20, 0  ;;  %vm18270_vm1 = vmmov %vm18256_vm0 }
 0xaac   : > { %11461 = vmatmul.mubr.msk.bf16.vlgmr.msra.gmra.mrb[152].mxu1 %vm18259_vm5, %v3711_v58  ;;  %vm18267_vm5 = vmmov %vm18256_vm0 }
 0xaad   : > { %11464 = vmatprep.mubr.msk.bf16.mxu1 %vm18260_vm10, %v3713_v18  ;;  %11495 = vmatpush3.bf16.xpose.msra.mxu1 %v4145_v39  ;;  %vm18266_vm10 = vmmov %vm18256_vm0 }
 0xaae   : > { %12273 = vmatprep.subr.msk.bf16.mxu1 %vm18261_vm6, %v12743_v20  ;;  %vm18268_vm6 = vmmov %vm18256_vm0 }
 0xab1   : > { %11455 = vmatmul.mubr.msk.bf16.gmra.mrb[148].mxu0 %vm18262_vm8, %v3723_v62  ;;  %vm18269_vm8 = vmmov %vm18256_vm0 }
 0xab2   : > { %11478 = vmatprep.mubr.msk.bf16.mxu0 %vm18256_vm0, %v3709_v40  ;;  %v4151_v24 = vsel %vm18269_vm8, %v12744_v25, 0  ;;  %v12745_v40 = vld [vmem:[%s17742_s6 + $0xd8] sm:$0xff]   ;;  %vm18276_vm8 = vmmov %vm18256_vm0 }
 0xab4   : > { %11465 = vmatmul.mubr.msk.bf16.gmra.mrb[156].mxu1 %vm18264_vm13, %v3715_v8  ;;  %vm18271_vm13 = vmmov %vm18256_vm0 }
 0xab5   : > { %11468 = vmatprep.mubr.msk.bf16.mxu1 %vm18265_vm15, %v3717_v7  ;;  %11497 = vmatpush3.bf16.xpose.msra.mxu1 %v4148_v59  ;;  %vm18272_vm15 = vmmov %vm18256_vm0 }
 0xab6   : > { %12274 = vmatprep.subr.msk.bf16.mxu1 %vm18266_vm10, %v12744_v25  ;;  %vm18273_vm10 = vmmov %vm18256_vm0 }
 0xab9   : > { %11479 = vmatmul.mubr.msk.bf16.vlgmr.msra.gmra.mrb[152].mxu0 %vm18267_vm5, %v3711_v58  ;;  %vm18274_vm5 = vmmov %vm18256_vm0 }
 0xaba   : > { %11482 = vmatprep.mubr.msk.bf16.mxu0 %vm18268_vm6, %v3713_v18  ;;  %v4154_v34 = vsel %vm18274_vm5, %v12745_v40, 0  ;;  %vm18275_vm6 = vmmov %vm18256_vm0  ;;  %v12748_v18 = vld [vmem:[%s17742_s6 + $0xf0] sm:$0xff]  }
 0xabb   : > { %vm18281_vm5 = vmmov %vm18256_vm0 }
 0xabc   : > { %11469 = vmatmul.mubr.msk.bf16.gmra.mrb[160].mxu1 %vm18256_vm0, %v3719_v26  ;;  %v4160_v58 = vsel %vm18281_vm5, %v12747_v15, 0  ;;  %vm18303_vm5 = vmmov %vm18256_vm0 }
 0xabd   : > { %11472 = vmatprep.mubr.msk.bf16.mxu1 %vm18270_vm1, %v3721_v45  ;;  %11499 = vmatpush3.bf16.xpose.msra.mxu1 %v4151_v24  ;;  %vm18277_vm1 = vmmov %vm18256_vm0 }
 0xabe   : > { %12275 = vmatprep.subr.msk.bf16.mxu1 %vm18271_vm13, %v12745_v40  ;;  %vm18278_vm13 = vmmov %vm18256_vm0 }
 0xabf   : > { %v4157_v46 = vsel %vm18278_vm13, %v12746_v9, 0  ;;  %vm18296_vm13 = vmmov %vm18256_vm0 }
 0xac1   : > { %11483 = vmatmul.mubr.msk.bf16.gmra.mrb[156].mxu0 %vm18272_vm15, %v3715_v8  ;;  %vm18279_vm15 = vmmov %vm18256_vm0 }
 0xac2   : > { %11486 = vmatprep.mubr.msk.bf16.mxu0 %vm18273_vm10, %v3717_v7  ;;  %vm18280_vm10 = vmmov %vm18256_vm0 }
 0xac4   : > { %11473 = vmatmul.mubr.msk.bf16.gmra.mrb[164].mxu1 %vm18275_vm6, %v3723_v62  ;;  %vm18282_vm6 = vmmov %vm18256_vm0 }
 0xac5   : > { %11501 = vmatpush3.bf16.xpose.msra.mxu1 %v4154_v34 }
 0xac6   : > { %12276 = vmatprep.subr.msk.bf16.mxu1 %vm18276_vm8, %v12746_v9  ;;  %vm18283_vm8 = vmmov %vm18256_vm0 }
 0xac7   : > { %v4163_v4 = vsel %vm18283_vm8, %v12748_v18, 0  ;;  %vm18306_vm8 = vmmov %vm18256_vm0 }
 0xac9   : > { %11487 = vmatmul.mubr.msk.bf16.gmra.mrb[160].mxu0 %vm18256_vm0, %v3719_v26 }
 0xaca   : > { %11490 = vmatprep.mubr.msk.bf16.mxu0 %vm18277_vm1, %v3721_v45  ;;  %vm18284_vm1 = vmmov %vm18256_vm0 }
 0xacb   : > { %v4166_v36 = vsel %vm18284_vm1, %v12749_v2, 0  ;;  %vm18307_vm1 = vmmov %vm18256_vm0 }
 0xacd   : > { %11503 = vmatpush3.bf16.xpose.msra.mxu1 %v4157_v46 }
 0xace   : > { %12277 = vmatprep.subr.msk.bf16.mxu1 %vm18279_vm15, %v12747_v15  ;;  %vm18297_vm15 = vmmov %vm18256_vm0 }
 0xad1   : > { %11491 = vmatmul.mubr.msk.bf16.gmra.mrb[164].mxu0 %vm18280_vm10, %v3723_v62  ;;  %vm18299_vm10 = vmmov %vm18256_vm0 }
 0xad5   : > { %11505 = vmatpush3.bf16.xpose.msra.mxu1 %v4160_v58 }
 0xad6   : > { %12278 = vmatprep.subr.msk.bf16.mxu1 %vm18282_vm6, %v12748_v18  ;;  %vm18305_vm6 = vmmov %vm18256_vm0 }
 0xadd   : > { %11507 = vmatpush3.bf16.xpose.msra.mxu1 %v4163_v4 }
 0xade   : > { %12279 = vmatprep.subr.msk.bf16.mxu1 %vm18256_vm0, %v12749_v2 }
 0xae5   : > { %11509 = vmatpush3.bf16.xpose.msra.mxu1 %v4166_v36 }
 0xb5d   : > { %v15094_v37 = vpop.f32.mrb[136].mxu1 }
 0xb5e   : > { %18285 = vst [vmem:[#allocation24_spill] sm:$0xff] %v15094_v37  ;;  %v15096_v10 = vpop.f32.mrb[137].mxu1 }
 0xb5f   : > { %18286 = vst [vmem:[#allocation22_spill] sm:$0xff] %v15096_v10  ;;  %v15098_v30 = vpop.f32.mrb[138].mxu1 }
 0xb60   : > { %18287 = vst [vmem:[#allocation56_spill] sm:$0xff] %v15098_v30  ;;  %v15102_v61 = vpop.f32.mrb[139].mxu1 }
 0xb61   : > { %18288 = vst [vmem:[#allocation57_spill] sm:$0xff] %v15102_v61 }
 0xb67   : > { %v15106_v42 = vpop.f32.mrb[140].mxu1 }
 0xb68   : > { %18289 = vst [vmem:[#allocation58_spill] sm:$0xff] %v15106_v42  ;;  %v15108_v47 = vpop.f32.mrb[141].mxu1 }
 0xb69   : > { %18290 = vst [vmem:[#allocation59_spill] sm:$0xff] %v15108_v47  ;;  %v15110_v7 = vpop.f32.mrb[142].mxu1 }
 0xb6a   : > { %18291 = vst [vmem:[#allocation60_spill] sm:$0xff] %v15110_v7  ;;  %v15114_v31 = vpop.f32.mrb[143].mxu1 }
 0xb6b   : > { %18292 = vst [vmem:[#allocation61_spill] sm:$0xff] %v15114_v31 }
 0xb6c   : > { %v11444_v26 = vpop.f32.mrb[136].mxu0 }
 0xb6d   : > { %v3782_v45 = vpop.f32.mrb[137].mxu0 }
 0xb6e   : > { %v11445_v39 = vpop.f32.mrb[138].mxu0 }
 0xb6f   : > { %v15118_v20 = vpack.c.bf16 %v11445_v39, %v11444_v26  ;;  %v3785_v62 = vpop.f32.mrb[139].mxu0  ;;  %v15120_v59 = vpop.f32.mrb[144].mxu1 }
 0xb70   : > { %18293 = vst [vmem:[#allocation62_spill] sm:$0xff] %v15120_v59  ;;  %v4039_v25 = vpack.c.bf16 %v3785_v62, %v3782_v45  ;;  %v15122_v24 = vpop.f32.mrb[145].mxu1 }
 0xb71   : > { %18294 = vst [vmem:[#allocation63_spill] sm:$0xff] %v15122_v24  ;;  %v15124_v40 = vpop.f32.mrb[146].mxu1 }
 0xb72   : > { %18295 = vst [vmem:[#allocation64_spill] sm:$0xff] %v15124_v40  ;;  %11510 = vmatprep.mubr.msk.bf16.mxu1 %vm18296_vm13, %v4039_v25  ;;  %11542 = vmatprep.mubr.msk.bf16.mxu0 %vm18297_vm15, %v4039_v25  ;;  %v15130_v9 = vpop.f32.mrb[147].mxu1  ;;  %vm18308_vm13 = vmmov %vm18256_vm0 }
 0xb73   : > { %18298 = vst [vmem:[#allocation65_spill] sm:$0xff] %v15130_v9  ;;  %11511 = vmatmul.mubr.msk.bf16.vlgmr.msra.gmra.mrb[168].mxu1 %vm18299_vm10, %v15118_v20  ;;  %vm18309_vm15 = vmmov %vm18256_vm0 }
 0xb74   : > { %v11448_v15 = vpop.f32.mrb[140].mxu0  ;;  %vm18310_vm10 = vmmov %vm18256_vm0 }
 0xb75   : > { %v3798_v58 = vpop.f32.mrb[141].mxu0 }
 0xb76   : > { %v11449_v18 = vpop.f32.mrb[142].mxu0 }
 0xb77   : > { %v15136_v4 = vpack.c.bf16 %v11449_v18, %v11448_v15  ;;  %v3801_v2 = vpop.f32.mrb[143].mxu0  ;;  %v15138_v36 = vpop.f32.mrb[148].mxu1 }
 0xb78   : > { %18300 = vst [vmem:[#allocation66_spill] sm:$0xff] %v15138_v36  ;;  %v15140_v26 = vpack.c.bf16 %v3801_v2, %v3798_v58  ;;  %v15142_v45 = vpop.f32.mrb[149].mxu1 }
 0xb79   : > { %18301 = vst [vmem:[#allocation67_spill] sm:$0xff] %v15142_v45  ;;  %v15144_v39 = vpop.f32.mrb[150].mxu1 }
 0xb7a   : > { %18302 = vst [vmem:[#allocation68_spill] sm:$0xff] %v15144_v39  ;;  %11514 = vmatprep.mubr.msk.bf16.mxu1 %vm18303_vm5, %v15140_v26  ;;  %v15150_v25 = vpop.f32.mrb[151].mxu1  ;;  %vm18311_vm5 = vmmov %vm18256_vm0 }
 0xb7b   : > { %18304 = vst [vmem:[#allocation69_spill] sm:$0xff] %v15150_v25  ;;  %11515 = vmatmul.mubr.msk.bf16.gmra.mrb[172].mxu1 %vm18305_vm6, %v15136_v4  ;;  %vm18312_vm6 = vmmov %vm18256_vm0 }
 0xb7c   : > { %v11452_v58 = vpop.f32.mrb[144].mxu0 }
 0xb7d   : > { %v3814_v18 = vpop.f32.mrb[145].mxu0 }
 0xb7e   : > { %v11453_v2 = vpop.f32.mrb[146].mxu0 }
 0xb7f   : > { %v15156_v46 = vpack.c.bf16 %v11453_v2, %v11452_v58  ;;  %v3817_v34 = vpop.f32.mrb[147].mxu0  ;;  %v11462_v13 = vpop.f32.mrb[152].mxu1 }
 0xb80   : > { %v15158_v33 = vpack.c.bf16 %v3817_v34, %v3814_v18  ;;  %v3879_v60 = vpop.f32.mrb[153].mxu1 }
 0xb81   : > { %v11463_v8 = vpop.f32.mrb[154].mxu1 }
 0xb82   : > { %11518 = vmatprep.mubr.msk.bf16.mxu1 %vm18306_vm8, %v15158_v33  ;;  %v4048_v62 = vpack.c.bf16 %v11463_v8, %v11462_v13  ;;  %v3882_v36 = vpop.f32.mrb[155].mxu1  ;;  %vm18313_vm8 = vmmov %vm18256_vm0 }
 0xb83   : > { %11519 = vmatmul.mubr.msk.bf16.gmra.mrb[176].mxu1 %vm18256_vm0, %v15156_v46  ;;  %v4047_v15 = vpack.c.bf16 %v3882_v36, %v3879_v60 }
 0xb84   : > { %v11456_v45 = vpop.f32.mrb[148].mxu0 }
 0xb85   : > { %v3830_v25 = vpop.f32.mrb[149].mxu0  ;;  %v4330_v58 = vsel %vm18307_vm1, %v4047_v15, 0  ;;  %12280 = vmatprep.subr.msk.bf16.mxu0 %vm18308_vm13, %v4047_v15  ;;  %vm18314_vm1 = vmmov %vm18256_vm0 }
 0xb86   : > { %v11457_v34 = vpop.f32.mrb[150].mxu0  ;;  %11527 = vmatpush3.bf16.xpose.msra.mxu0 %v4330_v58  ;;  %v4333_v58 = vsel %vm18312_vm6, %v4048_v62, 0  ;;  %vm18315_vm13 = vmmov %vm18256_vm0 }
 0xb87   : > { %v15166_v18 = vpack.c.bf16 %v11457_v34, %v11456_v45  ;;  %v3833_v2 = vpop.f32.mrb[151].mxu0  ;;  %v11466_v24 = vpop.f32.mrb[156].mxu1  ;;  %12281 = vmatprep.subr.msk.bf16.mxu0 %vm18309_vm15, %v4048_v62  ;;  %vm18316_vm15 = vmmov %vm18256_vm0 }
 0xb88   : > { %v15168_v39 = vpack.c.bf16 %v3833_v2, %v3830_v25  ;;  %v3895_v8 = vpop.f32.mrb[157].mxu1  ;;  %vm18319_vm6 = vmmov %vm18256_vm0 }
 0xb89   : > { %v11467_v13 = vpop.f32.mrb[158].mxu1 }
 0xb8a   : > { %11522 = vmatprep.mubr.msk.bf16.mxu1 %vm18310_vm10, %v15168_v39  ;;  %v4050_v60 = vpack.c.bf16 %v11467_v13, %v11466_v24  ;;  %v3898_v36 = vpop.f32.mrb[159].mxu1  ;;  %vm18317_vm10 = vmmov %vm18256_vm0 }
 0xb8b   : > { %11523 = vmatmul.mubr.msk.bf16.gmra.mrb[180].mxu1 %vm18311_vm5, %v15166_v18  ;;  %v4049_v15 = vpack.c.bf16 %v3898_v36, %v3895_v8  ;;  %vm18318_vm5 = vmmov %vm18256_vm0 }
 0xb8c   : > { %v11480_v45 = vpop.f32.mrb[152].mxu0 }
 0xb8d   : > { %v3976_v34 = vpop.f32.mrb[153].mxu0  ;;  %v4336_v62 = vsel %vm18256_vm0, %v4049_v15, 0 }
 0xb8e   : > { %v11481_v25 = vpop.f32.mrb[154].mxu0  ;;  %11529 = vmatpush3.bf16.xpose.msra.mxu0 %v4333_v58 }
 0xb8f   : > { %v4056_v2 = vpack.c.bf16 %v11481_v25, %v11480_v45  ;;  %v3979_v9 = vpop.f32.mrb[155].mxu0  ;;  %v11470_v59 = vpop.f32.mrb[160].mxu1  ;;  %12282 = vmatprep.subr.msk.bf16.mxu0 %vm18313_vm8, %v4049_v15  ;;  %v4339_v15 = vsel %vm18315_vm13, %v4050_v60, 0  ;;  %vm18320_vm8 = vmmov %vm18256_vm0 }
 0xb90   : > { %v4055_v40 = vpack.c.bf16 %v3979_v9, %v3976_v34  ;;  %v3911_v47 = vpop.f32.mrb[161].mxu1  ;;  %vm18322_vm13 = vmmov %vm18256_vm0 }
 0xb91   : > { %v11471_v31 = vpop.f32.mrb[162].mxu1 }
 0xb92   : > { %11558 = vmatprep.subr.bf16.mxu1 %v4055_v40  ;;  %v4052_v24 = vpack.c.bf16 %v11471_v31, %v11470_v59  ;;  %v3914_v13 = vpop.f32.mrb[163].mxu1 }
 0xb93   : > { %11559 = vmatpush3.bf16.msra.mxu1 %v4055_v40  ;;  %v4051_v42 = vpack.c.bf16 %v3914_v13, %v3911_v47 }
 0xb94   : > { %v11484_v8 = vpop.f32.mrb[156].mxu0  ;;  %11560 = vmatprep.subr.bf16.mxu1 %v4056_v2 }
 0xb95   : > { %v3992_v36 = vpop.f32.mrb[157].mxu0 }
 0xb96   : > { %v11485_v7 = vpop.f32.mrb[158].mxu0  ;;  %11531 = vmatpush3.bf16.xpose.msra.mxu0 %v4336_v62 }
 0xb97   : > { %v4058_v45 = vpack.c.bf16 %v11485_v7, %v11484_v8  ;;  %v3995_v58 = vpop.f32.mrb[159].mxu0  ;;  %11561 = vmatpush3.bf16.msra.mxu1 %v4056_v2  ;;  %v11474_v9 = vpop.f32.mrb[164].mxu1  ;;  %12283 = vmatprep.subr.msk.bf16.mxu0 %vm18314_vm1, %v4050_v60  ;;  %vm18321_vm1 = vmmov %vm18256_vm0 }
 0xb98   : > { %v4057_v34 = vpack.c.bf16 %v3995_v58, %v3992_v36  ;;  %v3927_v25 = vpop.f32.mrb[165].mxu1  ;;  %v4342_v58 = vsel %vm18317_vm10, %v4051_v42, 0  ;;  %vm18324_vm10 = vmmov %vm18256_vm0 }
 0xb99   : > { %v11475_v37 = vpop.f32.mrb[166].mxu1 }
 0xb9a   : > { %11562 = vmatprep.subr.bf16.mxu1 %v4057_v34  ;;  %v4054_v31 = vpack.c.bf16 %v11475_v37, %v11474_v9  ;;  %v3930_v59 = vpop.f32.mrb[167].mxu1 }
 0xb9b   : > { %11563 = vmatpush3.bf16.msra.mxu1 %v4057_v34  ;;  %v4053_v47 = vpack.c.bf16 %v3930_v59, %v3927_v25 }
 0xb9c   : > { %v11488_v40 = vpop.f32.mrb[160].mxu0  ;;  %11564 = vmatprep.subr.bf16.mxu1 %v4058_v45  ;;  %v4351_v59 = vsel %vm18322_vm13, %v4054_v31, 0  ;;  %vm18329_vm13 = vcmp.eq.s32.totalorder %v13783_v3, 1 }
 0xb9d   : > { %v4008_v13 = vpop.f32.mrb[161].mxu0 }
 0xb9e   : > { %v11489_v7 = vpop.f32.mrb[162].mxu0  ;;  %11533 = vmatpush3.bf16.xpose.msra.mxu0 %v4339_v15 }
 0xb9f   : > { %v4060_v8 = vpack.c.bf16 %v11489_v7, %v11488_v40  ;;  %v4011_v2 = vpop.f32.mrb[163].mxu0  ;;  %11565 = vmatpush3.bf16.msra.mxu1 %v4058_v45  ;;  %12284 = vmatprep.subr.msk.bf16.mxu0 %vm18316_vm15, %v4051_v42  ;;  %v4345_v45 = vsel %vm18319_vm6, %v4052_v24, 0  ;;  %v4348_v42 = vsel %vm18256_vm0, %v4053_v47, 0  ;;  %v13310_v40 = vld [vmem:[%s17737_s1] sm:$0xff]   ;;  %vm18323_vm15 = vmmov %vm18256_vm0 }
 0xba0   : > { %v4059_v36 = vpack.c.bf16 %v4011_v2, %v4008_v13  ;;  %vm18326_vm6 = vmmov %vm18256_vm0 }
 0xba2   : > { %11566 = vmatprep.subr.bf16.mxu1 %v4059_v36 }
 0xba3   : > { %11567 = vmatpush3.bf16.msra.mxu1 %v4059_v36 }
 0xba4   : > { %v11492_v62 = vpop.f32.mrb[164].mxu0  ;;  %11568 = vmatprep.subr.bf16.mxu1 %v4060_v8 }
 0xba5   : > { %v4024_v37 = vpop.f32.mrb[165].mxu0 }
 0xba6   : > { %v11493_v9 = vpop.f32.mrb[166].mxu0  ;;  %11535 = vmatpush3.bf16.xpose.msra.mxu0 %v4342_v58 }
 0xba7   : > { %v4062_v34 = vpack.c.bf16 %v11493_v9, %v11492_v62  ;;  %v4027_v25 = vpop.f32.mrb[167].mxu0  ;;  %11569 = vmatpush3.bf16.msra.mxu1 %v4060_v8  ;;  %12285 = vmatprep.subr.msk.bf16.mxu0 %vm18318_vm5, %v4052_v24  ;;  %vm18325_vm5 = vmmov %vm18256_vm0 }
 0xba8   : > { %v4061_v60 = vpack.c.bf16 %v4027_v25, %v4024_v37 }
 0xbaa   : > { %11570 = vmatprep.subr.bf16.mxu1 %v4061_v60 }
 0xbab   : > { %11571 = vmatpush3.bf16.msra.mxu1 %v4061_v60 }
 0xbac   : > { %11572 = vmatprep.subr.bf16.mxu1 %v4062_v34 }
 0xbae   : > { %11537 = vmatpush3.bf16.xpose.msra.mxu0 %v4345_v45 }
 0xbaf   : > { %11573 = vmatpush3.bf16.msra.mxu1 %v4062_v34  ;;  %12286 = vmatprep.subr.msk.bf16.mxu0 %vm18320_vm8, %v4053_v47  ;;  %vm18327_vm8 = vmmov %vm18256_vm0 }
 0xbb0   : > { %11608 = vmatprep.subr.bf16.mxu1 %v15010_v32 }
 0xbb6   : > { %11539 = vmatpush3.bf16.xpose.msra.mxu0 %v4348_v42 }
 0xbb7   : > { %12287 = vmatprep.subr.msk.bf16.mxu0 %vm18321_vm1, %v4054_v31  ;;  %vm18328_vm1 = vmmov %vm18256_vm0 }
 0xbbe   : > { %11541 = vmatpush3.bf16.xpose.msra.mxu0 %v4351_v59 }
 0xbbf   : > { %11590 = vmatprep.subr.bf16.mxu0 %v13310_v40 }
 0xbc5   : > { %11543 = vmatmul.mubr.msk.bf16.vlgmr.msra.gmra.mrb[168].mxu0 %vm18323_vm15, %v15118_v20  ;;  %vm18330_vm15 = vcmp.eq.s32.totalorder %v13787_v6, 1 }
 0xbc6   : > { %11546 = vmatprep.mubr.msk.bf16.mxu0 %vm18324_vm10, %v15140_v26  ;;  %11591 = vmatpush3.bf16.msra.mxu0 %v13310_v40  ;;  %vm18331_vm10 = vcmp.eq.s32.totalorder %v13785_v43, 1 }
 0xbc7   : > { %11626 = vmatprep.subr.bf16.mxu0 %v15029_v51 }
 0xbcd   : > { %11547 = vmatmul.mubr.msk.bf16.gmra.mrb[172].mxu0 %vm18325_vm5, %v15136_v4  ;;  %vm18332_vm5 = vcmp.eq.s32.totalorder %v13789_v11, 1 }
 0xbce   : > { %11550 = vmatprep.mubr.msk.bf16.mxu0 %vm18326_vm6, %v15158_v33  ;;  %vm18333_vm6 = vcmp.eq.s32.totalorder %v13791_v14, 1 }
 0xbd5   : > { %11551 = vmatmul.mubr.msk.bf16.gmra.mrb[176].mxu0 %vm18327_vm8, %v15156_v46  ;;  %vm18334_vm8 = vcmp.eq.s32.totalorder %v13797_v0, 1 }
 0xbd6   : > { %11554 = vmatprep.mubr.msk.bf16.mxu0 %vm18256_vm0, %v15168_v39  ;;  %vm18335_vm0 = vcmp.eq.s32.totalorder %v13793_v17, 1 }
 0xbdd   : > { %11555 = vmatmul.mubr.msk.bf16.gmra.mrb[180].mxu0 %vm18328_vm1, %v15166_v18  ;;  %vm18336_vm1 = vnez %v17994_v16 }
 0xc46   : > { %v11512_v32 = vpop.f32.mrb[168].mxu1 }
 0xc47   : > { %v4202_v20 = vpop.f32.mrb[169].mxu1 }
 0xc48   : > { %4267 = vrot.lane.b32.xlu0 %v4202_v20, %s18212_s0  ;;  %v11513_v51 = vpop.f32.mrb[170].mxu1 }
 0xc49   : > { %v4205_v26 = vpop.f32.mrb[171].mxu1 }
 0xc4a   : > { %4271 = vrot.lane.b32.xlu1 %v4205_v26, %s18213_s7 }
 0xc4c   : > { %4275 = vrot.lane.b32.xlu0 %v11512_v32, %s18214_s16 }
 0xc4e   : > { %4279 = vrot.lane.b32.xlu1 %v11513_v51, %s18215_s13  ;;  %v11516_v33 = vpop.f32.mrb[172].mxu1 }
 0xc4f   : > { %v4218_v46 = vpop.f32.mrb[173].mxu1 }
 0xc50   : > { %4283 = vrot.lane.b32.xlu0 %v4218_v46, %s18216_s11  ;;  %v11517_v4 = vpop.f32.mrb[174].mxu1 }
 0xc51   : > { %v4221_v39 = vpop.f32.mrb[175].mxu1 }
 0xc52   : > { %4287 = vrot.lane.b32.xlu1 %v4221_v39, %s18217_s9 }
 0xc54   : > { %4291 = vrot.lane.b32.xlu0 %v11516_v33, %s18091_s12 }
 0xc56   : > { %4295 = vrot.lane.b32.xlu1 %v11517_v4, %s18092_s14  ;;  %v11520_v18 = vpop.f32.mrb[176].mxu1 }
 0xc57   : > { %v4234_v24 = vpop.f32.mrb[177].mxu1 }
 0xc58   : > { %4299 = vrot.lane.b32.xlu0 %v4234_v24, %s18093_s25  ;;  %v11521_v31 = vpop.f32.mrb[178].mxu1 }
 0xc59   : > { %v4237_v47 = vpop.f32.mrb[179].mxu1 }
 0xc5a   : > { %4303 = vrot.lane.b32.xlu1 %v4237_v47, %s18094_s26 }
 0xc5c   : > { %4307 = vrot.lane.b32.xlu0 %v11520_v18, %s18095_s19 }
 0xc5e   : > { %4311 = vrot.lane.b32.xlu1 %v11521_v31, %s18096_s20  ;;  %v11524_v13 = vpop.f32.mrb[180].mxu1 }
 0xc5f   : > { %v4250_v15 = vpop.f32.mrb[181].mxu1 }
 0xc60   : > { %4315 = vrot.lane.b32.xlu0 %v4250_v15, %s18097_s21  ;;  %v11525_v7 = vpop.f32.mrb[182].mxu1 }
 0xc61   : > { %v4253_v8 = vpop.f32.mrb[183].mxu1 }
 0xc62   : > { %4319 = vrot.lane.b32.xlu1 %v4253_v8, %s18098_s22 }
 0xc64   : > { %4323 = vrot.lane.b32.xlu0 %v11524_v13, %s18099_s24 }
 0xc66   : > { %4327 = vrot.lane.b32.xlu1 %v11525_v7, %s18100_s23 }
 0xc98   : > { %v11544_v2 = vpop.f32.mrb[168].mxu0 }
 0xc99   : > { %v4387_v36 = vpop.f32.mrb[169].mxu0  ;;  %v4452_v18 = vmul.f32 0.088388346, %v11544_v2 }
 0xc9a   : > { %v11545_v62 = vpop.f32.mrb[170].mxu0  ;;  %v4450_v26 = vmul.f32 0.088388346, %v4387_v36 }
 0xc9b   : > { %v4390_v37 = vpop.f32.mrb[171].mxu0  ;;  %v4453_v15 = vmul.f32 0.088388346, %v11545_v62 }
 0xc9c   : > { %v4451_v46 = vmul.f32 0.088388346, %v4390_v37 }
 0xca0   : > { %v11548_v58 = vpop.f32.mrb[172].mxu0 }
 0xca1   : > { %v4403_v9 = vpop.f32.mrb[173].mxu0 }
 0xca2   : > { %v11549_v34 = vpop.f32.mrb[174].mxu0  ;;  %v4454_v37 = vmul.f32 0.088388346, %v4403_v9  ;;  %v4456_v9 = vmul.f32 0.088388346, %v11548_v58 }
 0xca3   : > { %v4406_v25 = vpop.f32.mrb[175].mxu0 }
 0xca8   : > { %v11552_v60 = vpop.f32.mrb[176].mxu0 }
 0xca9   : > { %v4419_v45 = vpop.f32.mrb[177].mxu0 }
 0xcaa   : > { %v15223_v42 = vpop.f32.mrb[178].mxu0 }
 0xcab   : > { %v4422_v59 = vpop.f32.mrb[179].mxu0 }
 0xcb0   : > { %v15225_v40 = vpop.f32.mrb[180].mxu0 }
 0xcb1   : > { %v15227_v32 = vpop.f32.mrb[181].mxu0 }
 0xcb2   : > { %v15229_v20 = vpop.f32.mrb[182].mxu0 }
 0xcb3   : > { %v15231_v51 = vpop.f32.mrb[183].mxu0 }
 0xcba   : > { %v4268_v33 = vpop.permute.xlu0 %4267 }
 0xcbb   : > { %v4466_v4 = vadd.f32 %v4450_v26, %v4268_v33 }
 0xcbc   : > { %v4272_v39 = vpop.permute.xlu1 %4271 }
 0xcbd   : > { %v4467_v24 = vadd.f32 %v4451_v46, %v4272_v39  ;;  %v4482_v31 = vsel %vm13837_vm2, -1e+09, %v4466_v4  ;;  %v4455_v4 = vmul.f32 0.088388346, %v4406_v25 }
 0xcbe   : > { %v4276_v47 = vpop.permute.xlu0 %4275  ;;  %v15237_v13 = vsel %vm18329_vm13, -1e+09, %v4482_v31  ;;  %vm18337_vm13 = vcmp.eq.s32.totalorder %v13799_v23, 1 }
 0xcbf   : > { %v4468_v7 = vadd.f32 %v4452_v18, %v4276_v47  ;;  %4514 = vmax.xlane.f32.xlu0 %v15237_v13  ;;  %v4483_v8 = vsel %vm13842_vm3, -1e+09, %v4467_v24 }
 0xcc0   : > { %v4280_v36 = vpop.permute.xlu1 %4279  ;;  %v15244_v2 = vsel %vm18330_vm15, -1e+09, %v4483_v8  ;;  %v4457_v8 = vmul.f32 0.088388346, %v11549_v34  ;;  %vm18338_vm15 = vcmp.eq.s32.totalorder %v13807_v27, 1 }
 0xcc1   : > { %v4469_v26 = vadd.f32 %v4453_v15, %v4280_v36  ;;  %4516 = vmax.xlane.f32.xlu1 %v15244_v2  ;;  %v4484_v33 = vsel %vm13847_vm4, -1e+09, %v4468_v7 }
 0xcc2   : > { %v4284_v46 = vpop.permute.xlu0 %4283  ;;  %v15251_v62 = vsel %vm18331_vm10, -1e+09, %v4484_v33  ;;  %vm18339_vm10 = vnez %v17998_v28 }
 0xcc3   : > { %v4470_v39 = vadd.f32 %v4454_v37, %v4284_v46  ;;  %4518 = vmax.xlane.f32.xlu0 %v15251_v62  ;;  %v4485_v18 = vsel %vm13871_vm7, -1e+09, %v4469_v26  ;;  %v4458_v26 = vmul.f32 0.088388346, %v4419_v45 }
 0xcc4   : > { %v4288_v24 = vpop.permute.xlu1 %4287  ;;  %v15260_v7 = vsel %vm18332_vm5, -1e+09, %v4485_v18  ;;  %v4459_v18 = vmul.f32 0.088388346, %v4422_v59  ;;  %vm18340_vm5 = vnez %v17996_v57 }
 0xcc5   : > { %v4471_v31 = vadd.f32 %v4455_v4, %v4288_v24  ;;  %v4486_v47 = vsel %vm13884_vm9, -1e+09, %v4470_v39 }
 0xcc6   : > { %v4292_v15 = vpop.permute.xlu0 %4291  ;;  %v15264_v25 = vsel %vm18333_vm6, -1e+09, %v4486_v47  ;;  %vm18341_vm6 = vcmp.eq.s32.totalorder %v13815_v21, 1 }
 0xcc7   : > { %v4472_v36 = vadd.f32 %v4456_v9, %v4292_v15  ;;  %4520 = vmax.xlane.f32.xlu0 %v15260_v7  ;;  %4522 = vmax.xlane.f32.xlu1 %v15264_v25  ;;  %v4487_v58 = vsel %vm13898_vm12, -1e+09, %v4471_v31  ;;  %v4460_v31 = vmul.f32 0.088388346, %v11552_v60 }
 0xcc8   : > { %v4296_v37 = vpop.permute.xlu1 %4295  ;;  %v15278_v34 = vsel %vm18335_vm0, -1e+09, %v4487_v58  ;;  %v4461_v58 = vmul.f32 0.088388346, %v15223_v42  ;;  %vm18343_vm0 = vnez %v18116_v1 }
 0xcc9   : > { %v4473_v33 = vadd.f32 %v4457_v8, %v4296_v37  ;;  %v4488_v46 = vsel %vm13893_vm11, -1e+09, %v4472_v36 }
 0xcca   : > { %v4300_v4 = vpop.permute.xlu0 %4299  ;;  %v15274_v39 = vsel %vm18334_vm8, -1e+09, %v4488_v46  ;;  %vm18342_vm8 = vcmp.eq.s32.totalorder %v18114_v35, 1 }
 0xccb   : > { %v4474_v24 = vadd.f32 %v4458_v26, %v4300_v4  ;;  %4526 = vmax.xlane.f32.xlu1 %v15274_v39  ;;  %4524 = vmax.xlane.f32.xlu0 %v15278_v34  ;;  %v4489_v45 = vsel %vm13923_vm14, -1e+09, %v4473_v33  ;;  %v4462_v33 = vmul.f32 0.088388346, %v15227_v32 }
 0xccc   : > { %v4304_v9 = vpop.permute.xlu1 %4303  ;;  %v15288_v36 = vsel %vm18337_vm13, -1e+09, %v4489_v45  ;;  %v4463_v45 = vmul.f32 0.088388346, %v15231_v51  ;;  %vm18344_vm13 = vnez %v18005_v63 }
 0xccd   : > { %v4475_v47 = vadd.f32 %v4459_v18, %v4304_v9  ;;  %v4490_v15 = vsel %vm18336_vm1, -1e+09, %v4474_v24 }
 0xcce   : > { %v4308_v8 = vpop.permute.xlu0 %4307  ;;  %v15292_v59 = vsel %vm18338_vm15, -1e+09, %v4490_v15  ;;  %vm18345_vm15 = vcmp.eq.s32.totalorder %v18119_v29, 1 }
 0xccf   : > { %v4476_v37 = vadd.f32 %v4460_v31, %v4308_v8  ;;  %4528 = vmax.xlane.f32.xlu0 %v15288_v36  ;;  %4530 = vmax.xlane.f32.xlu1 %v15292_v59  ;;  %v4491_v60 = vsel %vm18339_vm10, -1e+09, %v4475_v47  ;;  %v4464_v47 = vmul.f32 0.088388346, %v15225_v40 }
 0xcd0   : > { %v4312_v26 = vpop.permute.xlu1 %4311  ;;  %v15308_v42 = vsel %vm18342_vm8, -1e+09, %v4491_v60  ;;  %v4465_v60 = vmul.f32 0.088388346, %v15229_v20  ;;  %vm18347_vm8 = vnez %v18007_v49 }
 0xcd1   : > { %v4477_v46 = vadd.f32 %v4461_v58, %v4312_v26  ;;  %v4492_v4 = vsel %vm18340_vm5, -1e+09, %v4476_v37 }
 0xcd2   : > { %v4316_v18 = vpop.permute.xlu0 %4315  ;;  %v15304_v24 = vsel %vm18341_vm6, -1e+09, %v4492_v4  ;;  %vm18346_vm6 = vcmp.eq.s32.totalorder %v13825_v38, 1 }
 0xcd3   : > { %v4478_v9 = vadd.f32 %v4462_v33, %v4316_v18  ;;  %4534 = vmax.xlane.f32.xlu1 %v15304_v24  ;;  %4532 = vmax.xlane.f32.xlu0 %v15308_v42  ;;  %v4493_v32 = vsel %vm18343_vm0, -1e+09, %v4477_v46 }
 0xcd4   : > { %v4320_v31 = vpop.permute.xlu1 %4319  ;;  %v15320_v37 = vsel %vm18345_vm15, -1e+09, %v4493_v32  ;;  %vm18349_vm15 = vcmp.eq.s32.totalorder %v18238_v44, 1  ;;  %v18353_v32 = vld [vmem:[#allocation25_spill] sm:$0xff] }
 0xcd5   : > { %v4479_v15 = vadd.f32 %v4463_v45, %v4320_v31  ;;  %v4494_v8 = vsel %vm18344_vm13, -1e+09, %v4478_v9  ;;  %vm18348_vm13 = vnez %v18009_v56  ;;  %v18351_v45 = vld [vmem:[#allocation26_spill] sm:$0xff] }
 0xcd6   : > { %v4324_v58 = vpop.permute.xlu0 %4323  ;;  %v15324_v51 = vsel %vm18346_vm6, -1e+09, %v4494_v8  ;;  %vm18350_vm6 = vcmp.eq.s32.totalorder %v18240_v22, 1  ;;  %vm18352_vm0 = vnez %v18351_v45 }
 0xcd7   : > { %v4480_v26 = vadd.f32 %v4464_v47, %v4324_v58  ;;  %4536 = vmax.xlane.f32.xlu0 %v15320_v37  ;;  %4538 = vmax.xlane.f32.xlu1 %v15324_v51  ;;  %v4495_v40 = vsel %vm18347_vm8, -1e+09, %v4479_v15  ;;  %vm18354_vm8 = vcmp.eq.s32.totalorder %v18353_v32, 1 }
 0xcd8   : > { %v4328_v33 = vpop.permute.xlu1 %4327  ;;  %v15339_v20 = vsel %vm18350_vm6, -1e+09, %v4495_v40 }
 0xcd9   : > { %v4481_v46 = vadd.f32 %v4465_v60, %v4328_v33  ;;  %v4496_v4 = vsel %vm18348_vm13, -1e+09, %v4480_v26 }
 0xcda   : > { %v15335_v18 = vsel %vm18349_vm15, -1e+09, %v4496_v4 }
 0xcdb   : > { %4542 = vmax.xlane.f32.xlu1 %v15335_v18  ;;  %4540 = vmax.xlane.f32.xlu0 %v15339_v20  ;;  %v4497_v9 = vsel %vm18352_vm0, -1e+09, %v4481_v46 }
 0xcdc   : > { %v15347_v31 = vsel %vm18354_vm8, -1e+09, %v4497_v9  ;;  %vm18361_vm8 = vcmask 130048  }
 0xcdd   : > { %vm18362_vm15 = vmmov %vm18361_vm8 }
 0xcde   : > { %vm18363_vm6 = vmmov %vm18361_vm8 }
 0xcdf   : > { %4544 = vmax.xlane.f32.xlu0 %v15347_v31  ;;  %vm18367_vm0 = vmmov %vm18363_vm6 }
 0xce0   : > { %vm18368_vm13 = vmmov %vm18367_vm0 }
 0xce1   : > { %vm18369_vm5 = vmmov %vm18367_vm0 }
 0xce2   : > { %vm18371_vm10 = vmmov %vm18367_vm0 }
 0xce3   : > { %vm18376_vm1 = vmmov %vm18367_vm0 }
 0xd4c   : > { %v4515_v47 = vpop.xlane.xlu0 %4514 }
 0xd4d   : > { %v4546_v15 = vsub.f32 %v15237_v13, %v4515_v47 }
 0xd4e   : > { %v4517_v8 = vpop.xlane.xlu1 %4516 }
 0xd4f   : > { %v4562_v58 = vmul.f32 1.442695, %v4546_v15  ;;  %v4547_v60 = vsub.f32 %v15244_v2, %v4517_v8 }
 0xd50   : > { %v4519_v26 = vpop.xlane.xlu0 %4518 }
 0xd51   : > { %12982 = vpow2.f32 %v4562_v58  ;;  %v4564_v40 = vmul.f32 1.442695, %v4547_v60  ;;  %v4548_v33 = vsub.f32 %v15251_v62, %v4519_v26 }
 0xd53   : > { %12984 = vpow2.f32 %v4564_v40  ;;  %v4566_v46 = vmul.f32 1.442695, %v4548_v33 }
 0xd54   : > { %v4521_v4 = vpop.xlane.xlu0 %4520  ;;  %v4523_v30 = vpop.xlane.xlu1 %4522 }
 0xd55   : > { %12986 = vpow2.f32 %v4566_v46  ;;  %v4549_v9 = vsub.f32 %v15260_v7, %v4521_v4  ;;  %v4550_v10 = vsub.f32 %v15264_v25, %v4523_v30 }
 0xd57   : > { %v4568_v61 = vmul.f32 1.442695, %v4549_v9  ;;  %v4570_v13 = vmul.f32 1.442695, %v4550_v10 }
 0xd58   : > { %v4527_v47 = vpop.xlane.xlu1 %4526  ;;  %v4525_v15 = vpop.xlane.xlu0 %4524 }
 0xd59   : > { %12988 = vpow2.f32 %v4568_v61  ;;  %v4552_v2 = vsub.f32 %v15274_v39, %v4527_v47  ;;  %v4551_v8 = vsub.f32 %v15278_v34, %v4525_v15 }
 0xd5a   : > { %12990 = vpow2.f32 %v4570_v13 }
 0xd5b   : > { %v15357_v62 = vpop.eup %12982  ;;  %v4574_v58 = vmul.f32 1.442695, %v4552_v2  ;;  %v4572_v60 = vmul.f32 1.442695, %v4551_v8 }
 0xd5c   : > { %v4529_v26 = vpop.xlane.xlu0 %4528  ;;  %v4531_v40 = vpop.xlane.xlu1 %4530  ;;  %4594 = vadd.xlane.f32.xlu1 %v15357_v62 }
 0xd5d   : > { %v15360_v7 = vpop.eup %12984  ;;  %12992 = vpow2.f32 %v4574_v58  ;;  %v4553_v10 = vsub.f32 %v15288_v36, %v4529_v26  ;;  %v4554_v30 = vsub.f32 %v15292_v59, %v4531_v40 }
 0xd5e   : > { %12994 = vpow2.f32 %v4572_v60  ;;  %4596 = vadd.xlane.f32.xlu0 %v15360_v7 }
 0xd5f   : > { %v15365_v61 = vpop.eup %12986  ;;  %v4576_v25 = vmul.f32 1.442695, %v4553_v10  ;;  %v4578_v39 = vmul.f32 1.442695, %v4554_v30 }
 0xd60   : > { %v4535_v34 = vpop.xlane.xlu1 %4534  ;;  %v4533_v33 = vpop.xlane.xlu0 %4532  ;;  %4598 = vadd.xlane.f32.xlu1 %v15365_v61 }
 0xd61   : > { %12996 = vpow2.f32 %v4576_v25  ;;  %v4556_v46 = vsub.f32 %v15304_v24, %v4535_v34  ;;  %v4555_v4 = vsub.f32 %v15308_v42, %v4533_v33 }
 0xd62   : > { %12998 = vpow2.f32 %v4578_v39 }
 0xd63   : > { %v15370_v36 = vpop.eup %12988  ;;  %v4582_v59 = vmul.f32 1.442695, %v4556_v46  ;;  %v4580_v9 = vmul.f32 1.442695, %v4555_v4 }
 0xd64   : > { %v15372_v13 = vpop.eup %12990  ;;  %v4537_v47 = vpop.xlane.xlu0 %4536  ;;  %4600 = vadd.xlane.f32.xlu0 %v15370_v36 }
 0xd65   : > { %v4539_v15 = vpop.xlane.xlu1 %4538  ;;  %13000 = vpow2.f32 %v4582_v59  ;;  %v4557_v2 = vsub.f32 %v15320_v37, %v4537_v47  ;;  %4602 = vadd.xlane.f32.xlu1 %v15372_v13 }
 0xd66   : > { %v4558_v24 = vsub.f32 %v15324_v51, %v4539_v15  ;;  %13002 = vpow2.f32 %v4580_v9  ;;  %v18355_v15 = vld [vmem:[#allocation18_spill] sm:$0xff] }
 0xd67   : > { %v15378_v42 = vpop.eup %12992  ;;  %v4584_v8 = vmul.f32 1.442695, %v4557_v2  ;;  %v18356_v2 = vld [vmem:[#allocation14_spill] sm:$0xff] }
 0xd68   : > { %v4586_v58 = vmul.f32 1.442695, %v4558_v24  ;;  %v15380_v60 = vpop.eup %12994  ;;  %v4541_v40 = vpop.xlane.xlu0 %4540  ;;  %v18357_v24 = vld [vmem:[#allocation15_spill] sm:$0xff] }
 0xd69   : > { %v4543_v26 = vpop.xlane.xlu1 %4542  ;;  %13004 = vpow2.f32 %v4584_v8  ;;  %4606 = vadd.xlane.f32.xlu1 %v15378_v42  ;;  %4604 = vadd.xlane.f32.xlu0 %v15380_v60  ;;  %v4559_v37 = vsub.f32 %v15339_v20, %v4541_v40  ;;  %v18358_v8 = vld [vmem:[#allocation13_spill] sm:$0xff] }
 0xd6a   : > { %v4560_v10 = vsub.f32 %v15335_v18, %v4543_v26  ;;  %13006 = vpow2.f32 %v4586_v58  ;;  %v18359_v58 = vld [vmem:[#allocation19_spill] sm:$0xff]  ;;  %v18360_v26 = vld [vmem:[#allocation17_spill] sm:$0xff] }
 0xd6b   : > { %v15386_v51 = vpop.eup %12996  ;;  %v4588_v25 = vmul.f32 1.442695, %v4559_v37 }
 0xd6c   : > { %v4590_v30 = vmul.f32 1.442695, %v4560_v10  ;;  %v15388_v39 = vpop.eup %12998  ;;  %v4545_v34 = vpop.xlane.xlu0 %4544 }
 0xd6d   : > { %4610 = vadd.xlane.f32.xlu1 %v15388_v39  ;;  %4608 = vadd.xlane.f32.xlu0 %v15386_v51  ;;  %v4561_v33 = vsub.f32 %v15347_v31, %v4545_v34 }
 0xd6e   : > { %13008 = vpow2.f32 %v4590_v30 }
 0xd6f   : > { %13010 = vpow2.f32 %v4588_v25  ;;  %v15393_v18 = vpop.eup %13000  ;;  %v4592_v46 = vmul.f32 1.442695, %v4561_v33 }
 0xd70   : > { %v15395_v20 = vpop.eup %13002 }
 0xd71   : > { %13012 = vpow2.f32 %v4592_v46  ;;  %4614 = vadd.xlane.f32.xlu1 %v15393_v18  ;;  %4612 = vadd.xlane.f32.xlu0 %v15395_v20 }
 0xd73   : > { %v15399_v4 = vpop.eup %13004 }
 0xd74   : > { %v15401_v59 = vpop.eup %13006 }
 0xd75   : > { %4618 = vadd.xlane.f32.xlu1 %v15401_v59  ;;  %4616 = vadd.xlane.f32.xlu0 %v15399_v4 }
 0xd78   : > { %v15405_v31 = vpop.eup %13008 }
 0xd79   : > { %v15407_v9 = vpop.eup %13010  ;;  %4622 = vadd.xlane.f32.xlu1 %v15405_v31 }
 0xd7a   : > { %4620 = vadd.xlane.f32.xlu0 %v15407_v9 }
 0xd7b   : > { %v15411_v47 = vpop.eup %13012 }
 0xd7e   : > { %4624 = vadd.xlane.f32.xlu0 %v15411_v47 }
 0xd8a   : > { %4763 = vrot.lane.b32.xlu1 %v13554_v5, %s17885_s27 }
 0xd8e   : > { %4767 = vrot.lane.b32.xlu1 %v13571_v19, %s17885_s27 }
 0xd92   : > { %4769 = vrot.lane.b32.xlu1 %v18355_v15, %s17885_s27 }
 0xd94   : > { %4765 = vrot.lane.b32.xlu0 %v18356_v2, %s17885_s27 }
 0xd96   : > { %4773 = vrot.lane.b32.xlu1 %v18357_v24, %s17885_s27 }
 0xd98   : > { %4771 = vrot.lane.b32.xlu0 %v18358_v8, %s17885_s27 }
 0xd9a   : > { %4777 = vrot.lane.b32.xlu1 %v18359_v58, %s17885_s27 }
 0xd9c   : > { %4775 = vrot.lane.b32.xlu0 %v18360_v26, %s17885_s27 }
 0xde9   : > { %v4595_v40 = vpop.xlane.xlu1 %4594 }
 0xdea   : > { %13014 = vrcp.f32 %v4595_v40 }
 0xdeb   : > { %v4597_v10 = vpop.xlane.xlu0 %4596 }
 0xdec   : > { %13016 = vrcp.f32 %v4597_v10 }
 0xded   : > { %v4599_v37 = vpop.xlane.xlu1 %4598 }
 0xdee   : > { %13018 = vrcp.f32 %v4599_v37 }
 0xdf1   : > { %v4601_v30 = vpop.xlane.xlu0 %4600 }
 0xdf2   : > { %v4603_v25 = vpop.xlane.xlu1 %4602  ;;  %13020 = vrcp.f32 %v4601_v30 }
 0xdf3   : > { %13022 = vrcp.f32 %v4603_v25 }
 0xdf4   : > { %v13015_v34 = vpop.eup %13014 }
 0xdf5   : > { %v4642_v24 = vmul.f32 %v13015_v34, %v15357_v62  ;;  %v15437_v62 = vld [vmem:[%s17742_s6 + $0x100] sm:$0xff]  }
 0xdf6   : > { %v13017_v33 = vpop.eup %13016  ;;  %v4607_v46 = vpop.xlane.xlu1 %4606 }
 0xdf7   : > { %v4605_v8 = vpop.xlane.xlu0 %4604  ;;  %v4643_v58 = vmul.f32 %v13017_v33, %v15360_v7 }
 0xdf8   : > { %13024 = vrcp.f32 %v4605_v8  ;;  %v13019_v2 = vpop.eup %13018 }
 0xdf9   : > { %v4658_v26 = vpack.c.bf16 %v4643_v58, %v4642_v24  ;;  %13026 = vrcp.f32 %v4607_v46  ;;  %v4644_v30 = vmul.f32 %v13019_v2, %v15365_v61  ;;  %v15442_v61 = vld [vmem:[%s17738_s2] sm:$0xff]  }
 0xdfa   : > { %v4611_v40 = vpop.xlane.xlu1 %4610 }
 0xdfb   : > { %v4609_v10 = vpop.xlane.xlu0 %4608  ;;  %11574 = vmatprep.mubr.bf16.mxu1 %v4658_v26 }
 0xdfc   : > { %v13021_v37 = vpop.eup %13020  ;;  %13028 = vrcp.f32 %v4609_v10 }
 0xdfd   : > { %v4645_v15 = vmul.f32 %v13021_v37, %v15370_v36  ;;  %13030 = vrcp.f32 %v4611_v40  ;;  %v13023_v7 = vpop.eup %13022 }
 0xdfe   : > { %v4615_v25 = vpop.xlane.xlu1 %4614  ;;  %v4646_v36 = vmul.f32 %v13023_v7, %v15372_v13 }
 0xdff   : > { %v4613_v19 = vpop.xlane.xlu0 %4612  ;;  %v4659_v5 = vpack.c.bf16 %v4645_v15, %v4644_v30 }
 0xe00   : > { %13032 = vrcp.f32 %v4613_v19 }
 0xe01   : > { %11575 = vmatmul.mubr.bf16.vlgmr.msra.gmra.mrb[184].mxu1 %v4659_v5  ;;  %13034 = vrcp.f32 %v4615_v25 }
 0xe02   : > { %v13025_v24 = vpop.eup %13024  ;;  %v4619_v8 = vpop.xlane.xlu1 %4618  ;;  %11609 = vmatpush3.bf16.msra.mxu1 %v15442_v61 }
 0xe03   : > { %v4617_v58 = vpop.xlane.xlu0 %4616  ;;  %v4647_v15 = vmul.f32 %v13025_v24, %v15380_v60  ;;  %12288 = vmatprep.subr.msk.bf16.mxu1 %vm18361_vm8, %v15437_v62  ;;  %v13027_v19 = vpop.eup %13026  ;;  %vm18364_vm8 = vmmov %vm18363_vm6 }
 0xe04   : > { %13036 = vrcp.f32 %v4617_v58  ;;  %v4648_v33 = vmul.f32 %v13027_v19, %v15378_v42 }
 0xe05   : > { %v4660_v5 = vpack.c.bf16 %v4647_v15, %v4646_v36  ;;  %13038 = vrcp.f32 %v4619_v8 }
 0xe06   : > { %v13029_v2 = vpop.eup %13028  ;;  %v4623_v26 = vpop.xlane.xlu1 %4622 }
 0xe07   : > { %v4621_v34 = vpop.xlane.xlu0 %4620  ;;  %11578 = vmatprep.mubr.bf16.mxu1 %v4660_v5  ;;  %v4649_v46 = vmul.f32 %v13029_v2, %v15386_v51  ;;  %v13031_v40 = vpop.eup %13030 }
 0xe08   : > { %13040 = vrcp.f32 %v4621_v34  ;;  %v4650_v30 = vmul.f32 %v13031_v40, %v15388_v39  ;;  %v15461_v39 = vld [vmem:[%s17739_s3] sm:$0xff]  }
 0xe09   : > { %13042 = vrcp.f32 %v4623_v26  ;;  %v4661_v13 = vpack.c.bf16 %v4649_v46, %v4648_v33 }
 0xe0a   : > { %v13033_v60 = vpop.eup %13032  ;;  %v4764_v37 = vpop.permute.xlu1 %4763 }
 0xe0b   : > { %v4625_v10 = vpop.xlane.xlu0 %4624  ;;  %11579 = vmatmul.mubr.bf16.gmra.mrb[188].mxu1 %v4661_v13  ;;  %v4651_v25 = vmul.f32 %v13033_v60, %v15395_v20  ;;  %11592 = vmatprep.mubr.msk.bf16.mxu0 %vm18362_vm15, %v4764_v37  ;;  %v13035_v7 = vpop.eup %13034  ;;  %vm18365_vm15 = vmmov %vm18363_vm6 }
 0xe0c   : > { %13044 = vrcp.f32 %v4625_v10  ;;  %v4652_v58 = vmul.f32 %v13035_v7, %v15393_v18  ;;  %v12754_v7 = vld [vmem:[%s17742_s6 + $0x120] sm:$0xff]  }
 0xe0d   : > { %v4662_v24 = vpack.c.bf16 %v4651_v25, %v4650_v30 }
 0xe0e   : > { %v13037_v42 = vpop.eup %13036  ;;  %v4768_v51 = vpop.permute.xlu1 %4767 }
 0xe0f   : > { %v4766_v8 = vpop.permute.xlu0 %4765  ;;  %11582 = vmatprep.mubr.bf16.mxu1 %v4662_v24  ;;  %v4653_v36 = vmul.f32 %v13037_v42, %v15399_v4  ;;  %v13039_v15 = vpop.eup %13038  ;;  %v12755_v42 = vld [vmem:[%s17742_s6 + $0x128] sm:$0xff]  }
 0xe10   : > { %11593 = vmatmul.mubr.msk.bf16.vlgmr.msra.gmra.mrb[184].mxu0 %vm18363_vm6, %v4766_v8  ;;  %v4654_v2 = vmul.f32 %v13039_v15, %v15401_v59 }
 0xe11   : > { %11596 = vmatprep.mubr.msk.bf16.mxu0 %vm18364_vm8, %v4768_v51  ;;  %11627 = vmatpush3.bf16.msra.mxu0 %v15461_v39  ;;  %v4663_v20 = vpack.c.bf16 %v4653_v36, %v4652_v58  ;;  %vm18366_vm8 = vmmov %vm18363_vm6  ;;  %v12757_v36 = vld [vmem:[%s17742_s6 + $0x138] sm:$0xff]  }
 0xe12   : > { %v13041_v19 = vpop.eup %13040  ;;  %v4770_v26 = vpop.permute.xlu1 %4769 }
 0xe13   : > { %v13043_v5 = vpop.eup %13042  ;;  %11583 = vmatmul.mubr.bf16.gmra.mrb[192].mxu1 %v4663_v20  ;;  %v4655_v18 = vmul.f32 %v13041_v19, %v15407_v9  ;;  %v4772_v33 = vpop.permute.xlu0 %4771  ;;  %v12751_v9 = vld [vmem:[%s17742_s6 + $0x108] sm:$0xff]  }
 0xe14   : > { %v4656_v46 = vmul.f32 %v13043_v5, %v15405_v31  ;;  %v5200_v31 = vsel %vm18369_vm5, %v15437_v62, 0  ;;  %v12752_v62 = vld [vmem:[%s17742_s6 + $0x110] sm:$0xff]   ;;  %vm18375_vm5 = vmmov %vm18367_vm0 }
 0xe15   : > { %v4664_v34 = vpack.c.bf16 %v4655_v18, %v4654_v2 }
 0xe16   : > { %v13045_v4 = vpop.eup %13044  ;;  %v4774_v59 = vpop.permute.xlu1 %4773 }
 0xe17   : > { %v4657_v40 = vmul.f32 %v13045_v4, %v15411_v47  ;;  %11586 = vmatprep.mubr.bf16.mxu1 %v4664_v34  ;;  %v4776_v60 = vpop.permute.xlu0 %4775 }
 0xe18   : > { %11597 = vmatmul.mubr.msk.bf16.gmra.mrb[188].mxu0 %vm18365_vm15, %v4770_v26  ;;  %vm18370_vm15 = vmmov %vm18367_vm0 }
 0xe19   : > { %v4665_v13 = vpack.c.bf16 %v4657_v40, %v4656_v46  ;;  %11600 = vmatprep.mubr.msk.bf16.mxu0 %vm18363_vm6, %v4772_v33  ;;  %vm18372_vm6 = vmmov %vm18367_vm0 }
 0xe1a   : > { %v4778_v47 = vpop.permute.xlu1 %4777 }
 0xe1b   : > { %11587 = vmatmul.mubr.bf16.gmra.mrb[196].mxu1 %v4665_v13 }
 0xe1c   : > { %11610 = vmatprep.mubr.msk.bf16.mxu1 %vm18366_vm8, %v4764_v37  ;;  %vm18373_vm8 = vmmov %vm18367_vm0 }
 0xe20   : > { %11601 = vmatmul.mubr.msk.bf16.gmra.mrb[192].mxu0 %vm18367_vm0, %v4774_v59 }
 0xe21   : > { %11604 = vmatprep.mubr.msk.bf16.mxu0 %vm18368_vm13, %v4776_v60  ;;  %vm18374_vm13 = vmmov %vm18367_vm0 }
 0xe22   : > { %v5203_v10 = vsel %vm18374_vm13, %v12751_v9, 0  ;;  %vm18381_vm13 = vmmov %vm18367_vm0 }
 0xe23   : > { %11611 = vmatmul.mubr.msk.bf16.vlgmr.msra.gmra.mrb[200].mxu1 %vm18370_vm15, %v4766_v8  ;;  %vm18378_vm15 = vmmov %vm18367_vm0 }
 0xe24   : > { %11614 = vmatprep.mubr.msk.bf16.mxu1 %vm18371_vm10, %v4768_v51  ;;  %11645 = vmatpush3.bf16.xpose.msra.mxu1 %v5200_v31  ;;  %vm18377_vm10 = vmmov %vm18367_vm0 }
 0xe25   : > { %12289 = vmatprep.subr.msk.bf16.mxu1 %vm18372_vm6, %v12751_v9  ;;  %vm18379_vm6 = vmmov %vm18367_vm0 }
 0xe28   : > { %11605 = vmatmul.mubr.msk.bf16.gmra.mrb[196].mxu0 %vm18373_vm8, %v4778_v47  ;;  %vm18380_vm8 = vmmov %vm18367_vm0 }
 0xe29   : > { %11628 = vmatprep.mubr.msk.bf16.mxu0 %vm18367_vm0, %v4764_v37  ;;  %v5206_v30 = vsel %vm18380_vm8, %v12752_v62, 0  ;;  %v12753_v37 = vld [vmem:[%s17742_s6 + $0x118] sm:$0xff]   ;;  %vm18387_vm8 = vmmov %vm18367_vm0 }
 0xe2b   : > { %11615 = vmatmul.mubr.msk.bf16.gmra.mrb[204].mxu1 %vm18375_vm5, %v4770_v26  ;;  %vm18382_vm5 = vmmov %vm18367_vm0 }
 0xe2c   : > { %11618 = vmatprep.mubr.msk.bf16.mxu1 %vm18376_vm1, %v4772_v33  ;;  %11647 = vmatpush3.bf16.xpose.msra.mxu1 %v5203_v10  ;;  %vm18383_vm1 = vmmov %vm18367_vm0 }
 0xe2d   : > { %12290 = vmatprep.subr.msk.bf16.mxu1 %vm18377_vm10, %v12752_v62  ;;  %vm18384_vm10 = vmmov %vm18367_vm0 }
 0xe30   : > { %11629 = vmatmul.mubr.msk.bf16.vlgmr.msra.gmra.mrb[200].mxu0 %vm18378_vm15, %v4766_v8  ;;  %vm18385_vm15 = vmmov %vm18367_vm0 }
 0xe31   : > { %11632 = vmatprep.mubr.msk.bf16.mxu0 %vm18379_vm6, %v4768_v51  ;;  %v5209_v25 = vsel %vm18385_vm15, %v12753_v37, 0  ;;  %vm18386_vm6 = vmmov %vm18367_vm0  ;;  %v12756_v51 = vld [vmem:[%s17742_s6 + $0x130] sm:$0xff]  }
 0xe32   : > { %vm18392_vm15 = vmmov %vm18367_vm0 }
 0xe33   : > { %11619 = vmatmul.mubr.msk.bf16.gmra.mrb[208].mxu1 %vm18367_vm0, %v4774_v59  ;;  %v5215_v8 = vsel %vm18392_vm15, %v12755_v42, 0  ;;  %vm18414_vm15 = vmmov %vm18367_vm0 }
 0xe34   : > { %11622 = vmatprep.mubr.msk.bf16.mxu1 %vm18381_vm13, %v4776_v60  ;;  %11649 = vmatpush3.bf16.xpose.msra.mxu1 %v5206_v30  ;;  %vm18388_vm13 = vmmov %vm18367_vm0 }
 0xe35   : > { %12291 = vmatprep.subr.msk.bf16.mxu1 %vm18382_vm5, %v12753_v37  ;;  %vm18389_vm5 = vmmov %vm18367_vm0 }
 0xe36   : > { %v5212_v24 = vsel %vm18389_vm5, %v12754_v7, 0  ;;  %vm18407_vm5 = vmmov %vm18367_vm0 }
 0xe38   : > { %11633 = vmatmul.mubr.msk.bf16.gmra.mrb[204].mxu0 %vm18383_vm1, %v4770_v26  ;;  %vm18390_vm1 = vmmov %vm18367_vm0 }
 0xe39   : > { %11636 = vmatprep.mubr.msk.bf16.mxu0 %vm18384_vm10, %v4772_v33  ;;  %vm18391_vm10 = vmmov %vm18367_vm0 }
 0xe3b   : > { %11623 = vmatmul.mubr.msk.bf16.gmra.mrb[212].mxu1 %vm18386_vm6, %v4778_v47  ;;  %vm18393_vm6 = vmmov %vm18367_vm0 }
 0xe3c   : > { %11651 = vmatpush3.bf16.xpose.msra.mxu1 %v5209_v25 }
 0xe3d   : > { %12292 = vmatprep.subr.msk.bf16.mxu1 %vm18387_vm8, %v12754_v7  ;;  %vm18394_vm8 = vmmov %vm18367_vm0 }
 0xe3e   : > { %v5218_v58 = vsel %vm18394_vm8, %v12756_v51, 0  ;;  %vm18417_vm8 = vmmov %vm18367_vm0 }
 0xe40   : > { %11637 = vmatmul.mubr.msk.bf16.gmra.mrb[208].mxu0 %vm18367_vm0, %v4774_v59 }
 0xe41   : > { %11640 = vmatprep.mubr.msk.bf16.mxu0 %vm18388_vm13, %v4776_v60  ;;  %vm18395_vm13 = vmmov %vm18367_vm0 }
 0xe42   : > { %v5221_v15 = vsel %vm18395_vm13, %v12757_v36, 0  ;;  %vm18418_vm13 = vmmov %vm18367_vm0 }
 0xe44   : > { %11653 = vmatpush3.bf16.xpose.msra.mxu1 %v5212_v24 }
 0xe45   : > { %12293 = vmatprep.subr.msk.bf16.mxu1 %vm18390_vm1, %v12755_v42  ;;  %vm18408_vm1 = vmmov %vm18367_vm0 }
 0xe48   : > { %11641 = vmatmul.mubr.msk.bf16.gmra.mrb[212].mxu0 %vm18391_vm10, %v4778_v47  ;;  %vm18410_vm10 = vmmov %vm18367_vm0 }
 0xe4c   : > { %11655 = vmatpush3.bf16.xpose.msra.mxu1 %v5215_v8 }
 0xe4d   : > { %12294 = vmatprep.subr.msk.bf16.mxu1 %vm18393_vm6, %v12756_v51  ;;  %vm18416_vm6 = vmmov %vm18367_vm0 }
 0xe54   : > { %11657 = vmatpush3.bf16.xpose.msra.mxu1 %v5218_v58 }
 0xe55   : > { %12295 = vmatprep.subr.msk.bf16.mxu1 %vm18367_vm0, %v12757_v36 }
 0xe5c   : > { %11659 = vmatpush3.bf16.xpose.msra.mxu1 %v5221_v15 }
 0xed4   : > { %v15526_v20 = vpop.f32.mrb[184].mxu1 }
 0xed5   : > { %18396 = vst [vmem:[#allocation26_spill] sm:$0xff] %v15526_v20  ;;  %v15528_v19 = vpop.f32.mrb[185].mxu1 }
 0xed6   : > { %18397 = vst [vmem:[#allocation25_spill] sm:$0xff] %v15528_v19  ;;  %v15530_v5 = vpop.f32.mrb[186].mxu1 }
 0xed7   : > { %18398 = vst [vmem:[#allocation70_spill] sm:$0xff] %v15530_v5  ;;  %v15534_v18 = vpop.f32.mrb[187].mxu1 }
 0xed8   : > { %18399 = vst [vmem:[#allocation71_spill] sm:$0xff] %v15534_v18 }
 0xede   : > { %v15538_v4 = vpop.f32.mrb[188].mxu1 }
 0xedf   : > { %18400 = vst [vmem:[#allocation72_spill] sm:$0xff] %v15538_v4  ;;  %v15540_v34 = vpop.f32.mrb[189].mxu1 }
 0xee0   : > { %18401 = vst [vmem:[#allocation73_spill] sm:$0xff] %v15540_v34  ;;  %v15542_v33 = vpop.f32.mrb[190].mxu1 }
 0xee1   : > { %18402 = vst [vmem:[#allocation74_spill] sm:$0xff] %v15542_v33  ;;  %v15546_v40 = vpop.f32.mrb[191].mxu1 }
 0xee2   : > { %18403 = vst [vmem:[#allocation75_spill] sm:$0xff] %v15546_v40 }
 0xee3   : > { %v11594_v59 = vpop.f32.mrb[184].mxu0 }
 0xee4   : > { %v4837_v60 = vpop.f32.mrb[185].mxu0 }
 0xee5   : > { %v11595_v31 = vpop.f32.mrb[186].mxu0 }
 0xee6   : > { %v15550_v9 = vpack.c.bf16 %v11595_v31, %v11594_v59  ;;  %v4840_v47 = vpop.f32.mrb[187].mxu0  ;;  %v15552_v10 = vpop.f32.mrb[192].mxu1 }
 0xee7   : > { %18404 = vst [vmem:[#allocation76_spill] sm:$0xff] %v15552_v10  ;;  %v5094_v62 = vpack.c.bf16 %v4840_v47, %v4837_v60  ;;  %v15554_v30 = vpop.f32.mrb[193].mxu1 }
 0xee8   : > { %18405 = vst [vmem:[#allocation77_spill] sm:$0xff] %v15554_v30  ;;  %v15556_v37 = vpop.f32.mrb[194].mxu1 }
 0xee9   : > { %18406 = vst [vmem:[#allocation78_spill] sm:$0xff] %v15556_v37  ;;  %11660 = vmatprep.mubr.msk.bf16.mxu1 %vm18407_vm5, %v5094_v62  ;;  %11692 = vmatprep.mubr.msk.bf16.mxu0 %vm18408_vm1, %v5094_v62  ;;  %v15562_v7 = vpop.f32.mrb[195].mxu1  ;;  %vm18419_vm5 = vmmov %vm18367_vm0 }
 0xeea   : > { %18409 = vst [vmem:[#allocation79_spill] sm:$0xff] %v15562_v7  ;;  %11661 = vmatmul.mubr.msk.bf16.vlgmr.msra.gmra.mrb[216].mxu1 %vm18410_vm10, %v15550_v9  ;;  %vm18420_vm1 = vmmov %vm18367_vm0 }
 0xeeb   : > { %v11598_v42 = vpop.f32.mrb[188].mxu0  ;;  %vm18421_vm10 = vmmov %vm18367_vm0 }
 0xeec   : > { %v4853_v8 = vpop.f32.mrb[189].mxu0 }
 0xeed   : > { %v11599_v51 = vpop.f32.mrb[190].mxu0 }
 0xeee   : > { %v15568_v58 = vpack.c.bf16 %v11599_v51, %v11598_v42  ;;  %v4856_v36 = vpop.f32.mrb[191].mxu0  ;;  %v15570_v15 = vpop.f32.mrb[196].mxu1 }
 0xeef   : > { %18411 = vst [vmem:[#allocation80_spill] sm:$0xff] %v15570_v15  ;;  %v15572_v59 = vpack.c.bf16 %v4856_v36, %v4853_v8  ;;  %v15574_v60 = vpop.f32.mrb[197].mxu1 }
 0xef0   : > { %18412 = vst [vmem:[#allocation81_spill] sm:$0xff] %v15574_v60  ;;  %v15576_v31 = vpop.f32.mrb[198].mxu1 }
 0xef1   : > { %18413 = vst [vmem:[#allocation82_spill] sm:$0xff] %v15576_v31  ;;  %11664 = vmatprep.mubr.msk.bf16.mxu1 %vm18414_vm15, %v15572_v59  ;;  %v15582_v62 = vpop.f32.mrb[199].mxu1  ;;  %vm18422_vm15 = vmmov %vm18367_vm0 }
 0xef2   : > { %18415 = vst [vmem:[#allocation83_spill] sm:$0xff] %v15582_v62  ;;  %11665 = vmatmul.mubr.msk.bf16.gmra.mrb[220].mxu1 %vm18416_vm6, %v15568_v58  ;;  %vm18423_vm6 = vmmov %vm18367_vm0 }
 0xef3   : > { %v11602_v8 = vpop.f32.mrb[192].mxu0 }
 0xef4   : > { %v4869_v51 = vpop.f32.mrb[193].mxu0 }
 0xef5   : > { %v11603_v36 = vpop.f32.mrb[194].mxu0 }
 0xef6   : > { %v15588_v24 = vpack.c.bf16 %v11603_v36, %v11602_v8  ;;  %v4872_v25 = vpop.f32.mrb[195].mxu0  ;;  %v11612_v46 = vpop.f32.mrb[200].mxu1 }
 0xef7   : > { %v15590_v13 = vpack.c.bf16 %v4872_v25, %v4869_v51  ;;  %v4934_v26 = vpop.f32.mrb[201].mxu1 }
 0xef8   : > { %v11613_v2 = vpop.f32.mrb[202].mxu1 }
 0xef9   : > { %11668 = vmatprep.mubr.msk.bf16.mxu1 %vm18417_vm8, %v15590_v13  ;;  %v5103_v47 = vpack.c.bf16 %v11613_v2, %v11612_v46  ;;  %v4937_v15 = vpop.f32.mrb[203].mxu1  ;;  %vm18424_vm8 = vmmov %vm18367_vm0 }
 0xefa   : > { %11669 = vmatmul.mubr.msk.bf16.gmra.mrb[224].mxu1 %vm18367_vm0, %v15588_v24  ;;  %v5102_v42 = vpack.c.bf16 %v4937_v15, %v4934_v26 }
 0xefb   : > { %v11606_v60 = vpop.f32.mrb[196].mxu0 }
 0xefc   : > { %v4885_v62 = vpop.f32.mrb[197].mxu0  ;;  %v5385_v8 = vsel %vm18418_vm13, %v5102_v42, 0  ;;  %12296 = vmatprep.subr.msk.bf16.mxu0 %vm18419_vm5, %v5102_v42  ;;  %vm18425_vm13 = vmmov %vm18367_vm0 }
 0xefd   : > { %v11607_v25 = vpop.f32.mrb[198].mxu0  ;;  %11677 = vmatpush3.bf16.xpose.msra.mxu0 %v5385_v8  ;;  %v5388_v8 = vsel %vm18423_vm6, %v5103_v47, 0  ;;  %vm18426_vm5 = vmmov %vm18367_vm0 }
 0xefe   : > { %v15598_v51 = vpack.c.bf16 %v11607_v25, %v11606_v60  ;;  %v4888_v36 = vpop.f32.mrb[199].mxu0  ;;  %v11616_v30 = vpop.f32.mrb[204].mxu1  ;;  %12297 = vmatprep.subr.msk.bf16.mxu0 %vm18420_vm1, %v5103_v47  ;;  %vm18427_vm1 = vmmov %vm18367_vm0 }
 0xeff   : > { %v15600_v31 = vpack.c.bf16 %v4888_v36, %v4885_v62  ;;  %v4950_v2 = vpop.f32.mrb[205].mxu1  ;;  %vm18430_vm6 = vmmov %vm18367_vm0 }
 0xf00   : > { %v11617_v46 = vpop.f32.mrb[206].mxu1 }
 0xf01   : > { %11672 = vmatprep.mubr.msk.bf16.mxu1 %vm18421_vm10, %v15600_v31  ;;  %v5105_v26 = vpack.c.bf16 %v11617_v46, %v11616_v30  ;;  %v4953_v15 = vpop.f32.mrb[207].mxu1  ;;  %vm18428_vm10 = vmmov %vm18367_vm0 }
 0xf02   : > { %11673 = vmatmul.mubr.msk.bf16.gmra.mrb[228].mxu1 %vm18422_vm15, %v15598_v51  ;;  %v5104_v42 = vpack.c.bf16 %v4953_v15, %v4950_v2  ;;  %vm18429_vm15 = vmmov %vm18367_vm0 }
 0xf03   : > { %v11630_v60 = vpop.f32.mrb[200].mxu0 }
 0xf04   : > { %v5031_v25 = vpop.f32.mrb[201].mxu0  ;;  %v5391_v47 = vsel %vm18367_vm0, %v5104_v42, 0 }
 0xf05   : > { %v11631_v62 = vpop.f32.mrb[202].mxu0  ;;  %11679 = vmatpush3.bf16.xpose.msra.mxu0 %v5388_v8 }
 0xf06   : > { %v5111_v36 = vpack.c.bf16 %v11631_v62, %v11630_v60  ;;  %v5034_v7 = vpop.f32.mrb[203].mxu0  ;;  %v11620_v10 = vpop.f32.mrb[208].mxu1  ;;  %12298 = vmatprep.subr.msk.bf16.mxu0 %vm18424_vm8, %v5104_v42  ;;  %v5394_v42 = vsel %vm18426_vm5, %v5105_v26, 0  ;;  %vm18431_vm8 = vmmov %vm18367_vm0 }
 0xf07   : > { %v5110_v37 = vpack.c.bf16 %v5034_v7, %v5031_v25  ;;  %v4966_v34 = vpop.f32.mrb[209].mxu1  ;;  %vm18433_vm5 = vmmov %vm18367_vm0 }
 0xf08   : > { %v11621_v40 = vpop.f32.mrb[210].mxu1 }
 0xf09   : > { %11708 = vmatprep.subr.bf16.mxu1 %v5110_v37  ;;  %v5107_v30 = vpack.c.bf16 %v11621_v40, %v11620_v10  ;;  %v4969_v46 = vpop.f32.mrb[211].mxu1 }
 0xf0a   : > { %11709 = vmatpush3.bf16.msra.mxu1 %v5110_v37  ;;  %v5106_v4 = vpack.c.bf16 %v4969_v46, %v4966_v34 }
 0xf0b   : > { %v11634_v2 = vpop.f32.mrb[204].mxu0  ;;  %11710 = vmatprep.subr.bf16.mxu1 %v5111_v36 }
 0xf0c   : > { %v5047_v15 = vpop.f32.mrb[205].mxu0 }
 0xf0d   : > { %v11635_v33 = vpop.f32.mrb[206].mxu0  ;;  %11681 = vmatpush3.bf16.xpose.msra.mxu0 %v5391_v47 }
 0xf0e   : > { %v5113_v60 = vpack.c.bf16 %v11635_v33, %v11634_v2  ;;  %v5050_v8 = vpop.f32.mrb[207].mxu0  ;;  %11711 = vmatpush3.bf16.msra.mxu1 %v5111_v36  ;;  %v11624_v7 = vpop.f32.mrb[212].mxu1  ;;  %12299 = vmatprep.subr.msk.bf16.mxu0 %vm18425_vm13, %v5105_v26  ;;  %vm18432_vm13 = vmmov %vm18367_vm0 }
 0xf0f   : > { %v5112_v25 = vpack.c.bf16 %v5050_v8, %v5047_v15  ;;  %v4982_v62 = vpop.f32.mrb[213].mxu1  ;;  %v5397_v8 = vsel %vm18428_vm10, %v5106_v4, 0  ;;  %vm18435_vm10 = vmmov %vm18367_vm0 }
 0xf10   : > { %v11625_v19 = vpop.f32.mrb[214].mxu1 }
 0xf11   : > { %11712 = vmatprep.subr.bf16.mxu1 %v5112_v25  ;;  %v5109_v40 = vpack.c.bf16 %v11625_v19, %v11624_v7  ;;  %v4985_v10 = vpop.f32.mrb[215].mxu1 }
 0xf12   : > { %11713 = vmatpush3.bf16.msra.mxu1 %v5112_v25  ;;  %v5108_v34 = vpack.c.bf16 %v4985_v10, %v4982_v62 }
 0xf13   : > { %v11638_v37 = vpop.f32.mrb[208].mxu0  ;;  %11714 = vmatprep.subr.bf16.mxu1 %v5113_v60  ;;  %v5406_v10 = vsel %vm18433_vm5, %v5109_v40, 0  ;;  %vm18440_vm5 = vcmp.eq.s32.totalorder %v13783_v3, 1 }
 0xf14   : > { %v5063_v46 = vpop.f32.mrb[209].mxu0 }
 0xf15   : > { %v11639_v33 = vpop.f32.mrb[210].mxu0  ;;  %11683 = vmatpush3.bf16.xpose.msra.mxu0 %v5394_v42 }
 0xf16   : > { %v5115_v2 = vpack.c.bf16 %v11639_v33, %v11638_v37  ;;  %v5066_v36 = vpop.f32.mrb[211].mxu0  ;;  %11715 = vmatpush3.bf16.msra.mxu1 %v5113_v60  ;;  %12300 = vmatprep.subr.msk.bf16.mxu0 %vm18427_vm1, %v5106_v4  ;;  %v5400_v60 = vsel %vm18430_vm6, %v5107_v30, 0  ;;  %v5403_v4 = vsel %vm18367_vm0, %v5108_v34, 0  ;;  %v13313_v37 = vld [vmem:[%s17737_s1] sm:$0xff]   ;;  %vm18434_vm1 = vmmov %vm18367_vm0 }
 0xf17   : > { %v5114_v15 = vpack.c.bf16 %v5066_v36, %v5063_v46  ;;  %vm18437_vm6 = vmmov %vm18367_vm0 }
 0xf19   : > { %11716 = vmatprep.subr.bf16.mxu1 %v5114_v15 }
 0xf1a   : > { %11717 = vmatpush3.bf16.msra.mxu1 %v5114_v15 }
 0xf1b   : > { %v11642_v47 = vpop.f32.mrb[212].mxu0  ;;  %11718 = vmatprep.subr.bf16.mxu1 %v5115_v2 }
 0xf1c   : > { %v5079_v19 = vpop.f32.mrb[213].mxu0 }
 0xf1d   : > { %v11643_v7 = vpop.f32.mrb[214].mxu0  ;;  %11685 = vmatpush3.bf16.xpose.msra.mxu0 %v5397_v8 }
 0xf1e   : > { %v5117_v25 = vpack.c.bf16 %v11643_v7, %v11642_v47  ;;  %v5082_v62 = vpop.f32.mrb[215].mxu0  ;;  %11719 = vmatpush3.bf16.msra.mxu1 %v5115_v2  ;;  %12301 = vmatprep.subr.msk.bf16.mxu0 %vm18429_vm15, %v5107_v30  ;;  %vm18436_vm15 = vmmov %vm18367_vm0 }
 0xf1f   : > { %v5116_v26 = vpack.c.bf16 %v5082_v62, %v5079_v19 }
 0xf21   : > { %11720 = vmatprep.subr.bf16.mxu1 %v5116_v26 }
 0xf22   : > { %11721 = vmatpush3.bf16.msra.mxu1 %v5116_v26 }
 0xf23   : > { %11722 = vmatprep.subr.bf16.mxu1 %v5117_v25 }
 0xf25   : > { %11687 = vmatpush3.bf16.xpose.msra.mxu0 %v5400_v60 }
 0xf26   : > { %11723 = vmatpush3.bf16.msra.mxu1 %v5117_v25  ;;  %12302 = vmatprep.subr.msk.bf16.mxu0 %vm18431_vm8, %v5108_v34  ;;  %vm18438_vm8 = vmmov %vm18367_vm0 }
 0xf27   : > { %11758 = vmatprep.subr.bf16.mxu1 %v15442_v61 }
 0xf2d   : > { %11689 = vmatpush3.bf16.xpose.msra.mxu0 %v5403_v4 }
 0xf2e   : > { %12303 = vmatprep.subr.msk.bf16.mxu0 %vm18432_vm13, %v5109_v40  ;;  %vm18439_vm13 = vmmov %vm18367_vm0 }
 0xf35   : > { %11691 = vmatpush3.bf16.xpose.msra.mxu0 %v5406_v10 }
 0xf36   : > { %11740 = vmatprep.subr.bf16.mxu0 %v13313_v37 }
 0xf3c   : > { %11693 = vmatmul.mubr.msk.bf16.vlgmr.msra.gmra.mrb[216].mxu0 %vm18434_vm1, %v15550_v9  ;;  %vm18441_vm1 = vcmp.eq.s32.totalorder %v13787_v6, 1 }
 0xf3d   : > { %11696 = vmatprep.mubr.msk.bf16.mxu0 %vm18435_vm10, %v15572_v59  ;;  %11741 = vmatpush3.bf16.msra.mxu0 %v13313_v37  ;;  %vm18442_vm10 = vcmp.eq.s32.totalorder %v13785_v43, 1 }
 0xf3e   : > { %11776 = vmatprep.subr.bf16.mxu0 %v15461_v39 }
 0xf44   : > { %11697 = vmatmul.mubr.msk.bf16.gmra.mrb[220].mxu0 %vm18436_vm15, %v15568_v58  ;;  %vm18443_vm15 = vcmp.eq.s32.totalorder %v13789_v11, 1 }
 0xf45   : > { %11700 = vmatprep.mubr.msk.bf16.mxu0 %vm18437_vm6, %v15590_v13  ;;  %vm18444_vm6 = vcmp.eq.s32.totalorder %v13791_v14, 1 }
 0xf4c   : > { %11701 = vmatmul.mubr.msk.bf16.gmra.mrb[224].mxu0 %vm18438_vm8, %v15588_v24  ;;  %vm18445_vm8 = vcmp.eq.s32.totalorder %v13797_v0, 1 }
 0xf4d   : > { %11704 = vmatprep.mubr.msk.bf16.mxu0 %vm18367_vm0, %v15600_v31  ;;  %vm18446_vm0 = vcmp.eq.s32.totalorder %v13793_v17, 1 }
 0xf54   : > { %11705 = vmatmul.mubr.msk.bf16.gmra.mrb[228].mxu0 %vm18439_vm13, %v15598_v51  ;;  %vm18447_vm13 = vnez %v17994_v16 }
 0xfbd   : > { %v11662_v61 = vpop.f32.mrb[216].mxu1 }
 0xfbe   : > { %v5257_v9 = vpop.f32.mrb[217].mxu1 }
 0xfbf   : > { %5322 = vrot.lane.b32.xlu0 %v5257_v9, %s18212_s0  ;;  %v11663_v39 = vpop.f32.mrb[218].mxu1 }
 0xfc0   : > { %v5260_v59 = vpop.f32.mrb[219].mxu1 }
 0xfc1   : > { %5326 = vrot.lane.b32.xlu1 %v5260_v59, %s18213_s7 }
 0xfc3   : > { %5330 = vrot.lane.b32.xlu0 %v11662_v61, %s18214_s16 }
 0xfc5   : > { %5334 = vrot.lane.b32.xlu1 %v11663_v39, %s18215_s13  ;;  %v11666_v13 = vpop.f32.mrb[220].mxu1 }
 0xfc6   : > { %v5273_v24 = vpop.f32.mrb[221].mxu1 }
 0xfc7   : > { %5338 = vrot.lane.b32.xlu0 %v5273_v24, %s18216_s11  ;;  %v11667_v58 = vpop.f32.mrb[222].mxu1 }
 0xfc8   : > { %v5276_v31 = vpop.f32.mrb[223].mxu1 }
 0xfc9   : > { %5342 = vrot.lane.b32.xlu1 %v5276_v31, %s18217_s9 }
 0xfcb   : > { %5346 = vrot.lane.b32.xlu0 %v11666_v13, %s18091_s12 }
 0xfcd   : > { %5350 = vrot.lane.b32.xlu1 %v11667_v58, %s18092_s14  ;;  %v11670_v51 = vpop.f32.mrb[224].mxu1 }
 0xfce   : > { %v5289_v30 = vpop.f32.mrb[225].mxu1 }
 0xfcf   : > { %5354 = vrot.lane.b32.xlu0 %v5289_v30, %s18093_s25  ;;  %v11671_v40 = vpop.f32.mrb[226].mxu1 }
 0xfd0   : > { %v5292_v34 = vpop.f32.mrb[227].mxu1 }
 0xfd1   : > { %5358 = vrot.lane.b32.xlu1 %v5292_v34, %s18094_s26 }
 0xfd3   : > { %5362 = vrot.lane.b32.xlu0 %v11670_v51, %s18095_s19 }
 0xfd5   : > { %5366 = vrot.lane.b32.xlu1 %v11671_v40, %s18096_s20  ;;  %v11674_v46 = vpop.f32.mrb[228].mxu1 }
 0xfd6   : > { %v5305_v42 = vpop.f32.mrb[229].mxu1 }
 0xfd7   : > { %5370 = vrot.lane.b32.xlu0 %v5305_v42, %s18097_s21  ;;  %v11675_v33 = vpop.f32.mrb[230].mxu1 }
 0xfd8   : > { %v5308_v2 = vpop.f32.mrb[231].mxu1 }
 0xfd9   : > { %5374 = vrot.lane.b32.xlu1 %v5308_v2, %s18098_s22 }
 0xfdb   : > { %5378 = vrot.lane.b32.xlu0 %v11674_v46, %s18099_s24 }
 0xfdd   : > { %5382 = vrot.lane.b32.xlu1 %v11675_v33, %s18100_s23 }
0x100f   : > { %v11694_v36 = vpop.f32.mrb[216].mxu0 }
0x1010   : > { %v5442_v15 = vpop.f32.mrb[217].mxu0  ;;  %v5507_v51 = vmul.f32 0.088388346, %v11694_v36 }
0x1011   : > { %v11695_v47 = vpop.f32.mrb[218].mxu0  ;;  %v5505_v59 = vmul.f32 0.088388346, %v5442_v15 }
0x1012   : > { %v5445_v19 = vpop.f32.mrb[219].mxu0  ;;  %v5508_v42 = vmul.f32 0.088388346, %v11695_v47 }
0x1013   : > { %v5506_v24 = vmul.f32 0.088388346, %v5445_v19 }
0x1017   : > { %v11698_v8 = vpop.f32.mrb[220].mxu0 }
0x1018   : > { %v5458_v7 = vpop.f32.mrb[221].mxu0 }
0x1019   : > { %v11699_v25 = vpop.f32.mrb[222].mxu0  ;;  %v5509_v19 = vmul.f32 0.088388346, %v5458_v7  ;;  %v5511_v7 = vmul.f32 0.088388346, %v11698_v8 }
0x101a   : > { %v5461_v62 = vpop.f32.mrb[223].mxu0 }
0x101f   : > { %v11702_v26 = vpop.f32.mrb[224].mxu0 }
0x1020   : > { %v5474_v60 = vpop.f32.mrb[225].mxu0 }
0x1021   : > { %v15655_v4 = vpop.f32.mrb[226].mxu0 }
0x1022   : > { %v5477_v10 = vpop.f32.mrb[227].mxu0 }
0x1027   : > { %v15657_v37 = vpop.f32.mrb[228].mxu0 }
0x1028   : > { %v15659_v61 = vpop.f32.mrb[229].mxu0 }
0x1029   : > { %v15661_v9 = vpop.f32.mrb[230].mxu0 }
0x102a   : > { %v15663_v39 = vpop.f32.mrb[231].mxu0 }
0x1031   : > { %v5323_v13 = vpop.permute.xlu0 %5322 }
0x1032   : > { %v5521_v58 = vadd.f32 %v5505_v59, %v5323_v13 }
0x1033   : > { %v5327_v31 = vpop.permute.xlu1 %5326 }
0x1034   : > { %v5522_v30 = vadd.f32 %v5506_v24, %v5327_v31  ;;  %v5537_v40 = vsel %vm13837_vm2, -1e+09, %v5521_v58  ;;  %v5510_v58 = vmul.f32 0.088388346, %v5461_v62 }
0x1035   : > { %v5331_v34 = vpop.permute.xlu0 %5330  ;;  %v15669_v46 = vsel %vm18440_vm5, -1e+09, %v5537_v40  ;;  %vm18448_vm5 = vcmp.eq.s32.totalorder %v13799_v23, 1 }
0x1036   : > { %v5523_v33 = vadd.f32 %v5507_v51, %v5331_v34  ;;  %5569 = vmax.xlane.f32.xlu0 %v15669_v46  ;;  %v5538_v2 = vsel %vm13842_vm3, -1e+09, %v5522_v30 }
0x1037   : > { %v5335_v15 = vpop.permute.xlu1 %5334  ;;  %v15676_v36 = vsel %vm18441_vm1, -1e+09, %v5538_v2  ;;  %v5512_v2 = vmul.f32 0.088388346, %v11699_v25  ;;  %vm18449_vm1 = vcmp.eq.s32.totalorder %v13807_v27, 1 }
0x1038   : > { %v5524_v59 = vadd.f32 %v5508_v42, %v5335_v15  ;;  %5571 = vmax.xlane.f32.xlu1 %v15676_v36  ;;  %v5539_v13 = vsel %vm13847_vm4, -1e+09, %v5523_v33 }
0x1039   : > { %v5339_v24 = vpop.permute.xlu0 %5338  ;;  %v15683_v47 = vsel %vm18442_vm10, -1e+09, %v5539_v13  ;;  %vm18450_vm10 = vnez %v17998_v28 }
0x103a   : > { %v5525_v31 = vadd.f32 %v5509_v19, %v5339_v24  ;;  %5573 = vmax.xlane.f32.xlu0 %v15683_v47  ;;  %v5540_v51 = vsel %vm13871_vm7, -1e+09, %v5524_v59  ;;  %v5513_v59 = vmul.f32 0.088388346, %v5474_v60 }
0x103b   : > { %v5343_v30 = vpop.permute.xlu1 %5342  ;;  %v15692_v33 = vsel %vm18443_vm15, -1e+09, %v5540_v51  ;;  %v5514_v51 = vmul.f32 0.088388346, %v5477_v10  ;;  %vm18451_vm15 = vnez %v17996_v57 }
0x103c   : > { %v5526_v40 = vadd.f32 %v5510_v58, %v5343_v30  ;;  %v5541_v34 = vsel %vm13884_vm9, -1e+09, %v5525_v31 }
0x103d   : > { %v5347_v42 = vpop.permute.xlu0 %5346  ;;  %v15696_v62 = vsel %vm18444_vm6, -1e+09, %v5541_v34  ;;  %vm18452_vm6 = vcmp.eq.s32.totalorder %v13815_v21, 1 }
0x103e   : > { %v5527_v15 = vadd.f32 %v5511_v7, %v5347_v42  ;;  %5575 = vmax.xlane.f32.xlu0 %v15692_v33  ;;  %5577 = vmax.xlane.f32.xlu1 %v15696_v62  ;;  %v5542_v8 = vsel %vm13898_vm12, -1e+09, %v5526_v40  ;;  %v5515_v40 = vmul.f32 0.088388346, %v11702_v26 }
0x103f   : > { %v5351_v19 = vpop.permute.xlu1 %5350  ;;  %v15710_v25 = vsel %vm18446_vm0, -1e+09, %v5542_v8  ;;  %v5516_v8 = vmul.f32 0.088388346, %v15655_v4  ;;  %vm18454_vm0 = vnez %v18116_v1 }
0x1040   : > { %v5528_v13 = vadd.f32 %v5512_v2, %v5351_v19  ;;  %v5543_v24 = vsel %vm13893_vm11, -1e+09, %v5527_v15 }
0x1041   : > { %v5355_v58 = vpop.permute.xlu0 %5354  ;;  %v15706_v31 = vsel %vm18445_vm8, -1e+09, %v5543_v24  ;;  %vm18453_vm8 = vcmp.eq.s32.totalorder %v18114_v35, 1 }
0x1042   : > { %v5529_v30 = vadd.f32 %v5513_v59, %v5355_v58  ;;  %5581 = vmax.xlane.f32.xlu1 %v15706_v31  ;;  %5579 = vmax.xlane.f32.xlu0 %v15710_v25  ;;  %v5544_v60 = vsel %vm13923_vm14, -1e+09, %v5528_v13  ;;  %v5517_v13 = vmul.f32 0.088388346, %v15659_v61 }
0x1043   : > { %v5359_v7 = vpop.permute.xlu1 %5358  ;;  %v15720_v15 = vsel %vm18448_vm5, -1e+09, %v5544_v60  ;;  %v5518_v60 = vmul.f32 0.088388346, %v15663_v39  ;;  %vm18455_vm5 = vnez %v18005_v63 }
0x1044   : > { %v5530_v34 = vadd.f32 %v5514_v51, %v5359_v7  ;;  %v5545_v42 = vsel %vm18447_vm13, -1e+09, %v5529_v30 }
0x1045   : > { %v5363_v2 = vpop.permute.xlu0 %5362  ;;  %v15724_v10 = vsel %vm18449_vm1, -1e+09, %v5545_v42  ;;  %vm18456_vm1 = vcmp.eq.s32.totalorder %v18119_v29, 1 }
0x1046   : > { %v5531_v19 = vadd.f32 %v5515_v40, %v5363_v2  ;;  %5583 = vmax.xlane.f32.xlu0 %v15720_v15  ;;  %5585 = vmax.xlane.f32.xlu1 %v15724_v10  ;;  %v5546_v26 = vsel %vm18450_vm10, -1e+09, %v5530_v34  ;;  %v5519_v34 = vmul.f32 0.088388346, %v15657_v37 }
0x1047   : > { %v5367_v59 = vpop.permute.xlu1 %5366  ;;  %v15740_v4 = vsel %vm18453_vm8, -1e+09, %v5546_v26  ;;  %v5520_v26 = vmul.f32 0.088388346, %v15661_v9  ;;  %vm18458_vm8 = vnez %v18007_v49 }
0x1048   : > { %v5532_v24 = vadd.f32 %v5516_v8, %v5367_v59  ;;  %v5547_v58 = vsel %vm18451_vm15, -1e+09, %v5531_v19 }
0x1049   : > { %v5371_v51 = vpop.permute.xlu0 %5370  ;;  %v15736_v30 = vsel %vm18452_vm6, -1e+09, %v5547_v58  ;;  %vm18457_vm6 = vcmp.eq.s32.totalorder %v13825_v38, 1 }
0x104a   : > { %v5533_v7 = vadd.f32 %v5517_v13, %v5371_v51  ;;  %5589 = vmax.xlane.f32.xlu1 %v15736_v30  ;;  %5587 = vmax.xlane.f32.xlu0 %v15740_v4  ;;  %v5548_v61 = vsel %vm18454_vm0, -1e+09, %v5532_v24  ;;  %vm18462_vm0 = vnez %v18351_v45 }
0x104b   : > { %v5375_v40 = vpop.permute.xlu1 %5374  ;;  %v15752_v19 = vsel %vm18456_vm1, -1e+09, %v5548_v61  ;;  %vm18460_vm1 = vcmp.eq.s32.totalorder %v18238_v44, 1 }
0x104c   : > { %v5534_v42 = vadd.f32 %v5518_v60, %v5375_v40  ;;  %v5549_v2 = vsel %vm18455_vm5, -1e+09, %v5533_v7  ;;  %vm18459_vm5 = vnez %v18009_v56 }
0x104d   : > { %v5379_v8 = vpop.permute.xlu0 %5378  ;;  %v15756_v39 = vsel %vm18457_vm6, -1e+09, %v5549_v2  ;;  %vm18461_vm6 = vcmp.eq.s32.totalorder %v18240_v22, 1 }
0x104e   : > { %v5535_v59 = vadd.f32 %v5519_v34, %v5379_v8  ;;  %5591 = vmax.xlane.f32.xlu0 %v15752_v19  ;;  %5593 = vmax.xlane.f32.xlu1 %v15756_v39  ;;  %v5550_v37 = vsel %vm18458_vm8, -1e+09, %v5534_v42  ;;  %vm18463_vm8 = vcmp.eq.s32.totalorder %v18353_v32, 1 }
0x104f   : > { %v5383_v13 = vpop.permute.xlu1 %5382  ;;  %v15771_v9 = vsel %vm18461_vm6, -1e+09, %v5550_v37 }
0x1050   : > { %v5536_v24 = vadd.f32 %v5520_v26, %v5383_v13  ;;  %v5551_v58 = vsel %vm18459_vm5, -1e+09, %v5535_v59 }
0x1051   : > { %v15767_v51 = vsel %vm18460_vm1, -1e+09, %v5551_v58 }
0x1052   : > { %5597 = vmax.xlane.f32.xlu1 %v15767_v51  ;;  %5595 = vmax.xlane.f32.xlu0 %v15771_v9  ;;  %v5552_v60 = vsel %vm18462_vm0, -1e+09, %v5536_v24 }
0x1053   : > { %v15779_v7 = vsel %vm18463_vm8, -1e+09, %v5552_v60  ;;  %vm18472_vm8 = vcmask 130048  }
0x1054   : > { %vm18473_vm1 = vmmov %vm18472_vm8 }
0x1055   : > { %vm18474_vm6 = vmmov %vm18473_vm1 }
0x1056   : > { %5599 = vmax.xlane.f32.xlu0 %v15779_v7  ;;  %vm18478_vm0 = vmmov %vm18473_vm1 }
0x1057   : > { %vm18479_vm5 = vmmov %vm18478_vm0 }
0x1058   : > { %vm18480_vm15 = vmmov %vm18478_vm0 }
0x1059   : > { %vm18482_vm10 = vmmov %vm18478_vm0 }
0x105a   : > { %vm18487_vm13 = vmmov %vm18478_vm0 }
0x10c3   : > { %v5570_v61 = vpop.xlane.xlu0 %5569 }
0x10c4   : > { %v5601_v40 = vsub.f32 %v15669_v46, %v5570_v61 }
0x10c5   : > { %v5572_v34 = vpop.xlane.xlu1 %5571 }
0x10c6   : > { %v5617_v42 = vmul.f32 1.442695, %v5601_v40  ;;  %v5602_v2 = vsub.f32 %v15676_v36, %v5572_v34 }
0x10c7   : > { %v5574_v8 = vpop.xlane.xlu0 %5573 }
0x10c8   : > { %13046 = vpow2.f32 %v5617_v42  ;;  %v5619_v26 = vmul.f32 1.442695, %v5602_v2  ;;  %v5603_v59 = vsub.f32 %v15683_v47, %v5574_v8 }
0x10ca   : > { %13048 = vpow2.f32 %v5619_v26  ;;  %v5621_v37 = vmul.f32 1.442695, %v5603_v59 }
0x10cb   : > { %v5576_v13 = vpop.xlane.xlu0 %5575  ;;  %v5578_v24 = vpop.xlane.xlu1 %5577 }
0x10cc   : > { %13050 = vpow2.f32 %v5621_v37  ;;  %v5604_v58 = vsub.f32 %v15692_v33, %v5576_v13  ;;  %v5605_v60 = vsub.f32 %v15696_v62, %v5578_v24 }
0x10ce   : > { %v5623_v18 = vmul.f32 1.442695, %v5604_v58  ;;  %v5625_v46 = vmul.f32 1.442695, %v5605_v60 }
0x10cf   : > { %v5582_v61 = vpop.xlane.xlu1 %5581  ;;  %v5580_v40 = vpop.xlane.xlu0 %5579 }
0x10d0   : > { %13052 = vpow2.f32 %v5623_v18  ;;  %v5607_v36 = vsub.f32 %v15706_v31, %v5582_v61  ;;  %v5606_v34 = vsub.f32 %v15710_v25, %v5580_v40 }
0x10d1   : > { %13054 = vpow2.f32 %v5625_v46 }
0x10d2   : > { %v15789_v47 = vpop.eup %13046  ;;  %v5629_v42 = vmul.f32 1.442695, %v5607_v36  ;;  %v5627_v2 = vmul.f32 1.442695, %v5606_v34 }
0x10d3   : > { %v5584_v8 = vpop.xlane.xlu0 %5583  ;;  %v5586_v26 = vpop.xlane.xlu1 %5585  ;;  %5649 = vadd.xlane.f32.xlu1 %v15789_v47 }
0x10d4   : > { %v15792_v33 = vpop.eup %13048  ;;  %13056 = vpow2.f32 %v5629_v42  ;;  %v5608_v62 = vsub.f32 %v15720_v15, %v5584_v8  ;;  %v5609_v18 = vsub.f32 %v15724_v10, %v5586_v26 }
0x10d5   : > { %13058 = vpow2.f32 %v5627_v2  ;;  %5651 = vadd.xlane.f32.xlu0 %v15792_v33 }
0x10d6   : > { %v15797_v31 = vpop.eup %13050  ;;  %v5631_v25 = vmul.f32 1.442695, %v5608_v62  ;;  %v5633_v59 = vmul.f32 1.442695, %v5609_v18 }
0x10d7   : > { %v5590_v37 = vpop.xlane.xlu1 %5589  ;;  %v5588_v13 = vpop.xlane.xlu0 %5587  ;;  %5653 = vadd.xlane.f32.xlu1 %v15797_v31 }
0x10d8   : > { %13060 = vpow2.f32 %v5631_v25  ;;  %v5611_v24 = vsub.f32 %v15736_v30, %v5590_v37  ;;  %v5610_v58 = vsub.f32 %v15740_v4, %v5588_v13 }
0x10d9   : > { %13062 = vpow2.f32 %v5633_v59 }
0x10da   : > { %v15802_v15 = vpop.eup %13052  ;;  %v5637_v10 = vmul.f32 1.442695, %v5611_v24  ;;  %v5635_v60 = vmul.f32 1.442695, %v5610_v58 }
0x10db   : > { %v15804_v46 = vpop.eup %13054  ;;  %v5592_v61 = vpop.xlane.xlu0 %5591  ;;  %5655 = vadd.xlane.f32.xlu0 %v15802_v15 }
0x10dc   : > { %v5594_v40 = vpop.xlane.xlu1 %5593  ;;  %13064 = vpow2.f32 %v5637_v10  ;;  %v5612_v36 = vsub.f32 %v15752_v19, %v5592_v61  ;;  %5657 = vadd.xlane.f32.xlu1 %v15804_v46 }
0x10dd   : > { %v5613_v30 = vsub.f32 %v15756_v39, %v5594_v40  ;;  %13066 = vpow2.f32 %v5635_v60  ;;  %v18464_v40 = vld [vmem:[#allocation12_spill] sm:$0xff] }
0x10de   : > { %v15810_v4 = vpop.eup %13056  ;;  %v5639_v34 = vmul.f32 1.442695, %v5612_v36  ;;  %v18465_v36 = vld [vmem:[#allocation16_spill] sm:$0xff] }
0x10df   : > { %v5641_v42 = vmul.f32 1.442695, %v5613_v30  ;;  %v15812_v2 = vpop.eup %13058  ;;  %v5596_v26 = vpop.xlane.xlu0 %5595  ;;  %v18466_v30 = vld [vmem:[#allocation18_spill] sm:$0xff] }
0x10e0   : > { %v5598_v8 = vpop.xlane.xlu1 %5597  ;;  %13068 = vpow2.f32 %v5639_v34  ;;  %5661 = vadd.xlane.f32.xlu1 %v15810_v4  ;;  %5659 = vadd.xlane.f32.xlu0 %v15812_v2  ;;  %v5614_v19 = vsub.f32 %v15771_v9, %v5596_v26  ;;  %v18467_v34 = vld [vmem:[#allocation14_spill] sm:$0xff]  ;;  %v18470_v26 = vld [vmem:[#allocation19_spill] sm:$0xff] }
0x10e1   : > { %v5615_v62 = vsub.f32 %v15767_v51, %v5598_v8  ;;  %13070 = vpow2.f32 %v5641_v42  ;;  %v18468_v42 = vld [vmem:[#allocation15_spill] sm:$0xff]  ;;  %v18469_v8 = vld [vmem:[#allocation13_spill] sm:$0xff] }
0x10e2   : > { %v15818_v39 = vpop.eup %13060  ;;  %v5643_v25 = vmul.f32 1.442695, %v5614_v19 }
0x10e3   : > { %v5645_v18 = vmul.f32 1.442695, %v5615_v62  ;;  %v15820_v59 = vpop.eup %13062  ;;  %v5600_v37 = vpop.xlane.xlu0 %5599  ;;  %v18471_v62 = vld [vmem:[#allocation17_spill] sm:$0xff] }
0x10e4   : > { %5665 = vadd.xlane.f32.xlu1 %v15820_v59  ;;  %5663 = vadd.xlane.f32.xlu0 %v15818_v39  ;;  %v5616_v13 = vsub.f32 %v15779_v7, %v5600_v37 }
0x10e5   : > { %13072 = vpow2.f32 %v5645_v18 }
0x10e6   : > { %13074 = vpow2.f32 %v5643_v25  ;;  %v15825_v51 = vpop.eup %13064  ;;  %v5647_v24 = vmul.f32 1.442695, %v5616_v13 }
0x10e7   : > { %v15827_v9 = vpop.eup %13066 }
0x10e8   : > { %13076 = vpow2.f32 %v5647_v24  ;;  %5669 = vadd.xlane.f32.xlu1 %v15825_v51  ;;  %5667 = vadd.xlane.f32.xlu0 %v15827_v9 }
0x10ea   : > { %v15831_v58 = vpop.eup %13068 }
0x10eb   : > { %v15833_v10 = vpop.eup %13070 }
0x10ec   : > { %5673 = vadd.xlane.f32.xlu1 %v15833_v10  ;;  %5671 = vadd.xlane.f32.xlu0 %v15831_v58 }
0x10ef   : > { %v15837_v7 = vpop.eup %13072 }
0x10f0   : > { %v15839_v60 = vpop.eup %13074  ;;  %5677 = vadd.xlane.f32.xlu1 %v15837_v7 }
0x10f1   : > { %5675 = vadd.xlane.f32.xlu0 %v15839_v60 }
0x10f2   : > { %v15843_v61 = vpop.eup %13076 }
0x10f5   : > { %5679 = vadd.xlane.f32.xlu0 %v15843_v61 }
0x1101   : > { %5818 = vrot.lane.b32.xlu1 %v18464_v40, %s17903_s29 }
0x1105   : > { %5822 = vrot.lane.b32.xlu1 %v18465_v36, %s17903_s29 }
0x1109   : > { %5824 = vrot.lane.b32.xlu1 %v18466_v30, %s17903_s29 }
0x110b   : > { %5820 = vrot.lane.b32.xlu0 %v18467_v34, %s17903_s29 }
0x110d   : > { %5828 = vrot.lane.b32.xlu1 %v18468_v42, %s17903_s29 }
0x110f   : > { %5826 = vrot.lane.b32.xlu0 %v18469_v8, %s17903_s29 }
0x1111   : > { %5832 = vrot.lane.b32.xlu1 %v18470_v26, %s17903_s29 }
0x1113   : > { %5830 = vrot.lane.b32.xlu0 %v18471_v62, %s17903_s29 }
0x1160   : > { %v5650_v19 = vpop.xlane.xlu1 %5649 }
0x1161   : > { %13078 = vrcp.f32 %v5650_v19 }
0x1162   : > { %v5652_v18 = vpop.xlane.xlu0 %5651 }
0x1163   : > { %13080 = vrcp.f32 %v5652_v18 }
0x1164   : > { %v5654_v25 = vpop.xlane.xlu1 %5653 }
0x1165   : > { %13082 = vrcp.f32 %v5654_v25 }
0x1168   : > { %v5656_v37 = vpop.xlane.xlu0 %5655 }
0x1169   : > { %v5658_v13 = vpop.xlane.xlu1 %5657  ;;  %13084 = vrcp.f32 %v5656_v37 }
0x116a   : > { %13086 = vrcp.f32 %v5658_v13 }
0x116b   : > { %v13079_v24 = vpop.eup %13078 }
0x116c   : > { %v5697_v42 = vmul.f32 %v13079_v24, %v15789_v47 }
0x116d   : > { %v13081_v20 = vpop.eup %13080  ;;  %v5662_v5 = vpop.xlane.xlu1 %5661 }
0x116e   : > { %v5660_v8 = vpop.xlane.xlu0 %5659  ;;  %v5698_v26 = vmul.f32 %v13081_v20, %v15792_v33  ;;  %v15869_v20 = vld [vmem:[%s17742_s6 + $0x140] sm:$0xff]  }
0x116f   : > { %13088 = vrcp.f32 %v5660_v8  ;;  %v13083_v34 = vpop.eup %13082 }
0x1170   : > { %v5713_v62 = vpack.c.bf16 %v5698_v26, %v5697_v42  ;;  %13090 = vrcp.f32 %v5662_v5  ;;  %v5699_v37 = vmul.f32 %v13083_v34, %v15797_v31  ;;  %v15874_v31 = vld [vmem:[%s17738_s2] sm:$0xff]  }
0x1171   : > { %v5666_v19 = vpop.xlane.xlu1 %5665 }
0x1172   : > { %v5664_v18 = vpop.xlane.xlu0 %5663  ;;  %11724 = vmatprep.mubr.bf16.mxu1 %v5713_v62 }
0x1173   : > { %v13085_v25 = vpop.eup %13084  ;;  %13092 = vrcp.f32 %v5664_v18 }
0x1174   : > { %v5700_v30 = vmul.f32 %v13085_v25, %v15802_v15  ;;  %13094 = vrcp.f32 %v5666_v19  ;;  %v13087_v47 = vpop.eup %13086 }
0x1175   : > { %v5670_v13 = vpop.xlane.xlu1 %5669  ;;  %v5701_v15 = vmul.f32 %v13087_v47, %v15804_v46 }
0x1176   : > { %v5668_v36 = vpop.xlane.xlu0 %5667  ;;  %v5714_v40 = vpack.c.bf16 %v5700_v30, %v5699_v37 }
0x1177   : > { %13096 = vrcp.f32 %v5668_v36 }
0x1178   : > { %11725 = vmatmul.mubr.bf16.vlgmr.msra.gmra.mrb[232].mxu1 %v5714_v40  ;;  %13098 = vrcp.f32 %v5670_v13 }
0x1179   : > { %v13089_v5 = vpop.eup %13088  ;;  %v5674_v33 = vpop.xlane.xlu1 %5673  ;;  %11759 = vmatpush3.bf16.msra.mxu1 %v15874_v31 }
0x117a   : > { %v5672_v42 = vpop.xlane.xlu0 %5671  ;;  %v5702_v30 = vmul.f32 %v13089_v5, %v15812_v2  ;;  %12304 = vmatprep.subr.msk.bf16.mxu1 %vm18472_vm8, %v15869_v20  ;;  %v13091_v36 = vpop.eup %13090  ;;  %vm18475_vm8 = vmmov %vm18473_vm1 }
0x117b   : > { %13100 = vrcp.f32 %v5672_v42  ;;  %v5703_v62 = vmul.f32 %v13091_v36, %v15810_v4 }
0x117c   : > { %v5715_v40 = vpack.c.bf16 %v5702_v30, %v5701_v15  ;;  %13102 = vrcp.f32 %v5674_v33 }
0x117d   : > { %v13093_v34 = vpop.eup %13092  ;;  %v5678_v8 = vpop.xlane.xlu1 %5677 }
0x117e   : > { %v5676_v26 = vpop.xlane.xlu0 %5675  ;;  %11728 = vmatprep.mubr.bf16.mxu1 %v5715_v40  ;;  %v5704_v24 = vmul.f32 %v13093_v34, %v15818_v39  ;;  %v13095_v19 = vpop.eup %13094 }
0x117f   : > { %13104 = vrcp.f32 %v5676_v26  ;;  %v5705_v37 = vmul.f32 %v13095_v19, %v15820_v59  ;;  %v15893_v59 = vld [vmem:[%s17739_s3] sm:$0xff]  }
0x1180   : > { %13106 = vrcp.f32 %v5678_v8  ;;  %v5716_v46 = vpack.c.bf16 %v5704_v24, %v5703_v62 }
0x1181   : > { %v13097_v2 = vpop.eup %13096  ;;  %v5819_v25 = vpop.permute.xlu1 %5818 }
0x1182   : > { %v5680_v18 = vpop.xlane.xlu0 %5679  ;;  %11729 = vmatmul.mubr.bf16.gmra.mrb[236].mxu1 %v5716_v46  ;;  %11742 = vmatprep.mubr.msk.bf16.mxu0 %vm18473_vm1, %v5819_v25  ;;  %v5706_v13 = vmul.f32 %v13097_v2, %v15827_v9  ;;  %v13099_v47 = vpop.eup %13098 }
0x1183   : > { %13108 = vrcp.f32 %v5680_v18  ;;  %v5707_v42 = vmul.f32 %v13099_v47, %v15825_v51  ;;  %v12762_v47 = vld [vmem:[%s17742_s6 + $0x160] sm:$0xff]  }
0x1184   : > { %v5717_v5 = vpack.c.bf16 %v5706_v13, %v5705_v37 }
0x1185   : > { %v13101_v4 = vpop.eup %13100  ;;  %v5823_v39 = vpop.permute.xlu1 %5822 }
0x1186   : > { %v5821_v33 = vpop.permute.xlu0 %5820  ;;  %11732 = vmatprep.mubr.bf16.mxu1 %v5717_v5  ;;  %v5708_v15 = vmul.f32 %v13101_v4, %v15831_v58  ;;  %v13103_v30 = vpop.eup %13102  ;;  %v12763_v4 = vld [vmem:[%s17742_s6 + $0x168] sm:$0xff]  }
0x1187   : > { %11743 = vmatmul.mubr.msk.bf16.vlgmr.msra.gmra.mrb[232].mxu0 %vm18474_vm6, %v5821_v33  ;;  %v5709_v34 = vmul.f32 %v13103_v30, %v15833_v10  ;;  %vm18476_vm6 = vmmov %vm18473_vm1 }
0x1188   : > { %11746 = vmatprep.mubr.msk.bf16.mxu0 %vm18475_vm8, %v5823_v39  ;;  %11777 = vmatpush3.bf16.msra.mxu0 %v15893_v59  ;;  %v5718_v9 = vpack.c.bf16 %v5708_v15, %v5707_v42  ;;  %vm18477_vm8 = vmmov %vm18473_vm1  ;;  %v12765_v15 = vld [vmem:[%s17742_s6 + $0x178] sm:$0xff]  }
0x1189   : > { %v13105_v36 = vpop.eup %13104  ;;  %v5825_v8 = vpop.permute.xlu1 %5824 }
0x118a   : > { %v13107_v40 = vpop.eup %13106  ;;  %11733 = vmatmul.mubr.bf16.gmra.mrb[240].mxu1 %v5718_v9  ;;  %v5710_v51 = vmul.f32 %v13105_v36, %v15839_v60  ;;  %v5827_v62 = vpop.permute.xlu0 %5826  ;;  %v12759_v60 = vld [vmem:[%s17742_s6 + $0x148] sm:$0xff]  }
0x118b   : > { %v5711_v24 = vmul.f32 %v13107_v40, %v15837_v7  ;;  %v6255_v7 = vsel %vm18480_vm15, %v15869_v20, 0  ;;  %v12760_v20 = vld [vmem:[%s17742_s6 + $0x150] sm:$0xff]   ;;  %vm18486_vm15 = vmmov %vm18478_vm0 }
0x118c   : > { %v5719_v26 = vpack.c.bf16 %v5710_v51, %v5709_v34 }
0x118d   : > { %v13109_v58 = vpop.eup %13108  ;;  %v5829_v10 = vpop.permute.xlu1 %5828 }
0x118e   : > { %v5712_v19 = vmul.f32 %v13109_v58, %v15843_v61  ;;  %11736 = vmatprep.mubr.bf16.mxu1 %v5719_v26  ;;  %v5831_v2 = vpop.permute.xlu0 %5830 }
0x118f   : > { %11747 = vmatmul.mubr.msk.bf16.gmra.mrb[236].mxu0 %vm18473_vm1, %v5825_v8  ;;  %vm18481_vm1 = vmmov %vm18478_vm0 }
0x1190   : > { %v5720_v46 = vpack.c.bf16 %v5712_v19, %v5711_v24  ;;  %11750 = vmatprep.mubr.msk.bf16.mxu0 %vm18476_vm6, %v5827_v62  ;;  %vm18483_vm6 = vmmov %vm18478_vm0 }
0x1191   : > { %v5833_v61 = vpop.permute.xlu1 %5832 }
0x1192   : > { %11737 = vmatmul.mubr.bf16.gmra.mrb[244].mxu1 %v5720_v46 }
0x1193   : > { %11760 = vmatprep.mubr.msk.bf16.mxu1 %vm18477_vm8, %v5819_v25  ;;  %vm18484_vm8 = vmmov %vm18478_vm0 }
0x1197   : > { %11751 = vmatmul.mubr.msk.bf16.gmra.mrb[240].mxu0 %vm18478_vm0, %v5829_v10 }
0x1198   : > { %11754 = vmatprep.mubr.msk.bf16.mxu0 %vm18479_vm5, %v5831_v2  ;;  %vm18485_vm5 = vmmov %vm18478_vm0 }
0x1199   : > { %v6258_v18 = vsel %vm18485_vm5, %v12759_v60, 0  ;;  %vm18492_vm5 = vmmov %vm18478_vm0 }
0x119a   : > { %11761 = vmatmul.mubr.msk.bf16.vlgmr.msra.gmra.mrb[248].mxu1 %vm18481_vm1, %v5821_v33  ;;  %vm18489_vm1 = vmmov %vm18478_vm0 }
0x119b   : > { %11764 = vmatprep.mubr.msk.bf16.mxu1 %vm18482_vm10, %v5823_v39  ;;  %11795 = vmatpush3.bf16.xpose.msra.mxu1 %v6255_v7  ;;  %vm18488_vm10 = vmmov %vm18478_vm0 }
0x119c   : > { %12305 = vmatprep.subr.msk.bf16.mxu1 %vm18483_vm6, %v12759_v60  ;;  %vm18490_vm6 = vmmov %vm18478_vm0 }
0x119f   : > { %11755 = vmatmul.mubr.msk.bf16.gmra.mrb[244].mxu0 %vm18484_vm8, %v5833_v61  ;;  %vm18491_vm8 = vmmov %vm18478_vm0 }
0x11a0   : > { %11778 = vmatprep.mubr.msk.bf16.mxu0 %vm18478_vm0, %v5819_v25  ;;  %v6261_v37 = vsel %vm18491_vm8, %v12760_v20, 0  ;;  %v12761_v25 = vld [vmem:[%s17742_s6 + $0x158] sm:$0xff]   ;;  %vm18498_vm8 = vmmov %vm18478_vm0 }
0x11a2   : > { %11765 = vmatmul.mubr.msk.bf16.gmra.mrb[252].mxu1 %vm18486_vm15, %v5825_v8  ;;  %vm18493_vm15 = vmmov %vm18478_vm0 }
0x11a3   : > { %11768 = vmatprep.mubr.msk.bf16.mxu1 %vm18487_vm13, %v5827_v62  ;;  %11797 = vmatpush3.bf16.xpose.msra.mxu1 %v6258_v18  ;;  %vm18494_vm13 = vmmov %vm18478_vm0 }
0x11a4   : > { %12306 = vmatprep.subr.msk.bf16.mxu1 %vm18488_vm10, %v12760_v20  ;;  %vm18495_vm10 = vmmov %vm18478_vm0 }
0x11a7   : > { %11779 = vmatmul.mubr.msk.bf16.vlgmr.msra.gmra.mrb[248].mxu0 %vm18489_vm1, %v5821_v33  ;;  %vm18496_vm1 = vmmov %vm18478_vm0 }
0x11a8   : > { %11782 = vmatprep.mubr.msk.bf16.mxu0 %vm18490_vm6, %v5823_v39  ;;  %v6264_v13 = vsel %vm18496_vm1, %v12761_v25, 0  ;;  %vm18497_vm6 = vmmov %vm18478_vm0  ;;  %v12764_v39 = vld [vmem:[%s17742_s6 + $0x170] sm:$0xff]  }
0x11a9   : > { %vm18503_vm1 = vmmov %vm18478_vm0 }
0x11aa   : > { %11769 = vmatmul.mubr.msk.bf16.gmra.mrb[0].mxu1 %vm18478_vm0, %v5829_v10  ;;  %v6270_v33 = vsel %vm18503_vm1, %v12763_v4, 0  ;;  %vm18525_vm1 = vmmov %vm18478_vm0 }
0x11ab   : > { %11772 = vmatprep.mubr.msk.bf16.mxu1 %vm18492_vm5, %v5831_v2  ;;  %11799 = vmatpush3.bf16.xpose.msra.mxu1 %v6261_v37  ;;  %vm18499_vm5 = vmmov %vm18478_vm0 }
0x11ac   : > { %12307 = vmatprep.subr.msk.bf16.mxu1 %vm18493_vm15, %v12761_v25  ;;  %vm18500_vm15 = vmmov %vm18478_vm0 }
0x11ad   : > { %v6267_v5 = vsel %vm18500_vm15, %v12762_v47, 0  ;;  %vm18518_vm15 = vmmov %vm18478_vm0 }
0x11af   : > { %11783 = vmatmul.mubr.msk.bf16.gmra.mrb[252].mxu0 %vm18494_vm13, %v5825_v8  ;;  %vm18501_vm13 = vmmov %vm18478_vm0 }
0x11b0   : > { %11786 = vmatprep.mubr.msk.bf16.mxu0 %vm18495_vm10, %v5827_v62  ;;  %vm18502_vm10 = vmmov %vm18478_vm0 }
0x11b2   : > { %11773 = vmatmul.mubr.msk.bf16.gmra.mrb[4].mxu1 %vm18497_vm6, %v5833_v61  ;;  %vm18504_vm6 = vmmov %vm18478_vm0 }
0x11b3   : > { %11801 = vmatpush3.bf16.xpose.msra.mxu1 %v6264_v13 }
0x11b4   : > { %12308 = vmatprep.subr.msk.bf16.mxu1 %vm18498_vm8, %v12762_v47  ;;  %vm18505_vm8 = vmmov %vm18478_vm0 }
0x11b5   : > { %v6273_v42 = vsel %vm18505_vm8, %v12764_v39, 0  ;;  %vm18528_vm8 = vmmov %vm18478_vm0 }
0x11b7   : > { %11787 = vmatmul.mubr.msk.bf16.gmra.mrb[0].mxu0 %vm18478_vm0, %v5829_v10 }
0x11b8   : > { %11790 = vmatprep.mubr.msk.bf16.mxu0 %vm18499_vm5, %v5831_v2  ;;  %vm18506_vm5 = vmmov %vm18478_vm0 }
0x11b9   : > { %v6276_v30 = vsel %vm18506_vm5, %v12765_v15, 0  ;;  %vm18529_vm5 = vmmov %vm18478_vm0 }
0x11bb   : > { %11803 = vmatpush3.bf16.xpose.msra.mxu1 %v6267_v5 }
0x11bc   : > { %12309 = vmatprep.subr.msk.bf16.mxu1 %vm18501_vm13, %v12763_v4  ;;  %vm18519_vm13 = vmmov %vm18478_vm0 }
0x11bf   : > { %11791 = vmatmul.mubr.msk.bf16.gmra.mrb[4].mxu0 %vm18502_vm10, %v5833_v61  ;;  %vm18521_vm10 = vmmov %vm18478_vm0 }
0x11c3   : > { %11805 = vmatpush3.bf16.xpose.msra.mxu1 %v6270_v33 }
0x11c4   : > { %12310 = vmatprep.subr.msk.bf16.mxu1 %vm18504_vm6, %v12764_v39  ;;  %vm18527_vm6 = vmmov %vm18478_vm0 }
0x11cb   : > { %11807 = vmatpush3.bf16.xpose.msra.mxu1 %v6273_v42 }
0x11cc   : > { %12311 = vmatprep.subr.msk.bf16.mxu1 %vm18478_vm0, %v12765_v15 }
0x11d3   : > { %11809 = vmatpush3.bf16.xpose.msra.mxu1 %v6276_v30 }
0x124b   : > { %v15958_v9 = vpop.f32.mrb[232].mxu1 }
0x124c   : > { %18507 = vst [vmem:[#allocation84_spill] sm:$0xff] %v15958_v9  ;;  %v15960_v36 = vpop.f32.mrb[233].mxu1 }
0x124d   : > { %18508 = vst [vmem:[#allocation85_spill] sm:$0xff] %v15960_v36  ;;  %v15962_v40 = vpop.f32.mrb[234].mxu1 }
0x124e   : > { %18509 = vst [vmem:[#allocation86_spill] sm:$0xff] %v15962_v40  ;;  %v15966_v51 = vpop.f32.mrb[235].mxu1 }
0x124f   : > { %18510 = vst [vmem:[#allocation87_spill] sm:$0xff] %v15966_v51 }
0x1255   : > { %v15970_v58 = vpop.f32.mrb[236].mxu1 }
0x1256   : > { %18511 = vst [vmem:[#allocation88_spill] sm:$0xff] %v15970_v58  ;;  %v15972_v26 = vpop.f32.mrb[237].mxu1 }
0x1257   : > { %18512 = vst [vmem:[#allocation89_spill] sm:$0xff] %v15972_v26  ;;  %v15974_v62 = vpop.f32.mrb[238].mxu1 }
0x1258   : > { %18513 = vst [vmem:[#allocation90_spill] sm:$0xff] %v15974_v62  ;;  %v15978_v19 = vpop.f32.mrb[239].mxu1 }
0x1259   : > { %18514 = vst [vmem:[#allocation91_spill] sm:$0xff] %v15978_v19 }
0x125a   : > { %v11744_v10 = vpop.f32.mrb[232].mxu0 }
0x125b   : > { %v5892_v2 = vpop.f32.mrb[233].mxu0 }
0x125c   : > { %v11745_v7 = vpop.f32.mrb[234].mxu0 }
0x125d   : > { %v15982_v60 = vpack.c.bf16 %v11745_v7, %v11744_v10  ;;  %v5895_v61 = vpop.f32.mrb[235].mxu0  ;;  %v15984_v18 = vpop.f32.mrb[240].mxu1 }
0x125e   : > { %18515 = vst [vmem:[#allocation92_spill] sm:$0xff] %v15984_v18  ;;  %v6149_v20 = vpack.c.bf16 %v5895_v61, %v5892_v2  ;;  %v15986_v37 = vpop.f32.mrb[241].mxu1 }
0x125f   : > { %18516 = vst [vmem:[#allocation93_spill] sm:$0xff] %v15986_v37  ;;  %v15988_v25 = vpop.f32.mrb[242].mxu1 }
0x1260   : > { %18517 = vst [vmem:[#allocation94_spill] sm:$0xff] %v15988_v25  ;;  %11810 = vmatprep.mubr.msk.bf16.mxu1 %vm18518_vm15, %v6149_v20  ;;  %11842 = vmatprep.mubr.msk.bf16.mxu0 %vm18519_vm13, %v6149_v20  ;;  %v15994_v47 = vpop.f32.mrb[243].mxu1  ;;  %vm18530_vm15 = vmmov %vm18478_vm0 }
0x1261   : > { %18520 = vst [vmem:[#allocation95_spill] sm:$0xff] %v15994_v47  ;;  %11811 = vmatmul.mubr.msk.bf16.vlgmr.msra.gmra.mrb[8].mxu1 %vm18521_vm10, %v15982_v60  ;;  %vm18531_vm13 = vmmov %vm18478_vm0 }
0x1262   : > { %v11748_v4 = vpop.f32.mrb[236].mxu0  ;;  %vm18532_vm10 = vmmov %vm18478_vm0 }
0x1263   : > { %v5908_v33 = vpop.f32.mrb[237].mxu0 }
0x1264   : > { %v11749_v39 = vpop.f32.mrb[238].mxu0 }
0x1265   : > { %v16000_v42 = vpack.c.bf16 %v11749_v39, %v11748_v4  ;;  %v5911_v15 = vpop.f32.mrb[239].mxu0  ;;  %v16002_v30 = vpop.f32.mrb[244].mxu1 }
0x1266   : > { %18522 = vst [vmem:[#allocation96_spill] sm:$0xff] %v16002_v30  ;;  %v16004_v10 = vpack.c.bf16 %v5911_v15, %v5908_v33  ;;  %v16006_v2 = vpop.f32.mrb[245].mxu1 }
0x1267   : > { %18523 = vst [vmem:[#allocation97_spill] sm:$0xff] %v16006_v2  ;;  %v16008_v7 = vpop.f32.mrb[246].mxu1 }
0x1268   : > { %18524 = vst [vmem:[#allocation98_spill] sm:$0xff] %v16008_v7  ;;  %11814 = vmatprep.mubr.msk.bf16.mxu1 %vm18525_vm1, %v16004_v10  ;;  %v16014_v20 = vpop.f32.mrb[247].mxu1  ;;  %vm18533_vm1 = vmmov %vm18478_vm0 }
0x1269   : > { %18526 = vst [vmem:[#allocation99_spill] sm:$0xff] %v16014_v20  ;;  %11815 = vmatmul.mubr.msk.bf16.gmra.mrb[12].mxu1 %vm18527_vm6, %v16000_v42  ;;  %vm18534_vm6 = vmmov %vm18478_vm0 }
0x126a   : > { %v11752_v33 = vpop.f32.mrb[240].mxu0 }
0x126b   : > { %v5924_v39 = vpop.f32.mrb[241].mxu0 }
0x126c   : > { %v11753_v15 = vpop.f32.mrb[242].mxu0 }
0x126d   : > { %v16020_v5 = vpack.c.bf16 %v11753_v15, %v11752_v33  ;;  %v5927_v13 = vpop.f32.mrb[243].mxu0  ;;  %v11762_v24 = vpop.f32.mrb[248].mxu1 }
0x126e   : > { %v16022_v46 = vpack.c.bf16 %v5927_v13, %v5924_v39  ;;  %v5989_v8 = vpop.f32.mrb[249].mxu1 }
0x126f   : > { %v11763_v34 = vpop.f32.mrb[250].mxu1 }
0x1270   : > { %11818 = vmatprep.mubr.msk.bf16.mxu1 %vm18528_vm8, %v16022_v46  ;;  %v6158_v61 = vpack.c.bf16 %v11763_v34, %v11762_v24  ;;  %v5992_v30 = vpop.f32.mrb[251].mxu1  ;;  %vm18535_vm8 = vmmov %vm18478_vm0 }
0x1271   : > { %11819 = vmatmul.mubr.msk.bf16.gmra.mrb[16].mxu1 %vm18478_vm0, %v16020_v5  ;;  %v6157_v4 = vpack.c.bf16 %v5992_v30, %v5989_v8 }
0x1272   : > { %v11756_v2 = vpop.f32.mrb[244].mxu0 }
0x1273   : > { %v5940_v20 = vpop.f32.mrb[245].mxu0  ;;  %v6440_v33 = vsel %vm18529_vm5, %v6157_v4, 0  ;;  %12312 = vmatprep.subr.msk.bf16.mxu0 %vm18530_vm15, %v6157_v4  ;;  %vm18536_vm5 = vmmov %vm18478_vm0 }
0x1274   : > { %v11757_v13 = vpop.f32.mrb[246].mxu0  ;;  %11827 = vmatpush3.bf16.xpose.msra.mxu0 %v6440_v33  ;;  %v6443_v33 = vsel %vm18534_vm6, %v6158_v61, 0  ;;  %vm18537_vm15 = vmmov %vm18478_vm0 }
0x1275   : > { %v16030_v39 = vpack.c.bf16 %v11757_v13, %v11756_v2  ;;  %v5943_v15 = vpop.f32.mrb[247].mxu0  ;;  %v11766_v37 = vpop.f32.mrb[252].mxu1  ;;  %12313 = vmatprep.subr.msk.bf16.mxu0 %vm18531_vm13, %v6158_v61  ;;  %vm18538_vm13 = vmmov %vm18478_vm0 }
0x1276   : > { %v16032_v7 = vpack.c.bf16 %v5943_v15, %v5940_v20  ;;  %v6005_v34 = vpop.f32.mrb[253].mxu1  ;;  %vm18541_vm6 = vmmov %vm18478_vm0 }
0x1277   : > { %v11767_v24 = vpop.f32.mrb[254].mxu1 }
0x1278   : > { %11822 = vmatprep.mubr.msk.bf16.mxu1 %vm18532_vm10, %v16032_v7  ;;  %v6160_v8 = vpack.c.bf16 %v11767_v24, %v11766_v37  ;;  %v6008_v30 = vpop.f32.mrb[255].mxu1  ;;  %vm18539_vm10 = vmmov %vm18478_vm0 }
0x1279   : > { %11823 = vmatmul.mubr.msk.bf16.gmra.mrb[20].mxu1 %vm18533_vm1, %v16030_v39  ;;  %v6159_v4 = vpack.c.bf16 %v6008_v30, %v6005_v34  ;;  %vm18540_vm1 = vmmov %vm18478_vm0 }
0x127a   : > { %v11780_v2 = vpop.f32.mrb[248].mxu0 }
0x127b   : > { %v6086_v13 = vpop.f32.mrb[249].mxu0  ;;  %v6446_v61 = vsel %vm18478_vm0, %v6159_v4, 0 }
0x127c   : > { %v11781_v20 = vpop.f32.mrb[250].mxu0  ;;  %11829 = vmatpush3.bf16.xpose.msra.mxu0 %v6443_v33 }
0x127d   : > { %v6166_v15 = vpack.c.bf16 %v11781_v20, %v11780_v2  ;;  %v6089_v47 = vpop.f32.mrb[251].mxu0  ;;  %v11770_v18 = vpop.f32.mrb[0].mxu1  ;;  %12314 = vmatprep.subr.msk.bf16.mxu0 %vm18535_vm8, %v6159_v4  ;;  %v6449_v4 = vsel %vm18537_vm15, %v6160_v8, 0  ;;  %vm18542_vm8 = vmmov %vm18478_vm0 }
0x127e   : > { %v6165_v25 = vpack.c.bf16 %v6089_v47, %v6086_v13  ;;  %v6021_v26 = vpop.f32.mrb[1].mxu1  ;;  %vm18544_vm15 = vmmov %vm18478_vm0 }
0x127f   : > { %v11771_v19 = vpop.f32.mrb[2].mxu1 }
0x1280   : > { %11858 = vmatprep.subr.bf16.mxu1 %v6165_v25  ;;  %v6162_v37 = vpack.c.bf16 %v11771_v19, %v11770_v18  ;;  %v6024_v24 = vpop.f32.mrb[3].mxu1 }
0x1281   : > { %11859 = vmatpush3.bf16.msra.mxu1 %v6165_v25  ;;  %v6161_v58 = vpack.c.bf16 %v6024_v24, %v6021_v26 }
0x1282   : > { %v11784_v34 = vpop.f32.mrb[252].mxu0  ;;  %11860 = vmatprep.subr.bf16.mxu1 %v6166_v15 }
0x1283   : > { %v6102_v30 = vpop.f32.mrb[253].mxu0 }
0x1284   : > { %v11785_v62 = vpop.f32.mrb[254].mxu0  ;;  %11831 = vmatpush3.bf16.xpose.msra.mxu0 %v6446_v61 }
0x1285   : > { %v6168_v2 = vpack.c.bf16 %v11785_v62, %v11784_v34  ;;  %v6105_v33 = vpop.f32.mrb[255].mxu0  ;;  %11861 = vmatpush3.bf16.msra.mxu1 %v6166_v15  ;;  %v11774_v47 = vpop.f32.mrb[4].mxu1  ;;  %12315 = vmatprep.subr.msk.bf16.mxu0 %vm18536_vm5, %v6160_v8  ;;  %vm18543_vm5 = vmmov %vm18478_vm0 }
0x1286   : > { %v6167_v13 = vpack.c.bf16 %v6105_v33, %v6102_v30  ;;  %v6037_v20 = vpop.f32.mrb[5].mxu1  ;;  %v6452_v33 = vsel %vm18539_vm10, %v6161_v58, 0  ;;  %vm18546_vm10 = vmmov %vm18478_vm0 }
0x1287   : > { %v11775_v36 = vpop.f32.mrb[6].mxu1 }
0x1288   : > { %11862 = vmatprep.subr.bf16.mxu1 %v6167_v13  ;;  %v6164_v19 = vpack.c.bf16 %v11775_v36, %v11774_v47  ;;  %v6040_v18 = vpop.f32.mrb[7].mxu1 }
0x1289   : > { %11863 = vmatpush3.bf16.msra.mxu1 %v6167_v13  ;;  %v6163_v26 = vpack.c.bf16 %v6040_v18, %v6037_v20 }
0x128a   : > { %v11788_v25 = vpop.f32.mrb[0].mxu0  ;;  %11864 = vmatprep.subr.bf16.mxu1 %v6168_v2  ;;  %v6461_v18 = vsel %vm18544_vm15, %v6164_v19, 0  ;;  %vm18551_vm15 = vcmp.eq.s32.totalorder %v13783_v3, 1 }
0x128b   : > { %v6118_v24 = vpop.f32.mrb[1].mxu0 }
0x128c   : > { %v11789_v62 = vpop.f32.mrb[2].mxu0  ;;  %11833 = vmatpush3.bf16.xpose.msra.mxu0 %v6449_v4 }
0x128d   : > { %v6170_v34 = vpack.c.bf16 %v11789_v62, %v11788_v25  ;;  %v6121_v15 = vpop.f32.mrb[3].mxu0  ;;  %11865 = vmatpush3.bf16.msra.mxu1 %v6168_v2  ;;  %12316 = vmatprep.subr.msk.bf16.mxu0 %vm18538_vm13, %v6161_v58  ;;  %v6455_v2 = vsel %vm18541_vm6, %v6162_v37, 0  ;;  %v6458_v58 = vsel %vm18478_vm0, %v6163_v26, 0  ;;  %v13316_v25 = vld [vmem:[%s17737_s1] sm:$0xff]   ;;  %vm18545_vm13 = vmmov %vm18478_vm0 }
0x128e   : > { %v6169_v30 = vpack.c.bf16 %v6121_v15, %v6118_v24  ;;  %vm18548_vm6 = vmmov %vm18478_vm0 }
0x1290   : > { %11866 = vmatprep.subr.bf16.mxu1 %v6169_v30 }
0x1291   : > { %11867 = vmatpush3.bf16.msra.mxu1 %v6169_v30 }
0x1292   : > { %v11792_v61 = vpop.f32.mrb[4].mxu0  ;;  %11868 = vmatprep.subr.bf16.mxu1 %v6170_v34 }
0x1293   : > { %v6134_v36 = vpop.f32.mrb[5].mxu0 }
0x1294   : > { %v11793_v47 = vpop.f32.mrb[6].mxu0  ;;  %11835 = vmatpush3.bf16.xpose.msra.mxu0 %v6452_v33 }
0x1295   : > { %v6172_v13 = vpack.c.bf16 %v11793_v47, %v11792_v61  ;;  %v6137_v20 = vpop.f32.mrb[7].mxu0  ;;  %11869 = vmatpush3.bf16.msra.mxu1 %v6170_v34  ;;  %12317 = vmatprep.subr.msk.bf16.mxu0 %vm18540_vm1, %v6162_v37  ;;  %vm18547_vm1 = vmmov %vm18478_vm0 }
0x1296   : > { %v6171_v8 = vpack.c.bf16 %v6137_v20, %v6134_v36 }
0x1298   : > { %11870 = vmatprep.subr.bf16.mxu1 %v6171_v8 }
0x1299   : > { %11871 = vmatpush3.bf16.msra.mxu1 %v6171_v8 }
0x129a   : > { %11872 = vmatprep.subr.bf16.mxu1 %v6172_v13 }
0x129c   : > { %11837 = vmatpush3.bf16.xpose.msra.mxu0 %v6455_v2 }
0x129d   : > { %11873 = vmatpush3.bf16.msra.mxu1 %v6172_v13  ;;  %12318 = vmatprep.subr.msk.bf16.mxu0 %vm18542_vm8, %v6163_v26  ;;  %vm18549_vm8 = vmmov %vm18478_vm0 }
0x129e   : > { %11908 = vmatprep.subr.bf16.mxu1 %v15874_v31 }
0x12a4   : > { %11839 = vmatpush3.bf16.xpose.msra.mxu0 %v6458_v58 }
0x12a5   : > { %12319 = vmatprep.subr.msk.bf16.mxu0 %vm18543_vm5, %v6164_v19  ;;  %vm18550_vm5 = vmmov %vm18478_vm0 }
0x12ac   : > { %11841 = vmatpush3.bf16.xpose.msra.mxu0 %v6461_v18 }
0x12ad   : > { %11890 = vmatprep.subr.bf16.mxu0 %v13316_v25 }
0x12b3   : > { %11843 = vmatmul.mubr.msk.bf16.vlgmr.msra.gmra.mrb[8].mxu0 %vm18545_vm13, %v15982_v60  ;;  %vm18552_vm13 = vcmp.eq.s32.totalorder %v13787_v6, 1 }
0x12b4   : > { %11846 = vmatprep.mubr.msk.bf16.mxu0 %vm18546_vm10, %v16004_v10  ;;  %11891 = vmatpush3.bf16.msra.mxu0 %v13316_v25  ;;  %vm18553_vm10 = vcmp.eq.s32.totalorder %v13785_v43, 1 }
0x12b5   : > { %11926 = vmatprep.subr.bf16.mxu0 %v15893_v59 }
0x12bb   : > { %11847 = vmatmul.mubr.msk.bf16.gmra.mrb[12].mxu0 %vm18547_vm1, %v16000_v42  ;;  %vm18554_vm1 = vcmp.eq.s32.totalorder %v13789_v11, 1 }
0x12bc   : > { %11850 = vmatprep.mubr.msk.bf16.mxu0 %vm18548_vm6, %v16022_v46  ;;  %vm18555_vm6 = vcmp.eq.s32.totalorder %v13791_v14, 1 }
0x12c3   : > { %11851 = vmatmul.mubr.msk.bf16.gmra.mrb[16].mxu0 %vm18549_vm8, %v16020_v5  ;;  %vm18556_vm8 = vcmp.eq.s32.totalorder %v13797_v0, 1 }
0x12c4   : > { %11854 = vmatprep.mubr.msk.bf16.mxu0 %vm18478_vm0, %v16032_v7  ;;  %vm18557_vm0 = vcmp.eq.s32.totalorder %v13793_v17, 1 }
0x12cb   : > { %11855 = vmatmul.mubr.msk.bf16.gmra.mrb[20].mxu0 %vm18550_vm5, %v16030_v39  ;;  %vm18558_vm5 = vnez %v17994_v16 }
0x1334   : > { %v11812_v31 = vpop.f32.mrb[8].mxu1 }
0x1335   : > { %v6312_v60 = vpop.f32.mrb[9].mxu1 }
0x1336   : > { %6377 = vrot.lane.b32.xlu0 %v6312_v60, %s18212_s0  ;;  %v11813_v59 = vpop.f32.mrb[10].mxu1 }
0x1337   : > { %v6315_v10 = vpop.f32.mrb[11].mxu1 }
0x1338   : > { %6381 = vrot.lane.b32.xlu1 %v6315_v10, %s18213_s7 }
0x133a   : > { %6385 = vrot.lane.b32.xlu0 %v11812_v31, %s18214_s16 }
0x133c   : > { %6389 = vrot.lane.b32.xlu1 %v11813_v59, %s18215_s13  ;;  %v11816_v46 = vpop.f32.mrb[12].mxu1 }
0x133d   : > { %v6328_v5 = vpop.f32.mrb[13].mxu1 }
0x133e   : > { %6393 = vrot.lane.b32.xlu0 %v6328_v5, %s18216_s11  ;;  %v11817_v42 = vpop.f32.mrb[14].mxu1 }
0x133f   : > { %v6331_v7 = vpop.f32.mrb[15].mxu1 }
0x1340   : > { %6397 = vrot.lane.b32.xlu1 %v6331_v7, %s18217_s9 }
0x1342   : > { %6401 = vrot.lane.b32.xlu0 %v11816_v46, %s18091_s12 }
0x1344   : > { %6405 = vrot.lane.b32.xlu1 %v11817_v42, %s18092_s14  ;;  %v11820_v39 = vpop.f32.mrb[16].mxu1 }
0x1345   : > { %v6344_v37 = vpop.f32.mrb[17].mxu1 }
0x1346   : > { %6409 = vrot.lane.b32.xlu0 %v6344_v37, %s18093_s25  ;;  %v11821_v19 = vpop.f32.mrb[18].mxu1 }
0x1347   : > { %v6347_v26 = vpop.f32.mrb[19].mxu1 }
0x1348   : > { %6413 = vrot.lane.b32.xlu1 %v6347_v26, %s18094_s26 }
0x134a   : > { %6417 = vrot.lane.b32.xlu0 %v11820_v39, %s18095_s19 }
0x134c   : > { %6421 = vrot.lane.b32.xlu1 %v11821_v19, %s18096_s20  ;;  %v11824_v24 = vpop.f32.mrb[20].mxu1 }
0x134d   : > { %v6360_v4 = vpop.f32.mrb[21].mxu1 }
0x134e   : > { %6425 = vrot.lane.b32.xlu0 %v6360_v4, %s18097_s21  ;;  %v11825_v62 = vpop.f32.mrb[22].mxu1 }
0x134f   : > { %v6363_v34 = vpop.f32.mrb[23].mxu1 }
0x1350   : > { %6429 = vrot.lane.b32.xlu1 %v6363_v34, %s18098_s22 }
0x1352   : > { %6433 = vrot.lane.b32.xlu0 %v11824_v24, %s18099_s24 }
0x1354   : > { %6437 = vrot.lane.b32.xlu1 %v11825_v62, %s18100_s23 }
0x1386   : > { %v11844_v15 = vpop.f32.mrb[8].mxu0 }
0x1387   : > { %v6497_v30 = vpop.f32.mrb[9].mxu0  ;;  %v6562_v39 = vmul.f32 0.088388346, %v11844_v15 }
0x1388   : > { %v11845_v61 = vpop.f32.mrb[10].mxu0  ;;  %v6560_v10 = vmul.f32 0.088388346, %v6497_v30 }
0x1389   : > { %v6500_v36 = vpop.f32.mrb[11].mxu0  ;;  %v6563_v4 = vmul.f32 0.088388346, %v11845_v61 }
0x138a   : > { %v6561_v5 = vmul.f32 0.088388346, %v6500_v36 }
0x138e   : > { %v11848_v33 = vpop.f32.mrb[12].mxu0 }
0x138f   : > { %v6513_v47 = vpop.f32.mrb[13].mxu0 }
0x1390   : > { %v11849_v13 = vpop.f32.mrb[14].mxu0  ;;  %v6564_v36 = vmul.f32 0.088388346, %v6513_v47  ;;  %v6566_v47 = vmul.f32 0.088388346, %v11848_v33 }
0x1391   : > { %v6516_v20 = vpop.f32.mrb[15].mxu0 }
0x1396   : > { %v11852_v8 = vpop.f32.mrb[16].mxu0 }
0x1397   : > { %v6529_v2 = vpop.f32.mrb[17].mxu0 }
0x1398   : > { %v16087_v58 = vpop.f32.mrb[18].mxu0 }
0x1399   : > { %v6532_v18 = vpop.f32.mrb[19].mxu0 }
0x139e   : > { %v16089_v25 = vpop.f32.mrb[20].mxu0 }
0x139f   : > { %v16091_v31 = vpop.f32.mrb[21].mxu0 }
0x13a0   : > { %v16093_v60 = vpop.f32.mrb[22].mxu0 }
0x13a1   : > { %v16095_v59 = vpop.f32.mrb[23].mxu0 }
0x13a8   : > { %v6378_v46 = vpop.permute.xlu0 %6377 }
0x13a9   : > { %v6576_v42 = vadd.f32 %v6560_v10, %v6378_v46 }
0x13aa   : > { %v6382_v7 = vpop.permute.xlu1 %6381 }
0x13ab   : > { %v6577_v37 = vadd.f32 %v6561_v5, %v6382_v7  ;;  %v6592_v19 = vsel %vm13837_vm2, -1e+09, %v6576_v42  ;;  %v6565_v42 = vmul.f32 0.088388346, %v6516_v20 }
0x13ac   : > { %v6386_v26 = vpop.permute.xlu0 %6385  ;;  %v16101_v24 = vsel %vm18551_vm15, -1e+09, %v6592_v19  ;;  %vm18559_vm15 = vcmp.eq.s32.totalorder %v13799_v23, 1 }
0x13ad   : > { %v6578_v62 = vadd.f32 %v6562_v39, %v6386_v26  ;;  %6624 = vmax.xlane.f32.xlu0 %v16101_v24  ;;  %v6593_v34 = vsel %vm13842_vm3, -1e+09, %v6577_v37 }
0x13ae   : > { %v6390_v30 = vpop.permute.xlu1 %6389  ;;  %v16108_v15 = vsel %vm18552_vm13, -1e+09, %v6593_v34  ;;  %v6567_v34 = vmul.f32 0.088388346, %v11849_v13  ;;  %vm18560_vm13 = vcmp.eq.s32.totalorder %v13807_v27, 1 }
0x13af   : > { %v6579_v10 = vadd.f32 %v6563_v4, %v6390_v30  ;;  %6626 = vmax.xlane.f32.xlu1 %v16108_v15  ;;  %v6594_v46 = vsel %vm13847_vm4, -1e+09, %v6578_v62 }
0x13b0   : > { %v6394_v5 = vpop.permute.xlu0 %6393  ;;  %v16115_v61 = vsel %vm18553_vm10, -1e+09, %v6594_v46  ;;  %vm18561_vm10 = vnez %v17998_v28 }
0x13b1   : > { %v6580_v7 = vadd.f32 %v6564_v36, %v6394_v5  ;;  %6628 = vmax.xlane.f32.xlu0 %v16115_v61  ;;  %v6595_v39 = vsel %vm13871_vm7, -1e+09, %v6579_v10  ;;  %v6568_v10 = vmul.f32 0.088388346, %v6529_v2 }
0x13b2   : > { %v6398_v37 = vpop.permute.xlu1 %6397  ;;  %v16124_v62 = vsel %vm18554_vm1, -1e+09, %v6595_v39  ;;  %v6569_v39 = vmul.f32 0.088388346, %v6532_v18  ;;  %vm18562_vm1 = vnez %v17996_v57 }
0x13b3   : > { %v6581_v19 = vadd.f32 %v6565_v42, %v6398_v37  ;;  %v6596_v26 = vsel %vm13884_vm9, -1e+09, %v6580_v7 }
0x13b4   : > { %v6402_v4 = vpop.permute.xlu0 %6401  ;;  %v16128_v20 = vsel %vm18555_vm6, -1e+09, %v6596_v26  ;;  %vm18563_vm6 = vcmp.eq.s32.totalorder %v13815_v21, 1 }
0x13b5   : > { %v6582_v30 = vadd.f32 %v6566_v47, %v6402_v4  ;;  %6630 = vmax.xlane.f32.xlu0 %v16124_v62  ;;  %6632 = vmax.xlane.f32.xlu1 %v16128_v20  ;;  %v6597_v33 = vsel %vm13898_vm12, -1e+09, %v6581_v19  ;;  %v6570_v19 = vmul.f32 0.088388346, %v11852_v8 }
0x13b6   : > { %v6406_v36 = vpop.permute.xlu1 %6405  ;;  %v16142_v13 = vsel %vm18557_vm0, -1e+09, %v6597_v33  ;;  %v6571_v33 = vmul.f32 0.088388346, %v16087_v58  ;;  %vm18565_vm0 = vnez %v18116_v1 }
0x13b7   : > { %v6583_v46 = vadd.f32 %v6567_v34, %v6406_v36  ;;  %v6598_v5 = vsel %vm13893_vm11, -1e+09, %v6582_v30 }
0x13b8   : > { %v6410_v42 = vpop.permute.xlu0 %6409  ;;  %v16138_v7 = vsel %vm18556_vm8, -1e+09, %v6598_v5  ;;  %vm18564_vm8 = vcmp.eq.s32.totalorder %v18114_v35, 1 }
0x13b9   : > { %v6584_v37 = vadd.f32 %v6568_v10, %v6410_v42  ;;  %6636 = vmax.xlane.f32.xlu1 %v16138_v7  ;;  %6634 = vmax.xlane.f32.xlu0 %v16142_v13  ;;  %v6599_v2 = vsel %vm13923_vm14, -1e+09, %v6583_v46  ;;  %v6572_v46 = vmul.f32 0.088388346, %v16091_v31 }
0x13ba   : > { %v6414_v47 = vpop.permute.xlu1 %6413  ;;  %v16152_v30 = vsel %vm18559_vm15, -1e+09, %v6599_v2  ;;  %v6573_v2 = vmul.f32 0.088388346, %v16095_v59  ;;  %vm18566_vm15 = vnez %v18005_v63 }
0x13bb   : > { %v6585_v26 = vadd.f32 %v6569_v39, %v6414_v47  ;;  %v6600_v4 = vsel %vm18558_vm5, -1e+09, %v6584_v37 }
0x13bc   : > { %v6418_v34 = vpop.permute.xlu0 %6417  ;;  %v16156_v18 = vsel %vm18560_vm13, -1e+09, %v6600_v4  ;;  %vm18567_vm13 = vcmp.eq.s32.totalorder %v18119_v29, 1 }
0x13bd   : > { %v6586_v36 = vadd.f32 %v6570_v19, %v6418_v34  ;;  %6638 = vmax.xlane.f32.xlu0 %v16152_v30  ;;  %6640 = vmax.xlane.f32.xlu1 %v16156_v18  ;;  %v6601_v8 = vsel %vm18561_vm10, -1e+09, %v6585_v26  ;;  %v6574_v26 = vmul.f32 0.088388346, %v16089_v25 }
0x13be   : > { %v6422_v10 = vpop.permute.xlu1 %6421  ;;  %v16172_v58 = vsel %vm18564_vm8, -1e+09, %v6601_v8  ;;  %v6575_v8 = vmul.f32 0.088388346, %v16093_v60  ;;  %vm18569_vm8 = vnez %v18007_v49 }
0x13bf   : > { %v6587_v5 = vadd.f32 %v6571_v33, %v6422_v10  ;;  %v6602_v42 = vsel %vm18562_vm1, -1e+09, %v6586_v36 }
0x13c0   : > { %v6426_v39 = vpop.permute.xlu0 %6425  ;;  %v16168_v37 = vsel %vm18563_vm6, -1e+09, %v6602_v42  ;;  %vm18568_vm6 = vcmp.eq.s32.totalorder %v13825_v38, 1 }
0x13c1   : > { %v6588_v47 = vadd.f32 %v6572_v46, %v6426_v39  ;;  %6644 = vmax.xlane.f32.xlu1 %v16168_v37  ;;  %6642 = vmax.xlane.f32.xlu0 %v16172_v58  ;;  %v6603_v31 = vsel %vm18565_vm0, -1e+09, %v6587_v5  ;;  %vm18573_vm0 = vnez %v18351_v45 }
0x13c2   : > { %v6430_v19 = vpop.permute.xlu1 %6429  ;;  %v16184_v36 = vsel %vm18567_vm13, -1e+09, %v6603_v31  ;;  %vm18571_vm13 = vcmp.eq.s32.totalorder %v18238_v44, 1 }
0x13c3   : > { %v6589_v4 = vadd.f32 %v6573_v2, %v6430_v19  ;;  %v6604_v34 = vsel %vm18566_vm15, -1e+09, %v6588_v47  ;;  %vm18570_vm15 = vnez %v18009_v56 }
0x13c4   : > { %v6434_v33 = vpop.permute.xlu0 %6433  ;;  %v16188_v59 = vsel %vm18568_vm6, -1e+09, %v6604_v34  ;;  %vm18572_vm6 = vcmp.eq.s32.totalorder %v18240_v22, 1 }
0x13c5   : > { %v6590_v10 = vadd.f32 %v6574_v26, %v6434_v33  ;;  %6646 = vmax.xlane.f32.xlu0 %v16184_v36  ;;  %6648 = vmax.xlane.f32.xlu1 %v16188_v59  ;;  %v6605_v25 = vsel %vm18569_vm8, -1e+09, %v6589_v4  ;;  %vm18574_vm8 = vcmp.eq.s32.totalorder %v18353_v32, 1 }
0x13c6   : > { %v6438_v46 = vpop.permute.xlu1 %6437  ;;  %v16203_v60 = vsel %vm18572_vm6, -1e+09, %v6605_v25 }
0x13c7   : > { %v6591_v5 = vadd.f32 %v6575_v8, %v6438_v46  ;;  %v6606_v42 = vsel %vm18570_vm15, -1e+09, %v6590_v10 }
0x13c8   : > { %v16199_v39 = vsel %vm18571_vm13, -1e+09, %v6606_v42 }
0x13c9   : > { %6652 = vmax.xlane.f32.xlu1 %v16199_v39  ;;  %6650 = vmax.xlane.f32.xlu0 %v16203_v60  ;;  %v6607_v2 = vsel %vm18573_vm0, -1e+09, %v6591_v5 }
0x13ca   : > { %v16211_v47 = vsel %vm18574_vm8, -1e+09, %v6607_v2  ;;  %vm18583_vm8 = vcmask 130048  }
0x13cb   : > { %vm18584_vm13 = vmmov %vm18583_vm8 }
0x13cc   : > { %vm18585_vm6 = vmmov %vm18583_vm8 }
0x13cd   : > { %6654 = vmax.xlane.f32.xlu0 %v16211_v47  ;;  %vm18589_vm0 = vmmov %vm18585_vm6 }
0x13ce   : > { %vm18590_vm15 = vmmov %vm18589_vm0 }
0x13cf   : > { %vm18591_vm1 = vmmov %vm18589_vm0 }
0x13d0   : > { %vm18593_vm10 = vmmov %vm18589_vm0 }
0x13d1   : > { %vm18598_vm5 = vmmov %vm18589_vm0 }
0x143a   : > { %v6625_v31 = vpop.xlane.xlu0 %6624 }
0x143b   : > { %v6656_v19 = vsub.f32 %v16101_v24, %v6625_v31 }
0x143c   : > { %v6627_v26 = vpop.xlane.xlu1 %6626 }
0x143d   : > { %v6672_v4 = vmul.f32 1.442695, %v6656_v19  ;;  %v6657_v34 = vsub.f32 %v16108_v15, %v6627_v26 }
0x143e   : > { %v6629_v33 = vpop.xlane.xlu0 %6628 }
0x143f   : > { %13110 = vpow2.f32 %v6672_v4  ;;  %v6674_v8 = vmul.f32 1.442695, %v6657_v34  ;;  %v6658_v10 = vsub.f32 %v16115_v61, %v6629_v33 }
0x1441   : > { %13112 = vpow2.f32 %v6674_v8  ;;  %v6676_v25 = vmul.f32 1.442695, %v6658_v10 }
0x1442   : > { %v6631_v46 = vpop.xlane.xlu0 %6630  ;;  %v6633_v5 = vpop.xlane.xlu1 %6632 }
0x1443   : > { %13114 = vpow2.f32 %v6676_v25  ;;  %v6659_v42 = vsub.f32 %v16124_v62, %v6631_v46  ;;  %v6660_v2 = vsub.f32 %v16128_v20, %v6633_v5 }
0x1445   : > { %v6678_v51 = vmul.f32 1.442695, %v6659_v42  ;;  %v6680_v24 = vmul.f32 1.442695, %v6660_v2 }
0x1446   : > { %v6637_v31 = vpop.xlane.xlu1 %6636  ;;  %v6635_v19 = vpop.xlane.xlu0 %6634 }
0x1447   : > { %13116 = vpow2.f32 %v6678_v51  ;;  %v6662_v15 = vsub.f32 %v16138_v7, %v6637_v31  ;;  %v6661_v26 = vsub.f32 %v16142_v13, %v6635_v19 }
0x1448   : > { %13118 = vpow2.f32 %v6680_v24 }
0x1449   : > { %v16221_v61 = vpop.eup %13110  ;;  %v6684_v4 = vmul.f32 1.442695, %v6662_v15  ;;  %v6682_v34 = vmul.f32 1.442695, %v6661_v26 }
0x144a   : > { %v6639_v33 = vpop.xlane.xlu0 %6638  ;;  %v6641_v8 = vpop.xlane.xlu1 %6640  ;;  %6704 = vadd.xlane.f32.xlu1 %v16221_v61 }
0x144b   : > { %v16224_v62 = vpop.eup %13112  ;;  %13120 = vpow2.f32 %v6684_v4  ;;  %v6663_v20 = vsub.f32 %v16152_v30, %v6639_v33  ;;  %v6664_v51 = vsub.f32 %v16156_v18, %v6641_v8 }
0x144c   : > { %13122 = vpow2.f32 %v6682_v34  ;;  %6706 = vadd.xlane.f32.xlu0 %v16224_v62 }
0x144d   : > { %v16229_v7 = vpop.eup %13114  ;;  %v6686_v13 = vmul.f32 1.442695, %v6663_v20  ;;  %v6688_v10 = vmul.f32 1.442695, %v6664_v51 }
0x144e   : > { %v6645_v25 = vpop.xlane.xlu1 %6644  ;;  %v6643_v46 = vpop.xlane.xlu0 %6642  ;;  %6708 = vadd.xlane.f32.xlu1 %v16229_v7 }
0x144f   : > { %13124 = vpow2.f32 %v6686_v13  ;;  %v6666_v5 = vsub.f32 %v16168_v37, %v6645_v25  ;;  %v6665_v42 = vsub.f32 %v16172_v58, %v6643_v46 }
0x1450   : > { %13126 = vpow2.f32 %v6688_v10 }
0x1451   : > { %v16234_v30 = vpop.eup %13116  ;;  %v6692_v18 = vmul.f32 1.442695, %v6666_v5  ;;  %v6690_v2 = vmul.f32 1.442695, %v6665_v42 }
0x1452   : > { %v16236_v24 = vpop.eup %13118  ;;  %v6647_v31 = vpop.xlane.xlu0 %6646  ;;  %6710 = vadd.xlane.f32.xlu0 %v16234_v30 }
0x1453   : > { %v6649_v19 = vpop.xlane.xlu1 %6648  ;;  %13128 = vpow2.f32 %v6692_v18  ;;  %v6667_v15 = vsub.f32 %v16184_v36, %v6647_v31  ;;  %6712 = vadd.xlane.f32.xlu1 %v16236_v24 }
0x1454   : > { %v6668_v37 = vsub.f32 %v16188_v59, %v6649_v19  ;;  %13130 = vpow2.f32 %v6690_v2  ;;  %v18575_v19 = vld [vmem:[#allocation12_spill] sm:$0xff] }
0x1455   : > { %v16242_v58 = vpop.eup %13120  ;;  %v6694_v26 = vmul.f32 1.442695, %v6667_v15  ;;  %v18576_v15 = vld [vmem:[#allocation16_spill] sm:$0xff] }
0x1456   : > { %v6696_v4 = vmul.f32 1.442695, %v6668_v37  ;;  %v16244_v34 = vpop.eup %13122  ;;  %v6651_v8 = vpop.xlane.xlu0 %6650  ;;  %v18577_v37 = vld [vmem:[#allocation18_spill] sm:$0xff] }
0x1457   : > { %v6653_v33 = vpop.xlane.xlu1 %6652  ;;  %13132 = vpow2.f32 %v6694_v26  ;;  %6716 = vadd.xlane.f32.xlu1 %v16242_v58  ;;  %6714 = vadd.xlane.f32.xlu0 %v16244_v34  ;;  %v6669_v36 = vsub.f32 %v16203_v60, %v6651_v8  ;;  %v18578_v26 = vld [vmem:[#allocation14_spill] sm:$0xff]  ;;  %v18581_v8 = vld [vmem:[#allocation19_spill] sm:$0xff] }
0x1458   : > { %v6670_v20 = vsub.f32 %v16199_v39, %v6653_v33  ;;  %13134 = vpow2.f32 %v6696_v4  ;;  %v18579_v4 = vld [vmem:[#allocation15_spill] sm:$0xff]  ;;  %v18580_v33 = vld [vmem:[#allocation13_spill] sm:$0xff] }
0x1459   : > { %v16250_v59 = vpop.eup %13124  ;;  %v6698_v13 = vmul.f32 1.442695, %v6669_v36 }
0x145a   : > { %v6700_v51 = vmul.f32 1.442695, %v6670_v20  ;;  %v16252_v10 = vpop.eup %13126  ;;  %v6655_v25 = vpop.xlane.xlu0 %6654  ;;  %v18582_v20 = vld [vmem:[#allocation17_spill] sm:$0xff] }
0x145b   : > { %6720 = vadd.xlane.f32.xlu1 %v16252_v10  ;;  %6718 = vadd.xlane.f32.xlu0 %v16250_v59  ;;  %v6671_v46 = vsub.f32 %v16211_v47, %v6655_v25 }
0x145c   : > { %13136 = vpow2.f32 %v6700_v51 }
0x145d   : > { %13138 = vpow2.f32 %v6698_v13  ;;  %v16257_v39 = vpop.eup %13128  ;;  %v6702_v5 = vmul.f32 1.442695, %v6671_v46 }
0x145e   : > { %v16259_v60 = vpop.eup %13130 }
0x145f   : > { %13140 = vpow2.f32 %v6702_v5  ;;  %6724 = vadd.xlane.f32.xlu1 %v16257_v39  ;;  %6722 = vadd.xlane.f32.xlu0 %v16259_v60 }
0x1461   : > { %v16263_v42 = vpop.eup %13132 }
0x1462   : > { %v16265_v18 = vpop.eup %13134 }
0x1463   : > { %6728 = vadd.xlane.f32.xlu1 %v16265_v18  ;;  %6726 = vadd.xlane.f32.xlu0 %v16263_v42 }
0x1466   : > { %v16269_v47 = vpop.eup %13136 }
0x1467   : > { %v16271_v2 = vpop.eup %13138  ;;  %6732 = vadd.xlane.f32.xlu1 %v16269_v47 }
0x1468   : > { %6730 = vadd.xlane.f32.xlu0 %v16271_v2 }
0x1469   : > { %v16275_v31 = vpop.eup %13140 }
0x146c   : > { %6734 = vadd.xlane.f32.xlu0 %v16275_v31 }
0x1478   : > { %6873 = vrot.lane.b32.xlu1 %v18575_v19, %s17921_s17 }
0x147c   : > { %6877 = vrot.lane.b32.xlu1 %v18576_v15, %s17921_s17 }
0x1480   : > { %6879 = vrot.lane.b32.xlu1 %v18577_v37, %s17921_s17 }
0x1482   : > { %6875 = vrot.lane.b32.xlu0 %v18578_v26, %s17921_s17 }
0x1484   : > { %6883 = vrot.lane.b32.xlu1 %v18579_v4, %s17921_s17 }
0x1486   : > { %6881 = vrot.lane.b32.xlu0 %v18580_v33, %s17921_s17 }
0x1488   : > { %6887 = vrot.lane.b32.xlu1 %v18581_v8, %s17921_s17 }
0x148a   : > { %6885 = vrot.lane.b32.xlu0 %v18582_v20, %s17921_s17 }
0x14d7   : > { %v6705_v36 = vpop.xlane.xlu1 %6704 }
0x14d8   : > { %13142 = vrcp.f32 %v6705_v36 }
0x14d9   : > { %v6707_v51 = vpop.xlane.xlu0 %6706 }
0x14da   : > { %13144 = vrcp.f32 %v6707_v51 }
0x14db   : > { %v6709_v13 = vpop.xlane.xlu1 %6708 }
0x14dc   : > { %13146 = vrcp.f32 %v6709_v13 }
0x14df   : > { %v6711_v25 = vpop.xlane.xlu0 %6710 }
0x14e0   : > { %v6713_v46 = vpop.xlane.xlu1 %6712  ;;  %13148 = vrcp.f32 %v6711_v25 }
0x14e1   : > { %13150 = vrcp.f32 %v6713_v46 }
0x14e2   : > { %v13143_v5 = vpop.eup %13142 }
0x14e3   : > { %v6752_v4 = vmul.f32 %v13143_v5, %v16221_v61 }
0x14e4   : > { %v13145_v9 = vpop.eup %13144  ;;  %v6717_v40 = vpop.xlane.xlu1 %6716 }
0x14e5   : > { %v6715_v33 = vpop.xlane.xlu0 %6714  ;;  %v6753_v8 = vmul.f32 %v13145_v9, %v16224_v62  ;;  %v16301_v9 = vld [vmem:[%s17742_s6 + $0x180] sm:$0xff]  }
0x14e6   : > { %13152 = vrcp.f32 %v6715_v33  ;;  %v13147_v26 = vpop.eup %13146 }
0x14e7   : > { %v6768_v20 = vpack.c.bf16 %v6753_v8, %v6752_v4  ;;  %13154 = vrcp.f32 %v6717_v40  ;;  %v6754_v25 = vmul.f32 %v13147_v26, %v16229_v7  ;;  %v16306_v7 = vld [vmem:[%s17738_s2] sm:$0xff]  }
0x14e8   : > { %v6721_v36 = vpop.xlane.xlu1 %6720 }
0x14e9   : > { %v6719_v51 = vpop.xlane.xlu0 %6718  ;;  %11874 = vmatprep.mubr.bf16.mxu1 %v6768_v20 }
0x14ea   : > { %v13149_v13 = vpop.eup %13148  ;;  %13156 = vrcp.f32 %v6719_v51 }
0x14eb   : > { %v6755_v37 = vmul.f32 %v13149_v13, %v16234_v30  ;;  %13158 = vrcp.f32 %v6721_v36  ;;  %v13151_v61 = vpop.eup %13150 }
0x14ec   : > { %v6725_v46 = vpop.xlane.xlu1 %6724  ;;  %v6756_v30 = vmul.f32 %v13151_v61, %v16236_v24 }
0x14ed   : > { %v6723_v15 = vpop.xlane.xlu0 %6722  ;;  %v6769_v19 = vpack.c.bf16 %v6755_v37, %v6754_v25 }
0x14ee   : > { %13160 = vrcp.f32 %v6723_v15 }
0x14ef   : > { %11875 = vmatmul.mubr.bf16.vlgmr.msra.gmra.mrb[24].mxu1 %v6769_v19  ;;  %13162 = vrcp.f32 %v6725_v46 }
0x14f0   : > { %v13153_v40 = vpop.eup %13152  ;;  %v6729_v62 = vpop.xlane.xlu1 %6728  ;;  %11909 = vmatpush3.bf16.msra.mxu1 %v16306_v7 }
0x14f1   : > { %v6727_v4 = vpop.xlane.xlu0 %6726  ;;  %v6757_v37 = vmul.f32 %v13153_v40, %v16244_v34  ;;  %12320 = vmatprep.subr.msk.bf16.mxu1 %vm18583_vm8, %v16301_v9  ;;  %v13155_v15 = vpop.eup %13154  ;;  %vm18586_vm8 = vmmov %vm18585_vm6 }
0x14f2   : > { %13164 = vrcp.f32 %v6727_v4  ;;  %v6758_v20 = vmul.f32 %v13155_v15, %v16242_v58 }
0x14f3   : > { %v6770_v19 = vpack.c.bf16 %v6757_v37, %v6756_v30  ;;  %13166 = vrcp.f32 %v6729_v62 }
0x14f4   : > { %v13157_v26 = vpop.eup %13156  ;;  %v6733_v33 = vpop.xlane.xlu1 %6732 }
0x14f5   : > { %v6731_v8 = vpop.xlane.xlu0 %6730  ;;  %v6759_v5 = vmul.f32 %v13157_v26, %v16250_v59  ;;  %11878 = vmatprep.mubr.bf16.mxu1 %v6770_v19  ;;  %v13159_v36 = vpop.eup %13158 }
0x14f6   : > { %13168 = vrcp.f32 %v6731_v8  ;;  %v6760_v25 = vmul.f32 %v13159_v36, %v16252_v10  ;;  %v16325_v10 = vld [vmem:[%s17739_s3] sm:$0xff]  }
0x14f7   : > { %v6771_v24 = vpack.c.bf16 %v6759_v5, %v6758_v20  ;;  %13170 = vrcp.f32 %v6733_v33 }
0x14f8   : > { %v13161_v34 = vpop.eup %13160  ;;  %v6874_v13 = vpop.permute.xlu1 %6873 }
0x14f9   : > { %v6735_v51 = vpop.xlane.xlu0 %6734  ;;  %11879 = vmatmul.mubr.bf16.gmra.mrb[28].mxu1 %v6771_v24  ;;  %v6761_v46 = vmul.f32 %v13161_v34, %v16259_v60  ;;  %11892 = vmatprep.mubr.msk.bf16.mxu0 %vm18584_vm13, %v6874_v13  ;;  %v13163_v61 = vpop.eup %13162  ;;  %vm18587_vm13 = vmmov %vm18585_vm6 }
0x14fa   : > { %13172 = vrcp.f32 %v6735_v51  ;;  %v6762_v4 = vmul.f32 %v13163_v61, %v16257_v39  ;;  %v12770_v61 = vld [vmem:[%s17742_s6 + $0x1a0] sm:$0xff]  }
0x14fb   : > { %v6772_v58 = vpack.c.bf16 %v6761_v46, %v6760_v25 }
0x14fc   : > { %v13165_v40 = vpop.eup %13164  ;;  %v6878_v62 = vpop.permute.xlu1 %6877 }
0x14fd   : > { %v6876_v59 = vpop.permute.xlu0 %6875  ;;  %v6763_v30 = vmul.f32 %v13165_v40, %v16263_v42  ;;  %11882 = vmatprep.mubr.bf16.mxu1 %v6772_v58  ;;  %v13167_v37 = vpop.eup %13166  ;;  %v12771_v40 = vld [vmem:[%s17742_s6 + $0x1a8] sm:$0xff]  }
0x14fe   : > { %11893 = vmatmul.mubr.msk.bf16.vlgmr.msra.gmra.mrb[24].mxu0 %vm18585_vm6, %v6876_v59  ;;  %v6764_v39 = vmul.f32 %v13167_v37, %v16265_v18 }
0x14ff   : > { %11896 = vmatprep.mubr.msk.bf16.mxu0 %vm18586_vm8, %v6878_v62  ;;  %11927 = vmatpush3.bf16.msra.mxu0 %v16325_v10  ;;  %v6773_v60 = vpack.c.bf16 %v6763_v30, %v6762_v4  ;;  %vm18588_vm8 = vmmov %vm18585_vm6  ;;  %v12773_v30 = vld [vmem:[%s17742_s6 + $0x1b8] sm:$0xff]  }
0x1500   : > { %v13169_v15 = vpop.eup %13168  ;;  %v6880_v26 = vpop.permute.xlu1 %6879 }
0x1501   : > { %v13171_v19 = vpop.eup %13170  ;;  %11883 = vmatmul.mubr.bf16.gmra.mrb[32].mxu1 %v6773_v60  ;;  %v6765_v42 = vmul.f32 %v13169_v15, %v16271_v2  ;;  %v6882_v20 = vpop.permute.xlu0 %6881  ;;  %v12767_v2 = vld [vmem:[%s17742_s6 + $0x188] sm:$0xff]  }
0x1502   : > { %v6766_v5 = vmul.f32 %v13171_v19, %v16269_v47  ;;  %v7310_v47 = vsel %vm18591_vm1, %v16301_v9, 0  ;;  %v12768_v9 = vld [vmem:[%s17742_s6 + $0x190] sm:$0xff]   ;;  %vm18597_vm1 = vmmov %vm18589_vm0 }
0x1503   : > { %v6774_v8 = vpack.c.bf16 %v6765_v42, %v6764_v39 }
0x1504   : > { %v13173_v33 = vpop.eup %13172  ;;  %v6884_v18 = vpop.permute.xlu1 %6883 }
0x1505   : > { %v6767_v36 = vmul.f32 %v13173_v33, %v16275_v31  ;;  %11886 = vmatprep.mubr.bf16.mxu1 %v6774_v8  ;;  %v6886_v34 = vpop.permute.xlu0 %6885 }
0x1506   : > { %11897 = vmatmul.mubr.msk.bf16.gmra.mrb[28].mxu0 %vm18587_vm13, %v6880_v26  ;;  %vm18592_vm13 = vmmov %vm18589_vm0 }
0x1507   : > { %v6775_v24 = vpack.c.bf16 %v6767_v36, %v6766_v5  ;;  %11900 = vmatprep.mubr.msk.bf16.mxu0 %vm18585_vm6, %v6882_v20  ;;  %vm18594_vm6 = vmmov %vm18589_vm0 }
0x1508   : > { %v6888_v31 = vpop.permute.xlu1 %6887 }
0x1509   : > { %11887 = vmatmul.mubr.bf16.gmra.mrb[36].mxu1 %v6775_v24 }
0x150a   : > { %11910 = vmatprep.mubr.msk.bf16.mxu1 %vm18588_vm8, %v6874_v13  ;;  %vm18595_vm8 = vmmov %vm18589_vm0 }
0x150e   : > { %11901 = vmatmul.mubr.msk.bf16.gmra.mrb[32].mxu0 %vm18589_vm0, %v6884_v18 }
0x150f   : > { %11904 = vmatprep.mubr.msk.bf16.mxu0 %vm18590_vm15, %v6886_v34  ;;  %vm18596_vm15 = vmmov %vm18589_vm0 }
0x1510   : > { %v7313_v51 = vsel %vm18596_vm15, %v12767_v2, 0  ;;  %vm18603_vm15 = vmmov %vm18589_vm0 }
0x1511   : > { %11911 = vmatmul.mubr.msk.bf16.vlgmr.msra.gmra.mrb[40].mxu1 %vm18592_vm13, %v6876_v59  ;;  %vm18600_vm13 = vmmov %vm18589_vm0 }
0x1512   : > { %11914 = vmatprep.mubr.msk.bf16.mxu1 %vm18593_vm10, %v6878_v62  ;;  %11945 = vmatpush3.bf16.xpose.msra.mxu1 %v7310_v47  ;;  %vm18599_vm10 = vmmov %vm18589_vm0 }
0x1513   : > { %12321 = vmatprep.subr.msk.bf16.mxu1 %vm18594_vm6, %v12767_v2  ;;  %vm18601_vm6 = vmmov %vm18589_vm0 }
0x1516   : > { %11905 = vmatmul.mubr.msk.bf16.gmra.mrb[36].mxu0 %vm18595_vm8, %v6888_v31  ;;  %vm18602_vm8 = vmmov %vm18589_vm0 }
0x1517   : > { %11928 = vmatprep.mubr.msk.bf16.mxu0 %vm18589_vm0, %v6874_v13  ;;  %v7316_v25 = vsel %vm18602_vm8, %v12768_v9, 0  ;;  %v12769_v13 = vld [vmem:[%s17742_s6 + $0x198] sm:$0xff]   ;;  %vm18609_vm8 = vmmov %vm18589_vm0 }
0x1519   : > { %11915 = vmatmul.mubr.msk.bf16.gmra.mrb[44].mxu1 %vm18597_vm1, %v6880_v26  ;;  %vm18604_vm1 = vmmov %vm18589_vm0 }
0x151a   : > { %11918 = vmatprep.mubr.msk.bf16.mxu1 %vm18598_vm5, %v6882_v20  ;;  %11947 = vmatpush3.bf16.xpose.msra.mxu1 %v7313_v51  ;;  %vm18605_vm5 = vmmov %vm18589_vm0 }
0x151b   : > { %12322 = vmatprep.subr.msk.bf16.mxu1 %vm18599_vm10, %v12768_v9  ;;  %vm18606_vm10 = vmmov %vm18589_vm0 }
0x151e   : > { %11929 = vmatmul.mubr.msk.bf16.vlgmr.msra.gmra.mrb[40].mxu0 %vm18600_vm13, %v6876_v59  ;;  %vm18607_vm13 = vmmov %vm18589_vm0 }
0x151f   : > { %11932 = vmatprep.mubr.msk.bf16.mxu0 %vm18601_vm6, %v6878_v62  ;;  %v7319_v46 = vsel %vm18607_vm13, %v12769_v13, 0  ;;  %vm18608_vm6 = vmmov %vm18589_vm0  ;;  %v12772_v62 = vld [vmem:[%s17742_s6 + $0x1b0] sm:$0xff]  }
0x1520   : > { %vm18614_vm13 = vmmov %vm18589_vm0 }
0x1521   : > { %11919 = vmatmul.mubr.msk.bf16.gmra.mrb[48].mxu1 %vm18589_vm0, %v6884_v18  ;;  %v7325_v59 = vsel %vm18614_vm13, %v12771_v40, 0  ;;  %vm18636_vm13 = vmmov %vm18589_vm0 }
0x1522   : > { %11922 = vmatprep.mubr.msk.bf16.mxu1 %vm18603_vm15, %v6886_v34  ;;  %11949 = vmatpush3.bf16.xpose.msra.mxu1 %v7316_v25  ;;  %vm18610_vm15 = vmmov %vm18589_vm0 }
0x1523   : > { %12323 = vmatprep.subr.msk.bf16.mxu1 %vm18604_vm1, %v12769_v13  ;;  %vm18611_vm1 = vmmov %vm18589_vm0 }
0x1524   : > { %v7322_v58 = vsel %vm18611_vm1, %v12770_v61, 0  ;;  %vm18629_vm1 = vmmov %vm18589_vm0 }
0x1526   : > { %11933 = vmatmul.mubr.msk.bf16.gmra.mrb[44].mxu0 %vm18605_vm5, %v6880_v26  ;;  %vm18612_vm5 = vmmov %vm18589_vm0 }
0x1527   : > { %11936 = vmatprep.mubr.msk.bf16.mxu0 %vm18606_vm10, %v6882_v20  ;;  %vm18613_vm10 = vmmov %vm18589_vm0 }
0x1529   : > { %11923 = vmatmul.mubr.msk.bf16.gmra.mrb[52].mxu1 %vm18608_vm6, %v6888_v31  ;;  %vm18615_vm6 = vmmov %vm18589_vm0 }
0x152a   : > { %11951 = vmatpush3.bf16.xpose.msra.mxu1 %v7319_v46 }
0x152b   : > { %12324 = vmatprep.subr.msk.bf16.mxu1 %vm18609_vm8, %v12770_v61  ;;  %vm18616_vm8 = vmmov %vm18589_vm0 }
0x152c   : > { %v7328_v4 = vsel %vm18616_vm8, %v12772_v62, 0  ;;  %vm18639_vm8 = vmmov %vm18589_vm0 }
0x152e   : > { %11937 = vmatmul.mubr.msk.bf16.gmra.mrb[48].mxu0 %vm18589_vm0, %v6884_v18 }
0x152f   : > { %11940 = vmatprep.mubr.msk.bf16.mxu0 %vm18610_vm15, %v6886_v34  ;;  %vm18617_vm15 = vmmov %vm18589_vm0 }
0x1530   : > { %v7331_v37 = vsel %vm18617_vm15, %v12773_v30, 0  ;;  %vm18640_vm15 = vmmov %vm18589_vm0 }
0x1532   : > { %11953 = vmatpush3.bf16.xpose.msra.mxu1 %v7322_v58 }
0x1533   : > { %12325 = vmatprep.subr.msk.bf16.mxu1 %vm18612_vm5, %v12771_v40  ;;  %vm18630_vm5 = vmmov %vm18589_vm0 }
0x1536   : > { %11941 = vmatmul.mubr.msk.bf16.gmra.mrb[52].mxu0 %vm18613_vm10, %v6888_v31  ;;  %vm18632_vm10 = vmmov %vm18589_vm0 }
0x153a   : > { %11955 = vmatpush3.bf16.xpose.msra.mxu1 %v7325_v59 }
0x153b   : > { %12326 = vmatprep.subr.msk.bf16.mxu1 %vm18615_vm6, %v12772_v62  ;;  %vm18638_vm6 = vmmov %vm18589_vm0 }
0x1542   : > { %11957 = vmatpush3.bf16.xpose.msra.mxu1 %v7328_v4 }
0x1543   : > { %12327 = vmatprep.subr.msk.bf16.mxu1 %vm18589_vm0, %v12773_v30 }
0x154a   : > { %11959 = vmatpush3.bf16.xpose.msra.mxu1 %v7331_v37 }
0x15c2   : > { %v16390_v60 = vpop.f32.mrb[24].mxu1 }
0x15c3   : > { %18618 = vst [vmem:[#allocation100_spill] sm:$0xff] %v16390_v60  ;;  %v16392_v15 = vpop.f32.mrb[25].mxu1 }
0x15c4   : > { %18619 = vst [vmem:[#allocation101_spill] sm:$0xff] %v16392_v15  ;;  %v16394_v19 = vpop.f32.mrb[26].mxu1 }
0x15c5   : > { %18620 = vst [vmem:[#allocation102_spill] sm:$0xff] %v16394_v19  ;;  %v16398_v42 = vpop.f32.mrb[27].mxu1 }
0x15c6   : > { %18621 = vst [vmem:[#allocation103_spill] sm:$0xff] %v16398_v42 }
0x15cc   : > { %v16402_v33 = vpop.f32.mrb[28].mxu1 }
0x15cd   : > { %18622 = vst [vmem:[#allocation104_spill] sm:$0xff] %v16402_v33  ;;  %v16404_v8 = vpop.f32.mrb[29].mxu1 }
0x15ce   : > { %18623 = vst [vmem:[#allocation105_spill] sm:$0xff] %v16404_v8  ;;  %v16406_v20 = vpop.f32.mrb[30].mxu1 }
0x15cf   : > { %18624 = vst [vmem:[#allocation106_spill] sm:$0xff] %v16406_v20  ;;  %v16410_v36 = vpop.f32.mrb[31].mxu1 }
0x15d0   : > { %18625 = vst [vmem:[#allocation107_spill] sm:$0xff] %v16410_v36 }
0x15d1   : > { %v11894_v18 = vpop.f32.mrb[24].mxu0 }
0x15d2   : > { %v6947_v34 = vpop.f32.mrb[25].mxu0 }
0x15d3   : > { %v11895_v47 = vpop.f32.mrb[26].mxu0 }
0x15d4   : > { %v16414_v2 = vpack.c.bf16 %v11895_v47, %v11894_v18  ;;  %v6950_v31 = vpop.f32.mrb[27].mxu0  ;;  %v16416_v51 = vpop.f32.mrb[32].mxu1 }
0x15d5   : > { %18626 = vst [vmem:[#allocation108_spill] sm:$0xff] %v16416_v51  ;;  %v7204_v9 = vpack.c.bf16 %v6950_v31, %v6947_v34  ;;  %v16418_v25 = vpop.f32.mrb[33].mxu1 }
0x15d6   : > { %18627 = vst [vmem:[#allocation109_spill] sm:$0xff] %v16418_v25  ;;  %v16420_v13 = vpop.f32.mrb[34].mxu1 }
0x15d7   : > { %18628 = vst [vmem:[#allocation110_spill] sm:$0xff] %v16420_v13  ;;  %11960 = vmatprep.mubr.msk.bf16.mxu1 %vm18629_vm1, %v7204_v9  ;;  %11992 = vmatprep.mubr.msk.bf16.mxu0 %vm18630_vm5, %v7204_v9  ;;  %v16426_v61 = vpop.f32.mrb[35].mxu1  ;;  %vm18641_vm1 = vmmov %vm18589_vm0 }
0x15d8   : > { %18631 = vst [vmem:[#allocation111_spill] sm:$0xff] %v16426_v61  ;;  %11961 = vmatmul.mubr.msk.bf16.vlgmr.msra.gmra.mrb[56].mxu1 %vm18632_vm10, %v16414_v2  ;;  %vm18642_vm5 = vmmov %vm18589_vm0 }
0x15d9   : > { %v11898_v40 = vpop.f32.mrb[28].mxu0  ;;  %vm18643_vm10 = vmmov %vm18589_vm0 }
0x15da   : > { %v6963_v59 = vpop.f32.mrb[29].mxu0 }
0x15db   : > { %v11899_v62 = vpop.f32.mrb[30].mxu0 }
0x15dc   : > { %v16432_v4 = vpack.c.bf16 %v11899_v62, %v11898_v40  ;;  %v6966_v30 = vpop.f32.mrb[31].mxu0  ;;  %v16434_v37 = vpop.f32.mrb[36].mxu1 }
0x15dd   : > { %18633 = vst [vmem:[#allocation112_spill] sm:$0xff] %v16434_v37  ;;  %v16436_v18 = vpack.c.bf16 %v6966_v30, %v6963_v59  ;;  %v16438_v34 = vpop.f32.mrb[37].mxu1 }
0x15de   : > { %18634 = vst [vmem:[#allocation113_spill] sm:$0xff] %v16438_v34  ;;  %v16440_v47 = vpop.f32.mrb[38].mxu1 }
0x15df   : > { %18635 = vst [vmem:[#allocation114_spill] sm:$0xff] %v16440_v47  ;;  %11964 = vmatprep.mubr.msk.bf16.mxu1 %vm18636_vm13, %v16436_v18  ;;  %v16446_v9 = vpop.f32.mrb[39].mxu1  ;;  %vm18644_vm13 = vmmov %vm18589_vm0 }
0x15e0   : > { %18637 = vst [vmem:[#allocation115_spill] sm:$0xff] %v16446_v9  ;;  %11965 = vmatmul.mubr.msk.bf16.gmra.mrb[60].mxu1 %vm18638_vm6, %v16432_v4  ;;  %vm18645_vm6 = vmmov %vm18589_vm0 }
0x15e1   : > { %v11902_v59 = vpop.f32.mrb[32].mxu0 }
0x15e2   : > { %v6979_v62 = vpop.f32.mrb[33].mxu0 }
0x15e3   : > { %v11903_v30 = vpop.f32.mrb[34].mxu0 }
0x15e4   : > { %v16452_v58 = vpack.c.bf16 %v11903_v30, %v11902_v59  ;;  %v6982_v46 = vpop.f32.mrb[35].mxu0  ;;  %v11912_v5 = vpop.f32.mrb[40].mxu1 }
0x15e5   : > { %v16454_v24 = vpack.c.bf16 %v6982_v46, %v6979_v62  ;;  %v7044_v26 = vpop.f32.mrb[41].mxu1 }
0x15e6   : > { %v11913_v39 = vpop.f32.mrb[42].mxu1 }
0x15e7   : > { %11968 = vmatprep.mubr.msk.bf16.mxu1 %vm18639_vm8, %v16454_v24  ;;  %v7213_v31 = vpack.c.bf16 %v11913_v39, %v11912_v5  ;;  %v7047_v37 = vpop.f32.mrb[43].mxu1  ;;  %vm18646_vm8 = vmmov %vm18589_vm0 }
0x15e8   : > { %11969 = vmatmul.mubr.msk.bf16.gmra.mrb[64].mxu1 %vm18589_vm0, %v16452_v58  ;;  %v7212_v40 = vpack.c.bf16 %v7047_v37, %v7044_v26 }
0x15e9   : > { %v11906_v34 = vpop.f32.mrb[36].mxu0 }
0x15ea   : > { %v6995_v9 = vpop.f32.mrb[37].mxu0  ;;  %v7495_v59 = vsel %vm18640_vm15, %v7212_v40, 0  ;;  %12328 = vmatprep.subr.msk.bf16.mxu0 %vm18641_vm1, %v7212_v40  ;;  %vm18647_vm15 = vmmov %vm18589_vm0 }
0x15eb   : > { %v11907_v46 = vpop.f32.mrb[38].mxu0  ;;  %11977 = vmatpush3.bf16.xpose.msra.mxu0 %v7495_v59  ;;  %v7498_v59 = vsel %vm18645_vm6, %v7213_v31, 0  ;;  %vm18648_vm1 = vmmov %vm18589_vm0 }
0x15ec   : > { %v16462_v62 = vpack.c.bf16 %v11907_v46, %v11906_v34  ;;  %v6998_v30 = vpop.f32.mrb[39].mxu0  ;;  %v11916_v25 = vpop.f32.mrb[44].mxu1  ;;  %12329 = vmatprep.subr.msk.bf16.mxu0 %vm18642_vm5, %v7213_v31  ;;  %vm18649_vm5 = vmmov %vm18589_vm0 }
0x15ed   : > { %v16464_v47 = vpack.c.bf16 %v6998_v30, %v6995_v9  ;;  %v7060_v39 = vpop.f32.mrb[45].mxu1  ;;  %vm18652_vm6 = vmmov %vm18589_vm0 }
0x15ee   : > { %v11917_v5 = vpop.f32.mrb[46].mxu1 }
0x15ef   : > { %11972 = vmatprep.mubr.msk.bf16.mxu1 %vm18643_vm10, %v16464_v47  ;;  %v7215_v26 = vpack.c.bf16 %v11917_v5, %v11916_v25  ;;  %v7063_v37 = vpop.f32.mrb[47].mxu1  ;;  %vm18650_vm10 = vmmov %vm18589_vm0 }
0x15f0   : > { %11973 = vmatmul.mubr.msk.bf16.gmra.mrb[68].mxu1 %vm18644_vm13, %v16462_v62  ;;  %v7214_v40 = vpack.c.bf16 %v7063_v37, %v7060_v39  ;;  %vm18651_vm13 = vmmov %vm18589_vm0 }
0x15f1   : > { %v11930_v34 = vpop.f32.mrb[40].mxu0 }
0x15f2   : > { %v7141_v46 = vpop.f32.mrb[41].mxu0  ;;  %v7501_v31 = vsel %vm18589_vm0, %v7214_v40, 0 }
0x15f3   : > { %v11931_v9 = vpop.f32.mrb[42].mxu0  ;;  %11979 = vmatpush3.bf16.xpose.msra.mxu0 %v7498_v59 }
0x15f4   : > { %v7221_v30 = vpack.c.bf16 %v11931_v9, %v11930_v34  ;;  %v7144_v61 = vpop.f32.mrb[43].mxu0  ;;  %v11920_v51 = vpop.f32.mrb[48].mxu1  ;;  %12330 = vmatprep.subr.msk.bf16.mxu0 %vm18646_vm8, %v7214_v40  ;;  %v7504_v40 = vsel %vm18648_vm1, %v7215_v26, 0  ;;  %vm18653_vm8 = vmmov %vm18589_vm0 }
0x15f5   : > { %v7220_v13 = vpack.c.bf16 %v7144_v61, %v7141_v46  ;;  %v7076_v8 = vpop.f32.mrb[49].mxu1  ;;  %vm18655_vm1 = vmmov %vm18589_vm0 }
0x15f6   : > { %v11921_v36 = vpop.f32.mrb[50].mxu1 }
0x15f7   : > { %12008 = vmatprep.subr.bf16.mxu1 %v7220_v13  ;;  %v7217_v25 = vpack.c.bf16 %v11921_v36, %v11920_v51  ;;  %v7079_v5 = vpop.f32.mrb[51].mxu1 }
0x15f8   : > { %12009 = vmatpush3.bf16.msra.mxu1 %v7220_v13  ;;  %v7216_v33 = vpack.c.bf16 %v7079_v5, %v7076_v8 }
0x15f9   : > { %v11934_v39 = vpop.f32.mrb[44].mxu0  ;;  %12010 = vmatprep.subr.bf16.mxu1 %v7221_v30 }
0x15fa   : > { %v7157_v37 = vpop.f32.mrb[45].mxu0 }
0x15fb   : > { %v11935_v20 = vpop.f32.mrb[46].mxu0  ;;  %11981 = vmatpush3.bf16.xpose.msra.mxu0 %v7501_v31 }
0x15fc   : > { %v7223_v34 = vpack.c.bf16 %v11935_v20, %v11934_v39  ;;  %v7160_v59 = vpop.f32.mrb[47].mxu0  ;;  %12011 = vmatpush3.bf16.msra.mxu1 %v7221_v30  ;;  %v11924_v61 = vpop.f32.mrb[52].mxu1  ;;  %12331 = vmatprep.subr.msk.bf16.mxu0 %vm18647_vm15, %v7215_v26  ;;  %vm18654_vm15 = vmmov %vm18589_vm0 }
0x15fd   : > { %v7222_v46 = vpack.c.bf16 %v7160_v59, %v7157_v37  ;;  %v7092_v9 = vpop.f32.mrb[53].mxu1  ;;  %v7507_v59 = vsel %vm18650_vm10, %v7216_v33, 0  ;;  %vm18657_vm10 = vmmov %vm18589_vm0 }
0x15fe   : > { %v11925_v15 = vpop.f32.mrb[54].mxu1 }
0x15ff   : > { %12012 = vmatprep.subr.bf16.mxu1 %v7222_v46  ;;  %v7219_v36 = vpack.c.bf16 %v11925_v15, %v11924_v61  ;;  %v7095_v51 = vpop.f32.mrb[55].mxu1 }
0x1600   : > { %12013 = vmatpush3.bf16.msra.mxu1 %v7222_v46  ;;  %v7218_v8 = vpack.c.bf16 %v7095_v51, %v7092_v9 }
0x1601   : > { %v11938_v13 = vpop.f32.mrb[48].mxu0  ;;  %12014 = vmatprep.subr.bf16.mxu1 %v7223_v34  ;;  %v7516_v51 = vsel %vm18655_vm1, %v7219_v36, 0  ;;  %vm18662_vm1 = vcmp.eq.s32.totalorder %v13783_v3, 1 }
0x1602   : > { %v7173_v5 = vpop.f32.mrb[49].mxu0 }
0x1603   : > { %v11939_v20 = vpop.f32.mrb[50].mxu0  ;;  %11983 = vmatpush3.bf16.xpose.msra.mxu0 %v7504_v40 }
0x1604   : > { %v7225_v39 = vpack.c.bf16 %v11939_v20, %v11938_v13  ;;  %v7176_v30 = vpop.f32.mrb[51].mxu0  ;;  %12015 = vmatpush3.bf16.msra.mxu1 %v7223_v34  ;;  %12332 = vmatprep.subr.msk.bf16.mxu0 %vm18649_vm5, %v7216_v33  ;;  %v7510_v34 = vsel %vm18652_vm6, %v7217_v25, 0  ;;  %v7513_v33 = vsel %vm18589_vm0, %v7218_v8, 0  ;;  %v13319_v13 = vld [vmem:[%s17737_s1] sm:$0xff]   ;;  %vm18656_vm5 = vmmov %vm18589_vm0 }
0x1605   : > { %v7224_v37 = vpack.c.bf16 %v7176_v30, %v7173_v5  ;;  %vm18659_vm6 = vmmov %vm18589_vm0 }
0x1607   : > { %12016 = vmatprep.subr.bf16.mxu1 %v7224_v37 }
0x1608   : > { %12017 = vmatpush3.bf16.msra.mxu1 %v7224_v37 }
0x1609   : > { %v11942_v31 = vpop.f32.mrb[52].mxu0  ;;  %12018 = vmatprep.subr.bf16.mxu1 %v7225_v39 }
0x160a   : > { %v7189_v15 = vpop.f32.mrb[53].mxu0 }
0x160b   : > { %v11943_v61 = vpop.f32.mrb[54].mxu0  ;;  %11985 = vmatpush3.bf16.xpose.msra.mxu0 %v7507_v59 }
0x160c   : > { %v7227_v46 = vpack.c.bf16 %v11943_v61, %v11942_v31  ;;  %v7192_v9 = vpop.f32.mrb[55].mxu0  ;;  %12019 = vmatpush3.bf16.msra.mxu1 %v7225_v39  ;;  %12333 = vmatprep.subr.msk.bf16.mxu0 %vm18651_vm13, %v7217_v25  ;;  %vm18658_vm13 = vmmov %vm18589_vm0 }
0x160d   : > { %v7226_v26 = vpack.c.bf16 %v7192_v9, %v7189_v15 }
0x160f   : > { %12020 = vmatprep.subr.bf16.mxu1 %v7226_v26 }
0x1610   : > { %12021 = vmatpush3.bf16.msra.mxu1 %v7226_v26 }
0x1611   : > { %12022 = vmatprep.subr.bf16.mxu1 %v7227_v46 }
0x1613   : > { %11987 = vmatpush3.bf16.xpose.msra.mxu0 %v7510_v34 }
0x1614   : > { %12023 = vmatpush3.bf16.msra.mxu1 %v7227_v46  ;;  %12334 = vmatprep.subr.msk.bf16.mxu0 %vm18653_vm8, %v7218_v8  ;;  %vm18660_vm8 = vmmov %vm18589_vm0 }
0x1615   : > { %12058 = vmatprep.subr.bf16.mxu1 %v16306_v7 }
0x161b   : > { %11989 = vmatpush3.bf16.xpose.msra.mxu0 %v7513_v33 }
0x161c   : > { %12335 = vmatprep.subr.msk.bf16.mxu0 %vm18654_vm15, %v7219_v36  ;;  %vm18661_vm15 = vmmov %vm18589_vm0 }
0x1623   : > { %11991 = vmatpush3.bf16.xpose.msra.mxu0 %v7516_v51 }
0x1624   : > { %12040 = vmatprep.subr.bf16.mxu0 %v13319_v13 }
0x162a   : > { %11993 = vmatmul.mubr.msk.bf16.vlgmr.msra.gmra.mrb[56].mxu0 %vm18656_vm5, %v16414_v2  ;;  %vm18663_vm5 = vcmp.eq.s32.totalorder %v13787_v6, 1 }
0x162b   : > { %11996 = vmatprep.mubr.msk.bf16.mxu0 %vm18657_vm10, %v16436_v18  ;;  %12041 = vmatpush3.bf16.msra.mxu0 %v13319_v13  ;;  %vm18664_vm10 = vcmp.eq.s32.totalorder %v13785_v43, 1 }
0x162c   : > { %12076 = vmatprep.subr.bf16.mxu0 %v16325_v10 }
0x1632   : > { %11997 = vmatmul.mubr.msk.bf16.gmra.mrb[60].mxu0 %vm18658_vm13, %v16432_v4  ;;  %vm18665_vm13 = vcmp.eq.s32.totalorder %v13789_v11, 1 }
0x1633   : > { %12000 = vmatprep.mubr.msk.bf16.mxu0 %vm18659_vm6, %v16454_v24  ;;  %vm18666_vm6 = vcmp.eq.s32.totalorder %v13791_v14, 1 }
0x163a   : > { %12001 = vmatmul.mubr.msk.bf16.gmra.mrb[64].mxu0 %vm18660_vm8, %v16452_v58  ;;  %vm18667_vm8 = vcmp.eq.s32.totalorder %v13797_v0, 1 }
0x163b   : > { %12004 = vmatprep.mubr.msk.bf16.mxu0 %vm18589_vm0, %v16464_v47  ;;  %vm18668_vm0 = vcmp.eq.s32.totalorder %v13793_v17, 1 }
0x1642   : > { %12005 = vmatmul.mubr.msk.bf16.gmra.mrb[68].mxu0 %vm18661_vm15, %v16462_v62  ;;  %vm18669_vm15 = vnez %v17994_v16 }
0x16ab   : > { %v11962_v7 = vpop.f32.mrb[56].mxu1 }
0x16ac   : > { %v7367_v2 = vpop.f32.mrb[57].mxu1 }
0x16ad   : > { %7432 = vrot.lane.b32.xlu0 %v7367_v2, %s18212_s0  ;;  %v11963_v10 = vpop.f32.mrb[58].mxu1 }
0x16ae   : > { %v7370_v18 = vpop.f32.mrb[59].mxu1 }
0x16af   : > { %7436 = vrot.lane.b32.xlu1 %v7370_v18, %s18213_s7 }
0x16b1   : > { %7440 = vrot.lane.b32.xlu0 %v11962_v7, %s18214_s16 }
0x16b3   : > { %7444 = vrot.lane.b32.xlu1 %v11963_v10, %s18215_s13  ;;  %v11966_v24 = vpop.f32.mrb[60].mxu1 }
0x16b4   : > { %v7383_v58 = vpop.f32.mrb[61].mxu1 }
0x16b5   : > { %7448 = vrot.lane.b32.xlu0 %v7383_v58, %s18216_s11  ;;  %v11967_v4 = vpop.f32.mrb[62].mxu1 }
0x16b6   : > { %v7386_v47 = vpop.f32.mrb[63].mxu1 }
0x16b7   : > { %7452 = vrot.lane.b32.xlu1 %v7386_v47, %s18217_s9 }
0x16b9   : > { %7456 = vrot.lane.b32.xlu0 %v11966_v24, %s18091_s12 }
0x16bb   : > { %7460 = vrot.lane.b32.xlu1 %v11967_v4, %s18092_s14  ;;  %v11970_v62 = vpop.f32.mrb[64].mxu1 }
0x16bc   : > { %v7399_v25 = vpop.f32.mrb[65].mxu1 }
0x16bd   : > { %7464 = vrot.lane.b32.xlu0 %v7399_v25, %s18093_s25  ;;  %v11971_v36 = vpop.f32.mrb[66].mxu1 }
0x16be   : > { %v7402_v8 = vpop.f32.mrb[67].mxu1 }
0x16bf   : > { %7468 = vrot.lane.b32.xlu1 %v7402_v8, %s18094_s26 }
0x16c1   : > { %7472 = vrot.lane.b32.xlu0 %v11970_v62, %s18095_s19 }
0x16c3   : > { %7476 = vrot.lane.b32.xlu1 %v11971_v36, %s18096_s20  ;;  %v11974_v5 = vpop.f32.mrb[68].mxu1 }
0x16c4   : > { %v7415_v40 = vpop.f32.mrb[69].mxu1 }
0x16c5   : > { %7480 = vrot.lane.b32.xlu0 %v7415_v40, %s18097_s21  ;;  %v11975_v20 = vpop.f32.mrb[70].mxu1 }
0x16c6   : > { %v7418_v39 = vpop.f32.mrb[71].mxu1 }
0x16c7   : > { %7484 = vrot.lane.b32.xlu1 %v7418_v39, %s18098_s22 }
0x16c9   : > { %7488 = vrot.lane.b32.xlu0 %v11974_v5, %s18099_s24 }
0x16cb   : > { %7492 = vrot.lane.b32.xlu1 %v11975_v20, %s18100_s23 }
0x16fd   : > { %v11994_v30 = vpop.f32.mrb[56].mxu0 }
0x16fe   : > { %v7552_v37 = vpop.f32.mrb[57].mxu0  ;;  %v7617_v62 = vmul.f32 0.088388346, %v11994_v30 }
0x16ff   : > { %v11995_v31 = vpop.f32.mrb[58].mxu0  ;;  %v7615_v18 = vmul.f32 0.088388346, %v7552_v37 }
0x1700   : > { %v7555_v15 = vpop.f32.mrb[59].mxu0  ;;  %v7618_v40 = vmul.f32 0.088388346, %v11995_v31 }
0x1701   : > { %v7616_v58 = vmul.f32 0.088388346, %v7555_v15 }
0x1705   : > { %v11998_v59 = vpop.f32.mrb[60].mxu0 }
0x1706   : > { %v7568_v61 = vpop.f32.mrb[61].mxu0 }
0x1707   : > { %v11999_v46 = vpop.f32.mrb[62].mxu0  ;;  %v7619_v15 = vmul.f32 0.088388346, %v7568_v61  ;;  %v7621_v61 = vmul.f32 0.088388346, %v11998_v59 }
0x1708   : > { %v7571_v9 = vpop.f32.mrb[63].mxu0 }
0x170d   : > { %v12002_v26 = vpop.f32.mrb[64].mxu0 }
0x170e   : > { %v7584_v34 = vpop.f32.mrb[65].mxu0 }
0x170f   : > { %v16519_v33 = vpop.f32.mrb[66].mxu0 }
0x1710   : > { %v7587_v51 = vpop.f32.mrb[67].mxu0 }
0x1715   : > { %v16521_v13 = vpop.f32.mrb[68].mxu0 }
0x1716   : > { %v16523_v7 = vpop.f32.mrb[69].mxu0 }
0x1717   : > { %v16525_v2 = vpop.f32.mrb[70].mxu0 }
0x1718   : > { %v16527_v10 = vpop.f32.mrb[71].mxu0 }
0x171f   : > { %v7433_v24 = vpop.permute.xlu0 %7432 }
0x1720   : > { %v7631_v4 = vadd.f32 %v7615_v18, %v7433_v24 }
0x1721   : > { %v7437_v47 = vpop.permute.xlu1 %7436 }
0x1722   : > { %v7632_v25 = vadd.f32 %v7616_v58, %v7437_v47  ;;  %v7647_v36 = vsel %vm13837_vm2, -1e+09, %v7631_v4  ;;  %v7620_v4 = vmul.f32 0.088388346, %v7571_v9 }
0x1723   : > { %v7441_v8 = vpop.permute.xlu0 %7440  ;;  %v16533_v5 = vsel %vm18662_vm1, -1e+09, %v7647_v36  ;;  %vm18670_vm1 = vcmp.eq.s32.totalorder %v13799_v23, 1 }
0x1724   : > { %v7633_v20 = vadd.f32 %v7617_v62, %v7441_v8  ;;  %7679 = vmax.xlane.f32.xlu0 %v16533_v5  ;;  %v7648_v39 = vsel %vm13842_vm3, -1e+09, %v7632_v25 }
0x1725   : > { %v7445_v37 = vpop.permute.xlu1 %7444  ;;  %v16540_v30 = vsel %vm18663_vm5, -1e+09, %v7648_v39  ;;  %v7622_v39 = vmul.f32 0.088388346, %v11999_v46  ;;  %vm18671_vm5 = vcmp.eq.s32.totalorder %v13807_v27, 1 }
0x1726   : > { %v7634_v18 = vadd.f32 %v7618_v40, %v7445_v37  ;;  %7681 = vmax.xlane.f32.xlu1 %v16540_v30  ;;  %v7649_v24 = vsel %vm13847_vm4, -1e+09, %v7633_v20 }
0x1727   : > { %v7449_v58 = vpop.permute.xlu0 %7448  ;;  %v16547_v31 = vsel %vm18664_vm10, -1e+09, %v7649_v24  ;;  %vm18672_vm10 = vnez %v17998_v28 }
0x1728   : > { %v7635_v47 = vadd.f32 %v7619_v15, %v7449_v58  ;;  %7683 = vmax.xlane.f32.xlu0 %v16547_v31  ;;  %v7650_v62 = vsel %vm13871_vm7, -1e+09, %v7634_v18  ;;  %v7623_v18 = vmul.f32 0.088388346, %v7584_v34 }
0x1729   : > { %v7453_v25 = vpop.permute.xlu1 %7452  ;;  %v16556_v20 = vsel %vm18665_vm13, -1e+09, %v7650_v62  ;;  %v7624_v62 = vmul.f32 0.088388346, %v7587_v51  ;;  %vm18673_vm13 = vnez %v17996_v57 }
0x172a   : > { %v7636_v36 = vadd.f32 %v7620_v4, %v7453_v25  ;;  %v7651_v8 = vsel %vm13884_vm9, -1e+09, %v7635_v47 }
0x172b   : > { %v7457_v40 = vpop.permute.xlu0 %7456  ;;  %v16560_v9 = vsel %vm18666_vm6, -1e+09, %v7651_v8  ;;  %vm18674_vm6 = vcmp.eq.s32.totalorder %v13815_v21, 1 }
0x172c   : > { %v7637_v37 = vadd.f32 %v7621_v61, %v7457_v40  ;;  %7685 = vmax.xlane.f32.xlu0 %v16556_v20  ;;  %7687 = vmax.xlane.f32.xlu1 %v16560_v9  ;;  %v7652_v59 = vsel %vm13898_vm12, -1e+09, %v7636_v36  ;;  %v7625_v36 = vmul.f32 0.088388346, %v12002_v26 }
0x172d   : > { %v7461_v15 = vpop.permute.xlu1 %7460  ;;  %v16574_v46 = vsel %vm18668_vm0, -1e+09, %v7652_v59  ;;  %v7626_v59 = vmul.f32 0.088388346, %v16519_v33  ;;  %vm18676_vm0 = vnez %v18116_v1 }
0x172e   : > { %v7638_v24 = vadd.f32 %v7622_v39, %v7461_v15  ;;  %v7653_v58 = vsel %vm13893_vm11, -1e+09, %v7637_v37 }
0x172f   : > { %v7465_v4 = vpop.permute.xlu0 %7464  ;;  %v16570_v47 = vsel %vm18667_vm8, -1e+09, %v7653_v58  ;;  %vm18675_vm8 = vcmp.eq.s32.totalorder %v18114_v35, 1 }
0x1730   : > { %v7639_v25 = vadd.f32 %v7623_v18, %v7465_v4  ;;  %7691 = vmax.xlane.f32.xlu1 %v16570_v47  ;;  %7689 = vmax.xlane.f32.xlu0 %v16574_v46  ;;  %v7654_v34 = vsel %vm13923_vm14, -1e+09, %v7638_v24  ;;  %v7627_v24 = vmul.f32 0.088388346, %v16523_v7 }
0x1731   : > { %v7469_v61 = vpop.permute.xlu1 %7468  ;;  %v16584_v37 = vsel %vm18670_vm1, -1e+09, %v7654_v34  ;;  %v7628_v34 = vmul.f32 0.088388346, %v16527_v10  ;;  %vm18677_vm1 = vnez %v18005_v63 }
0x1732   : > { %v7640_v8 = vadd.f32 %v7624_v62, %v7469_v61  ;;  %v7655_v40 = vsel %vm18669_vm15, -1e+09, %v7639_v25 }
0x1733   : > { %v7473_v39 = vpop.permute.xlu0 %7472  ;;  %v16588_v51 = vsel %vm18671_vm5, -1e+09, %v7655_v40  ;;  %vm18678_vm5 = vcmp.eq.s32.totalorder %v18119_v29, 1 }
0x1734   : > { %v7641_v15 = vadd.f32 %v7625_v36, %v7473_v39  ;;  %7693 = vmax.xlane.f32.xlu0 %v16584_v37  ;;  %7695 = vmax.xlane.f32.xlu1 %v16588_v51  ;;  %v7656_v26 = vsel %vm18672_vm10, -1e+09, %v7640_v8  ;;  %v7629_v8 = vmul.f32 0.088388346, %v16521_v13 }
0x1735   : > { %v7477_v18 = vpop.permute.xlu1 %7476  ;;  %v16604_v33 = vsel %vm18675_vm8, -1e+09, %v7656_v26  ;;  %v7630_v26 = vmul.f32 0.088388346, %v16525_v2  ;;  %vm18680_vm8 = vnez %v18007_v49 }
0x1736   : > { %v7642_v58 = vadd.f32 %v7626_v59, %v7477_v18  ;;  %v7657_v4 = vsel %vm18673_vm13, -1e+09, %v7641_v15 }
0x1737   : > { %v7481_v62 = vpop.permute.xlu0 %7480  ;;  %v16600_v25 = vsel %vm18674_vm6, -1e+09, %v7657_v4  ;;  %vm18679_vm6 = vcmp.eq.s32.totalorder %v13825_v38, 1 }
0x1738   : > { %v7643_v61 = vadd.f32 %v7627_v24, %v7481_v62  ;;  %7699 = vmax.xlane.f32.xlu1 %v16600_v25  ;;  %7697 = vmax.xlane.f32.xlu0 %v16604_v33  ;;  %v7658_v7 = vsel %vm18676_vm0, -1e+09, %v7642_v58  ;;  %vm18684_vm0 = vnez %v18351_v45 }
0x1739   : > { %v7485_v36 = vpop.permute.xlu1 %7484  ;;  %v16616_v15 = vsel %vm18678_vm5, -1e+09, %v7658_v7  ;;  %vm18682_vm5 = vcmp.eq.s32.totalorder %v18238_v44, 1 }
0x173a   : > { %v7644_v40 = vadd.f32 %v7628_v34, %v7485_v36  ;;  %v7659_v39 = vsel %vm18677_vm1, -1e+09, %v7643_v61  ;;  %vm18681_vm1 = vnez %v18009_v56 }
0x173b   : > { %v7489_v59 = vpop.permute.xlu0 %7488  ;;  %v16620_v10 = vsel %vm18679_vm6, -1e+09, %v7659_v39  ;;  %vm18683_vm6 = vcmp.eq.s32.totalorder %v18240_v22, 1 }
0x173c   : > { %v7645_v18 = vadd.f32 %v7629_v8, %v7489_v59  ;;  %7701 = vmax.xlane.f32.xlu0 %v16616_v15  ;;  %7703 = vmax.xlane.f32.xlu1 %v16620_v10  ;;  %v7660_v13 = vsel %vm18680_vm8, -1e+09, %v7644_v40  ;;  %vm18685_vm8 = vcmp.eq.s32.totalorder %v18353_v32, 1 }
0x173d   : > { %v7493_v24 = vpop.permute.xlu1 %7492  ;;  %v16635_v2 = vsel %vm18683_vm6, -1e+09, %v7660_v13 }
0x173e   : > { %v7646_v58 = vadd.f32 %v7630_v26, %v7493_v24  ;;  %v7661_v4 = vsel %vm18681_vm1, -1e+09, %v7645_v18 }
0x173f   : > { %v16631_v62 = vsel %vm18682_vm5, -1e+09, %v7661_v4 }
0x1740   : > { %7707 = vmax.xlane.f32.xlu1 %v16631_v62  ;;  %7705 = vmax.xlane.f32.xlu0 %v16635_v2  ;;  %v7662_v34 = vsel %vm18684_vm0, -1e+09, %v7646_v58 }
0x1741   : > { %v16643_v61 = vsel %vm18685_vm8, -1e+09, %v7662_v34  ;;  %vm18694_vm8 = vcmask 130048  }
0x1742   : > { %vm18695_vm5 = vmmov %vm18694_vm8 }
0x1743   : > { %vm18696_vm6 = vmmov %vm18695_vm5 }
0x1744   : > { %7709 = vmax.xlane.f32.xlu0 %v16643_v61  ;;  %vm18700_vm0 = vmmov %vm18695_vm5 }
0x1745   : > { %vm18701_vm1 = vmmov %vm18700_vm0 }
0x1746   : > { %vm18702_vm13 = vmmov %vm18700_vm0 }
0x1747   : > { %vm18704_vm10 = vmmov %vm18700_vm0 }
0x1748   : > { %vm18709_vm15 = vmmov %vm18700_vm0 }
0x17b1   : > { %v7680_v7 = vpop.xlane.xlu0 %7679 }
0x17b2   : > { %v7711_v36 = vsub.f32 %v16533_v5, %v7680_v7 }
0x17b3   : > { %v7682_v8 = vpop.xlane.xlu1 %7681 }
0x17b4   : > { %v7727_v40 = vmul.f32 1.442695, %v7711_v36  ;;  %v7712_v39 = vsub.f32 %v16540_v30, %v7682_v8 }
0x17b5   : > { %v7684_v59 = vpop.xlane.xlu0 %7683 }
0x17b6   : > { %13174 = vpow2.f32 %v7727_v40  ;;  %v7729_v26 = vmul.f32 1.442695, %v7712_v39  ;;  %v7713_v18 = vsub.f32 %v16547_v31, %v7684_v59 }
0x17b8   : > { %13176 = vpow2.f32 %v7729_v26  ;;  %v7731_v13 = vmul.f32 1.442695, %v7713_v18 }
0x17b9   : > { %v7686_v24 = vpop.xlane.xlu0 %7685  ;;  %v7688_v58 = vpop.xlane.xlu1 %7687 }
0x17ba   : > { %13178 = vpow2.f32 %v7731_v13  ;;  %v7714_v4 = vsub.f32 %v16556_v20, %v7686_v24  ;;  %v7715_v34 = vsub.f32 %v16560_v9, %v7688_v58 }
0x17bc   : > { %v7733_v42 = vmul.f32 1.442695, %v7714_v4  ;;  %v7735_v5 = vmul.f32 1.442695, %v7715_v34 }
0x17bd   : > { %v7692_v7 = vpop.xlane.xlu1 %7691  ;;  %v7690_v36 = vpop.xlane.xlu0 %7689 }
0x17be   : > { %13180 = vpow2.f32 %v7733_v42  ;;  %v7717_v30 = vsub.f32 %v16570_v47, %v7692_v7  ;;  %v7716_v8 = vsub.f32 %v16574_v46, %v7690_v36 }
0x17bf   : > { %13182 = vpow2.f32 %v7735_v5 }
0x17c0   : > { %v16653_v31 = vpop.eup %13174  ;;  %v7739_v40 = vmul.f32 1.442695, %v7717_v30  ;;  %v7737_v39 = vmul.f32 1.442695, %v7716_v8 }
0x17c1   : > { %v7694_v59 = vpop.xlane.xlu0 %7693  ;;  %v7696_v26 = vpop.xlane.xlu1 %7695  ;;  %7759 = vadd.xlane.f32.xlu1 %v16653_v31 }
0x17c2   : > { %v16656_v20 = vpop.eup %13176  ;;  %13184 = vpow2.f32 %v7739_v40  ;;  %v7718_v9 = vsub.f32 %v16584_v37, %v7694_v59  ;;  %v7719_v42 = vsub.f32 %v16588_v51, %v7696_v26 }
0x17c3   : > { %13186 = vpow2.f32 %v7737_v39  ;;  %7761 = vadd.xlane.f32.xlu0 %v16656_v20 }
0x17c4   : > { %v16661_v47 = vpop.eup %13178  ;;  %v7741_v46 = vmul.f32 1.442695, %v7718_v9  ;;  %v7743_v18 = vmul.f32 1.442695, %v7719_v42 }
0x17c5   : > { %v7700_v13 = vpop.xlane.xlu1 %7699  ;;  %v7698_v24 = vpop.xlane.xlu0 %7697  ;;  %7763 = vadd.xlane.f32.xlu1 %v16661_v47 }
0x17c6   : > { %13188 = vpow2.f32 %v7741_v46  ;;  %v7721_v58 = vsub.f32 %v16600_v25, %v7700_v13  ;;  %v7720_v4 = vsub.f32 %v16604_v33, %v7698_v24 }
0x17c7   : > { %13190 = vpow2.f32 %v7743_v18 }
0x17c8   : > { %v16666_v37 = vpop.eup %13180  ;;  %v7747_v51 = vmul.f32 1.442695, %v7721_v58  ;;  %v7745_v34 = vmul.f32 1.442695, %v7720_v4 }
0x17c9   : > { %v16668_v5 = vpop.eup %13182  ;;  %v7702_v7 = vpop.xlane.xlu0 %7701  ;;  %7765 = vadd.xlane.f32.xlu0 %v16666_v37 }
0x17ca   : > { %v7704_v36 = vpop.xlane.xlu1 %7703  ;;  %13192 = vpow2.f32 %v7747_v51  ;;  %v7722_v30 = vsub.f32 %v16616_v15, %v7702_v7  ;;  %7767 = vadd.xlane.f32.xlu1 %v16668_v5 }
0x17cb   : > { %v7723_v25 = vsub.f32 %v16620_v10, %v7704_v36  ;;  %13194 = vpow2.f32 %v7745_v34  ;;  %v18686_v36 = vld [vmem:[#allocation12_spill] sm:$0xff] }
0x17cc   : > { %v16674_v33 = vpop.eup %13184  ;;  %v7749_v8 = vmul.f32 1.442695, %v7722_v30  ;;  %v18687_v30 = vld [vmem:[#allocation16_spill] sm:$0xff] }
0x17cd   : > { %v7751_v40 = vmul.f32 1.442695, %v7723_v25  ;;  %v16676_v39 = vpop.eup %13186  ;;  %v7706_v26 = vpop.xlane.xlu0 %7705  ;;  %v18688_v25 = vld [vmem:[#allocation18_spill] sm:$0xff] }
0x17ce   : > { %v7708_v59 = vpop.xlane.xlu1 %7707  ;;  %13196 = vpow2.f32 %v7749_v8  ;;  %7771 = vadd.xlane.f32.xlu1 %v16674_v33  ;;  %7769 = vadd.xlane.f32.xlu0 %v16676_v39  ;;  %v7724_v15 = vsub.f32 %v16635_v2, %v7706_v26  ;;  %v18689_v8 = vld [vmem:[#allocation14_spill] sm:$0xff]  ;;  %v18692_v26 = vld [vmem:[#allocation19_spill] sm:$0xff] }
0x17cf   : > { %v7725_v9 = vsub.f32 %v16631_v62, %v7708_v59  ;;  %13198 = vpow2.f32 %v7751_v40  ;;  %v18690_v40 = vld [vmem:[#allocation15_spill] sm:$0xff]  ;;  %v18691_v59 = vld [vmem:[#allocation13_spill] sm:$0xff] }
0x17d0   : > { %v16682_v10 = vpop.eup %13188  ;;  %v7753_v46 = vmul.f32 1.442695, %v7724_v15 }
0x17d1   : > { %v7755_v42 = vmul.f32 1.442695, %v7725_v9  ;;  %v16684_v18 = vpop.eup %13190  ;;  %v7710_v13 = vpop.xlane.xlu0 %7709  ;;  %v18693_v9 = vld [vmem:[#allocation17_spill] sm:$0xff] }
0x17d2   : > { %7775 = vadd.xlane.f32.xlu1 %v16684_v18  ;;  %7773 = vadd.xlane.f32.xlu0 %v16682_v10  ;;  %v7726_v24 = vsub.f32 %v16643_v61, %v7710_v13 }
0x17d3   : > { %13200 = vpow2.f32 %v7755_v42 }
0x17d4   : > { %13202 = vpow2.f32 %v7753_v46  ;;  %v16689_v62 = vpop.eup %13192  ;;  %v7757_v58 = vmul.f32 1.442695, %v7726_v24 }
0x17d5   : > { %v16691_v2 = vpop.eup %13194 }
0x17d6   : > { %13204 = vpow2.f32 %v7757_v58  ;;  %7779 = vadd.xlane.f32.xlu1 %v16689_v62  ;;  %7777 = vadd.xlane.f32.xlu0 %v16691_v2 }
0x17d8   : > { %v16695_v4 = vpop.eup %13196 }
0x17d9   : > { %v16697_v51 = vpop.eup %13198 }
0x17da   : > { %7783 = vadd.xlane.f32.xlu1 %v16697_v51  ;;  %7781 = vadd.xlane.f32.xlu0 %v16695_v4 }
0x17dd   : > { %v16701_v61 = vpop.eup %13200 }
0x17de   : > { %v16703_v34 = vpop.eup %13202  ;;  %7787 = vadd.xlane.f32.xlu1 %v16701_v61 }
0x17df   : > { %7785 = vadd.xlane.f32.xlu0 %v16703_v34 }
0x17e0   : > { %v16707_v7 = vpop.eup %13204 }
0x17e3   : > { %7789 = vadd.xlane.f32.xlu0 %v16707_v7 }
0x17ef   : > { %7928 = vrot.lane.b32.xlu1 %v18686_v36, %s17939_s10 }
0x17f3   : > { %7932 = vrot.lane.b32.xlu1 %v18687_v30, %s17939_s10 }
0x17f7   : > { %7934 = vrot.lane.b32.xlu1 %v18688_v25, %s17939_s10 }
0x17f9   : > { %7930 = vrot.lane.b32.xlu0 %v18689_v8, %s17939_s10 }
0x17fb   : > { %7938 = vrot.lane.b32.xlu1 %v18690_v40, %s17939_s10 }
0x17fd   : > { %7936 = vrot.lane.b32.xlu0 %v18691_v59, %s17939_s10 }
0x17ff   : > { %7942 = vrot.lane.b32.xlu1 %v18692_v26, %s17939_s10 }
0x1801   : > { %7940 = vrot.lane.b32.xlu0 %v18693_v9, %s17939_s10 }
0x184e   : > { %v7760_v15 = vpop.xlane.xlu1 %7759 }
0x184f   : > { %13206 = vrcp.f32 %v7760_v15 }
0x1850   : > { %v7762_v42 = vpop.xlane.xlu0 %7761 }
0x1851   : > { %13208 = vrcp.f32 %v7762_v42 }
0x1852   : > { %v7764_v46 = vpop.xlane.xlu1 %7763 }
0x1853   : > { %13210 = vrcp.f32 %v7764_v46 }
0x1856   : > { %v7766_v13 = vpop.xlane.xlu0 %7765 }
0x1857   : > { %v7768_v24 = vpop.xlane.xlu1 %7767  ;;  %13212 = vrcp.f32 %v7766_v13 }
0x1858   : > { %13214 = vrcp.f32 %v7768_v24 }
0x1859   : > { %v13207_v58 = vpop.eup %13206 }
0x185a   : > { %v7807_v8 = vmul.f32 %v13207_v58, %v16653_v31  ;;  %v16733_v31 = vld [vmem:[%s17742_s6 + $0x1c0] sm:$0xff]  }
0x185b   : > { %v13209_v36 = vpop.eup %13208  ;;  %v7772_v30 = vpop.xlane.xlu1 %7771 }
0x185c   : > { %v7770_v25 = vpop.xlane.xlu0 %7769  ;;  %v7808_v40 = vmul.f32 %v13209_v36, %v16656_v20 }
0x185d   : > { %13216 = vrcp.f32 %v7770_v25  ;;  %v13211_v26 = vpop.eup %13210 }
0x185e   : > { %v7823_v59 = vpack.c.bf16 %v7808_v40, %v7807_v8  ;;  %13218 = vrcp.f32 %v7772_v30  ;;  %v7809_v46 = vmul.f32 %v13211_v26, %v16661_v47  ;;  %v13320_v47 = vld [vmem:[%s17738_s2] sm:$0xff]  }
0x185f   : > { %v7776_v9 = vpop.xlane.xlu1 %7775 }
0x1860   : > { %v7774_v15 = vpop.xlane.xlu0 %7773  ;;  %12024 = vmatprep.mubr.bf16.mxu1 %v7823_v59 }
0x1861   : > { %v13213_v42 = vpop.eup %13212  ;;  %13220 = vrcp.f32 %v7774_v15 }
0x1862   : > { %v7810_v13 = vmul.f32 %v13213_v42, %v16666_v37  ;;  %13222 = vrcp.f32 %v7776_v9  ;;  %v13215_v20 = vpop.eup %13214 }
0x1863   : > { %v7780_v24 = vpop.xlane.xlu1 %7779  ;;  %v7811_v37 = vmul.f32 %v13215_v20, %v16668_v5 }
0x1864   : > { %v7778_v60 = vpop.xlane.xlu0 %7777  ;;  %v7824_v19 = vpack.c.bf16 %v7810_v13, %v7809_v46 }
0x1865   : > { %13224 = vrcp.f32 %v7778_v60 }
0x1866   : > { %12025 = vmatmul.mubr.bf16.vlgmr.msra.gmra.mrb[72].mxu1 %v7824_v19  ;;  %13226 = vrcp.f32 %v7780_v24 }
0x1867   : > { %v13217_v58 = vpop.eup %13216  ;;  %v7784_v36 = vpop.xlane.xlu1 %7783  ;;  %12059 = vmatpush3.bf16.msra.mxu1 %v13320_v47 }
0x1868   : > { %v7782_v30 = vpop.xlane.xlu0 %7781  ;;  %v7812_v25 = vmul.f32 %v13217_v58, %v16676_v39  ;;  %12336 = vmatprep.subr.msk.bf16.mxu1 %vm18694_vm8, %v16733_v31  ;;  %v13219_v8 = vpop.eup %13218  ;;  %vm18697_vm8 = vmmov %vm18695_vm5 }
0x1869   : > { %13228 = vrcp.f32 %v7782_v30  ;;  %v7813_v26 = vmul.f32 %v13219_v8, %v16674_v33 }
0x186a   : > { %v7825_v60 = vpack.c.bf16 %v7812_v25, %v7811_v37  ;;  %13230 = vrcp.f32 %v7784_v36 }
0x186b   : > { %v13221_v19 = vpop.eup %13220  ;;  %v7788_v40 = vpop.xlane.xlu1 %7787 }
0x186c   : > { %v7786_v59 = vpop.xlane.xlu0 %7785  ;;  %v7814_v9 = vmul.f32 %v13221_v19, %v16682_v10  ;;  %12028 = vmatprep.mubr.bf16.mxu1 %v7825_v60  ;;  %v13223_v15 = vpop.eup %13222 }
0x186d   : > { %13232 = vrcp.f32 %v7786_v59  ;;  %v7815_v13 = vmul.f32 %v13223_v15, %v16684_v18  ;;  %v13321_v18 = vld [vmem:[%s17739_s3] sm:$0xff]  }
0x186e   : > { %v7826_v5 = vpack.c.bf16 %v7814_v9, %v7813_v26  ;;  %13234 = vrcp.f32 %v7788_v40 }
0x186f   : > { %v13225_v39 = vpop.eup %13224  ;;  %v7929_v46 = vpop.permute.xlu1 %7928 }
0x1870   : > { %v7790_v42 = vpop.xlane.xlu0 %7789  ;;  %12029 = vmatmul.mubr.bf16.gmra.mrb[76].mxu1 %v7826_v5  ;;  %12042 = vmatprep.mubr.msk.bf16.mxu0 %vm18695_vm5, %v7929_v46  ;;  %v7816_v24 = vmul.f32 %v13225_v39, %v16691_v2  ;;  %v13227_v20 = vpop.eup %13226 }
0x1871   : > { %13236 = vrcp.f32 %v7790_v42  ;;  %v7817_v30 = vmul.f32 %v13227_v20, %v16689_v62 }
0x1872   : > { %v7827_v33 = vpack.c.bf16 %v7816_v24, %v7815_v13  ;;  %v12778_v24 = vld [vmem:[%s17742_s6 + $0x1e0] sm:$0xff]  }
0x1873   : > { %v13229_v58 = vpop.eup %13228  ;;  %v7933_v36 = vpop.permute.xlu1 %7932 }
0x1874   : > { %v7931_v10 = vpop.permute.xlu0 %7930  ;;  %v7818_v47 = vmul.f32 %v13229_v58, %v16695_v4  ;;  %12032 = vmatprep.mubr.bf16.mxu1 %v7827_v33  ;;  %v13231_v37 = vpop.eup %13230  ;;  %v12779_v33 = vld [vmem:[%s17742_s6 + $0x1e8] sm:$0xff]  }
0x1875   : > { %12043 = vmatmul.mubr.msk.bf16.vlgmr.msra.gmra.mrb[72].mxu0 %vm18696_vm6, %v7931_v10  ;;  %v7819_v60 = vmul.f32 %v13231_v37, %v16697_v51  ;;  %vm18698_vm6 = vmmov %vm18695_vm5 }
0x1876   : > { %12046 = vmatprep.mubr.msk.bf16.mxu0 %vm18697_vm8, %v7933_v36  ;;  %12077 = vmatpush3.bf16.msra.mxu0 %v13321_v18  ;;  %v7828_v2 = vpack.c.bf16 %v7818_v47, %v7817_v30  ;;  %vm18699_vm8 = vmmov %vm18695_vm5  ;;  %v12781_v30 = vld [vmem:[%s17742_s6 + $0x1f8] sm:$0xff]  }
0x1877   : > { %v13233_v25 = vpop.eup %13232  ;;  %v7935_v4 = vpop.permute.xlu1 %7934 }
0x1878   : > { %v13235_v8 = vpop.eup %13234  ;;  %12033 = vmatmul.mubr.bf16.gmra.mrb[80].mxu1 %v7828_v2  ;;  %v7820_v62 = vmul.f32 %v13233_v25, %v16703_v34  ;;  %v7937_v59 = vpop.permute.xlu0 %7936  ;;  %v12775_v34 = vld [vmem:[%s17742_s6 + $0x1c8] sm:$0xff]  }
0x1879   : > { %v7821_v26 = vmul.f32 %v13235_v8, %v16701_v61  ;;  %v8365_v61 = vsel %vm18702_vm13, %v16733_v31, 0  ;;  %v12776_v31 = vld [vmem:[%s17742_s6 + $0x1d0] sm:$0xff]   ;;  %vm18708_vm13 = vmmov %vm18700_vm0 }
0x187a   : > { %v7829_v40 = vpack.c.bf16 %v7820_v62, %v7819_v60 }
0x187b   : > { %v13237_v19 = vpop.eup %13236  ;;  %v7939_v51 = vpop.permute.xlu1 %7938 }
0x187c   : > { %v7822_v9 = vmul.f32 %v13237_v19, %v16707_v7  ;;  %12036 = vmatprep.mubr.bf16.mxu1 %v7829_v40  ;;  %v7941_v5 = vpop.permute.xlu0 %7940 }
0x187d   : > { %12047 = vmatmul.mubr.msk.bf16.gmra.mrb[76].mxu0 %vm18695_vm5, %v7935_v4  ;;  %vm18703_vm5 = vmmov %vm18700_vm0 }
0x187e   : > { %v7830_v15 = vpack.c.bf16 %v7822_v9, %v7821_v26  ;;  %12050 = vmatprep.mubr.msk.bf16.mxu0 %vm18698_vm6, %v7937_v59  ;;  %vm18705_vm6 = vmmov %vm18700_vm0 }
0x187f   : > { %v7943_v7 = vpop.permute.xlu1 %7942 }
0x1880   : > { %12037 = vmatmul.mubr.bf16.gmra.mrb[84].mxu1 %v7830_v15 }
0x1881   : > { %12060 = vmatprep.mubr.msk.bf16.mxu1 %vm18699_vm8, %v7929_v46  ;;  %vm18706_vm8 = vmmov %vm18700_vm0 }
0x1885   : > { %12051 = vmatmul.mubr.msk.bf16.gmra.mrb[80].mxu0 %vm18700_vm0, %v7939_v51 }
0x1886   : > { %12054 = vmatprep.mubr.msk.bf16.mxu0 %vm18701_vm1, %v7941_v5  ;;  %vm18707_vm1 = vmmov %vm18700_vm0 }
0x1887   : > { %v8368_v39 = vsel %vm18707_vm1, %v12775_v34, 0  ;;  %vm18714_vm1 = vmmov %vm18700_vm0 }
0x1888   : > { %12061 = vmatmul.mubr.msk.bf16.vlgmr.msra.gmra.mrb[88].mxu1 %vm18703_vm5, %v7931_v10  ;;  %vm18711_vm5 = vmmov %vm18700_vm0 }
0x1889   : > { %12064 = vmatprep.mubr.msk.bf16.mxu1 %vm18704_vm10, %v7933_v36  ;;  %12095 = vmatpush3.bf16.xpose.msra.mxu1 %v8365_v61  ;;  %vm18710_vm10 = vmmov %vm18700_vm0 }
0x188a   : > { %12337 = vmatprep.subr.msk.bf16.mxu1 %vm18705_vm6, %v12775_v34  ;;  %vm18712_vm6 = vmmov %vm18700_vm0 }
0x188d   : > { %12055 = vmatmul.mubr.msk.bf16.gmra.mrb[84].mxu0 %vm18706_vm8, %v7943_v7  ;;  %vm18713_vm8 = vmmov %vm18700_vm0 }
0x188e   : > { %12078 = vmatprep.mubr.msk.bf16.mxu0 %vm18700_vm0, %v7929_v46  ;;  %v8371_v42 = vsel %vm18713_vm8, %v12776_v31, 0  ;;  %v12777_v46 = vld [vmem:[%s17742_s6 + $0x1d8] sm:$0xff]   ;;  %vm18720_vm8 = vmmov %vm18700_vm0 }
0x1890   : > { %12065 = vmatmul.mubr.msk.bf16.gmra.mrb[92].mxu1 %vm18708_vm13, %v7935_v4  ;;  %vm18715_vm13 = vmmov %vm18700_vm0 }
0x1891   : > { %12068 = vmatprep.mubr.msk.bf16.mxu1 %vm18709_vm15, %v7937_v59  ;;  %12097 = vmatpush3.bf16.xpose.msra.mxu1 %v8368_v39  ;;  %vm18716_vm15 = vmmov %vm18700_vm0 }
0x1892   : > { %12338 = vmatprep.subr.msk.bf16.mxu1 %vm18710_vm10, %v12776_v31  ;;  %vm18717_vm10 = vmmov %vm18700_vm0 }
0x1895   : > { %12079 = vmatmul.mubr.msk.bf16.vlgmr.msra.gmra.mrb[88].mxu0 %vm18711_vm5, %v7931_v10  ;;  %vm18718_vm5 = vmmov %vm18700_vm0  ;;  %v12780_v10 = vld [vmem:[%s17742_s6 + $0x1f0] sm:$0xff]  }
0x1896   : > { %12082 = vmatprep.mubr.msk.bf16.mxu0 %vm18712_vm6, %v7933_v36  ;;  %v8374_v13 = vsel %vm18718_vm5, %v12777_v46, 0  ;;  %vm18719_vm6 = vmmov %vm18700_vm0 }
0x1897   : > { %vm18725_vm5 = vmmov %vm18700_vm0 }
0x1898   : > { %12069 = vmatmul.mubr.msk.bf16.gmra.mrb[96].mxu1 %vm18700_vm0, %v7939_v51  ;;  %v8380_v58 = vsel %vm18725_vm5, %v12779_v33, 0  ;;  %vm18743_vm5 = vmmov %vm18700_vm0 }
0x1899   : > { %12072 = vmatprep.mubr.msk.bf16.mxu1 %vm18714_vm1, %v7941_v5  ;;  %12099 = vmatpush3.bf16.xpose.msra.mxu1 %v8371_v42  ;;  %vm18721_vm1 = vmmov %vm18700_vm0 }
0x189a   : > { %12339 = vmatprep.subr.msk.bf16.mxu1 %vm18715_vm13, %v12777_v46  ;;  %vm18722_vm13 = vmmov %vm18700_vm0 }
0x189b   : > { %v8377_v20 = vsel %vm18722_vm13, %v12778_v24, 0  ;;  %vm18736_vm13 = vmmov %vm18700_vm0 }
0x189d   : > { %12083 = vmatmul.mubr.msk.bf16.gmra.mrb[92].mxu0 %vm18716_vm15, %v7935_v4  ;;  %vm18723_vm15 = vmmov %vm18700_vm0 }
0x189e   : > { %12086 = vmatprep.mubr.msk.bf16.mxu0 %vm18717_vm10, %v7937_v59  ;;  %vm18724_vm10 = vmmov %vm18700_vm0 }
0x18a0   : > { %12073 = vmatmul.mubr.msk.bf16.gmra.mrb[100].mxu1 %vm18719_vm6, %v7943_v7  ;;  %vm18726_vm6 = vmmov %vm18700_vm0 }
0x18a1   : > { %12101 = vmatpush3.bf16.xpose.msra.mxu1 %v8374_v13 }
0x18a2   : > { %12340 = vmatprep.subr.msk.bf16.mxu1 %vm18720_vm8, %v12778_v24  ;;  %vm18727_vm8 = vmmov %vm18700_vm0 }
0x18a3   : > { %v8383_v36 = vsel %vm18727_vm8, %v12780_v10, 0  ;;  %vm18746_vm8 = vmmov %vm18700_vm0 }
0x18a5   : > { %12087 = vmatmul.mubr.msk.bf16.gmra.mrb[96].mxu0 %vm18700_vm0, %v7939_v51 }
0x18a6   : > { %12090 = vmatprep.mubr.msk.bf16.mxu0 %vm18721_vm1, %v7941_v5  ;;  %vm18728_vm1 = vmmov %vm18700_vm0 }
0x18a7   : > { %v8386_v47 = vsel %vm18728_vm1, %v12781_v30, 0  ;;  %vm18747_vm1 = vmmov %vm18700_vm0 }
0x18a9   : > { %12103 = vmatpush3.bf16.xpose.msra.mxu1 %v8377_v20 }
0x18aa   : > { %12341 = vmatprep.subr.msk.bf16.mxu1 %vm18723_vm15, %v12779_v33  ;;  %vm18737_vm15 = vmmov %vm18700_vm0 }
0x18ad   : > { %12091 = vmatmul.mubr.msk.bf16.gmra.mrb[100].mxu0 %vm18724_vm10, %v7943_v7  ;;  %vm18739_vm10 = vmmov %vm18700_vm0 }
0x18b1   : > { %12105 = vmatpush3.bf16.xpose.msra.mxu1 %v8380_v58 }
0x18b2   : > { %12342 = vmatprep.subr.msk.bf16.mxu1 %vm18726_vm6, %v12780_v10  ;;  %vm18745_vm6 = vmmov %vm18700_vm0 }
0x18b9   : > { %12107 = vmatpush3.bf16.xpose.msra.mxu1 %v8383_v36 }
0x18ba   : > { %12343 = vmatprep.subr.msk.bf16.mxu1 %vm18700_vm0, %v12781_v30 }
0x18c1   : > { %12109 = vmatpush3.bf16.xpose.msra.mxu1 %v8386_v47 }
0x1939   : > { %v16816_v37 = vpop.f32.mrb[72].mxu1 }
0x193a   : > { %v16818_v18 = vpop.f32.mrb[73].mxu1 }
0x193b   : > { %v16820_v2 = vpop.f32.mrb[74].mxu1 }
0x193c   : > { %v16824_v8 = vpop.f32.mrb[75].mxu1 }
0x1943   : > { %v16828_v62 = vpop.f32.mrb[76].mxu1 }
0x1944   : > { %18729 = vst [vmem:[#allocation12_spill] sm:$0xff] %v16828_v62  ;;  %v16830_v4 = vpop.f32.mrb[77].mxu1 }
0x1945   : > { %18730 = vst [vmem:[#allocation16_spill] sm:$0xff] %v16830_v4  ;;  %v16832_v19 = vpop.f32.mrb[78].mxu1 }
0x1946   : > { %18731 = vst [vmem:[#allocation18_spill] sm:$0xff] %v16832_v19  ;;  %v16836_v59 = vpop.f32.mrb[79].mxu1 }
0x1947   : > { %18732 = vst [vmem:[#allocation14_spill] sm:$0xff] %v16836_v59 }
0x1948   : > { %v12044_v9 = vpop.f32.mrb[72].mxu0 }
0x1949   : > { %v8002_v15 = vpop.f32.mrb[73].mxu0 }
0x194a   : > { %v12045_v51 = vpop.f32.mrb[74].mxu0 }
0x194b   : > { %v16840_v5 = vpack.c.bf16 %v12045_v51, %v12044_v9  ;;  %v8005_v61 = vpop.f32.mrb[75].mxu0  ;;  %v16842_v34 = vpop.f32.mrb[80].mxu1 }
0x194c   : > { %18733 = vst [vmem:[#allocation15_spill] sm:$0xff] %v16842_v34  ;;  %v8259_v7 = vpack.c.bf16 %v8005_v61, %v8002_v15  ;;  %v16844_v39 = vpop.f32.mrb[81].mxu1 }
0x194d   : > { %18734 = vst [vmem:[#allocation13_spill] sm:$0xff] %v16844_v39  ;;  %v16846_v31 = vpop.f32.mrb[82].mxu1 }
0x194e   : > { %18735 = vst [vmem:[#allocation19_spill] sm:$0xff] %v16846_v31  ;;  %12110 = vmatprep.mubr.msk.bf16.mxu1 %vm18736_vm13, %v8259_v7  ;;  %12142 = vmatprep.mubr.msk.bf16.mxu0 %vm18737_vm15, %v8259_v7  ;;  %v16852_v46 = vpop.f32.mrb[83].mxu1  ;;  %vm18748_vm13 = vmmov %vm18700_vm0 }
0x194f   : > { %18738 = vst [vmem:[#allocation17_spill] sm:$0xff] %v16852_v46  ;;  %12111 = vmatmul.mubr.msk.bf16.vlgmr.msra.gmra.mrb[104].mxu1 %vm18739_vm10, %v16840_v5  ;;  %vm18749_vm15 = vmmov %vm18700_vm0 }
0x1950   : > { %v12048_v24 = vpop.f32.mrb[76].mxu0  ;;  %vm18750_vm10 = vmmov %vm18700_vm0 }
0x1951   : > { %v8018_v20 = vpop.f32.mrb[77].mxu0 }
0x1952   : > { %v12049_v33 = vpop.f32.mrb[78].mxu0 }
0x1953   : > { %v16858_v58 = vpack.c.bf16 %v12049_v33, %v12048_v24  ;;  %v8021_v10 = vpop.f32.mrb[79].mxu0  ;;  %v16860_v36 = vpop.f32.mrb[84].mxu1 }
0x1954   : > { %18740 = vst [vmem:[#allocation116_spill] sm:$0xff] %v16860_v36  ;;  %v16862_v30 = vpack.c.bf16 %v8021_v10, %v8018_v20  ;;  %v16864_v47 = vpop.f32.mrb[85].mxu1 }
0x1955   : > { %18741 = vst [vmem:[#allocation117_spill] sm:$0xff] %v16864_v47  ;;  %v16866_v9 = vpop.f32.mrb[86].mxu1 }
0x1956   : > { %18742 = vst [vmem:[#allocation118_spill] sm:$0xff] %v16866_v9  ;;  %12114 = vmatprep.mubr.msk.bf16.mxu1 %vm18743_vm5, %v16862_v30  ;;  %v16872_v51 = vpop.f32.mrb[87].mxu1  ;;  %vm18751_vm5 = vmmov %vm18700_vm0 }
0x1957   : > { %18744 = vst [vmem:[#allocation119_spill] sm:$0xff] %v16872_v51  ;;  %12115 = vmatmul.mubr.msk.bf16.gmra.mrb[108].mxu1 %vm18745_vm6, %v16858_v58  ;;  %vm18752_vm6 = vmmov %vm18700_vm0 }
0x1958   : > { %v12052_v7 = vpop.f32.mrb[80].mxu0 }
0x1959   : > { %v8034_v24 = vpop.f32.mrb[81].mxu0 }
0x195a   : > { %v12053_v20 = vpop.f32.mrb[82].mxu0 }
0x195b   : > { %v16878_v33 = vpack.c.bf16 %v12053_v20, %v12052_v7  ;;  %v8037_v10 = vpop.f32.mrb[83].mxu0  ;;  %v12062_v42 = vpop.f32.mrb[88].mxu1 }
0x195c   : > { %v16880_v13 = vpack.c.bf16 %v8037_v10, %v8034_v24  ;;  %v8099_v26 = vpop.f32.mrb[89].mxu1 }
0x195d   : > { %v12063_v40 = vpop.f32.mrb[90].mxu1 }
0x195e   : > { %12118 = vmatprep.mubr.msk.bf16.mxu1 %vm18746_vm8, %v16880_v13  ;;  %v8268_v15 = vpack.c.bf16 %v12063_v40, %v12062_v42  ;;  %v8102_v60 = vpop.f32.mrb[91].mxu1  ;;  %vm18753_vm8 = vmmov %vm18700_vm0 }
0x195f   : > { %12119 = vmatmul.mubr.msk.bf16.gmra.mrb[112].mxu1 %vm18700_vm0, %v16878_v33  ;;  %v8267_v61 = vpack.c.bf16 %v8102_v60, %v8099_v26 }
0x1960   : > { %v12056_v25 = vpop.f32.mrb[84].mxu0 }
0x1961   : > { %v8050_v47 = vpop.f32.mrb[85].mxu0  ;;  %v8550_v7 = vsel %vm18747_vm1, %v8267_v61, 0  ;;  %12344 = vmatprep.subr.msk.bf16.mxu0 %vm18748_vm13, %v8267_v61  ;;  %vm18754_vm1 = vmmov %vm18700_vm0 }
0x1962   : > { %v12057_v24 = vpop.f32.mrb[86].mxu0  ;;  %12127 = vmatpush3.bf16.xpose.msra.mxu0 %v8550_v7  ;;  %v8553_v7 = vsel %vm18752_vm6, %v8268_v15, 0  ;;  %vm18755_vm13 = vmmov %vm18700_vm0 }
0x1963   : > { %v16888_v20 = vpack.c.bf16 %v12057_v24, %v12056_v25  ;;  %v8053_v10 = vpop.f32.mrb[87].mxu0  ;;  %v12066_v36 = vpop.f32.mrb[92].mxu1  ;;  %12345 = vmatprep.subr.msk.bf16.mxu0 %vm18749_vm15, %v8268_v15  ;;  %vm18756_vm15 = vmmov %vm18700_vm0 }
0x1964   : > { %v16890_v51 = vpack.c.bf16 %v8053_v10, %v8050_v47  ;;  %v8115_v40 = vpop.f32.mrb[93].mxu1  ;;  %vm18759_vm6 = vmmov %vm18700_vm0 }
0x1965   : > { %v12067_v42 = vpop.f32.mrb[94].mxu1 }
0x1966   : > { %12122 = vmatprep.mubr.msk.bf16.mxu1 %vm18750_vm10, %v16890_v51  ;;  %v8270_v60 = vpack.c.bf16 %v12067_v42, %v12066_v36  ;;  %v8118_v26 = vpop.f32.mrb[95].mxu1  ;;  %vm18757_vm10 = vmmov %vm18700_vm0 }
0x1967   : > { %12123 = vmatmul.mubr.msk.bf16.gmra.mrb[116].mxu1 %vm18751_vm5, %v16888_v20  ;;  %v8269_v61 = vpack.c.bf16 %v8118_v26, %v8115_v40  ;;  %vm18758_vm5 = vmmov %vm18700_vm0 }
0x1968   : > { %v12080_v25 = vpop.f32.mrb[88].mxu0 }
0x1969   : > { %v8196_v24 = vpop.f32.mrb[89].mxu0  ;;  %v8556_v15 = vsel %vm18700_vm0, %v8269_v61, 0 }
0x196a   : > { %v12081_v47 = vpop.f32.mrb[90].mxu0  ;;  %12129 = vmatpush3.bf16.xpose.msra.mxu0 %v8553_v7 }
0x196b   : > { %v8276_v10 = vpack.c.bf16 %v12081_v47, %v12080_v25  ;;  %v8199_v9 = vpop.f32.mrb[91].mxu0  ;;  %v12070_v39 = vpop.f32.mrb[96].mxu1  ;;  %12346 = vmatprep.subr.msk.bf16.mxu0 %vm18753_vm8, %v8269_v61  ;;  %v8559_v61 = vsel %vm18755_vm13, %v8270_v60, 0  ;;  %vm18760_vm8 = vmmov %vm18700_vm0 }
0x196c   : > { %v8275_v46 = vpack.c.bf16 %v8199_v9, %v8196_v24  ;;  %v8131_v34 = vpop.f32.mrb[97].mxu1  ;;  %vm18762_vm13 = vmmov %vm18700_vm0 }
0x196d   : > { %v12071_v31 = vpop.f32.mrb[98].mxu1 }
0x196e   : > { %12158 = vmatprep.subr.bf16.mxu1 %v8275_v46  ;;  %v8272_v36 = vpack.c.bf16 %v12071_v31, %v12070_v39  ;;  %v8134_v42 = vpop.f32.mrb[99].mxu1 }
0x196f   : > { %12159 = vmatpush3.bf16.msra.mxu1 %v8275_v46  ;;  %v8271_v4 = vpack.c.bf16 %v8134_v42, %v8131_v34 }
0x1970   : > { %v12084_v40 = vpop.f32.mrb[92].mxu0  ;;  %12160 = vmatprep.subr.bf16.mxu1 %v8276_v10 }
0x1971   : > { %v8212_v26 = vpop.f32.mrb[93].mxu0 }
0x1972   : > { %v12085_v59 = vpop.f32.mrb[94].mxu0  ;;  %12131 = vmatpush3.bf16.xpose.msra.mxu0 %v8556_v15 }
0x1973   : > { %v8278_v25 = vpack.c.bf16 %v12085_v59, %v12084_v40  ;;  %v8215_v7 = vpop.f32.mrb[95].mxu0  ;;  %12161 = vmatpush3.bf16.msra.mxu1 %v8276_v10  ;;  %v12074_v9 = vpop.f32.mrb[100].mxu1  ;;  %12347 = vmatprep.subr.msk.bf16.mxu0 %vm18754_vm1, %v8270_v60  ;;  %vm18761_vm1 = vmmov %vm18700_vm0 }
0x1974   : > { %v8277_v24 = vpack.c.bf16 %v8215_v7, %v8212_v26  ;;  %v8147_v47 = vpop.f32.mrb[101].mxu1  ;;  %v8562_v7 = vsel %vm18757_vm10, %v8271_v4, 0  ;;  %vm18764_vm10 = vmmov %vm18700_vm0 }
0x1975   : > { %v12075_v62 = vpop.f32.mrb[102].mxu1 }
0x1976   : > { %12162 = vmatprep.subr.bf16.mxu1 %v8277_v24  ;;  %v8274_v39 = vpack.c.bf16 %v12075_v62, %v12074_v9  ;;  %v8150_v31 = vpop.f32.mrb[103].mxu1 }
0x1977   : > { %12163 = vmatpush3.bf16.msra.mxu1 %v8277_v24  ;;  %v8273_v34 = vpack.c.bf16 %v8150_v31, %v8147_v47 }
0x1978   : > { %v12088_v46 = vpop.f32.mrb[96].mxu0  ;;  %12164 = vmatprep.subr.bf16.mxu1 %v8278_v25 }
0x1979   : > { %v8228_v42 = vpop.f32.mrb[97].mxu0  ;;  %v8568_v31 = vsel %vm18700_vm0, %v8273_v34, 0 }
0x197a   : > { %v12089_v59 = vpop.f32.mrb[98].mxu0  ;;  %12133 = vmatpush3.bf16.xpose.msra.mxu0 %v8559_v61 }
0x197b   : > { %v8280_v40 = vpack.c.bf16 %v12089_v59, %v12088_v46  ;;  %v8231_v10 = vpop.f32.mrb[99].mxu0  ;;  %12165 = vmatpush3.bf16.msra.mxu1 %v8278_v25  ;;  %12348 = vmatprep.subr.msk.bf16.mxu0 %vm18756_vm15, %v8271_v4  ;;  %v8565_v25 = vsel %vm18759_vm6, %v8272_v36, 0  ;;  %v8571_v4 = vsel %vm18762_vm13, %v8274_v39, 0  ;;  %vm18763_vm15 = vmmov %vm18700_vm0  ;;  %vm18769_vm13 = vcmp.eq.s32.totalorder %v13783_v3, 1 }
0x197c   : > { %v8279_v26 = vpack.c.bf16 %v8231_v10, %v8228_v42  ;;  %vm18766_vm6 = vmmov %vm18700_vm0 }
0x197e   : > { %12166 = vmatprep.subr.bf16.mxu1 %v8279_v26 }
0x197f   : > { %12167 = vmatpush3.bf16.msra.mxu1 %v8279_v26 }
0x1980   : > { %v12092_v15 = vpop.f32.mrb[100].mxu0  ;;  %12168 = vmatprep.subr.bf16.mxu1 %v8280_v40 }
0x1981   : > { %v8244_v62 = vpop.f32.mrb[101].mxu0 }
0x1982   : > { %v12093_v9 = vpop.f32.mrb[102].mxu0  ;;  %12135 = vmatpush3.bf16.xpose.msra.mxu0 %v8562_v7 }
0x1983   : > { %v8282_v24 = vpack.c.bf16 %v12093_v9, %v12092_v15  ;;  %v8247_v47 = vpop.f32.mrb[103].mxu0  ;;  %12169 = vmatpush3.bf16.msra.mxu1 %v8280_v40  ;;  %12349 = vmatprep.subr.msk.bf16.mxu0 %vm18758_vm5, %v8272_v36  ;;  %vm18765_vm5 = vmmov %vm18700_vm0 }
0x1984   : > { %v8281_v60 = vpack.c.bf16 %v8247_v47, %v8244_v62 }
0x1986   : > { %12170 = vmatprep.subr.bf16.mxu1 %v8281_v60 }
0x1987   : > { %12171 = vmatpush3.bf16.msra.mxu1 %v8281_v60 }
0x1988   : > { %12172 = vmatprep.subr.bf16.mxu1 %v8282_v24 }
0x198a   : > { %12137 = vmatpush3.bf16.xpose.msra.mxu0 %v8565_v25 }
0x198b   : > { %12173 = vmatpush3.bf16.msra.mxu1 %v8282_v24  ;;  %12350 = vmatprep.subr.msk.bf16.mxu0 %vm18760_vm8, %v8273_v34  ;;  %vm18767_vm8 = vmmov %vm18700_vm0 }
0x1992   : > { %12139 = vmatpush3.bf16.xpose.msra.mxu0 %v8568_v31 }
0x1993   : > { %12351 = vmatprep.subr.msk.bf16.mxu0 %vm18761_vm1, %v8274_v39  ;;  %vm18768_vm1 = vmmov %vm18700_vm0 }
0x199a   : > { %12141 = vmatpush3.bf16.xpose.msra.mxu0 %v8571_v4 }
0x19a1   : > { %12143 = vmatmul.mubr.msk.bf16.vlgmr.msra.gmra.mrb[104].mxu0 %vm18763_vm15, %v16840_v5  ;;  %vm18770_vm15 = vcmp.eq.s32.totalorder %v13787_v6, 1 }
0x19a2   : > { %12146 = vmatprep.mubr.msk.bf16.mxu0 %vm18764_vm10, %v16862_v30  ;;  %vm18778_vm10 = vcmp.eq.s32.totalorder %v13807_v27, 1 }
0x19a9   : > { %12147 = vmatmul.mubr.msk.bf16.gmra.mrb[108].mxu0 %vm18765_vm5, %v16858_v58  ;;  %vm18780_vm5 = vnez %v17996_v57 }
0x19aa   : > { %12150 = vmatprep.mubr.msk.bf16.mxu0 %vm18766_vm6, %v16880_v13  ;;  %vm18781_vm6 = vcmp.eq.s32.totalorder %v13815_v21, 1 }
0x19b1   : > { %12151 = vmatmul.mubr.msk.bf16.gmra.mrb[112].mxu0 %vm18767_vm8, %v16878_v33  ;;  %vm18782_vm8 = vcmp.eq.s32.totalorder %v18114_v35, 1 }
0x19b2   : > { %12154 = vmatprep.mubr.msk.bf16.mxu0 %vm18700_vm0, %v16890_v51  ;;  %vm18783_vm0 = vnez %v18116_v1 }
0x19b9   : > { %12155 = vmatmul.mubr.msk.bf16.gmra.mrb[116].mxu0 %vm18768_vm1, %v16888_v20  ;;  %vm18784_vm1 = vnez %v18005_v63 }
0x1a22   : > { %v12112_v36 = vpop.f32.mrb[104].mxu1 }
0x1a23   : > { %v8422_v5 = vpop.f32.mrb[105].mxu1 }
0x1a24   : > { %8487 = vrot.lane.b32.xlu0 %v8422_v5, %s18212_s0  ;;  %v12113_v30 = vpop.f32.mrb[106].mxu1 }
0x1a25   : > { %v8425_v39 = vpop.f32.mrb[107].mxu1 }
0x1a26   : > { %8491 = vrot.lane.b32.xlu1 %v8425_v39, %s18213_s7 }
0x1a28   : > { %8495 = vrot.lane.b32.xlu0 %v12112_v36, %s18214_s16  ;;  %s13426_s16 = smov [#allocation2]  }
0x1a2a   : > { %8499 = vrot.lane.b32.xlu1 %v12113_v30, %s18215_s13  ;;  %v12116_v13 = vpop.f32.mrb[108].mxu1  ;;  %s13326_s13 = sshll.u32 %s13426_s16, 4  ;;  %s13327_s13 = int_to_ptr.vmem [resolvable:$false] %s13326_s13 }
0x1a2b   : > { %v8438_v58 = vpop.f32.mrb[109].mxu1 }
0x1a2c   : > { %8503 = vrot.lane.b32.xlu0 %v8438_v58, %s18216_s11  ;;  %v12117_v51 = vpop.f32.mrb[110].mxu1  ;;  %s13328_s11 = scalar_lea.vmem %s13327_s13, 4096 }
0x1a2d   : > { %v8441_v33 = vpop.f32.mrb[111].mxu1 }
0x1a2e   : > { %8507 = vrot.lane.b32.xlu1 %v8441_v33, %s18217_s9  ;;  %s18793_s9 = smov 16  }
0x1a30   : > { %8511 = vrot.lane.b32.xlu0 %v12116_v13, %s18091_s12  ;;  %s18828_s12 = smov 96  }
0x1a32   : > { %8515 = vrot.lane.b32.xlu1 %v12117_v51, %s18092_s14  ;;  %v12120_v20 = vpop.f32.mrb[112].mxu1 }
0x1a33   : > { %v8454_v34 = vpop.f32.mrb[113].mxu1 }
0x1a34   : > { %8519 = vrot.lane.b32.xlu0 %v8454_v34, %s18093_s25  ;;  %v12121_v46 = vpop.f32.mrb[114].mxu1  ;;  %s10373_s25 = sshll.u32 %s13392_s30, 11 }
0x1a35   : > { %v8457_v42 = vpop.f32.mrb[115].mxu1  ;;  %s17681_s0 = scalar_lea.hbm %s17744_s8, %s10373_s25 }
0x1a36   : > { %8523 = vrot.lane.b32.xlu1 %v8457_v42, %s18094_s26 }
0x1a38   : > { %8527 = vrot.lane.b32.xlu0 %v12120_v20, %s18095_s19 }
0x1a3a   : > { %8531 = vrot.lane.b32.xlu1 %v12121_v46, %s18096_s20  ;;  %v12124_v61 = vpop.f32.mrb[116].mxu1 }
0x1a3b   : > { %v8470_v59 = vpop.f32.mrb[117].mxu1 }
0x1a3c   : > { %8535 = vrot.lane.b32.xlu0 %v8470_v59, %s18097_s21  ;;  %v12125_v40 = vpop.f32.mrb[118].mxu1  ;;  %s18814_s21 = smov 64  }
0x1a3d   : > { %v8473_v10 = vpop.f32.mrb[119].mxu1 }
0x1a3e   : > { %8539 = vrot.lane.b32.xlu1 %v8473_v10, %s18098_s22  ;;  %s18821_s22 = smov 80  }
0x1a40   : > { %8543 = vrot.lane.b32.xlu0 %v12124_v61, %s18099_s24  ;;  %s18807_s24 = smov 48  }
0x1a42   : > { %8547 = vrot.lane.b32.xlu1 %v12125_v40, %s18100_s23  ;;  %s18797_s23 = smov 32  }
0x1a74   : > { %v12144_v26 = vpop.f32.mrb[104].mxu0 }
0x1a75   : > { %v8607_v15 = vpop.f32.mrb[105].mxu0  ;;  %v8672_v46 = vmul.f32 0.088388346, %v12144_v26 }
0x1a76   : > { %v12145_v62 = vpop.f32.mrb[106].mxu0  ;;  %v8670_v58 = vmul.f32 0.088388346, %v8607_v15 }
0x1a77   : > { %v8610_v7 = vpop.f32.mrb[107].mxu0  ;;  %v8673_v10 = vmul.f32 0.088388346, %v12145_v62 }
0x1a78   : > { %v8671_v33 = vmul.f32 0.088388346, %v8610_v7 }
0x1a7c   : > { %v12148_v9 = vpop.f32.mrb[108].mxu0 }
0x1a7d   : > { %v8623_v24 = vpop.f32.mrb[109].mxu0 }
0x1a7e   : > { %v12149_v47 = vpop.f32.mrb[110].mxu0 }
0x1a7f   : > { %v8626_v60 = vpop.f32.mrb[111].mxu0 }
0x1a84   : > { %v12152_v25 = vpop.f32.mrb[112].mxu0 }
0x1a85   : > { %v8639_v31 = vpop.f32.mrb[113].mxu0 }
0x1a86   : > { %v16940_v4 = vpop.f32.mrb[114].mxu0 }
0x1a87   : > { %v8642_v36 = vpop.f32.mrb[115].mxu0 }
0x1a8c   : > { %v16942_v5 = vpop.f32.mrb[116].mxu0 }
0x1a8d   : > { %v16944_v30 = vpop.f32.mrb[117].mxu0 }
0x1a8e   : > { %v16946_v39 = vpop.f32.mrb[118].mxu0 }
0x1a8f   : > { %v16948_v13 = vpop.f32.mrb[119].mxu0 }
0x1a96   : > { %v8488_v51 = vpop.permute.xlu0 %8487 }
0x1a97   : > { %v8686_v20 = vadd.f32 %v8670_v58, %v8488_v51  ;;  %v8674_v58 = vmul.f32 0.088388346, %v8623_v24  ;;  %v8676_v24 = vmul.f32 0.088388346, %v12148_v9  ;;  %v8678_v9 = vmul.f32 0.088388346, %v8639_v31 }
0x1a98   : > { %v8492_v34 = vpop.permute.xlu1 %8491  ;;  %v8680_v31 = vmul.f32 0.088388346, %v12152_v25  ;;  %v8682_v25 = vmul.f32 0.088388346, %v16944_v30  ;;  %v8684_v30 = vmul.f32 0.088388346, %v16942_v5 }
0x1a99   : > { %v8687_v42 = vadd.f32 %v8671_v33, %v8492_v34  ;;  %v8702_v61 = vsel %vm13837_vm2, -1e+09, %v8686_v20  ;;  %vm18771_vm2 = vcmp.eq.s32.totalorder %v13785_v43, 1  ;;  %v8675_v33 = vmul.f32 0.088388346, %v8626_v60 }
0x1a9a   : > { %v8496_v59 = vpop.permute.xlu0 %8495  ;;  %v16954_v40 = vsel %vm18769_vm13, -1e+09, %v8702_v61  ;;  %v8677_v60 = vmul.f32 0.088388346, %v12149_v47  ;;  %vm18785_vm13 = vcmp.eq.s32.totalorder %v18119_v29, 1 }
0x1a9b   : > { %v8688_v19 = vadd.f32 %v8672_v46, %v8496_v59  ;;  %8734 = vmax.xlane.f32.xlu0 %v16954_v40  ;;  %v8703_v15 = vsel %vm13842_vm3, -1e+09, %v8687_v42  ;;  %vm18772_vm3 = vcmp.eq.s32.totalorder %v13789_v11, 1 }
0x1a9c   : > { %v8500_v7 = vpop.permute.xlu1 %8499  ;;  %v16961_v26 = vsel %vm18770_vm15, -1e+09, %v8703_v15  ;;  %vm18786_vm15 = vcmp.eq.s32.totalorder %v13825_v38, 1 }
0x1a9d   : > { %v8689_v50 = vadd.f32 %v8673_v10, %v8500_v7  ;;  %8736 = vmax.xlane.f32.xlu1 %v16961_v26  ;;  %v8704_v3 = vsel %vm13847_vm4, -1e+09, %v8688_v19  ;;  %vm18773_vm4 = vcmp.eq.s32.totalorder %v13791_v14, 1  ;;  %v8679_v10 = vmul.f32 0.088388346, %v8642_v36 }
0x1a9e   : > { %v8504_v51 = vpop.permute.xlu0 %8503  ;;  %v16968_v62 = vsel %vm18771_vm2, -1e+09, %v8704_v3  ;;  %v8681_v36 = vmul.f32 0.088388346, %v16940_v4  ;;  %v8683_v4 = vmul.f32 0.088388346, %v16948_v13  ;;  %vm18787_vm2 = vnez %v18007_v49 }
0x1a9f   : > { %v8690_v54 = vadd.f32 %v8674_v58, %v8504_v51  ;;  %8738 = vmax.xlane.f32.xlu0 %v16968_v62  ;;  %v8705_v6 = vsel %vm13871_vm7, -1e+09, %v8689_v50  ;;  %vm18774_vm7 = vcmp.eq.s32.totalorder %v13797_v0, 1  ;;  %v8685_v13 = vmul.f32 0.088388346, %v16946_v39 }
0x1aa0   : > { %v8508_v20 = vpop.permute.xlu1 %8507  ;;  %v16977_v19 = vsel %vm18772_vm3, -1e+09, %v8705_v6  ;;  %vm18788_vm3 = vnez %v18009_v56 }
0x1aa1   : > { %v8691_v34 = vadd.f32 %v8675_v33, %v8508_v20  ;;  %v8706_v46 = vsel %vm13884_vm9, -1e+09, %v8690_v54  ;;  %vm18775_vm9 = vcmp.eq.s32.totalorder %v13793_v17, 1 }
0x1aa2   : > { %v8512_v55 = vpop.permute.xlu0 %8511  ;;  %v16981_v43 = vsel %vm18773_vm4, -1e+09, %v8706_v46  ;;  %vm18789_vm4 = vcmp.eq.s32.totalorder %v18238_v44, 1 }
0x1aa3   : > { %v8692_v42 = vadd.f32 %v8676_v24, %v8512_v55  ;;  %8740 = vmax.xlane.f32.xlu0 %v16977_v19  ;;  %8742 = vmax.xlane.f32.xlu1 %v16981_v43  ;;  %v8707_v12 = vsel %vm13898_vm12, -1e+09, %v8691_v34  ;;  %vm18777_vm12 = vcmp.eq.s32.totalorder %v13799_v23, 1 }
0x1aa4   : > { %v8516_v48 = vpop.permute.xlu1 %8515  ;;  %v16995_v47 = vsel %vm18775_vm9, -1e+09, %v8707_v12  ;;  %vm18791_vm9 = vnez %v18351_v45 }
0x1aa5   : > { %v8708_v11 = vsel %vm13893_vm11, -1e+09, %v8692_v42  ;;  %v8693_v61 = vadd.f32 %v8677_v60, %v8516_v48  ;;  %vm18776_vm11 = vnez %v17994_v16 }
0x1aa6   : > { %v8520_v59 = vpop.permute.xlu0 %8519  ;;  %v16991_v14 = vsel %vm18774_vm7, -1e+09, %v8708_v11  ;;  %vm18790_vm7 = vcmp.eq.s32.totalorder %v18240_v22, 1 }
0x1aa7   : > { %v8709_v53 = vsel %vm13923_vm14, -1e+09, %v8693_v61  ;;  %v8694_v15 = vadd.f32 %v8678_v9, %v8520_v59  ;;  %8746 = vmax.xlane.f32.xlu1 %v16991_v14  ;;  %8744 = vmax.xlane.f32.xlu0 %v16995_v47  ;;  %vm18779_vm14 = vnez %v17998_v28 }
0x1aa8   : > { %v8524_v52 = vpop.permute.xlu1 %8523  ;;  %v17005_v17 = vsel %vm18777_vm12, -1e+09, %v8709_v53  ;;  %vm18922_vm12 = vcmask 130048  }
0x1aa9   : > { %v8710_v0 = vsel %vm18776_vm11, -1e+09, %v8694_v15  ;;  %v8695_v7 = vadd.f32 %v8679_v10, %v8524_v52  ;;  %vm18792_vm11 = vcmp.eq.s32.totalorder %v18353_v32, 1 }
0x1aaa   : > { %v8528_v58 = vpop.permute.xlu0 %8527  ;;  %v17009_v41 = vsel %vm18778_vm10, -1e+09, %v8710_v0  ;;  %vm18924_vm10 = vmmov %vm18922_vm12 }
0x1aab   : > { %v8711_v50 = vsel %vm18779_vm14, -1e+09, %v8695_v7  ;;  %v8696_v3 = vadd.f32 %v8680_v31, %v8528_v58  ;;  %8748 = vmax.xlane.f32.xlu0 %v17005_v17  ;;  %8750 = vmax.xlane.f32.xlu1 %v17009_v41  ;;  %vm9447_vm14 = vcmask 261120  }
0x1aac   : > { %v8532_v16 = vpop.permute.xlu1 %8531  ;;  %v17025_v28 = vsel %vm18782_vm8, -1e+09, %v8711_v50  ;;  %vm9464_vm8 = vcmask 392192  }
0x1aad   : > { %v8712_v23 = vsel %vm18780_vm5, -1e+09, %v8696_v3  ;;  %v8697_v51 = vadd.f32 %v8681_v36, %v8532_v16  ;;  %vm18926_vm5 = vmmov %vm18924_vm10 }
0x1aae   : > { %v8536_v27 = vpop.permute.xlu0 %8535  ;;  %v17021_v33 = vsel %vm18781_vm6, -1e+09, %v8712_v23  ;;  %vm18928_vm6 = vmmov %vm18926_vm5 }
0x1aaf   : > { %v8713_v54 = vsel %vm18783_vm0, -1e+09, %v8697_v51  ;;  %v8698_v6 = vadd.f32 %v8682_v25, %v8536_v27  ;;  %8754 = vmax.xlane.f32.xlu1 %v17021_v33  ;;  %8752 = vmax.xlane.f32.xlu0 %v17025_v28  ;;  %vm9481_vm0 = vcmask 523264  }
0x1ab0   : > { %v8540_v57 = vpop.permute.xlu1 %8539  ;;  %v17037_v24 = vsel %vm18785_vm13, -1e+09, %v8713_v54  ;;  %vm18930_vm13 = vmmov %vm18926_vm5 }
0x1ab1   : > { %v8714_v21 = vsel %vm18784_vm1, -1e+09, %v8698_v6  ;;  %v8699_v20 = vadd.f32 %v8683_v4, %v8540_v57  ;;  %vm9498_vm1 = vcmask 654336  }
0x1ab2   : > { %v8544_v35 = vpop.permute.xlu0 %8543  ;;  %v17041_v1 = vsel %vm18786_vm15, -1e+09, %v8714_v21  ;;  %vm18932_vm15 = vmmov %vm18926_vm5 }
0x1ab3   : > { %v8715_v34 = vsel %vm18787_vm2, -1e+09, %v8699_v20  ;;  %v8700_v46 = vadd.f32 %v8684_v30, %v8544_v35  ;;  %8756 = vmax.xlane.f32.xlu0 %v17037_v24  ;;  %8758 = vmax.xlane.f32.xlu1 %v17041_v1  ;;  %vm18934_vm2 = vmmov %vm18926_vm5 }
0x1ab4   : > { %v8548_v63 = vpop.permute.xlu1 %8547  ;;  %v17056_v39 = vsel %vm18790_vm7, -1e+09, %v8715_v34  ;;  %vm18957_vm7 = vmmov %vm18934_vm2 }
0x1ab5   : > { %v8716_v29 = vsel %vm18788_vm3, -1e+09, %v8700_v46  ;;  %v8701_v5 = vadd.f32 %v8685_v13, %v8548_v63  ;;  %vm18936_vm3 = vmmov %vm18934_vm2 }
0x1ab6   : > { %v17052_v38 = vsel %vm18789_vm4, -1e+09, %v8716_v29  ;;  %vm9515_vm4 = vcmask 785408  }
0x1ab7   : > { %v8717_v49 = vsel %vm18791_vm9, -1e+09, %v8701_v5  ;;  %8762 = vmax.xlane.f32.xlu1 %v17052_v38  ;;  %8760 = vmax.xlane.f32.xlu0 %v17056_v39  ;;  %vm18959_vm9 = vmmov %vm18934_vm2 }
0x1ab8   : > { %v17064_v56 = vsel %vm18792_vm11, -1e+09, %v8717_v49  ;;  %vm18961_vm11 = vmmov %vm18934_vm2 }
0x1abb   : > { %8764 = vmax.xlane.f32.xlu0 %v17064_v56 }
0x1b28   : > { %v8735_v44 = vpop.xlane.xlu0 %8734 }
0x1b29   : > { %v8766_v55 = vsub.f32 %v16954_v40, %v8735_v44 }
0x1b2a   : > { %v8737_v60 = vpop.xlane.xlu1 %8736 }
0x1b2b   : > { %v8782_v22 = vmul.f32 1.442695, %v8766_v55  ;;  %v8767_v42 = vsub.f32 %v16961_v26, %v8737_v60 }
0x1b2c   : > { %v8739_v12 = vpop.xlane.xlu0 %8738 }
0x1b2d   : > { %13238 = vpow2.f32 %v8782_v22  ;;  %v8784_v45 = vmul.f32 1.442695, %v8767_v42  ;;  %v8768_v48 = vsub.f32 %v16968_v62, %v8739_v12  ;;  %v18794_v42 = vld [vmem:[#allocation43_spill] sm:$0xff] }
0x1b2e   : > { %v18795_v12 = vld [vmem:[#allocation23_spill] sm:$0xff] }
0x1b2f   : > { %13240 = vpow2.f32 %v8784_v45  ;;  %v8786_v9 = vmul.f32 1.442695, %v8768_v48  ;;  %v18796_v45 = vpack.i.bf16 %v18794_v42, %v18795_v12  ;;  %v18798_v48 = vld [vmem:[#allocation57_spill] sm:$0xff] }
0x1b30   : > { %v8741_v11 = vpop.xlane.xlu0 %8740  ;;  %v8743_v32 = vpop.xlane.xlu1 %8742  ;;  %v18847_v42 = vld [vmem:[#allocation73_spill] sm:$0xff] }
0x1b31   : > { %13242 = vpow2.f32 %v8786_v9  ;;  %v8769_v61 = vsub.f32 %v16977_v19, %v8741_v11  ;;  %v8770_v59 = vsub.f32 %v16981_v43, %v8743_v32  ;;  %v18799_v9 = vld [vmem:[#allocation22_spill] sm:$0xff]  ;;  %v18801_v32 = vld [vmem:[#allocation56_spill] sm:$0xff] }
0x1b32   : > { %v18800_v11 = vpack.i.bf16 %v18798_v48, %v18799_v9  ;;  %v18850_v48 = vld [vmem:[#allocation88_spill] sm:$0xff] }
0x1b33   : > { %v8788_v10 = vmul.f32 1.442695, %v8769_v61  ;;  %v8790_v40 = vmul.f32 1.442695, %v8770_v59  ;;  %v18802_v61 = vld [vmem:[#allocation24_spill] sm:$0xff] }
0x1b34   : > { %v8747_v53 = vpop.xlane.xlu1 %8746  ;;  %v8745_v15 = vpop.xlane.xlu0 %8744  ;;  %v18803_v59 = vpack.i.bf16 %v18801_v32, %v18802_v61  ;;  %v18853_v32 = vld [vmem:[#allocation89_spill] sm:$0xff] }
0x1b35   : > { %13244 = vpow2.f32 %v8788_v10  ;;  %v8772_v26 = vsub.f32 %v16991_v14, %v8747_v53  ;;  %v8771_v52 = vsub.f32 %v16995_v47, %v8745_v15  ;;  %v18804_v10 = vld [vmem:[#allocation21_spill] sm:$0xff]  ;;  %v18808_v15 = vld [vmem:[#allocation70_spill] sm:$0xff] }
0x1b36   : > { %13246 = vpow2.f32 %v8790_v40  ;;  %v18805_v40 = vld [vmem:[#allocation20_spill] sm:$0xff] }
0x1b37   : > { %v17074_v62 = vpop.eup %13238  ;;  %v8794_v31 = vmul.f32 1.442695, %v8772_v26  ;;  %v8792_v0 = vmul.f32 1.442695, %v8771_v52  ;;  %v18806_v53 = vpack.i.bf16 %v18804_v10, %v18805_v40  ;;  %v18809_v26 = vld [vmem:[#allocation26_spill] sm:$0xff]  ;;  %v18856_v10 = vld [vmem:[#allocation104_spill] sm:$0xff] }
0x1b38   : > { %v8749_v7 = vpop.xlane.xlu0 %8748  ;;  %v8751_v58 = vpop.xlane.xlu1 %8750  ;;  %8814 = vadd.xlane.f32.xlu1 %v17074_v62  ;;  %v18810_v52 = vpack.i.bf16 %v18808_v15, %v18809_v26  ;;  %v18859_v15 = vld [vmem:[#allocation105_spill] sm:$0xff] }
0x1b39   : > { %v17077_v19 = vpop.eup %13240  ;;  %13248 = vpow2.f32 %v8794_v31  ;;  %v8773_v43 = vsub.f32 %v17005_v17, %v8749_v7  ;;  %v8774_v36 = vsub.f32 %v17009_v41, %v8751_v58  ;;  %v18811_v31 = vld [vmem:[#allocation71_spill] sm:$0xff]  ;;  %v18815_v58 = vld [vmem:[#allocation86_spill] sm:$0xff] }
0x1b3a   : > { %13250 = vpow2.f32 %v8792_v0  ;;  %8816 = vadd.xlane.f32.xlu0 %v17077_v19  ;;  %v18812_v0 = vld [vmem:[#allocation25_spill] sm:$0xff] }
0x1b3b   : > { %v17082_v14 = vpop.eup %13242  ;;  %v8796_v47 = vmul.f32 1.442695, %v8773_v43  ;;  %v8798_v50 = vmul.f32 1.442695, %v8774_v36  ;;  %v18813_v7 = vpack.i.bf16 %v18811_v31, %v18812_v0  ;;  %v18816_v43 = vld [vmem:[#allocation84_spill] sm:$0xff] }
0x1b3c   : > { %v8755_v3 = vpop.xlane.xlu1 %8754  ;;  %v8753_v16 = vpop.xlane.xlu0 %8752  ;;  %8818 = vadd.xlane.f32.xlu1 %v17082_v14  ;;  %v18817_v36 = vpack.i.bf16 %v18815_v58, %v18816_v43  ;;  %v18862_v31 = vld [vmem:[#allocation12_spill] sm:$0xff] }
0x1b3d   : > { %13252 = vpow2.f32 %v8796_v47  ;;  %v8776_v25 = vsub.f32 %v17021_v33, %v8755_v3  ;;  %v8775_v23 = vsub.f32 %v17025_v28, %v8753_v16  ;;  %v18818_v47 = vld [vmem:[#allocation87_spill] sm:$0xff]  ;;  %v18822_v16 = vld [vmem:[#allocation102_spill] sm:$0xff]  ;;  %v18865_v58 = vld [vmem:[#allocation16_spill] sm:$0xff] }
0x1b3e   : > { %13254 = vpow2.f32 %v8798_v50  ;;  %v18819_v50 = vld [vmem:[#allocation85_spill] sm:$0xff] }
0x1b3f   : > { %v17087_v17 = vpop.eup %13244  ;;  %v8802_v41 = vmul.f32 1.442695, %v8776_v25  ;;  %v8800_v51 = vmul.f32 1.442695, %v8775_v23  ;;  %v18820_v3 = vpack.i.bf16 %v18818_v47, %v18819_v50  ;;  %v18823_v25 = vld [vmem:[#allocation100_spill] sm:$0xff] }
0x1b40   : > { %v17089_v27 = vpop.eup %13246  ;;  %v8757_v4 = vpop.xlane.xlu0 %8756  ;;  %8820 = vadd.xlane.f32.xlu0 %v17087_v17  ;;  %v18824_v23 = vpack.i.bf16 %v18822_v16, %v18823_v25  ;;  %v18868_v47 = vld [vmem:[#allocation48_spill] sm:$0xff]  ;;  %v18871_v16 = vld [vmem:[#allocation49_spill] sm:$0xff] }
0x1b41   : > { %v8759_v54 = vpop.xlane.xlu1 %8758  ;;  %13256 = vpow2.f32 %v8802_v41  ;;  %v8777_v6 = vsub.f32 %v17037_v24, %v8757_v4  ;;  %8822 = vadd.xlane.f32.xlu1 %v17089_v27  ;;  %v18825_v41 = vld [vmem:[#allocation103_spill] sm:$0xff] }
0x1b42   : > { %v8778_v33 = vsub.f32 %v17041_v1, %v8759_v54  ;;  %13258 = vpow2.f32 %v8800_v51  ;;  %v18826_v51 = vld [vmem:[#allocation101_spill] sm:$0xff]  ;;  %v18829_v54 = vpack.i.bf16 %v16820_v2, %v16816_v37 }
0x1b43   : > { %v17095_v28 = vpop.eup %13248  ;;  %v8804_v57 = vmul.f32 1.442695, %v8777_v6  ;;  %v18827_v4 = vpack.i.bf16 %v18825_v41, %v18826_v51  ;;  %v18830_v6 = vpack.i.bf16 %v16824_v8, %v16818_v18  ;;  %v18840_v2 = vld [vmem:[#allocation61_spill] sm:$0xff]  ;;  %v18843_v8 = vld [vmem:[#allocation74_spill] sm:$0xff] }
0x1b44   : > { %v8806_v30 = vmul.f32 1.442695, %v8778_v33  ;;  %v17097_v21 = vpop.eup %13250  ;;  %v8761_v35 = vpop.xlane.xlu0 %8760  ;;  %v18831_v33 = vld [vmem:[#allocation46_spill] sm:$0xff] }
0x1b45   : > { %v8763_v20 = vpop.xlane.xlu1 %8762  ;;  %13260 = vpow2.f32 %v8804_v57  ;;  %8826 = vadd.xlane.f32.xlu1 %v17095_v28  ;;  %8824 = vadd.xlane.f32.xlu0 %v17097_v21  ;;  %v8779_v24 = vsub.f32 %v17056_v39, %v8761_v35  ;;  %v18832_v57 = vld [vmem:[#allocation44_spill] sm:$0xff]  ;;  %v18835_v35 = vld [vmem:[#allocation45_spill] sm:$0xff]  ;;  %v18874_v41 = vld [vmem:[#allocation62_spill] sm:$0xff] }
0x1b46   : > { %v8780_v13 = vsub.f32 %v17052_v38, %v8763_v20  ;;  %13262 = vpow2.f32 %v8806_v30  ;;  %v18833_v30 = vpack.i.bf16 %v18831_v33, %v18832_v57  ;;  %v18834_v20 = vld [vmem:[#allocation47_spill] sm:$0xff]  ;;  %v18879_v33 = vld [vmem:[#allocation78_spill] sm:$0xff]  ;;  %v18880_v57 = vld [vmem:[#allocation76_spill] sm:$0xff] }
0x1b47   : > { %v17103_v1 = vpop.eup %13252  ;;  %v8808_v46 = vmul.f32 1.442695, %v8779_v24  ;;  %v18837_v24 = vld [vmem:[#allocation60_spill] sm:$0xff] }
0x1b48   : > { %v8810_v34 = vmul.f32 1.442695, %v8780_v13  ;;  %v17105_v63 = vpop.eup %13254  ;;  %v8765_v29 = vpop.xlane.xlu0 %8764  ;;  %v18836_v13 = vpack.i.bf16 %v18834_v20, %v18835_v35  ;;  %v18882_v20 = vld [vmem:[#allocation79_spill] sm:$0xff]  ;;  %v18883_v35 = vld [vmem:[#allocation77_spill] sm:$0xff] }
0x1b49   : > { %8830 = vadd.xlane.f32.xlu1 %v17105_v63  ;;  %8828 = vadd.xlane.f32.xlu0 %v17103_v1  ;;  %v8781_v5 = vsub.f32 %v17064_v56, %v8765_v29  ;;  %v18844_v29 = vld [vmem:[#allocation72_spill] sm:$0xff] }
0x1b4a   : > { %13264 = vpow2.f32 %v8810_v34  ;;  %v18838_v34 = vld [vmem:[#allocation58_spill] sm:$0xff] }
0x1b4b   : > { %13266 = vpow2.f32 %v8808_v46  ;;  %v17110_v38 = vpop.eup %13256  ;;  %v8812_v49 = vmul.f32 1.442695, %v8781_v5  ;;  %v18839_v37 = vpack.i.bf16 %v18837_v24, %v18838_v34  ;;  %v18841_v46 = vld [vmem:[#allocation59_spill] sm:$0xff]  ;;  %v18845_v5 = vpack.i.bf16 %v18843_v8, %v18844_v29  ;;  %v18885_v24 = vld [vmem:[#allocation94_spill] sm:$0xff]  ;;  %v18886_v34 = vld [vmem:[#allocation92_spill] sm:$0xff] }
0x1b4c   : > { %v17112_v39 = vpop.eup %13258  ;;  %v18842_v18 = vpack.i.bf16 %v18840_v2, %v18841_v46  ;;  %v18888_v2 = vld [vmem:[#allocation95_spill] sm:$0xff]  ;;  %v18889_v46 = vld [vmem:[#allocation93_spill] sm:$0xff]  ;;  %v18891_v8 = vld [vmem:[#allocation110_spill] sm:$0xff] }
0x1b4d   : > { %13268 = vpow2.f32 %v8812_v49  ;;  %8834 = vadd.xlane.f32.xlu1 %v17110_v38  ;;  %8832 = vadd.xlane.f32.xlu0 %v17112_v39  ;;  %v18846_v49 = vld [vmem:[#allocation75_spill] sm:$0xff]  ;;  %v18892_v29 = vld [vmem:[#allocation108_spill] sm:$0xff] }
0x1b4e   : > { %v18848_v12 = vpack.i.bf16 %v18846_v49, %v18847_v42  ;;  %v18894_v49 = vld [vmem:[#allocation111_spill] sm:$0xff]  ;;  %v18895_v42 = vld [vmem:[#allocation109_spill] sm:$0xff] }
0x1b4f   : > { %v17116_v44 = vpop.eup %13260 }
0x1b50   : > { %v17118_v55 = vpop.eup %13262 }
0x1b51   : > { %8838 = vadd.xlane.f32.xlu1 %v17118_v55  ;;  %8836 = vadd.xlane.f32.xlu0 %v17116_v44 }
0x1b54   : > { %v17122_v56 = vpop.eup %13264 }
0x1b55   : > { %v17124_v60 = vpop.eup %13266  ;;  %8842 = vadd.xlane.f32.xlu1 %v17122_v56 }
0x1b56   : > { %8840 = vadd.xlane.f32.xlu0 %v17124_v60 }
0x1b57   : > { %v17128_v22 = vpop.eup %13268 }
0x1b5a   : > { %8844 = vadd.xlane.f32.xlu0 %v17128_v22 }
0x1b66   : > { %12436 = vrot.lane.b32.xlu1 %v18796_v45, %s18793_s9  ;;  %v18849_v45 = vld [vmem:[#allocation90_spill] sm:$0xff] }
0x1b67   : > { %v18851_v9 = vpack.i.bf16 %v18849_v45, %v18850_v48  ;;  %v18897_v45 = vld [vmem:[#allocation19_spill] sm:$0xff] }
0x1b68   : > { %v18898_v48 = vld [vmem:[#allocation15_spill] sm:$0xff] }
0x1b6a   : > { %12446 = vrot.lane.b32.xlu1 %v18800_v11, %s18797_s23  ;;  %v18852_v11 = vld [vmem:[#allocation91_spill] sm:$0xff] }
0x1b6b   : > { %v18854_v61 = vpack.i.bf16 %v18852_v11, %v18853_v32  ;;  %v18900_v11 = vld [vmem:[#allocation17_spill] sm:$0xff] }
0x1b6c   : > { %v18901_v32 = vld [vmem:[#allocation13_spill] sm:$0xff] }
0x1b6e   : > { %12451 = vrot.lane.b32.xlu1 %v18803_v59, %s18797_s23  ;;  %v18855_v59 = vld [vmem:[#allocation106_spill] sm:$0xff] }
0x1b6f   : > { %v18857_v40 = vpack.i.bf16 %v18855_v59, %v18856_v10  ;;  %v18903_v59 = vld [vmem:[#allocation54_spill] sm:$0xff]  ;;  %v18904_v10 = vld [vmem:[#allocation52_spill] sm:$0xff] }
0x1b70   : > { %12441 = vrot.lane.b32.xlu0 %v18806_v53, %s18793_s9  ;;  %v18858_v53 = vld [vmem:[#allocation107_spill] sm:$0xff] }
0x1b71   : > { %v18860_v26 = vpack.i.bf16 %v18858_v53, %v18859_v15  ;;  %v18906_v53 = vld [vmem:[#allocation55_spill] sm:$0xff]  ;;  %v18907_v15 = vld [vmem:[#allocation53_spill] sm:$0xff] }
0x1b72   : > { %12461 = vrot.lane.b32.xlu1 %v18810_v52, %s18807_s24  ;;  %v18861_v52 = vld [vmem:[#allocation18_spill] sm:$0xff] }
0x1b73   : > { %v18863_v0 = vpack.i.bf16 %v18861_v52, %v18862_v31  ;;  %v18909_v52 = vld [vmem:[#allocation68_spill] sm:$0xff]  ;;  %v18910_v31 = vld [vmem:[#allocation66_spill] sm:$0xff] }
0x1b74   : > { %12456 = vrot.lane.b32.xlu0 %v18813_v7, %s18807_s24  ;;  %v18864_v7 = vld [vmem:[#allocation14_spill] sm:$0xff] }
0x1b75   : > { %v18866_v43 = vpack.i.bf16 %v18864_v7, %v18865_v58  ;;  %v18912_v7 = vld [vmem:[#allocation69_spill] sm:$0xff]  ;;  %v18913_v58 = vld [vmem:[#allocation67_spill] sm:$0xff] }
0x1b76   : > { %12471 = vrot.lane.b32.xlu1 %v18817_v36, %s18814_s21  ;;  %v18867_v36 = vld [vmem:[#allocation50_spill] sm:$0xff] }
0x1b77   : > { %v18869_v50 = vpack.i.bf16 %v18867_v36, %v18868_v47  ;;  %v18915_v36 = vld [vmem:[#allocation82_spill] sm:$0xff]  ;;  %v18916_v47 = vld [vmem:[#allocation80_spill] sm:$0xff] }
0x1b78   : > { %12466 = vrot.lane.b32.xlu0 %v18820_v3, %s18814_s21  ;;  %v18870_v3 = vld [vmem:[#allocation51_spill] sm:$0xff] }
0x1b79   : > { %v18872_v25 = vpack.i.bf16 %v18870_v3, %v18871_v16  ;;  %v18918_v3 = vld [vmem:[#allocation83_spill] sm:$0xff]  ;;  %v18919_v16 = vld [vmem:[#allocation81_spill] sm:$0xff] }
0x1b7a   : > { %12481 = vrot.lane.b32.xlu1 %v18824_v23, %s18821_s22  ;;  %v18873_v23 = vld [vmem:[#allocation64_spill] sm:$0xff] }
0x1b7b   : > { %v18875_v51 = vpack.i.bf16 %v18873_v23, %v18874_v41 }
0x1b7c   : > { %12476 = vrot.lane.b32.xlu0 %v18827_v4, %s18821_s22  ;;  %v18876_v4 = vld [vmem:[#allocation65_spill] sm:$0xff] }
0x1b7e   : > { %12491 = vrot.lane.b32.xlu1 %v18829_v54, %s18828_s12  ;;  %v18877_v54 = vld [vmem:[#allocation63_spill] sm:$0xff] }
0x1b80   : > { %12486 = vrot.lane.b32.xlu0 %v18830_v6, %s18828_s12  ;;  %v18878_v6 = vpack.i.bf16 %v18876_v4, %v18877_v54 }
0x1b82   : > { %12501 = vrot.lane.b32.xlu1 %v18833_v30, %s18793_s9  ;;  %v18881_v30 = vpack.i.bf16 %v18879_v33, %v18880_v57 }
0x1b84   : > { %12496 = vrot.lane.b32.xlu0 %v18836_v13, %s18793_s9  ;;  %v18884_v13 = vpack.i.bf16 %v18882_v20, %v18883_v35 }
0x1b86   : > { %12511 = vrot.lane.b32.xlu1 %v18839_v37, %s18797_s23  ;;  %v18887_v37 = vpack.i.bf16 %v18885_v24, %v18886_v34 }
0x1b88   : > { %12506 = vrot.lane.b32.xlu0 %v18842_v18, %s18797_s23  ;;  %v18890_v18 = vpack.i.bf16 %v18888_v2, %v18889_v46 }
0x1b8a   : > { %12521 = vrot.lane.b32.xlu1 %v18845_v5, %s18807_s24  ;;  %v18893_v5 = vpack.i.bf16 %v18891_v8, %v18892_v29 }
0x1b8c   : > { %12516 = vrot.lane.b32.xlu0 %v18848_v12, %s18807_s24  ;;  %v18896_v12 = vpack.i.bf16 %v18894_v49, %v18895_v42 }
0x1b8e   : > { %12531 = vrot.lane.b32.xlu1 %v18851_v9, %s18814_s21  ;;  %v18899_v9 = vpack.i.bf16 %v18897_v45, %v18898_v48 }
0x1b90   : > { %12526 = vrot.lane.b32.xlu0 %v18854_v61, %s18814_s21  ;;  %v18902_v61 = vpack.i.bf16 %v18900_v11, %v18901_v32 }
0x1b92   : > { %12541 = vrot.lane.b32.xlu1 %v18857_v40, %s18821_s22  ;;  %v18905_v40 = vpack.i.bf16 %v18903_v59, %v18904_v10 }
0x1b94   : > { %12536 = vrot.lane.b32.xlu0 %v18860_v26, %s18821_s22  ;;  %v18908_v26 = vpack.i.bf16 %v18906_v53, %v18907_v15 }
0x1b96   : > { %12551 = vrot.lane.b32.xlu1 %v18863_v0, %s18828_s12  ;;  %v18911_v0 = vpack.i.bf16 %v18909_v52, %v18910_v31 }
0x1b98   : > { %12546 = vrot.lane.b32.xlu0 %v18866_v43, %s18828_s12  ;;  %v18914_v43 = vpack.i.bf16 %v18912_v7, %v18913_v58 }
0x1b9a   : > { %12561 = vrot.lane.b32.xlu1 %v18869_v50, %s18793_s9  ;;  %v18917_v50 = vpack.i.bf16 %v18915_v36, %v18916_v47 }
0x1b9c   : > { %12556 = vrot.lane.b32.xlu0 %v18872_v25, %s18793_s9  ;;  %v18920_v25 = vpack.i.bf16 %v18918_v3, %v18919_v16 }
0x1b9e   : > { %12571 = vrot.lane.b32.xlu1 %v18875_v51, %s18797_s23 }
0x1ba0   : > { %12566 = vrot.lane.b32.xlu0 %v18878_v6, %s18797_s23 }
0x1ba2   : > { %12581 = vrot.lane.b32.xlu1 %v18881_v30, %s18807_s24 }
0x1ba4   : > { %12576 = vrot.lane.b32.xlu0 %v18884_v13, %s18807_s24 }
0x1ba6   : > { %12591 = vrot.lane.b32.xlu1 %v18887_v37, %s18814_s21 }
0x1ba8   : > { %12586 = vrot.lane.b32.xlu0 %v18890_v18, %s18814_s21 }
0x1baa   : > { %12601 = vrot.lane.b32.xlu1 %v18893_v5, %s18821_s22 }
0x1bac   : > { %12596 = vrot.lane.b32.xlu0 %v18896_v12, %s18821_s22 }
0x1bae   : > { %12611 = vrot.lane.b32.xlu1 %v18899_v9, %s18828_s12 }
0x1bb0   : > { %12606 = vrot.lane.b32.xlu0 %v18902_v61, %s18828_s12 }
0x1bb2   : > { %12621 = vrot.lane.b32.xlu1 %v18905_v40, %s18793_s9 }
0x1bb4   : > { %12616 = vrot.lane.b32.xlu0 %v18908_v26, %s18793_s9 }
0x1bb6   : > { %12631 = vrot.lane.b32.xlu1 %v18911_v0, %s18797_s23  ;;  %v18923_v0 = vld [vmem:[#allocation28_spill] sm:$0xff] }
0x1bb8   : > { %12626 = vrot.lane.b32.xlu0 %v18914_v43, %s18797_s23  ;;  %s18937_s23 = smov 112  }
0x1bba   : > { %12641 = vrot.lane.b32.xlu1 %v18917_v50, %s18807_s24 }
0x1bbc   : > { %12636 = vrot.lane.b32.xlu0 %v18920_v25, %s18807_s24  ;;  %s336_s24 = sand.u32 1, %s13384_s28  }
0x1bbd   : > { %s17690_s30 = scalar_lea.sflag [#allocation3], %s336_s24 }
0x1bc5   : > { %v8815_v23 = vpop.xlane.xlu1 %8814 }
0x1bc6   : > { %13270 = vrcp.f32 %v8815_v23 }
0x1bc7   : > { %v8817_v41 = vpop.xlane.xlu0 %8816 }
0x1bc8   : > { %13272 = vrcp.f32 %v8817_v41 }
0x1bc9   : > { %v8819_v51 = vpop.xlane.xlu1 %8818 }
0x1bca   : > { %13274 = vrcp.f32 %v8819_v51 }
0x1bcd   : > { %v8821_v4 = vpop.xlane.xlu0 %8820 }
0x1bce   : > { %v8823_v54 = vpop.xlane.xlu1 %8822  ;;  %13276 = vrcp.f32 %v8821_v4 }
0x1bcf   : > { %13278 = vrcp.f32 %v8823_v54  ;;  %v18925_v54 = vld [vmem:[#allocation29_spill] sm:$0xff] }
0x1bd0   : > { %v13271_v6 = vpop.eup %13270 }
0x1bd1   : > { %v8862_v20 = vmul.f32 %v13271_v6, %v17074_v62 }
0x1bd2   : > { %v13273_v33 = vpop.eup %13272  ;;  %v8827_v57 = vpop.xlane.xlu1 %8826 }
0x1bd3   : > { %v8825_v30 = vpop.xlane.xlu0 %8824  ;;  %v8863_v35 = vmul.f32 %v13273_v33, %v17077_v19  ;;  %v18927_v33 = vld [vmem:[#allocation27_spill] sm:$0xff] }
0x1bd4   : > { %13280 = vrcp.f32 %v8825_v30  ;;  %v13275_v24 = vpop.eup %13274 }
0x1bd5   : > { %v8878_v13 = vpack.c.bf16 %v8863_v35, %v8862_v20  ;;  %13282 = vrcp.f32 %v8827_v57  ;;  %v8864_v46 = vmul.f32 %v13275_v24, %v17082_v14 }
0x1bd6   : > { %v8831_v34 = vpop.xlane.xlu1 %8830 }
0x1bd7   : > { %v8829_v37 = vpop.xlane.xlu0 %8828  ;;  %12174 = vmatprep.mubr.bf16.mxu1 %v8878_v13 }
0x1bd8   : > { %v13277_v2 = vpop.eup %13276  ;;  %13284 = vrcp.f32 %v8829_v37 }
0x1bd9   : > { %v8865_v18 = vmul.f32 %v13277_v2, %v17087_v17  ;;  %13286 = vrcp.f32 %v8831_v34  ;;  %v13279_v62 = vpop.eup %13278 }
0x1bda   : > { %v8835_v8 = vpop.xlane.xlu1 %8834  ;;  %v8866_v12 = vmul.f32 %v13279_v62, %v17089_v27 }
0x1bdb   : > { %v8833_v29 = vpop.xlane.xlu0 %8832  ;;  %v8879_v5 = vpack.c.bf16 %v8865_v18, %v8864_v46 }
0x1bdc   : > { %13288 = vrcp.f32 %v8833_v29 }
0x1bdd   : > { %13290 = vrcp.f32 %v8835_v8  ;;  %12175 = vmatmul.mubr.bf16.vlgmr.msra.gmra.mrb[120].mxu1 %v8879_v5 }
0x1bde   : > { %v13281_v19 = vpop.eup %13280  ;;  %v8839_v49 = vpop.xlane.xlu1 %8838 }
0x1bdf   : > { %v8837_v42 = vpop.xlane.xlu0 %8836  ;;  %v8867_v45 = vmul.f32 %v13281_v19, %v17097_v21  ;;  %v13283_v48 = vpop.eup %13282 }
0x1be0   : > { %13292 = vrcp.f32 %v8837_v42  ;;  %v8868_v61 = vmul.f32 %v13283_v48, %v17095_v28  ;;  %v18921_v28 = vld [vmem:[#allocation30_spill] sm:$0xff] }
0x1be1   : > { %v8880_v14 = vpack.c.bf16 %v8867_v45, %v8866_v12  ;;  %13294 = vrcp.f32 %v8839_v49 }
0x1be2   : > { %v13285_v9 = vpop.eup %13284  ;;  %v8843_v17 = vpop.xlane.xlu1 %8842 }
0x1be3   : > { %v8841_v11 = vpop.xlane.xlu0 %8840  ;;  %v13287_v32 = vpop.eup %13286  ;;  %v8869_v59 = vmul.f32 %v13285_v9, %v17103_v1  ;;  %12178 = vmatprep.mubr.bf16.mxu1 %v8880_v14 }
0x1be4   : > { %13296 = vrcp.f32 %v8841_v11  ;;  %v8870_v21 = vmul.f32 %v13287_v32, %v17105_v63 }
0x1be5   : > { %v8881_v10 = vpack.c.bf16 %v8869_v59, %v8868_v61  ;;  %13298 = vrcp.f32 %v8843_v17 }
0x1be6   : > { %v13289_v40 = vpop.eup %13288  ;;  %v12437_v27 = vpop.permute.xlu1 %12436 }
0x1be7   : > { %v8845_v53 = vpop.xlane.xlu0 %8844  ;;  %v13291_v15 = vpop.eup %13290  ;;  %v12439_v26 = vunpack.i.h.bf16 %v12437_v27  ;;  %v12438_v52 = vunpack.i.l.bf16 %v12437_v27  ;;  %12179 = vmatmul.mubr.bf16.gmra.mrb[124].mxu1 %v8881_v10  ;;  %v8871_v31 = vmul.f32 %v13289_v40, %v17112_v39 }
0x1be8   : > { %13300 = vrcp.f32 %v8845_v53  ;;  %v8872_v36 = vmul.f32 %v13291_v15, %v17110_v38 }
0x1be9   : > { %v9432_v1 = vsel %vm18922_vm12, %v18921_v28, %v12439_v26  ;;  %v9431_v7 = vsel %vm18924_vm10, %v18923_v0, %v12438_v52  ;;  %v8882_v58 = vpack.c.bf16 %v8871_v31, %v8870_v21  ;;  %vm18963_vm12 = vmmov %vm18934_vm2  ;;  %vm9532_vm10 = vcmask 916480  }
0x1bea   : > { %v13293_v43 = vpop.eup %13292  ;;  %v12447_v47 = vpop.permute.xlu1 %12446 }
0x1beb   : > { %v12442_v63 = vpop.permute.xlu0 %12441  ;;  %v8873_v50 = vmul.f32 %v13293_v43, %v17116_v44  ;;  %v12449_v3 = vunpack.i.h.bf16 %v12447_v47  ;;  %v12448_v16 = vunpack.i.l.bf16 %v12447_v47  ;;  %12182 = vmatprep.mubr.bf16.mxu1 %v8882_v58  ;;  %v13295_v23 = vpop.eup %13294  ;;  %v18929_v47 = vld [vmem:[#allocation34_spill] sm:$0xff] }
0x1bec   : > { %v12444_v25 = vunpack.i.h.bf16 %v12442_v63  ;;  %v12443_v39 = vunpack.i.l.bf16 %v12442_v63  ;;  %v8874_v37 = vmul.f32 %v13295_v23, %v17118_v55  ;;  %v18933_v23 = vld [vmem:[#allocation33_spill] sm:$0xff] }
0x1bed   : > { %v8883_v41 = vpack.c.bf16 %v8873_v50, %v8872_v36  ;;  %v9448_v51 = vsel %vm9447_vm14, %v9431_v7, %v12448_v16  ;;  %v9449_v4 = vsel %vm9447_vm14, %v9432_v1, %v12449_v3  ;;  %v18931_v50 = vld [vmem:[#allocation32_spill] sm:$0xff] }
0x1bee   : > { %v9434_v6 = vsel %vm18926_vm5, %v18925_v54, %v12444_v25  ;;  %v13297_v38 = vpop.eup %13296  ;;  %v9433_v57 = vsel %vm18928_vm6, %v18927_v33, %v12443_v39  ;;  %v12452_v30 = vpop.permute.xlu1 %12451  ;;  %v12782_v54 = vld [vmem:[%s17740_s4] sm:$0xff]   ;;  %v12785_v33 = vld [vmem:[%s17740_s4 + $0x18] sm:$0xff]   ;;  %vm18965_vm5 = vmmov %vm18934_vm2 }
0x1bef   : > { %v12457_v44 = vpop.permute.xlu0 %12456  ;;  %v13299_v20 = vpop.eup %13298  ;;  %v12454_v35 = vunpack.i.h.bf16 %v12452_v30  ;;  %v12453_v13 = vunpack.i.l.bf16 %v12452_v30  ;;  %12183 = vmatmul.mubr.bf16.gmra.mrb[128].mxu1 %v8883_v41  ;;  %v8875_v2 = vmul.f32 %v13297_v38, %v17124_v60  ;;  %12190 = vmatprep.subr.bf16.mxu0 %v12782_v54  ;;  %v12784_v38 = vld [vmem:[%s17740_s4 + $0x10] sm:$0xff]   ;;  %v12787_v30 = vld [vmem:[%s17740_s4 + $0x28] sm:$0xff]   ;;  %vm18967_vm6 = vmmov %vm18934_vm2 }
0x1bf0   : > { %v12459_v24 = vunpack.i.h.bf16 %v12457_v44  ;;  %v12458_v34 = vunpack.i.l.bf16 %v12457_v44  ;;  %v8876_v62 = vmul.f32 %v13299_v20, %v17122_v56  ;;  %12191 = vmatpush3.bf16.msra.mxu0 %v12782_v54  ;;  %v12788_v44 = vld [vmem:[%s17740_s4 + $0x30] sm:$0xff]   ;;  %v12789_v20 = vld [vmem:[%s17740_s4 + $0x38] sm:$0xff]  }
0x1bf1   : > { %v9450_v18 = vsel %vm9447_vm14, %v9433_v57, %v12453_v13  ;;  %v9451_v8 = vsel %vm9447_vm14, %v9434_v6, %v12454_v35  ;;  %v8884_v42 = vpack.c.bf16 %v8875_v2, %v8874_v37  ;;  %v12783_v6 = vld [vmem:[%s17740_s4 + $0x8] sm:$0xff]   ;;  %v12786_v57 = vld [vmem:[%s17740_s4 + $0x20] sm:$0xff]  }
0x1bf2   : > { %v13301_v46 = vpop.eup %13300  ;;  %v9466_v29 = vsel %vm9464_vm8, %v9449_v4, %v12459_v24  ;;  %v9465_v5 = vsel %vm9464_vm8, %v9448_v51, %v12458_v34  ;;  %v12462_v49 = vpop.permute.xlu1 %12461  ;;  %v18935_v51 = vld [vmem:[#allocation31_spill] sm:$0xff]  ;;  %12192 = vmatprep.subr.bf16.mxu0 %v12783_v6 }
0x1bf3   : > { %v8877_v19 = vmul.f32 %v13301_v46, %v17128_v22  ;;  %v12467_v12 = vpop.permute.xlu0 %12466  ;;  %v12464_v55 = vunpack.i.h.bf16 %v12462_v49  ;;  %v12463_v45 = vunpack.i.l.bf16 %v12462_v49  ;;  %12186 = vmatprep.mubr.bf16.mxu1 %v8884_v42  ;;  %v18938_v46 = vld [vmem:[#allocation98_spill] sm:$0xff] }
0x1bf4   : > { %v12469_v60 = vunpack.i.h.bf16 %v12467_v12  ;;  %v12468_v48 = vunpack.i.l.bf16 %v12467_v12  ;;  %12193 = vmatpush3.bf16.msra.mxu0 %v12783_v6 }
0x1bf5   : > { %v8885_v14 = vpack.c.bf16 %v8877_v19, %v8876_v62  ;;  %v9467_v9 = vsel %vm9464_vm8, %v9450_v18, %v12463_v45  ;;  %v9468_v17 = vsel %vm9464_vm8, %v9451_v8, %v12464_v55  ;;  %12194 = vmatprep.subr.bf16.mxu0 %v12784_v38  ;;  %v18939_v18 = vld [vmem:[#allocation96_spill] sm:$0xff]  ;;  %v18942_v62 = vld [vmem:[#allocation97_spill] sm:$0xff] }
0x1bf6   : > { %v9482_v11 = vsel %vm9481_vm0, %v9465_v5, %v12468_v48  ;;  %v9483_v56 = vsel %vm9481_vm0, %v9466_v29, %v12469_v60  ;;  %v12472_v32 = vpop.permute.xlu1 %12471  ;;  %v18940_v8 = vpack.i.bf16 %v18938_v46, %v18939_v18  ;;  %v18941_v5 = vld [vmem:[#allocation99_spill] sm:$0xff]  ;;  %v18944_v48 = vld [vmem:[#allocation114_spill] sm:$0xff] }
0x1bf7   : > { %v12477_v22 = vpop.permute.xlu0 %12476  ;;  %v12474_v61 = vunpack.i.h.bf16 %v12472_v32  ;;  %v12473_v59 = vunpack.i.l.bf16 %v12472_v32  ;;  %12187 = vmatmul.mubr.bf16.gmra.mrb[132].mxu1 %v8885_v14  ;;  %v18943_v19 = vpack.i.bf16 %v18941_v5, %v18942_v62  ;;  %v18945_v14 = vld [vmem:[#allocation112_spill] sm:$0xff] }
0x1bf8   : > { %v12479_v10 = vunpack.i.h.bf16 %v12477_v22  ;;  %v12478_v40 = vunpack.i.l.bf16 %v12477_v22  ;;  %12195 = vmatpush3.bf16.msra.mxu0 %v12784_v38 }
0x1bf9   : > { %v9484_v27 = vsel %vm9481_vm0, %v9467_v9, %v12473_v59  ;;  %v9485_v53 = vsel %vm9481_vm0, %v9468_v17, %v12474_v61  ;;  %12196 = vmatprep.subr.bf16.mxu0 %v12785_v33  ;;  %v18946_v9 = vpack.i.bf16 %v18944_v48, %v18945_v14 }
0x1bfa   : > { %v17336_v21 = vsel %vm9498_vm1, %v9482_v11, %v12478_v40  ;;  %v17339_v15 = vsel %vm9498_vm1, %v9483_v56, %v12479_v10  ;;  %v12482_v26 = vpop.permute.xlu1 %12481  ;;  %v18947_v11 = vld [vmem:[#allocation115_spill] sm:$0xff]  ;;  %v18948_v56 = vld [vmem:[#allocation113_spill] sm:$0xff] }
0x1bfb   : > { %v17341_v52 = vpop.permute.xlu0 %12486  ;;  %v12484_v31 = vunpack.i.h.bf16 %v12482_v26  ;;  %v12483_v28 = vunpack.i.l.bf16 %v12482_v26  ;;  %v18949_v32 = vpack.i.bf16 %v18947_v11, %v18948_v56 }
0x1bfc   : > { %12197 = vmatpush3.bf16.msra.mxu0 %v12785_v33  ;;  %v12489_v5 = vunpack.i.h.bf16 %v17341_v52  ;;  %v12488_v62 = vunpack.i.l.bf16 %v17341_v52 }
0x1bfd   : > { %v17344_v1 = vsel %vm9498_vm1, %v9484_v27, %v12483_v28  ;;  %v17347_v0 = vsel %vm9498_vm1, %v9485_v53, %v12484_v31  ;;  %12198 = vmatprep.subr.bf16.mxu0 %v12786_v57  ;;  %v18950_v27 = vld [vmem:[#allocation118_spill] sm:$0xff]  ;;  %v18951_v53 = vld [vmem:[#allocation116_spill] sm:$0xff]  ;;  %v18953_v28 = vld [vmem:[#allocation119_spill] sm:$0xff] }
0x1bfe   : > { %v17349_v7 = vpop.permute.xlu1 %12491  ;;  %v18952_v26 = vpack.i.bf16 %v18950_v27, %v18951_v53  ;;  %v17467_v52 = vsel %vm9515_vm4, %v17336_v21, %v12488_v62 }
0x1bff   : > { %v12497_v58 = vpop.permute.xlu0 %12496 }
0x1c00   : > { %v12499_v43 = vunpack.i.h.bf16 %v12497_v58  ;;  %v12498_v36 = vunpack.i.l.bf16 %v12497_v58  ;;  %12199 = vmatpush3.bf16.msra.mxu0 %v12786_v57  ;;  %v18954_v58 = vld [vmem:[#allocation117_spill] sm:$0xff] }
0x1c01   : > { %12200 = vmatprep.subr.bf16.mxu0 %v12787_v30 }
0x1c02   : > { %v17353_v63 = vsel %vm18930_vm13, %v18929_v47, %v12499_v43  ;;  %v17357_v3 = vsel %vm18932_vm15, %v18931_v50, %v12498_v36  ;;  %v12502_v16 = vpop.permute.xlu1 %12501  ;;  %v18955_v43 = vpack.i.bf16 %v18953_v28, %v18954_v58  ;;  %vm18969_vm13 = vmmov %vm18934_vm2 }
0x1c03   : > { %v12504_v25 = vunpack.i.h.bf16 %v12502_v16  ;;  %v12503_v39 = vunpack.i.l.bf16 %v12502_v16  ;;  %vm18971_vm15 = vmmov %vm18934_vm2 }
0x1c04   : > { %12201 = vmatpush3.bf16.msra.mxu0 %v12787_v30 }
0x1c05   : > { %v17361_v41 = vsel %vm18934_vm2, %v18933_v23, %v12504_v25  ;;  %v17365_v4 = vsel %vm18936_vm3, %v18935_v51, %v12503_v39  ;;  %12202 = vmatprep.subr.bf16.mxu0 %v12788_v44  ;;  %v12507_v39 = vpop.permute.xlu0 %12506 }
0x1c06   : > { %v12512_v25 = vpop.permute.xlu1 %12511 }
0x1c08   : > { %12203 = vmatpush3.bf16.msra.mxu0 %v12788_v44 }
0x1c09   : > { %12204 = vmatprep.subr.bf16.mxu0 %v12789_v20  ;;  %v12517_v51 = vpop.permute.xlu0 %12516 }
0x1c0a   : > { %v12522_v23 = vpop.permute.xlu1 %12521  ;;  %v12519_v14 = vunpack.i.h.bf16 %v12517_v51 }
0x1c0b   : > { %v12524_v11 = vunpack.i.h.bf16 %v12522_v23 }
0x1c0c   : > { %12205 = vmatpush3.bf16.msra.mxu0 %v12789_v20 }
0x1c0d   : > { %v12527_v6 = vpop.permute.xlu0 %12526 }
0x1c0e   : > { %v17423_v54 = vpop.permute.xlu1 %12531  ;;  %v12528_v56 = vunpack.i.l.bf16 %v12527_v6 }
0x1c11   : > { %v17427_v33 = vpop.permute.xlu0 %12536 }
0x1c12   : > { %v17425_v38 = vpop.permute.xlu1 %12541 }
0x1c13   : > { %v12544_v28 = vunpack.i.h.bf16 %v17425_v38  ;;  %v12543_v58 = vunpack.i.l.bf16 %v17425_v38 }
0x1c15   : > { %v17431_v30 = vpop.permute.xlu0 %12546 }
0x1c16   : > { %v17429_v57 = vpop.permute.xlu1 %12551 }
0x1c19   : > { %v17435_v20 = vpop.permute.xlu0 %12556 }
0x1c1a   : > { %v17433_v44 = vpop.permute.xlu1 %12561 }
0x1cb0   : > { %v12176_v35 = vpop.f32.mrb[120].mxu1 }
0x1cb1   : > { %v8920_v13 = vpop.f32.mrb[121].mxu1 }
0x1cb2   : > { %v12177_v24 = vpop.f32.mrb[122].mxu1 }
0x1cb3   : > { %v12645_v34 = vpack.i.bf16 %v12177_v24, %v12176_v35  ;;  %v8923_v37 = vpop.f32.mrb[123].mxu1  ;;  %v17437_v35 = vpop.permute.xlu1 %12571 }
0x1cb4   : > { %v12650_v2 = vpack.i.bf16 %v8923_v37, %v8920_v13  ;;  %v17439_v13 = vpop.permute.xlu0 %12566 }
0x1cb5   : > { %12646 = vrot.lane.b32.xlu1 %v12645_v34, %s18937_s23  ;;  %v12568_v38 = vunpack.i.l.bf16 %v17439_v13 }
0x1cb6   : > { %12651 = vrot.lane.b32.xlu0 %v12650_v2, %s18937_s23 }
0x1cb7   : > { %v17441_v24 = vpop.permute.xlu1 %12581 }
0x1cb8   : > { %v17443_v34 = vpop.permute.xlu0 %12576 }
0x1cb9   : > { %12661 = vrot.lane.b32.xlu1 %v18940_v8, %s18814_s21 }
0x1cba   : > { %v12180_v29 = vpop.f32.mrb[124].mxu1  ;;  %12656 = vrot.lane.b32.xlu0 %v18943_v19, %s18814_s21  ;;  %v12494_v19 = vunpack.i.h.bf16 %v17349_v7  ;;  %s9853_s21 = sshll.u32 %s336_s24, 7 }
0x1cbb   : > { %v8936_v49 = vpop.f32.mrb[125].mxu1  ;;  %v17445_v37 = vpop.permute.xlu1 %12591  ;;  %s17661_s14 = scalar_lea.vmem [#allocation2], %s9853_s21 }
0x1cbc   : > { %v12181_v42 = vpop.f32.mrb[126].mxu1  ;;  %v17447_v2 = vpop.permute.xlu0 %12586  ;;  %s9757_s26 = sshll.u32 %s17661_s14, 4  ;;  %s17683_s26 = int_to_ptr.vmem [resolvable:$true] %s9757_s26 }
0x1cbd   : > { %v12665_v12 = vpack.i.bf16 %v12181_v42, %v12180_v29  ;;  %v8939_v55 = vpop.f32.mrb[127].mxu1  ;;  %s13322_s7 = scalar_lea.vmem %s17683_s26, 2048  ;;  %p13329_p1 = scmp.lt.s32.totalorder %s17683_s26, %s13327_s13 }
0x1cbe   : > { %v12670_v45 = vpack.i.bf16 %v8939_v55, %v8936_v49  ;;  %v12493_v49 = vunpack.i.l.bf16 %v17349_v7  ;;  %v12508_v55 = vunpack.i.l.bf16 %v12507_v39  ;;  %v17471_v7 = vsel %vm9515_vm4, %v17339_v15, %v12489_v5  ;;  %p13323_p12 = scmp.ne.s32.totalorder %s17683_s26, %s13322_s7  ;;  %p13330_p2 = scmp.lt.s32.totalorder %s13328_s11, %s13322_s7 }
0x1cbf   : > { %12666 = vrot.lane.b32.xlu1 %v12665_v12, %s18937_s23  ;;  %v17449_v46 = vpop.permute.xlu1 %12601  ;;  %v12509_v12 = vunpack.i.h.bf16 %v12507_v39  ;;  %v12558_v39 = vunpack.i.l.bf16 %v17435_v20 }
0x1cc0   : > { %12671 = vrot.lane.b32.xlu0 %v12670_v45, %s18937_s23  ;;  %v17451_v18 = vpop.permute.xlu0 %12596  ;;  %v12514_v45 = vunpack.i.h.bf16 %v12512_v25  ;;  %p13324_p13 = pnand %p13323_p12, %p13514_p4  ;;  %p13331_p3 = por %p13330_p2, %p13329_p1 }
0x1cc2   : > { %v12184_v60 = vpop.f32.mrb[128].mxu1  ;;  %v9455_v15 = vsel %vm9447_vm14, %v17361_v41, %v12514_v45  ;;  %v12539_v41 = vunpack.i.h.bf16 %v17427_v33  ;;  %p13325_p0 = pneg %p13324_p13 }
0x1cc3   : > { %12681 = vrot.lane.b32.xlu1 %v18946_v9, %s18821_s22  ;;  %v8952_v17 = vpop.f32.mrb[129].mxu1  ;;  %v17453_v8 = vpop.permute.xlu1 %12611  ;;  %v12518_v9 = vunpack.i.l.bf16 %v12517_v51 }
0x1cc4   : > { %12676 = vrot.lane.b32.xlu0 %v18949_v32, %s18821_s22  ;;  %v12185_v22 = vpop.f32.mrb[130].mxu1  ;;  %v17455_v29 = vpop.permute.xlu0 %12606  ;;  %v17475_v32 = vsel %vm9515_vm4, %v17344_v1, %v12493_v49  ;;  %p13332_p5 = pnand %p13331_p3, %p13325_p0 }
0x1cc5   : > { %v12685_v61 = vpack.i.bf16 %v12185_v22, %v12184_v60  ;;  %v8955_v59 = vpop.f32.mrb[131].mxu1  ;;  %v12513_v60 = vunpack.i.l.bf16 %v12512_v25  ;;  %v17479_v22 = vsel %vm9515_vm4, %v17347_v0, %v12494_v19  ;;  %v12529_v0 = vunpack.i.h.bf16 %v12527_v6 }
0x1cc6   : > { %v12690_v10 = vpack.i.bf16 %v8955_v59, %v8952_v17  ;;  %v12523_v17 = vunpack.i.l.bf16 %v12522_v23  ;;  %v9453_v59 = vsel %vm9447_vm14, %v17353_v63, %v12509_v12  ;;  %v12534_v63 = vunpack.i.h.bf16 %v17423_v54 }
0x1cc7   : > { %12686 = vrot.lane.b32.xlu1 %v12685_v61, %s18937_s23  ;;  %v17461_v42 = vpop.permute.xlu1 %12621  ;;  %v9452_v61 = vsel %vm9447_vm14, %v17357_v3, %v12508_v55  ;;  %v9454_v21 = vsel %vm9447_vm14, %v17365_v4, %v12513_v60  ;;  %v9470_v1 = vsel %vm9464_vm8, %v9453_v59, %v12519_v14  ;;  %v9472_v3 = vsel %vm9464_vm8, %v9455_v15, %v12524_v11  ;;  %v18956_v55 = vld [vmem:[#allocation38_spill] sm:$0xff]  ;;  %v18958_v60 = vld [vmem:[#allocation36_spill] sm:$0xff] }
0x1cc8   : > { %12691 = vrot.lane.b32.xlu0 %v12690_v10, %s18937_s23  ;;  %v17463_v48 = vpop.permute.xlu0 %12616  ;;  %v9469_v10 = vsel %vm9464_vm8, %v9452_v61, %v12518_v9  ;;  %v12533_v4 = vunpack.i.l.bf16 %v17423_v54  ;;  %v12559_v25 = vunpack.i.h.bf16 %v17435_v20  ;;  %v12564_v23 = vunpack.i.h.bf16 %v17433_v44  ;;  %v18960_v9 = vld [vmem:[#allocation37_spill] sm:$0xff] }
0x1cc9   : > { %v9486_v53 = vsel %vm9481_vm0, %v9469_v10, %v12528_v56  ;;  %v9489_v54 = vsel %vm9481_vm0, %v9472_v3, %v12534_v63  ;;  %v12563_v6 = vunpack.i.l.bf16 %v17433_v44  ;;  %v9439_v14 = vsel %vm18959_vm9, %v18958_v60, %v12558_v39  ;;  %v18962_v56 = vld [vmem:[#allocation35_spill] sm:$0xff] }
0x1cca   : > { %v12188_v40 = vpop.f32.mrb[132].mxu1  ;;  %v9506_v5 = vsel %vm9498_vm1, %v9489_v54, %v12544_v28  ;;  %v9440_v45 = vsel %vm18957_vm7, %v18956_v55, %v12559_v25  ;;  %v12569_v11 = vunpack.i.h.bf16 %v17439_v13  ;;  %v9456_v59 = vsel %vm9447_vm14, %v9439_v14, %v12568_v38 }
0x1ccb   : > { %12701 = vrot.lane.b32.xlu1 %v18952_v26, %s18828_s12  ;;  %v8968_v31 = vpop.f32.mrb[133].mxu1  ;;  %v17492_v27 = vpop.permute.xlu1 %12631  ;;  %v9441_v61 = vsel %vm18963_vm12, %v18962_v56, %v12563_v6  ;;  %v12573_v15 = vunpack.i.l.bf16 %v17437_v35  ;;  %v12579_v10 = vunpack.i.h.bf16 %v17443_v34  ;;  %v12583_v3 = vunpack.i.l.bf16 %v17441_v24 }
0x1ccc   : > { %12696 = vrot.lane.b32.xlu0 %v18955_v43, %s18828_s12  ;;  %v12189_v36 = vpop.f32.mrb[134].mxu1  ;;  %v17498_v26 = vpop.permute.xlu0 %12626  ;;  %v12549_v43 = vunpack.i.h.bf16 %v17431_v30  ;;  %v12589_v13 = vunpack.i.h.bf16 %v17447_v2  ;;  %v12604_v25 = vunpack.i.h.bf16 %v17449_v46  ;;  %v12608_v60 = vunpack.i.l.bf16 %v17455_v29 }
0x1ccd   : > { %v12710_v47 = vpack.i.bf16 %v12189_v36, %v12188_v40  ;;  %v8971_v50 = vpop.f32.mrb[135].mxu1  ;;  %v9471_v40 = vsel %vm9464_vm8, %v9454_v21, %v12523_v17  ;;  %v12548_v36 = vunpack.i.l.bf16 %v17431_v30  ;;  %v9442_v17 = vsel %vm18961_vm11, %v18960_v9, %v12564_v23 }
0x1cce   : > { %v12705_v16 = vpack.i.bf16 %v8971_v50, %v8968_v31  ;;  %v12538_v31 = vunpack.i.l.bf16 %v17427_v33  ;;  %v12553_v50 = vunpack.i.l.bf16 %v17429_v57  ;;  %v9488_v51 = vsel %vm9481_vm0, %v9471_v40, %v12533_v4 }
0x1ccf   : > { %12711 = vrot.lane.b32.xlu1 %v12710_v47, %s18937_s23  ;;  %v12554_v47 = vunpack.i.h.bf16 %v17429_v57  ;;  %v9505_v30 = vsel %vm9498_vm1, %v9488_v51, %v12543_v58  ;;  %v17520_v62 = vpop.permute.xlu1 %12641  ;;  %v12574_v21 = vunpack.i.h.bf16 %v17437_v35  ;;  %v12584_v40 = vunpack.i.h.bf16 %v17441_v24 }
0x1cd0   : > { %12706 = vrot.lane.b32.xlu0 %v12705_v16, %s18937_s23  ;;  %v9487_v16 = vsel %vm9481_vm0, %v9470_v1, %v12529_v0  ;;  %v9503_v33 = vsel %vm9498_vm1, %v9486_v53, %v12538_v31  ;;  %v17529_v44 = vsel %vm9515_vm4, %v9505_v30, %v12553_v50  ;;  %v17534_v12 = vpop.permute.xlu0 %12636  ;;  %v12578_v1 = vunpack.i.l.bf16 %v17443_v34 }
0x1cd1   : > { %v9504_v57 = vsel %vm9498_vm1, %v9487_v16, %v12539_v41  ;;  %v17523_v20 = vsel %vm9515_vm4, %v9503_v33, %v12548_v36  ;;  %v17532_v49 = vsel %vm9515_vm4, %v9506_v5, %v12554_v47  ;;  %v12588_v41 = vunpack.i.l.bf16 %v17447_v2 }
0x1cd2   : > { %v17526_v19 = vsel %vm9515_vm4, %v9504_v57, %v12549_v43  ;;  %v12594_v31 = vunpack.i.h.bf16 %v17445_v37  ;;  %v12593_v58 = vunpack.i.l.bf16 %v17445_v37  ;;  %v12599_v34 = vunpack.i.h.bf16 %v17451_v18 }
0x1cd3   : > { %v12598_v36 = vunpack.i.l.bf16 %v17451_v18  ;;  %v9457_v37 = vsel %vm9447_vm14, %v9440_v45, %v12569_v11  ;;  %v9458_v18 = vsel %vm9447_vm14, %v9441_v61, %v12573_v15  ;;  %v9459_v23 = vsel %vm9447_vm14, %v9442_v17, %v12574_v21 }
0x1cd4   : > { %v9473_v51 = vsel %vm9464_vm8, %v9456_v59, %v12578_v1  ;;  %v9475_v54 = vsel %vm9464_vm8, %v9458_v18, %v12583_v3  ;;  %v12609_v45 = vunpack.i.h.bf16 %v17455_v29  ;;  %v12614_v14 = vunpack.i.h.bf16 %v17453_v8 }
0x1cd5   : > { %v9490_v6 = vsel %vm9481_vm0, %v9473_v51, %v12588_v41  ;;  %v12613_v9 = vunpack.i.l.bf16 %v17453_v8  ;;  %v12619_v17 = vunpack.i.h.bf16 %v17463_v48  ;;  %v12618_v11 = vunpack.i.l.bf16 %v17463_v48 }
0x1cd6   : > { %v9507_v57 = vsel %vm9498_vm1, %v9490_v6, %v12598_v36  ;;  %v12624_v61 = vunpack.i.h.bf16 %v17461_v42  ;;  %v12623_v59 = vunpack.i.l.bf16 %v17461_v42  ;;  %v12629_v1 = vunpack.i.h.bf16 %v17498_v26 }
0x1cd7   : > { %v12628_v29 = vunpack.i.l.bf16 %v17498_v26  ;;  %v12634_v8 = vunpack.i.h.bf16 %v17492_v27  ;;  %v12633_v3 = vunpack.i.l.bf16 %v17492_v27  ;;  %v12638_v42 = vunpack.i.l.bf16 %v17534_v12 }
0x1cd8   : > { %v9524_v41 = vsel %vm9515_vm4, %v9507_v57, %v12608_v60 }
0x1d27   : > { %v12647_v0 = vpop.permute.xlu1 %12646 }
0x1d28   : > { %v12649_v53 = vunpack.i.h.bf16 %v12647_v0  ;;  %v12648_v63 = vunpack.i.l.bf16 %v12647_v0  ;;  %v12652_v4 = vpop.permute.xlu0 %12651 }
0x1d29   : > { %v12654_v35 = vunpack.i.h.bf16 %v12652_v4  ;;  %v12653_v28 = vunpack.i.l.bf16 %v12652_v4 }
0x1d2a   : > { %v9535_v43 = vsel %vm9532_vm10, %v17475_v32, %v12648_v63  ;;  %v9536_v24 = vsel %vm9532_vm10, %v17479_v22, %v12649_v53  ;;  %v12603_v32 = vunpack.i.l.bf16 %v17449_v46  ;;  %v9492_v46 = vsel %vm9481_vm0, %v9475_v54, %v12593_v58 }
0x1d2b   : > { %v9550_v47 = vpack.c.bf16 %v9536_v24, %v9535_v43  ;;  %v17562_v50 = vpop.permute.xlu1 %12661  ;;  %v9533_v2 = vsel %vm9532_vm10, %v17467_v52, %v12653_v28  ;;  %v9534_v16 = vsel %vm9532_vm10, %v17471_v7, %v12654_v35  ;;  %v9474_v52 = vsel %vm9464_vm8, %v9457_v37, %v12579_v10  ;;  %v18964_v28 = vld [vmem:[#allocation42_spill] sm:$0xff] }
0x1d2c   : > { %v17571_v39 = vpop.permute.xlu0 %12656  ;;  %v9549_v22 = vpack.c.bf16 %v9534_v16, %v9533_v2  ;;  %v9476_v7 = vsel %vm9464_vm8, %v9459_v23, %v12584_v40  ;;  %v9491_v38 = vsel %vm9481_vm0, %v9474_v52, %v12589_v13  ;;  %v9509_v5 = vsel %vm9498_vm1, %v9492_v46, %v12603_v32 }
0x1d2d   : > { %v9493_v33 = vsel %vm9481_vm0, %v9476_v7, %v12594_v31  ;;  %v9508_v30 = vsel %vm9498_vm1, %v9491_v38, %v12599_v34  ;;  %v9526_v31 = vsel %vm9515_vm4, %v9509_v5, %v12613_v9  ;;  %v9444_v58 = vsel %vm18965_vm5, %v18964_v28, %v12619_v17  ;;  %v18966_v34 = vld [vmem:[#allocation40_spill] sm:$0xff] }
0x1d2e   : > { %12206 = vmatprep.mubr.bf16.mxu0 %v9549_v22  ;;  %v9510_v55 = vsel %vm9498_vm1, %v9493_v33, %v12604_v25  ;;  %v9525_v27 = vsel %vm9515_vm4, %v9508_v30, %v12609_v45  ;;  %v9443_v43 = vsel %vm18967_vm6, %v18966_v34, %v12618_v11  ;;  %v9461_v2 = vsel %vm9447_vm14, %v9444_v58, %v12629_v1 }
0x1d2f   : > { %12207 = vmatmul.mubr.bf16.vlgmr.msra.gmra.mrb[120].mxu0 %v9550_v47  ;;  %v9460_v47 = vsel %vm9447_vm14, %v9443_v43, %v12628_v29  ;;  %v12639_v16 = vunpack.i.h.bf16 %v17534_v12  ;;  %v12644_v22 = vunpack.i.h.bf16 %v17520_v62  ;;  %v12643_v23 = vunpack.i.l.bf16 %v17520_v62 }
0x1d30   : > { %v9477_v32 = vsel %vm9464_vm8, %v9460_v47, %v12638_v42  ;;  %v12664_v51 = vunpack.i.h.bf16 %v17562_v50  ;;  %v12663_v12 = vunpack.i.l.bf16 %v17562_v50  ;;  %v12659_v6 = vunpack.i.h.bf16 %v17571_v39 }
0x1d31   : > { %v12667_v56 = vpop.permute.xlu1 %12666  ;;  %v12658_v33 = vunpack.i.l.bf16 %v17571_v39  ;;  %v9478_v50 = vsel %vm9464_vm8, %v9461_v2, %v12639_v16 }
0x1d32   : > { %v12669_v21 = vunpack.i.h.bf16 %v12667_v56  ;;  %v12668_v15 = vunpack.i.l.bf16 %v12667_v56  ;;  %v12672_v10 = vpop.permute.xlu0 %12671 }
0x1d33   : > { %v12674_v40 = vunpack.i.h.bf16 %v12672_v10  ;;  %v12673_v0 = vunpack.i.l.bf16 %v12672_v10 }
0x1d34   : > { %v9540_v48 = vsel %vm9532_vm10, %v17532_v49, %v12669_v21  ;;  %v9539_v13 = vsel %vm9532_vm10, %v17529_v44, %v12668_v15  ;;  %v9527_v44 = vsel %vm9515_vm4, %v9510_v55, %v12614_v14 }
0x1d35   : > { %v9552_v53 = vpack.c.bf16 %v9540_v48, %v9539_v13  ;;  %v12682_v63 = vpop.permute.xlu1 %12681  ;;  %v9537_v4 = vsel %vm9532_vm10, %v17523_v20, %v12673_v0  ;;  %v9538_v26 = vsel %vm9532_vm10, %v17526_v19, %v12674_v40  ;;  %v18968_v20 = vld [vmem:[#allocation41_spill] sm:$0xff]  ;;  %v18970_v19 = vld [vmem:[#allocation39_spill] sm:$0xff]  ;;  %v9494_v40 = vsel %vm9481_vm0, %v9477_v32, %v12658_v33 }
0x1d36   : > { %v12677_v49 = vpop.permute.xlu0 %12676  ;;  %v9551_v35 = vpack.c.bf16 %v9538_v26, %v9537_v4  ;;  %v9446_v24 = vsel %vm18969_vm13, %v18968_v20, %v12624_v61  ;;  %v9445_v36 = vsel %vm18971_vm15, %v18970_v19, %v12623_v59  ;;  %v12684_v57 = vunpack.i.h.bf16 %v12682_v63 }
0x1d37   : > { %v9462_v37 = vsel %vm9447_vm14, %v9445_v36, %v12633_v3  ;;  %v9463_v25 = vsel %vm9447_vm14, %v9446_v24, %v12634_v8  ;;  %v12683_v55 = vunpack.i.l.bf16 %v12682_v63  ;;  %v12679_v9 = vunpack.i.h.bf16 %v12677_v49  ;;  %v10357_v24 = vld [vmem:[%s17741_s5] ss:$0 sm:$0xff] }
0x1d38   : > { %12210 = vmatprep.mubr.bf16.mxu0 %v9551_v35  ;;  %v12678_v17 = vunpack.i.l.bf16 %v12677_v49  ;;  %v9479_v39 = vsel %vm9464_vm8, %v9462_v37, %v12643_v23  ;;  %v9480_v61 = vsel %vm9464_vm8, %v9463_v25, %v12644_v22  ;;  %v9495_v0 = vsel %vm9481_vm0, %v9478_v50, %v12659_v6 }
0x1d39   : > { %v12687_v18 = vpop.permute.xlu1 %12686  ;;  %12211 = vmatmul.mubr.bf16.gmra.mrb[124].mxu0 %v9552_v53  ;;  %v9497_v15 = vsel %vm9481_vm0, %v9480_v61, %v12664_v51  ;;  %v9496_v10 = vsel %vm9481_vm0, %v9479_v39, %v12663_v12  ;;  %v9512_v42 = vsel %vm9498_vm1, %v9495_v0, %v12679_v9 }
0x1d3a   : > { %v12689_v52 = vunpack.i.h.bf16 %v12687_v18  ;;  %v12688_v54 = vunpack.i.l.bf16 %v12687_v18  ;;  %v12692_v7 = vpop.permute.xlu0 %12691  ;;  %v9514_v8 = vsel %vm9498_vm1, %v9497_v15, %v12684_v57  ;;  %v9513_v3 = vsel %vm9498_vm1, %v9496_v10, %v12683_v55 }
0x1d3b   : > { %v12694_v38 = vunpack.i.h.bf16 %v12692_v7  ;;  %v12693_v46 = vunpack.i.l.bf16 %v12692_v7  ;;  %v9511_v13 = vsel %vm9498_vm1, %v9494_v40, %v12678_v17 }
0x1d3c   : > { %v9544_v30 = vsel %vm9532_vm10, %v9527_v44, %v12689_v52  ;;  %v9543_v5 = vsel %vm9532_vm10, %v9526_v31, %v12688_v54 }
0x1d3d   : > { %v9554_v62 = vpack.c.bf16 %v9544_v30, %v9543_v5  ;;  %v12702_v45 = vpop.permute.xlu1 %12701  ;;  %v9541_v60 = vsel %vm9532_vm10, %v9524_v41, %v12693_v46  ;;  %v9542_v14 = vsel %vm9532_vm10, %v9525_v27, %v12694_v38 }
0x1d3e   : > { %v12697_v11 = vpop.permute.xlu0 %12696  ;;  %v9553_v56 = vpack.c.bf16 %v9542_v14, %v9541_v60  ;;  %v12704_v59 = vunpack.i.h.bf16 %v12702_v45  ;;  %v12703_v21 = vunpack.i.l.bf16 %v12702_v45 }
0x1d3f   : > { %v12699_v1 = vunpack.i.h.bf16 %v12697_v11  ;;  %v12698_v29 = vunpack.i.l.bf16 %v12697_v11 }
0x1d40   : > { %12214 = vmatprep.mubr.bf16.mxu0 %v9553_v56  ;;  %v9531_v26 = vsel %vm9515_vm4, %v9514_v8, %v12704_v59  ;;  %v9530_v41 = vsel %vm9515_vm4, %v9513_v3, %v12703_v21 }
0x1d41   : > { %v12712_v48 = vpop.permute.xlu1 %12711  ;;  %12215 = vmatmul.mubr.bf16.gmra.mrb[128].mxu0 %v9554_v62  ;;  %v9528_v49 = vsel %vm9515_vm4, %v9511_v13, %v12698_v29  ;;  %v9529_v35 = vsel %vm9515_vm4, %v9512_v42, %v12699_v1 }
0x1d42   : > { %v12714_v53 = vunpack.i.h.bf16 %v12712_v48  ;;  %v12713_v63 = vunpack.i.l.bf16 %v12712_v48  ;;  %v12707_v4 = vpop.permute.xlu0 %12706 }
0x1d43   : > { %v12709_v27 = vunpack.i.h.bf16 %v12707_v4  ;;  %v12708_v31 = vunpack.i.l.bf16 %v12707_v4 }
0x1d44   : > { %v9548_v44 = vsel %vm9532_vm10, %v9531_v26, %v12714_v53  ;;  %v9547_v28 = vsel %vm9532_vm10, %v9530_v41, %v12713_v63 }
0x1d45   : > { %v9556_v58 = vpack.c.bf16 %v9548_v44, %v9547_v28  ;;  %v9545_v34 = vsel %vm9532_vm10, %v9528_v49, %v12708_v31  ;;  %v9546_v43 = vsel %vm9532_vm10, %v9529_v35, %v12709_v27 }
0x1d46   : > { %v9555_v20 = vpack.c.bf16 %v9546_v43, %v9545_v34 }
0x1d48   : > { %12218 = vmatprep.mubr.bf16.mxu0 %v9555_v20 }
0x1d49   : > { %12219 = vmatmul.mubr.bf16.gmra.mrb[132].mxu0 %v9556_v58 }
0x1e02   : > { %v12208_v19 = vpop.f32.mrb[120].mxu0 }
0x1e03   : > { %v9671_v36 = vadd.f32 %v12208_v19, %v10357_v24  ;;  %v9662_v47 = vpop.f32.mrb[121].mxu0 }
0x1e04   : > { %v9663_v2 = vadd.f32 %v10357_v24, %v9662_v47  ;;  %v12209_v16 = vpop.f32.mrb[122].mxu0 }
0x1e05   : > { %9727 = vst [vmem:[%s17661_s14 + $0x10] sm:$0xff] %v9671_v36  ;;  %v9674_v37 = vadd.f32 %v12209_v16, %v10357_v24  ;;  %v9665_v25 = vpop.f32.mrb[123].mxu0 }
0x1e06   : > { %9725 = vst [vmem:[%s17661_s14] sm:$0xff] %v9663_v2  ;;  %v9666_v32 = vadd.f32 %v10357_v24, %v9665_v25 }
0x1e07   : > { %9728 = vst [vmem:[%s17661_s14 + $0x18] sm:$0xff] %v9674_v37 }
0x1e08   : > { %9726 = vst [vmem:[%s17661_s14 + $0x8] sm:$0xff] %v9666_v32 }
0x1e0c   : > { %v12212_v22 = vpop.f32.mrb[124].mxu0 }
0x1e0d   : > { %v9687_v18 = vadd.f32 %v12212_v22, %v10357_v24  ;;  %v9678_v23 = vpop.f32.mrb[125].mxu0 }
0x1e0e   : > { %v9679_v51 = vadd.f32 %v10357_v24, %v9678_v23  ;;  %v12213_v52 = vpop.f32.mrb[126].mxu0 }
0x1e0f   : > { %9731 = vst [vmem:[%s17661_s14 + $0x30] sm:$0xff] %v9687_v18  ;;  %v9690_v54 = vadd.f32 %v12213_v52, %v10357_v24  ;;  %v9681_v7 = vpop.f32.mrb[127].mxu0 }
0x1e10   : > { %9729 = vst [vmem:[%s17661_s14 + $0x20] sm:$0xff] %v9679_v51  ;;  %v9682_v12 = vadd.f32 %v10357_v24, %v9681_v7 }
0x1e11   : > { %9732 = vst [vmem:[%s17661_s14 + $0x38] sm:$0xff] %v9690_v54 }
0x1e12   : > { %9730 = vst [vmem:[%s17661_s14 + $0x28] sm:$0xff] %v9682_v12 }
0x1e14   : > { %v12216_v6 = vpop.f32.mrb[128].mxu0 }
0x1e15   : > { %v9703_v38 = vadd.f32 %v12216_v6, %v10357_v24  ;;  %v9694_v46 = vpop.f32.mrb[129].mxu0 }
0x1e16   : > { %v9695_v33 = vadd.f32 %v10357_v24, %v9694_v46  ;;  %v12217_v57 = vpop.f32.mrb[130].mxu0 }
0x1e17   : > { %9735 = vst [vmem:[%s17661_s14 + $0x50] sm:$0xff] %v9703_v38  ;;  %v9706_v30 = vadd.f32 %v12217_v57, %v10357_v24  ;;  %v9697_v5 = vpop.f32.mrb[131].mxu0 }
0x1e18   : > { %9733 = vst [vmem:[%s17661_s14 + $0x40] sm:$0xff] %v9695_v33  ;;  %v9698_v55 = vadd.f32 %v10357_v24, %v9697_v5 }
0x1e19   : > { %9736 = vst [vmem:[%s17661_s14 + $0x58] sm:$0xff] %v9706_v30 }
0x1e1a   : > { %9734 = vst [vmem:[%s17661_s14 + $0x48] sm:$0xff] %v9698_v55 }
0x1e1c   : > { %v12220_v62 = vpop.f32.mrb[132].mxu0 }
0x1e1d   : > { %v9719_v45 = vadd.f32 %v12220_v62, %v10357_v24  ;;  %v9710_v60 = vpop.f32.mrb[133].mxu0 }
0x1e1e   : > { %v9711_v14 = vadd.f32 %v10357_v24, %v9710_v60  ;;  %v12221_v50 = vpop.f32.mrb[134].mxu0 }
0x1e1f   : > { %9739 = vst [vmem:[%s17661_s14 + $0x70] sm:$0xff] %v9719_v45  ;;  %v9722_v9 = vadd.f32 %v12221_v50, %v10357_v24  ;;  %v9713_v17 = vpop.f32.mrb[135].mxu0 }
0x1e20   : > { %9737 = vst [vmem:[%s17661_s14 + $0x60] sm:$0xff] %v9711_v14  ;;  %v9714_v11 = vadd.f32 %v10357_v24, %v9713_v17 }
0x1e21   : > { %9740 = vst [vmem:[%s17661_s14 + $0x78] sm:$0xff] %v9722_v9 }
0x1e22   : > { %9738 = vst [vmem:[%s17661_s14 + $0x68] sm:$0xff] %v9714_v11 }
0x1e23   : > { %13335 = shalt.err (!%p13332_p5)
}
0x1e24   : > { %s13336_s10 = scalar_lea.hbm %s17681_s0, 2048  ;;  %s13340_s29 = scalar_lea.hbm %s17744_s8, 4096 }
0x1e25   : > { %p13337_p6 = scmp.ne.s32.totalorder %s17681_s0, %s13336_s10  ;;  %p13341_p10 = scmp.lt.u32.totalorder %s17681_s0, %s17744_s8 }
0x1e26   : > { %p13342_p11 = scmp.lt.u32.totalorder %s13340_s29, %s13336_s10  ;;  %p13344_p13 = scmp.lt.u32.totalorder %s13336_s10, %s17681_s0 }
0x1e27   : > { %p13338_p7 = pnand %p13337_p6, %p13514_p4 }
0x1e28   : > { %p13343_p12 = por %p13342_p11, %p13341_p10 }
0x1e29   : > { %p13339_p9 = pneg %p13338_p7 }
0x1e2a   : > { %p13345_p0 = por %p13344_p13, %p13343_p12 }
0x1e2c   : > { %p13346_p1 = pnand %p13345_p0, %p13339_p9 }
0x1e2e   : > { %13349 = shalt.err (!%p13346_p1)
}
0x1e2f   : > { %s13427_s23 = smov 128   ;;  %s13428_s24 = smov 8  }
0x1e30   : > { %12352 = dma.vmem_to_hbm [thread:$0]  (%p13514_p4), %s17683_s26, 2048, %s17681_s0, %s17690_s30, %s13427_s23, %s13427_s23, %s13428_s24  }
0x1e31 PF: > { %s18972_s21 = sld [smem:[#allocation8_spill]]  ;;  %s18973_s22 = sld [smem:[#allocation5_spill]] }
0x1e37   : > { %p12358_p2 = scmp.ge.s32.totalorder %s18972_s21, 2  ;;  %s9772_s14 = sand.u32 1, %s18973_s22  }
0x1e38   : > { %s9773_s25 = scalar_lea.sflag [#allocation3], %s9772_s14 }
0x1e39   : > { %p12355_p3 = pnand %p12358_p2, %p13521_p8 }
0x1e3b   : > { %13375 = dma.done.wait (!%p12355_p3), %s9773_s25, 2048  }
0x1e3c   : > { %13377 = vsyncadd (!%p12355_p3), %s9773_s25, 4294965248  ;;  %s21_s10 = sadd.s32 1, %s18972_s21   ;;  %s18975_s19 = sld [smem:[#allocation6_spill]] }
0x1e3d   : > { %p18_p5 = scmp.ge.s32.totalorder %s21_s10, 4   ;;  %s18976_s29 = sld [smem:[#allocation11_spill]] }
0x1e3e   : > { %s18977_s30 = sld [smem:[#allocation7_spill]]  ;;  %s18978_s9 = sld [smem:[#allocation9_spill]] }
0x1e3f   : > { %s18979_s27 = smov %s13384_s28  ;;  %20 = sbr.rel (!%p18_p5) target bundleno = 7 (0x7), region = 97 }
0x1e42   : > { %s18980_s28 = smov %s18975_s19 }
0x1e46   :  { %9778 = vsyncpa [#allocation3], 1 }
0x1e47   :  { %9780 = vsyncpa [#allocation3 + $0x1], 1 }

</bundles_post_ra>
